<compile_context>
chip_gen: v7x
topology: tpu7x:2x2x1
jax: 0.10.0
libtpu: 0.0.40
codegen_flags: <defaults>
</compile_context>

<pallas_src>
import jax
import jax.numpy as jnp
from jax.experimental import pallas as pl
from jax.experimental.pallas import tpu as pltpu

BN_EPS = 1e-5


# ----------------------------------------------------------------------------
# Pallas kernel: the whole residual block for one small (B, H, W, C) tensor.
# Everything fits in VMEM, so a single grid step keeps all tensors resident.
# ----------------------------------------------------------------------------
def chess_residual_block_kernel(x_ref, w1_ref, g1_ref, b1_ref,
                                w2_hbm, g2_ref, b2_ref,
                                wqkv_hbm, bqkv_ref,
                                out_ref,
                                pad_scr, col_scr, w2_vmem, wqkv_vmem, dma_sem):
    B, H, W, C = x_ref.shape
    M = B * H * W
    HW = H * W
    CQP = (wqkv_vmem.shape[1] - C) // 2          # lane-padded q/k width (>=128)
    Cq = C // 8                                  # true attention head width
    attn_scale = float(Cq) ** -0.5

    # ---- overlap w2 / wqkv weight DMA with conv1 (+BN1) ----------------------
    w2_cp = pltpu.make_async_copy(w2_hbm, w2_vmem, dma_sem.at[0])
    wqkv_cp = pltpu.make_async_copy(wqkv_hbm, wqkv_vmem, dma_sem.at[1])
    w2_cp.start()
    wqkv_cp.start()

    # Zero the padded-activation scratch once; only the interior is rewritten
    # before each conv, so the 1-pixel halo stays zero for both convolutions.
    # (Halo-only zeroing would save ~50 vreg stores -- negligible here.)
    pad_scr[...] = jnp.zeros_like(pad_scr)

    def build_cols():
        # im2col: 9 shifted copies (pad_scr -> col_scr), cast to bf16 on store
        # so the MXU sees bf16 operands and the vst volume is halved.
        for ky in range(3):
            for kx in range(3):
                t = ky * 3 + kx
                tap = pad_scr[:, pl.ds(ky, H), pl.ds(kx, W), :]
                col_scr[:, pl.ds(t * C, C)] = (
                    tap.reshape(M, C).astype(col_scr.dtype))

    def batchnorm(h, g, b):
        # train-mode BatchNorm2d, centered variance (robust to cancellation),
        # folded into a single per-channel scale/shift on the normalize side.
        inv_n = 1.0 / float(M)
        mean = jnp.sum(h, axis=0, keepdims=True) * inv_n          # (1, C)
        d = h - mean
        var = jnp.sum(d * d, axis=0, keepdims=True) * inv_n       # biased var
        scale = g * jax.lax.rsqrt(var + BN_EPS)
        return d * scale + b

    # --- conv1 -> bn1 -> relu --------------------------------------------------
    pad_scr[:, pl.ds(1, H), pl.ds(1, W), :] = x_ref[...]
    build_cols()
    h1 = jnp.dot(col_scr[...], w1_ref[...],
                 preferred_element_type=jnp.float32)               # (M, C) f32
    h1 = jnp.maximum(batchnorm(h1, g1_ref[...], b1_ref[...]), 0.0)

    # --- conv2 -> bn2 ------------------------------------------------------------
    pad_scr[:, pl.ds(1, H), pl.ds(1, W), :] = h1.reshape(B, H, W, C)
    build_cols()
    w2_cp.wait()                                  # weights needed only now
    h2 = jnp.dot(col_scr[...], w2_vmem[...],
                 preferred_element_type=jnp.float32)               # (M, C) f32
    h2 = batchnorm(h2, g2_ref[...], b2_ref[...])

    # Park h2 in the VMEM-resident output block so it is not live (16 vregs)
    # across the whole attention section; reloaded at the final store.
    out_ref[...] = h2

    # --- SpatialAttention: fused, lane-aligned [v | q_pad | k_pad] projection ----
    wqkv_cp.wait()
    qkv = (jnp.dot(h2.astype(jnp.bfloat16), wqkv_vmem[...],
                   preferred_element_type=jnp.float32)
           + bqkv_ref[...])                                        # (M, C + 2*CQP)
    # Slices start at lane offsets 0 / C / C+CQP, all multiples of 128.
    v = qkv[:, :C].reshape(B, HW, C)
    q = qkv[:, C:C + CQP].reshape(B, HW, CQP)          # cols >= Cq are exactly 0
    k = qkv[:, C + CQP:C + 2 * CQP].reshape(B, HW, CQP)

    logits = jnp.einsum('bqc,bkc->bqk', q, k,
                        preferred_element_type=jnp.float32) * attn_scale
    mmax = jnp.max(logits, axis=-1, keepdims=True)
    p = jnp.exp(logits - mmax)
    attn = p * pl.reciprocal(jnp.sum(p, axis=-1, keepdims=True), approx=True)
    a = jnp.einsum('bqk,bkc->bqc', attn, v,
                   preferred_element_type=jnp.float32).reshape(M, C)

    # attention-internal residual (h2, parked in out_ref) + outer residual + ReLU.
    out_ref[...] = jnp.maximum(out_ref[...] + a + x_ref[...].reshape(M, C), 0.0)


# ----------------------------------------------------------------------------
# Wrapper: reshapes / fuses / casts the weights (outside the kernel) and launches.
# ----------------------------------------------------------------------------
@jax.jit
def chess_residual_block(x_nhwc, params):
    B, H, W, C = x_nhwc.shape
    M = B * H * W
    Cq = C // 8
    CQP = ((Cq + 127) // 128) * 128               # lane-aligned padded q/k width

    # im2col weight layout: (3, 3, Cin, Cout) -> (9*Cin, Cout); row index is
    # (ky*3 + kx)*C + cin, matching the kernel's column-construction order.
    w1 = params['w1'].reshape(9 * C, C).astype(jnp.bfloat16)
    w2 = params['w2'].reshape(9 * C, C).astype(jnp.bfloat16)

    def pad_cols(w, b, width):
        wpad = jnp.zeros((C, width), jnp.float32).at[:, :w.shape[1]].set(w)
        bpad = jnp.zeros((1, width), jnp.float32).at[:, :b.shape[1]].set(b)
        return wpad, bpad

    wq_p, bq_p = pad_cols(params['wq'], params['bq'], CQP)
    wk_p, bk_p = pad_cols(params['wk'], params['bk'], CQP)
    # fused [v | q_pad | k_pad]: zero columns contribute exactly 0 to q k^T.
    wqkv = jnp.concatenate([params['wv'], wq_p, wk_p], axis=1).astype(jnp.bfloat16)
    bqkv = jnp.concatenate([params['bv'], bq_p, bk_p], axis=1)     # f32

    args = (x_nhwc, w1, params['g1'], params['b1'],
            w2, params['g2'], params['b2'], wqkv, bqkv)

    def full_spec(a):
        nd = a.ndim
        return pl.BlockSpec(a.shape, lambda i, _nd=nd: (0,) * _nd)

    in_specs = [
        full_spec(x_nhwc),                        # x
        full_spec(w1),                            # w1 (needed immediately)
        full_spec(params['g1']),
        full_spec(params['b1']),
        pl.BlockSpec(memory_space=pl.ANY),        # w2   -> manual overlapped DMA
        full_spec(params['g2']),
        full_spec(params['b2']),
        pl.BlockSpec(memory_space=pl.ANY),        # wqkv -> manual overlapped DMA
        full_spec(bqkv),
    ]

    out2d = pl.pallas_call(
        chess_residual_block_kernel,
        out_shape=jax.ShapeDtypeStruct((M, C), jnp.float32),   # lane-dense slab
        grid=(1,),
        in_specs=in_specs,
        out_specs=pl.BlockSpec((M, C), lambda i: (0, 0)),
        scratch_shapes=[
            pltpu.VMEM((B, H + 2, W + 2, C), jnp.float32),     # zero-padded act
            pltpu.VMEM((M, 9 * C), jnp.bfloat16),              # im2col matrix
            pltpu.VMEM((9 * C, C), jnp.bfloat16),              # w2 landing buffer
            pltpu.VMEM((C, C + 2 * CQP), jnp.bfloat16),        # wqkv landing buffer
            pltpu.SemaphoreType.DMA((2,)),
        ],
        compiler_params=pltpu.CompilerParams(
            dimension_semantics=("arbitrary",)),
    )(*args)
    return out2d.reshape(B, H, W, C)


# ----------------------------------------------------------------------------
# Deterministic synthetic parameters (mirrors the module's shapes).
# ----------------------------------------------------------------------------
def init_params(key, C):
    Cq = C // 8
    ks = jax.random.split(key, 12)

    def nrm(k, shape, s=0.05):
        return jax.random.normal(k, shape, jnp.float32) * s

    return dict(
        # conv1 / conv2: 3x3, no bias (HWIO)
        w1=nrm(ks[0], (3, 3, C, C)),
        g1=1.0 + 0.1 * jax.random.normal(ks[1], (1, C), jnp.float32),
        b1=0.1 * jax.random.normal(ks[2], (1, C), jnp.float32),
        w2=nrm(ks[3], (3, 3, C, C)),
        g2=1.0 + 0.1 * jax.random.normal(ks[4], (1, C), jnp.float32),
        b2=0.1 * jax.random.normal(ks[5], (1, C), jnp.float32),
        # spatial attention 1x1 convs (with bias), weights stored as (Cin, Cout)
        wq=nrm(ks[6], (C, Cq)),
        bq=0.1 * jax.random.normal(ks[7], (1, Cq), jnp.float32),
        wk=nrm(ks[8], (C, Cq)),
        bk=0.1 * jax.random.normal(ks[9], (1, Cq), jnp.float32),
        wv=nrm(ks[10], (C, C)),
        bv=0.1 * jax.random.normal(ks[11], (1, C), jnp.float32),
    )


# ----------------------------------------------------------------------------
# Pure-JAX f32 reference (same math, no Pallas) for a correctness check.
# ----------------------------------------------------------------------------
def reference_forward(x_nhwc, params):
    B, H, W, C = x_nhwc.shape
    Cq = params['wq'].shape[1]

    def conv3x3(h, w):
        hp = jnp.pad(h, ((0, 0), (1, 1), (1, 1), (0, 0)))
        acc = jnp.zeros((B, H, W, C), jnp.float32)
        for ky in range(3):
            for kx in range(3):
                acc = acc + jnp.einsum('bhwc,cd->bhwd',
                                       hp[:, ky:ky + H, kx:kx + W, :], w[ky, kx])
        return acc

    def bn(h, g, b):
        mean = jnp.mean(h, axis=(0, 1, 2), keepdims=True)
        var = jnp.mean((h - mean) ** 2, axis=(0, 1, 2), keepdims=True)
        return ((h - mean) / jnp.sqrt(var + BN_EPS)
                * g.reshape(1, 1, 1, C) + b.reshape(1, 1, 1, C))

    h = jnp.maximum(bn(conv3x3(x_nhwc, params['w1']), params['g1'], params['b1']), 0.)
    h2 = bn(conv3x3(h, params['w2']), params['g2'], params['b2'])

    feat = h2.reshape(B, H * W, C)
    q = feat @ params['wq'] + params['bq'].reshape(1, 1, Cq)
    k = feat @ params['wk'] + params['bk'].reshape(1, 1, Cq)
    v = feat @ params['wv'] + params['bv'].reshape(1, 1, C)
    logits = jnp.einsum('bqc,bkc->bqk', q, k) * (float(Cq) ** -0.5)
    attn = jax.nn.softmax(logits, axis=-1)
    a = jnp.einsum('bqk,bkc->bqc', attn, v).reshape(B, H, W, C)
    h2 = h2 + a
    return jnp.maximum(h2 + x_nhwc, 0.)


if __name__ == "__main__":
    # chess board 8x8; C=128 keeps every last-dim a full 128-lane vreg.
    # B=4 -> M=256 matmul rows so the conv matmuls fill a 256-wide MXU pass.
    B, C, H, W = 4, 128, 8, 8
    key = jax.random.PRNGKey(0)
    k_x, k_p = jax.random.split(key)

    x_nchw = jax.random.normal(k_x, (B, C, H, W), jnp.float32)   # PyTorch layout
    x_nhwc = jnp.transpose(x_nchw, (0, 2, 3, 1))                 # kernel layout

    params = init_params(k_p, C)

    out = jax.block_until_ready(chess_residual_block(x_nhwc, params))
    ref = reference_forward(x_nhwc, params)

    assert out.shape == (B, H, W, C) and out.dtype == jnp.float32
    # bf16 MXU operands (per perf review) raise the numerical floor vs the f32
    # reference to the ~1e-2 max-abs level; 2.5e-2 keeps comfortable headroom.
    err = float(jnp.max(jnp.abs(out - ref)))
    assert err < 2.5e-2, err

    print("KERNEL_OK")
</pallas_src>

<mosaic_0001>
module attributes {stable_mosaic.version = 11 : i64} {
  func.func @chess_residual_block_kernel(%arg0: i32, %arg1: memref<4x8x8x128xf32, #tpu.memory_space<vmem>>, %arg2: memref<1152x128xbf16, #tpu.memory_space<vmem>>, %arg3: memref<1x128xf32, #tpu.memory_space<vmem>>, %arg4: memref<1x128xf32, #tpu.memory_space<vmem>>, %arg5: memref<1152x128xbf16, #tpu.memory_space<any>>, %arg6: memref<1x128xf32, #tpu.memory_space<vmem>>, %arg7: memref<1x128xf32, #tpu.memory_space<vmem>>, %arg8: memref<128x384xbf16, #tpu.memory_space<any>>, %arg9: memref<1x384xf32, #tpu.memory_space<vmem>>, %arg10: memref<256x128xf32, #tpu.memory_space<vmem>>, %arg11: memref<4x10x10x128xf32, #tpu.memory_space<vmem>>, %arg12: memref<256x1152xbf16, #tpu.memory_space<vmem>>, %arg13: memref<1152x128xbf16, #tpu.memory_space<vmem>>, %arg14: memref<128x384xbf16, #tpu.memory_space<vmem>>, %arg15: memref<2x!tpu.dma_semaphore, #tpu.memory_space<semaphore_mem>>) attributes {dimension_semantics = [#tpu.dimension_semantics<arbitrary>], iteration_bounds = array<i64: 1>, scalar_prefetch = 0 : i64, scratch_operands = 5 : i64, tpu.core_type = #tpu.core_type<tc>, window_params = [{pipeline_mode = #tpu.pipeline_mode<synchronous>, transform_indices = @transform_0, window_bounds = array<i64: 4, 8, 8, 128>}, {pipeline_mode = #tpu.pipeline_mode<synchronous>, transform_indices = @transform_1, window_bounds = array<i64: 1152, 128>}, {pipeline_mode = #tpu.pipeline_mode<synchronous>, transform_indices = @transform_2, window_bounds = array<i64: 1, 128>}, {pipeline_mode = #tpu.pipeline_mode<synchronous>, transform_indices = @transform_3, window_bounds = array<i64: 1, 128>}, {}, {pipeline_mode = #tpu.pipeline_mode<synchronous>, transform_indices = @transform_5, window_bounds = array<i64: 1, 128>}, {pipeline_mode = #tpu.pipeline_mode<synchronous>, transform_indices = @transform_6, window_bounds = array<i64: 1, 128>}, {}, {pipeline_mode = #tpu.pipeline_mode<synchronous>, transform_indices = @transform_8, window_bounds = array<i64: 1, 384>}, {pipeline_mode = #tpu.pipeline_mode<synchronous>, transform_indices = @transform_9, window_bounds = array<i64: 256, 128>}]} {
    %c0_i32 = arith.constant 0 : i32
    %0 = tpu.memref_slice %arg15[%c0_i32] : memref<2x!tpu.dma_semaphore, #tpu.memory_space<semaphore_mem>> -> memref<1x!tpu.dma_semaphore, #tpu.memory_space<semaphore_mem>>
    %1 = tpu.memref_squeeze %0 : memref<1x!tpu.dma_semaphore, #tpu.memory_space<semaphore_mem>> -> memref<!tpu.dma_semaphore, #tpu.memory_space<semaphore_mem>>
    tpu.enqueue_dma source(%arg5 : memref<1152x128xbf16, #tpu.memory_space<any>>) target(%arg13 : memref<1152x128xbf16, #tpu.memory_space<vmem>>) target_semaphore(%1 : memref<!tpu.dma_semaphore, #tpu.memory_space<semaphore_mem>>)
    %c1_i32 = arith.constant 1 : i32
    %2 = tpu.memref_slice %arg15[%c1_i32] : memref<2x!tpu.dma_semaphore, #tpu.memory_space<semaphore_mem>> -> memref<1x!tpu.dma_semaphore, #tpu.memory_space<semaphore_mem>>
    %3 = tpu.memref_squeeze %2 : memref<1x!tpu.dma_semaphore, #tpu.memory_space<semaphore_mem>> -> memref<!tpu.dma_semaphore, #tpu.memory_space<semaphore_mem>>
    tpu.enqueue_dma source(%arg8 : memref<128x384xbf16, #tpu.memory_space<any>>) target(%arg14 : memref<128x384xbf16, #tpu.memory_space<vmem>>) target_semaphore(%3 : memref<!tpu.dma_semaphore, #tpu.memory_space<semaphore_mem>>)
    %cst = arith.constant 0.000000e+00 : f32
    %4 = vector.broadcast %cst : f32 to vector<4x10x10x128xf32>
    %c0 = arith.constant 0 : index
    %c0_0 = arith.constant 0 : index
    %c0_1 = arith.constant 0 : index
    %c0_2 = arith.constant 0 : index
    %5 = vector.load %arg11[%c0, %c0_0, %c0_1, %c0_2] : memref<4x10x10x128xf32, #tpu.memory_space<vmem>>, vector<4x10x10x128xf32>
    tpu.vector_store %arg11[%c0, %c0_0, %c0_1, %c0_2], %4 {strides = array<i32>} : memref<4x10x10x128xf32, #tpu.memory_space<vmem>>, vector<4x10x10x128xf32>,
    %c0_3 = arith.constant 0 : index
    %c0_4 = arith.constant 0 : index
    %c0_5 = arith.constant 0 : index
    %c0_6 = arith.constant 0 : index
    %6 = vector.load %arg1[%c0_3, %c0_4, %c0_5, %c0_6] : memref<4x8x8x128xf32, #tpu.memory_space<vmem>>, vector<4x8x8x128xf32>
    %c0_7 = arith.constant 0 : index
    %c1 = arith.constant 1 : index
    %c1_8 = arith.constant 1 : index
    %c0_9 = arith.constant 0 : index
    %7 = vector.load %arg11[%c0_7, %c1, %c1_8, %c0_9] : memref<4x10x10x128xf32, #tpu.memory_space<vmem>>, vector<4x8x8x128xf32>
    tpu.vector_store %arg11[%c0_7, %c1, %c1_8, %c0_9], %6 {strides = array<i32>} : memref<4x10x10x128xf32, #tpu.memory_space<vmem>>, vector<4x8x8x128xf32>,
    %c0_10 = arith.constant 0 : index
    %c0_11 = arith.constant 0 : index
    %c0_12 = arith.constant 0 : index
    %c0_13 = arith.constant 0 : index
    %8 = vector.load %arg11[%c0_10, %c0_11, %c0_12, %c0_13] : memref<4x10x10x128xf32, #tpu.memory_space<vmem>>, vector<4x8x8x128xf32>
    %9 = vector.shape_cast %8 : vector<4x8x8x128xf32> to vector<256x128xf32>
    %10 = arith.truncf %9 : vector<256x128xf32> to vector<256x128xbf16>
    %c0_14 = arith.constant 0 : index
    %c0_15 = arith.constant 0 : index
    %11 = vector.load %arg12[%c0_14, %c0_15] : memref<256x1152xbf16, #tpu.memory_space<vmem>>, vector<256x128xbf16>
    tpu.vector_store %arg12[%c0_14, %c0_15], %10 {strides = array<i32>} : memref<256x1152xbf16, #tpu.memory_space<vmem>>, vector<256x128xbf16>,
    %c0_16 = arith.constant 0 : index
    %c0_17 = arith.constant 0 : index
    %c1_18 = arith.constant 1 : index
    %c0_19 = arith.constant 0 : index
    %12 = vector.load %arg11[%c0_16, %c0_17, %c1_18, %c0_19] : memref<4x10x10x128xf32, #tpu.memory_space<vmem>>, vector<4x8x8x128xf32>
    %13 = vector.shape_cast %12 : vector<4x8x8x128xf32> to vector<256x128xf32>
    %14 = arith.truncf %13 : vector<256x128xf32> to vector<256x128xbf16>
    %c0_20 = arith.constant 0 : index
    %c128 = arith.constant 128 : index
    %15 = vector.load %arg12[%c0_20, %c128] : memref<256x1152xbf16, #tpu.memory_space<vmem>>, vector<256x128xbf16>
    tpu.vector_store %arg12[%c0_20, %c128], %14 {strides = array<i32>} : memref<256x1152xbf16, #tpu.memory_space<vmem>>, vector<256x128xbf16>,
    %c0_21 = arith.constant 0 : index
    %c0_22 = arith.constant 0 : index
    %c2 = arith.constant 2 : index
    %c0_23 = arith.constant 0 : index
    %16 = vector.load %arg11[%c0_21, %c0_22, %c2, %c0_23] : memref<4x10x10x128xf32, #tpu.memory_space<vmem>>, vector<4x8x8x128xf32>
    %17 = vector.shape_cast %16 : vector<4x8x8x128xf32> to vector<256x128xf32>
    %18 = arith.truncf %17 : vector<256x128xf32> to vector<256x128xbf16>
    %c0_24 = arith.constant 0 : index
    %c256 = arith.constant 256 : index
    %19 = vector.load %arg12[%c0_24, %c256] : memref<256x1152xbf16, #tpu.memory_space<vmem>>, vector<256x128xbf16>
    tpu.vector_store %arg12[%c0_24, %c256], %18 {strides = array<i32>} : memref<256x1152xbf16, #tpu.memory_space<vmem>>, vector<256x128xbf16>,
    %c0_25 = arith.constant 0 : index
    %c1_26 = arith.constant 1 : index
    %c0_27 = arith.constant 0 : index
    %c0_28 = arith.constant 0 : index
    %20 = vector.load %arg11[%c0_25, %c1_26, %c0_27, %c0_28] : memref<4x10x10x128xf32, #tpu.memory_space<vmem>>, vector<4x8x8x128xf32>
    %21 = vector.shape_cast %20 : vector<4x8x8x128xf32> to vector<256x128xf32>
    %22 = arith.truncf %21 : vector<256x128xf32> to vector<256x128xbf16>
    %c0_29 = arith.constant 0 : index
    %c384 = arith.constant 384 : index
    %23 = vector.load %arg12[%c0_29, %c384] : memref<256x1152xbf16, #tpu.memory_space<vmem>>, vector<256x128xbf16>
    tpu.vector_store %arg12[%c0_29, %c384], %22 {strides = array<i32>} : memref<256x1152xbf16, #tpu.memory_space<vmem>>, vector<256x128xbf16>,
    %c0_30 = arith.constant 0 : index
    %c1_31 = arith.constant 1 : index
    %c1_32 = arith.constant 1 : index
    %c0_33 = arith.constant 0 : index
    %24 = vector.load %arg11[%c0_30, %c1_31, %c1_32, %c0_33] : memref<4x10x10x128xf32, #tpu.memory_space<vmem>>, vector<4x8x8x128xf32>
    %25 = vector.shape_cast %24 : vector<4x8x8x128xf32> to vector<256x128xf32>
    %26 = arith.truncf %25 : vector<256x128xf32> to vector<256x128xbf16>
    %c0_34 = arith.constant 0 : index
    %c512 = arith.constant 512 : index
    %27 = vector.load %arg12[%c0_34, %c512] : memref<256x1152xbf16, #tpu.memory_space<vmem>>, vector<256x128xbf16>
    tpu.vector_store %arg12[%c0_34, %c512], %26 {strides = array<i32>} : memref<256x1152xbf16, #tpu.memory_space<vmem>>, vector<256x128xbf16>,
    %c0_35 = arith.constant 0 : index
    %c1_36 = arith.constant 1 : index
    %c2_37 = arith.constant 2 : index
    %c0_38 = arith.constant 0 : index
    %28 = vector.load %arg11[%c0_35, %c1_36, %c2_37, %c0_38] : memref<4x10x10x128xf32, #tpu.memory_space<vmem>>, vector<4x8x8x128xf32>
    %29 = vector.shape_cast %28 : vector<4x8x8x128xf32> to vector<256x128xf32>
    %30 = arith.truncf %29 : vector<256x128xf32> to vector<256x128xbf16>
    %c0_39 = arith.constant 0 : index
    %c640 = arith.constant 640 : index
    %31 = vector.load %arg12[%c0_39, %c640] : memref<256x1152xbf16, #tpu.memory_space<vmem>>, vector<256x128xbf16>
    tpu.vector_store %arg12[%c0_39, %c640], %30 {strides = array<i32>} : memref<256x1152xbf16, #tpu.memory_space<vmem>>, vector<256x128xbf16>,
    %c0_40 = arith.constant 0 : index
    %c2_41 = arith.constant 2 : index
    %c0_42 = arith.constant 0 : index
    %c0_43 = arith.constant 0 : index
    %32 = vector.load %arg11[%c0_40, %c2_41, %c0_42, %c0_43] : memref<4x10x10x128xf32, #tpu.memory_space<vmem>>, vector<4x8x8x128xf32>
    %33 = vector.shape_cast %32 : vector<4x8x8x128xf32> to vector<256x128xf32>
    %34 = arith.truncf %33 : vector<256x128xf32> to vector<256x128xbf16>
    %c0_44 = arith.constant 0 : index
    %c768 = arith.constant 768 : index
    %35 = vector.load %arg12[%c0_44, %c768] : memref<256x1152xbf16, #tpu.memory_space<vmem>>, vector<256x128xbf16>
    tpu.vector_store %arg12[%c0_44, %c768], %34 {strides = array<i32>} : memref<256x1152xbf16, #tpu.memory_space<vmem>>, vector<256x128xbf16>,
    %c0_45 = arith.constant 0 : index
    %c2_46 = arith.constant 2 : index
    %c1_47 = arith.constant 1 : index
    %c0_48 = arith.constant 0 : index
    %36 = vector.load %arg11[%c0_45, %c2_46, %c1_47, %c0_48] : memref<4x10x10x128xf32, #tpu.memory_space<vmem>>, vector<4x8x8x128xf32>
    %37 = vector.shape_cast %36 : vector<4x8x8x128xf32> to vector<256x128xf32>
    %38 = arith.truncf %37 : vector<256x128xf32> to vector<256x128xbf16>
    %c0_49 = arith.constant 0 : index
    %c896 = arith.constant 896 : index
    %39 = vector.load %arg12[%c0_49, %c896] : memref<256x1152xbf16, #tpu.memory_space<vmem>>, vector<256x128xbf16>
    tpu.vector_store %arg12[%c0_49, %c896], %38 {strides = array<i32>} : memref<256x1152xbf16, #tpu.memory_space<vmem>>, vector<256x128xbf16>,
    %c0_50 = arith.constant 0 : index
    %c2_51 = arith.constant 2 : index
    %c2_52 = arith.constant 2 : index
    %c0_53 = arith.constant 0 : index
    %40 = vector.load %arg11[%c0_50, %c2_51, %c2_52, %c0_53] : memref<4x10x10x128xf32, #tpu.memory_space<vmem>>, vector<4x8x8x128xf32>
    %41 = vector.shape_cast %40 : vector<4x8x8x128xf32> to vector<256x128xf32>
    %42 = arith.truncf %41 : vector<256x128xf32> to vector<256x128xbf16>
    %c0_54 = arith.constant 0 : index
    %c1024 = arith.constant 1024 : index
    %43 = vector.load %arg12[%c0_54, %c1024] : memref<256x1152xbf16, #tpu.memory_space<vmem>>, vector<256x128xbf16>
    tpu.vector_store %arg12[%c0_54, %c1024], %42 {strides = array<i32>} : memref<256x1152xbf16, #tpu.memory_space<vmem>>, vector<256x128xbf16>,
    %c0_55 = arith.constant 0 : index
    %c0_56 = arith.constant 0 : index
    %44 = vector.load %arg12[%c0_55, %c0_56] : memref<256x1152xbf16, #tpu.memory_space<vmem>>, vector<256x1152xbf16>
    %c0_57 = arith.constant 0 : index
    %c0_58 = arith.constant 0 : index
    %45 = vector.load %arg2[%c0_57, %c0_58] : memref<1152x128xbf16, #tpu.memory_space<vmem>>, vector<1152x128xbf16>
    %cst_59 = arith.constant dense<0.000000e+00> : vector<256x128xf32>
    %46 = tpu.matmul %44, %45, %cst_59 {dimension_numbers = #tpu.dot_dimension_numbers<[1], [0], [0], [1], [0, 0, 1, 1], [], []>} : vector<256x1152xbf16>, vector<1152x128xbf16>, vector<256x128xf32> -> vector<256x128xf32>
    %c0_60 = arith.constant 0 : index
    %c0_61 = arith.constant 0 : index
    %47 = vector.load %arg3[%c0_60, %c0_61] : memref<1x128xf32, #tpu.memory_space<vmem>>, vector<1x128xf32>
    %c0_62 = arith.constant 0 : index
    %c0_63 = arith.constant 0 : index
    %48 = vector.load %arg4[%c0_62, %c0_63] : memref<1x128xf32, #tpu.memory_space<vmem>>, vector<1x128xf32>
    %cst_64 = arith.constant dense<0.000000e+00> : vector<128xf32>
    %49 = vector.multi_reduction <add>, %46, %cst_64 [0] : vector<256x128xf32> to vector<128xf32>
    %50 = vector.shape_cast %49 : vector<128xf32> to vector<1x128xf32>
    %cst_65 = arith.constant 3.906250e-03 : f32
    %51 = vector.broadcast %cst_65 : f32 to vector<1x128xf32>
    %52 = arith.mulf %50, %51 : vector<1x128xf32>
    %53 = vector.broadcast %52 : vector<1x128xf32> to vector<256x128xf32>
    %54 = arith.subf %46, %53 : vector<256x128xf32>
    %55 = arith.mulf %54, %54 : vector<256x128xf32>
    %cst_66 = arith.constant dense<0.000000e+00> : vector<128xf32>
    %56 = vector.multi_reduction <add>, %55, %cst_66 [0] : vector<256x128xf32> to vector<128xf32>
    %57 = vector.shape_cast %56 : vector<128xf32> to vector<1x128xf32>
    %cst_67 = arith.constant 3.906250e-03 : f32
    %58 = vector.broadcast %cst_67 : f32 to vector<1x128xf32>
    %59 = arith.mulf %57, %58 : vector<1x128xf32>
    %cst_68 = arith.constant 9.99999974E-6 : f32
    %60 = vector.broadcast %cst_68 : f32 to vector<1x128xf32>
    %61 = arith.addf %59, %60 : vector<1x128xf32>
    %62 = math.rsqrt %61 : vector<1x128xf32>
    %63 = arith.mulf %47, %62 : vector<1x128xf32>
    %64 = vector.broadcast %63 : vector<1x128xf32> to vector<256x128xf32>
    %65 = arith.mulf %54, %64 : vector<256x128xf32>
    %66 = vector.broadcast %48 : vector<1x128xf32> to vector<256x128xf32>
    %67 = arith.addf %65, %66 : vector<256x128xf32>
    %cst_69 = arith.constant 0.000000e+00 : f32
    %68 = vector.broadcast %cst_69 : f32 to vector<256x128xf32>
    %69 = arith.maximumf %67, %68 : vector<256x128xf32>
    %70 = vector.shape_cast %69 : vector<256x128xf32> to vector<4x8x8x128xf32>
    %c0_70 = arith.constant 0 : index
    %c1_71 = arith.constant 1 : index
    %c1_72 = arith.constant 1 : index
    %c0_73 = arith.constant 0 : index
    %71 = vector.load %arg11[%c0_70, %c1_71, %c1_72, %c0_73] : memref<4x10x10x128xf32, #tpu.memory_space<vmem>>, vector<4x8x8x128xf32>
    tpu.vector_store %arg11[%c0_70, %c1_71, %c1_72, %c0_73], %70 {strides = array<i32>} : memref<4x10x10x128xf32, #tpu.memory_space<vmem>>, vector<4x8x8x128xf32>,
    %c0_74 = arith.constant 0 : index
    %c0_75 = arith.constant 0 : index
    %c0_76 = arith.constant 0 : index
    %c0_77 = arith.constant 0 : index
    %72 = vector.load %arg11[%c0_74, %c0_75, %c0_76, %c0_77] : memref<4x10x10x128xf32, #tpu.memory_space<vmem>>, vector<4x8x8x128xf32>
    %73 = vector.shape_cast %72 : vector<4x8x8x128xf32> to vector<256x128xf32>
    %74 = arith.truncf %73 : vector<256x128xf32> to vector<256x128xbf16>
    %c0_78 = arith.constant 0 : index
    %c0_79 = arith.constant 0 : index
    %75 = vector.load %arg12[%c0_78, %c0_79] : memref<256x1152xbf16, #tpu.memory_space<vmem>>, vector<256x128xbf16>
    tpu.vector_store %arg12[%c0_78, %c0_79], %74 {strides = array<i32>} : memref<256x1152xbf16, #tpu.memory_space<vmem>>, vector<256x128xbf16>,
    %c0_80 = arith.constant 0 : index
    %c0_81 = arith.constant 0 : index
    %c1_82 = arith.constant 1 : index
    %c0_83 = arith.constant 0 : index
    %76 = vector.load %arg11[%c0_80, %c0_81, %c1_82, %c0_83] : memref<4x10x10x128xf32, #tpu.memory_space<vmem>>, vector<4x8x8x128xf32>
    %77 = vector.shape_cast %76 : vector<4x8x8x128xf32> to vector<256x128xf32>
    %78 = arith.truncf %77 : vector<256x128xf32> to vector<256x128xbf16>
    %c0_84 = arith.constant 0 : index
    %c128_85 = arith.constant 128 : index
    %79 = vector.load %arg12[%c0_84, %c128_85] : memref<256x1152xbf16, #tpu.memory_space<vmem>>, vector<256x128xbf16>
    tpu.vector_store %arg12[%c0_84, %c128_85], %78 {strides = array<i32>} : memref<256x1152xbf16, #tpu.memory_space<vmem>>, vector<256x128xbf16>,
    %c0_86 = arith.constant 0 : index
    %c0_87 = arith.constant 0 : index
    %c2_88 = arith.constant 2 : index
    %c0_89 = arith.constant 0 : index
    %80 = vector.load %arg11[%c0_86, %c0_87, %c2_88, %c0_89] : memref<4x10x10x128xf32, #tpu.memory_space<vmem>>, vector<4x8x8x128xf32>
    %81 = vector.shape_cast %80 : vector<4x8x8x128xf32> to vector<256x128xf32>
    %82 = arith.truncf %81 : vector<256x128xf32> to vector<256x128xbf16>
    %c0_90 = arith.constant 0 : index
    %c256_91 = arith.constant 256 : index
    %83 = vector.load %arg12[%c0_90, %c256_91] : memref<256x1152xbf16, #tpu.memory_space<vmem>>, vector<256x128xbf16>
    tpu.vector_store %arg12[%c0_90, %c256_91], %82 {strides = array<i32>} : memref<256x1152xbf16, #tpu.memory_space<vmem>>, vector<256x128xbf16>,
    %c0_92 = arith.constant 0 : index
    %c1_93 = arith.constant 1 : index
    %c0_94 = arith.constant 0 : index
    %c0_95 = arith.constant 0 : index
    %84 = vector.load %arg11[%c0_92, %c1_93, %c0_94, %c0_95] : memref<4x10x10x128xf32, #tpu.memory_space<vmem>>, vector<4x8x8x128xf32>
    %85 = vector.shape_cast %84 : vector<4x8x8x128xf32> to vector<256x128xf32>
    %86 = arith.truncf %85 : vector<256x128xf32> to vector<256x128xbf16>
    %c0_96 = arith.constant 0 : index
    %c384_97 = arith.constant 384 : index
    %87 = vector.load %arg12[%c0_96, %c384_97] : memref<256x1152xbf16, #tpu.memory_space<vmem>>, vector<256x128xbf16>
    tpu.vector_store %arg12[%c0_96, %c384_97], %86 {strides = array<i32>} : memref<256x1152xbf16, #tpu.memory_space<vmem>>, vector<256x128xbf16>,
    %c0_98 = arith.constant 0 : index
    %c1_99 = arith.constant 1 : index
    %c1_100 = arith.constant 1 : index
    %c0_101 = arith.constant 0 : index
    %88 = vector.load %arg11[%c0_98, %c1_99, %c1_100, %c0_101] : memref<4x10x10x128xf32, #tpu.memory_space<vmem>>, vector<4x8x8x128xf32>
    %89 = vector.shape_cast %88 : vector<4x8x8x128xf32> to vector<256x128xf32>
    %90 = arith.truncf %89 : vector<256x128xf32> to vector<256x128xbf16>
    %c0_102 = arith.constant 0 : index
    %c512_103 = arith.constant 512 : index
    %91 = vector.load %arg12[%c0_102, %c512_103] : memref<256x1152xbf16, #tpu.memory_space<vmem>>, vector<256x128xbf16>
    tpu.vector_store %arg12[%c0_102, %c512_103], %90 {strides = array<i32>} : memref<256x1152xbf16, #tpu.memory_space<vmem>>, vector<256x128xbf16>,
    %c0_104 = arith.constant 0 : index
    %c1_105 = arith.constant 1 : index
    %c2_106 = arith.constant 2 : index
    %c0_107 = arith.constant 0 : index
    %92 = vector.load %arg11[%c0_104, %c1_105, %c2_106, %c0_107] : memref<4x10x10x128xf32, #tpu.memory_space<vmem>>, vector<4x8x8x128xf32>
    %93 = vector.shape_cast %92 : vector<4x8x8x128xf32> to vector<256x128xf32>
    %94 = arith.truncf %93 : vector<256x128xf32> to vector<256x128xbf16>
    %c0_108 = arith.constant 0 : index
    %c640_109 = arith.constant 640 : index
    %95 = vector.load %arg12[%c0_108, %c640_109] : memref<256x1152xbf16, #tpu.memory_space<vmem>>, vector<256x128xbf16>
    tpu.vector_store %arg12[%c0_108, %c640_109], %94 {strides = array<i32>} : memref<256x1152xbf16, #tpu.memory_space<vmem>>, vector<256x128xbf16>,
    %c0_110 = arith.constant 0 : index
    %c2_111 = arith.constant 2 : index
    %c0_112 = arith.constant 0 : index
    %c0_113 = arith.constant 0 : index
    %96 = vector.load %arg11[%c0_110, %c2_111, %c0_112, %c0_113] : memref<4x10x10x128xf32, #tpu.memory_space<vmem>>, vector<4x8x8x128xf32>
    %97 = vector.shape_cast %96 : vector<4x8x8x128xf32> to vector<256x128xf32>
    %98 = arith.truncf %97 : vector<256x128xf32> to vector<256x128xbf16>
    %c0_114 = arith.constant 0 : index
    %c768_115 = arith.constant 768 : index
    %99 = vector.load %arg12[%c0_114, %c768_115] : memref<256x1152xbf16, #tpu.memory_space<vmem>>, vector<256x128xbf16>
    tpu.vector_store %arg12[%c0_114, %c768_115], %98 {strides = array<i32>} : memref<256x1152xbf16, #tpu.memory_space<vmem>>, vector<256x128xbf16>,
    %c0_116 = arith.constant 0 : index
    %c2_117 = arith.constant 2 : index
    %c1_118 = arith.constant 1 : index
    %c0_119 = arith.constant 0 : index
    %100 = vector.load %arg11[%c0_116, %c2_117, %c1_118, %c0_119] : memref<4x10x10x128xf32, #tpu.memory_space<vmem>>, vector<4x8x8x128xf32>
    %101 = vector.shape_cast %100 : vector<4x8x8x128xf32> to vector<256x128xf32>
    %102 = arith.truncf %101 : vector<256x128xf32> to vector<256x128xbf16>
    %c0_120 = arith.constant 0 : index
    %c896_121 = arith.constant 896 : index
    %103 = vector.load %arg12[%c0_120, %c896_121] : memref<256x1152xbf16, #tpu.memory_space<vmem>>, vector<256x128xbf16>
    tpu.vector_store %arg12[%c0_120, %c896_121], %102 {strides = array<i32>} : memref<256x1152xbf16, #tpu.memory_space<vmem>>, vector<256x128xbf16>,
    %c0_122 = arith.constant 0 : index
    %c2_123 = arith.constant 2 : index
    %c2_124 = arith.constant 2 : index
    %c0_125 = arith.constant 0 : index
    %104 = vector.load %arg11[%c0_122, %c2_123, %c2_124, %c0_125] : memref<4x10x10x128xf32, #tpu.memory_space<vmem>>, vector<4x8x8x128xf32>
    %105 = vector.shape_cast %104 : vector<4x8x8x128xf32> to vector<256x128xf32>
    %106 = arith.truncf %105 : vector<256x128xf32> to vector<256x128xbf16>
    %c0_126 = arith.constant 0 : index
    %c1024_127 = arith.constant 1024 : index
    %107 = vector.load %arg12[%c0_126, %c1024_127] : memref<256x1152xbf16, #tpu.memory_space<vmem>>, vector<256x128xbf16>
    tpu.vector_store %arg12[%c0_126, %c1024_127], %106 {strides = array<i32>} : memref<256x1152xbf16, #tpu.memory_space<vmem>>, vector<256x128xbf16>,
    %c0_i32_128 = arith.constant 0 : i32
    %108 = tpu.memref_slice %arg15[%c0_i32_128] : memref<2x!tpu.dma_semaphore, #tpu.memory_space<semaphore_mem>> -> memref<1x!tpu.dma_semaphore, #tpu.memory_space<semaphore_mem>>
    %109 = tpu.memref_squeeze %108 : memref<1x!tpu.dma_semaphore, #tpu.memory_space<semaphore_mem>> -> memref<!tpu.dma_semaphore, #tpu.memory_space<semaphore_mem>>
    tpu.wait_dma2 semaphore(%109 : memref<!tpu.dma_semaphore, #tpu.memory_space<semaphore_mem>>) src(%arg5 : memref<1152x128xbf16, #tpu.memory_space<any>>) dst(%arg13 : memref<1152x128xbf16, #tpu.memory_space<vmem>>)
    %c0_129 = arith.constant 0 : index
    %c0_130 = arith.constant 0 : index
    %110 = vector.load %arg12[%c0_129, %c0_130] : memref<256x1152xbf16, #tpu.memory_space<vmem>>, vector<256x1152xbf16>
    %c0_131 = arith.constant 0 : index
    %c0_132 = arith.constant 0 : index
    %111 = vector.load %arg13[%c0_131, %c0_132] : memref<1152x128xbf16, #tpu.memory_space<vmem>>, vector<1152x128xbf16>
    %cst_133 = arith.constant dense<0.000000e+00> : vector<256x128xf32>
    %112 = tpu.matmul %110, %111, %cst_133 {dimension_numbers = #tpu.dot_dimension_numbers<[1], [0], [0], [1], [0, 0, 1, 1], [], []>} : vector<256x1152xbf16>, vector<1152x128xbf16>, vector<256x128xf32> -> vector<256x128xf32>
    %c0_134 = arith.constant 0 : index
    %c0_135 = arith.constant 0 : index
    %113 = vector.load %arg6[%c0_134, %c0_135] : memref<1x128xf32, #tpu.memory_space<vmem>>, vector<1x128xf32>
    %c0_136 = arith.constant 0 : index
    %c0_137 = arith.constant 0 : index
    %114 = vector.load %arg7[%c0_136, %c0_137] : memref<1x128xf32, #tpu.memory_space<vmem>>, vector<1x128xf32>
    %cst_138 = arith.constant dense<0.000000e+00> : vector<128xf32>
    %115 = vector.multi_reduction <add>, %112, %cst_138 [0] : vector<256x128xf32> to vector<128xf32>
    %116 = vector.shape_cast %115 : vector<128xf32> to vector<1x128xf32>
    %cst_139 = arith.constant 3.906250e-03 : f32
    %117 = vector.broadcast %cst_139 : f32 to vector<1x128xf32>
    %118 = arith.mulf %116, %117 : vector<1x128xf32>
    %119 = vector.broadcast %118 : vector<1x128xf32> to vector<256x128xf32>
    %120 = arith.subf %112, %119 : vector<256x128xf32>
    %121 = arith.mulf %120, %120 : vector<256x128xf32>
    %cst_140 = arith.constant dense<0.000000e+00> : vector<128xf32>
    %122 = vector.multi_reduction <add>, %121, %cst_140 [0] : vector<256x128xf32> to vector<128xf32>
    %123 = vector.shape_cast %122 : vector<128xf32> to vector<1x128xf32>
    %cst_141 = arith.constant 3.906250e-03 : f32
    %124 = vector.broadcast %cst_141 : f32 to vector<1x128xf32>
    %125 = arith.mulf %123, %124 : vector<1x128xf32>
    %cst_142 = arith.constant 9.99999974E-6 : f32
    %126 = vector.broadcast %cst_142 : f32 to vector<1x128xf32>
    %127 = arith.addf %125, %126 : vector<1x128xf32>
    %128 = math.rsqrt %127 : vector<1x128xf32>
    %129 = arith.mulf %113, %128 : vector<1x128xf32>
    %130 = vector.broadcast %129 : vector<1x128xf32> to vector<256x128xf32>
    %131 = arith.mulf %120, %130 : vector<256x128xf32>
    %132 = vector.broadcast %114 : vector<1x128xf32> to vector<256x128xf32>
    %133 = arith.addf %131, %132 : vector<256x128xf32>
    %c0_143 = arith.constant 0 : index
    %c0_144 = arith.constant 0 : index
    %134 = vector.load %arg10[%c0_143, %c0_144] : memref<256x128xf32, #tpu.memory_space<vmem>>, vector<256x128xf32>
    tpu.vector_store %arg10[%c0_143, %c0_144], %133 {strides = array<i32>} : memref<256x128xf32, #tpu.memory_space<vmem>>, vector<256x128xf32>,
    %c1_i32_145 = arith.constant 1 : i32
    %135 = tpu.memref_slice %arg15[%c1_i32_145] : memref<2x!tpu.dma_semaphore, #tpu.memory_space<semaphore_mem>> -> memref<1x!tpu.dma_semaphore, #tpu.memory_space<semaphore_mem>>
    %136 = tpu.memref_squeeze %135 : memref<1x!tpu.dma_semaphore, #tpu.memory_space<semaphore_mem>> -> memref<!tpu.dma_semaphore, #tpu.memory_space<semaphore_mem>>
    tpu.wait_dma2 semaphore(%136 : memref<!tpu.dma_semaphore, #tpu.memory_space<semaphore_mem>>) src(%arg8 : memref<128x384xbf16, #tpu.memory_space<any>>) dst(%arg14 : memref<128x384xbf16, #tpu.memory_space<vmem>>)
    %137 = arith.truncf %133 : vector<256x128xf32> to vector<256x128xbf16>
    %c0_146 = arith.constant 0 : index
    %c0_147 = arith.constant 0 : index
    %138 = vector.load %arg14[%c0_146, %c0_147] : memref<128x384xbf16, #tpu.memory_space<vmem>>, vector<128x384xbf16>
    %cst_148 = arith.constant dense<0.000000e+00> : vector<256x384xf32>
    %139 = tpu.matmul %137, %138, %cst_148 {dimension_numbers = #tpu.dot_dimension_numbers<[1], [0], [0], [1], [0, 0, 1, 1], [], []>} : vector<256x128xbf16>, vector<128x384xbf16>, vector<256x384xf32> -> vector<256x384xf32>
    %c0_149 = arith.constant 0 : index
    %c0_150 = arith.constant 0 : index
    %140 = vector.load %arg9[%c0_149, %c0_150] : memref<1x384xf32, #tpu.memory_space<vmem>>, vector<1x384xf32>
    %141 = vector.broadcast %140 : vector<1x384xf32> to vector<256x384xf32>
    %142 = arith.addf %139, %141 : vector<256x384xf32>
    %143 = vector.extract_strided_slice %142 {offsets = [0, 0], sizes = [256, 128], strides = [1, 1]} : vector<256x384xf32> to vector<256x128xf32>
    %144 = vector.shape_cast %143 : vector<256x128xf32> to vector<4x64x128xf32>
    %145 = vector.extract_strided_slice %142 {offsets = [0, 128], sizes = [256, 128], strides = [1, 1]} : vector<256x384xf32> to vector<256x128xf32>
    %146 = vector.shape_cast %145 : vector<256x128xf32> to vector<4x64x128xf32>
    %147 = vector.extract_strided_slice %142 {offsets = [0, 256], sizes = [256, 128], strides = [1, 1]} : vector<256x384xf32> to vector<256x128xf32>
    %148 = vector.shape_cast %147 : vector<256x128xf32> to vector<4x64x128xf32>
    "tpu.trace_start"() <{level = 10 : i32, message = "bqc,bkc->bqk"}> : () -> ()
    %cst_151 = arith.constant dense<0.000000e+00> : vector<4x64x64xf32>
    %149 = tpu.matmul %146, %148, %cst_151 {dimension_numbers = #tpu.dot_dimension_numbers<[2], [2], [1], [1], [0, 0, 0, 1, 1, 1], [0], [0]>} : vector<4x64x128xf32>, vector<4x64x128xf32>, vector<4x64x64xf32> -> vector<4x64x64xf32>
    "tpu.trace_stop"() : () -> ()
    %cst_152 = arith.constant 2.500000e-01 : f32
    %150 = vector.broadcast %cst_152 : f32 to vector<4x64x64xf32>
    %151 = arith.mulf %149, %150 : vector<4x64x64xf32>
    %cst_153 = arith.constant dense<0xFF800000> : vector<4x64xf32>
    %152 = vector.multi_reduction <maximumf>, %151, %cst_153 [2] : vector<4x64x64xf32> to vector<4x64xf32>
    %153 = vector.shape_cast %152 : vector<4x64xf32> to vector<4x64x1xf32>
    %154 = vector.broadcast %153 : vector<4x64x1xf32> to vector<4x64x64xf32>
    %155 = arith.subf %151, %154 : vector<4x64x64xf32>
    %156 = math.exp %155 : vector<4x64x64xf32>
    %cst_154 = arith.constant dense<0.000000e+00> : vector<4x64xf32>
    %157 = vector.multi_reduction <add>, %156, %cst_154 [2] : vector<4x64x64xf32> to vector<4x64xf32>
    %158 = vector.shape_cast %157 : vector<4x64xf32> to vector<4x64x1xf32>
    %159 = tpu.reciprocal %158 {approx = true} : vector<4x64x1xf32> -> vector<4x64x1xf32>
    %160 = vector.broadcast %159 : vector<4x64x1xf32> to vector<4x64x64xf32>
    %161 = arith.mulf %156, %160 : vector<4x64x64xf32>
    "tpu.trace_start"() <{level = 10 : i32, message = "bqk,bkc->bqc"}> : () -> ()
    %cst_155 = arith.constant dense<0.000000e+00> : vector<4x64x128xf32>
    %162 = tpu.matmul %161, %144, %cst_155 {dimension_numbers = #tpu.dot_dimension_numbers<[2], [1], [1], [2], [0, 0, 0, 1, 1, 2], [0], [0]>} : vector<4x64x64xf32>, vector<4x64x128xf32>, vector<4x64x128xf32> -> vector<4x64x128xf32>
    "tpu.trace_stop"() : () -> ()
    %163 = vector.shape_cast %162 : vector<4x64x128xf32> to vector<256x128xf32>
    %c0_156 = arith.constant 0 : index
    %c0_157 = arith.constant 0 : index
    %164 = vector.load %arg10[%c0_156, %c0_157] : memref<256x128xf32, #tpu.memory_space<vmem>>, vector<256x128xf32>
    %165 = arith.addf %164, %163 : vector<256x128xf32>
    %c0_158 = arith.constant 0 : index
    %c0_159 = arith.constant 0 : index
    %c0_160 = arith.constant 0 : index
    %c0_161 = arith.constant 0 : index
    %166 = vector.load %arg1[%c0_158, %c0_159, %c0_160, %c0_161] : memref<4x8x8x128xf32, #tpu.memory_space<vmem>>, vector<4x8x8x128xf32>
    %167 = vector.shape_cast %166 : vector<4x8x8x128xf32> to vector<256x128xf32>
    %168 = arith.addf %165, %167 : vector<256x128xf32>
    %cst_162 = arith.constant 0.000000e+00 : f32
    %169 = vector.broadcast %cst_162 : f32 to vector<256x128xf32>
    %170 = arith.maximumf %168, %169 : vector<256x128xf32>
    %c0_163 = arith.constant 0 : index
    %c0_164 = arith.constant 0 : index
    %171 = vector.load %arg10[%c0_163, %c0_164] : memref<256x128xf32, #tpu.memory_space<vmem>>, vector<256x128xf32>
    tpu.vector_store %arg10[%c0_163, %c0_164], %170 {strides = array<i32>} : memref<256x128xf32, #tpu.memory_space<vmem>>, vector<256x128xf32>,
    return
  }
  func.func @transform_0(%arg0: i32) -> (i32, i32, i32, i32) {
    %c0_i32 = arith.constant 0 : i32
    %c0_i32_0 = arith.constant 0 : i32
    %c0_i32_1 = arith.constant 0 : i32
    %c0_i32_2 = arith.constant 0 : i32
    %c0_i32_3 = arith.constant 0 : i32
    return %c0_i32, %c0_i32_0, %c0_i32_1, %c0_i32_2 : i32, i32, i32, i32
  }
  func.func @transform_1(%arg0: i32) -> (i32, i32) {
    %c0_i32 = arith.constant 0 : i32
    %c0_i32_0 = arith.constant 0 : i32
    %c0_i32_1 = arith.constant 0 : i32
    return %c0_i32, %c0_i32_0 : i32, i32
  }
  func.func @transform_2(%arg0: i32) -> (i32, i32) {
    %c0_i32 = arith.constant 0 : i32
    %c0_i32_0 = arith.constant 0 : i32
    %c0_i32_1 = arith.constant 0 : i32
    return %c0_i32, %c0_i32_0 : i32, i32
  }
  func.func @transform_3(%arg0: i32) -> (i32, i32) {
    %c0_i32 = arith.constant 0 : i32
    %c0_i32_0 = arith.constant 0 : i32
    %c0_i32_1 = arith.constant 0 : i32
    return %c0_i32, %c0_i32_0 : i32, i32
  }
  func.func @transform_5(%arg0: i32) -> (i32, i32) {
    %c0_i32 = arith.constant 0 : i32
    %c0_i32_0 = arith.constant 0 : i32
    %c0_i32_1 = arith.constant 0 : i32
    return %c0_i32, %c0_i32_0 : i32, i32
  }
  func.func @transform_6(%arg0: i32) -> (i32, i32) {
    %c0_i32 = arith.constant 0 : i32
    %c0_i32_0 = arith.constant 0 : i32
    %c0_i32_1 = arith.constant 0 : i32
    return %c0_i32, %c0_i32_0 : i32, i32
  }
  func.func @transform_8(%arg0: i32) -> (i32, i32) {
    %c0_i32 = arith.constant 0 : i32
    %c0_i32_0 = arith.constant 0 : i32
    %c0_i32_1 = arith.constant 0 : i32
    return %c0_i32, %c0_i32_0 : i32, i32
  }
  func.func @transform_9(%arg0: i32) -> (i32, i32) {
    %c0_i32 = arith.constant 0 : i32
    %c0_i32_0 = arith.constant 0 : i32
    %c0_i32_1 = arith.constant 0 : i32
    return %c0_i32, %c0_i32_0 : i32, i32
  }
}

</mosaic_0001>

<bundles_post_ra>
// kernel: chess_residual_block.1
= control target key start
LH: loop header
LB: loop body
LE: loop exit
PB: predicated region body
PF: predicated region fallthrough
CT: control target
= control target key end

     0   :  { %14 = vsyncpa [#allocation8], 0  ;;  %s12796_s0 = inlined_call_operand.vmem [shape: f32[4,8,8,128], index: 0, kind: input, shape index: {}]   ;;  %s12797_s1 = inlined_call_operand.vmem [shape: bf16[1152,128], index: 1, kind: input, shape index: {}]   ;;  %s12798_s2 = inlined_call_operand.vmem [shape: f32[1,128], index: 2, kind: input, shape index: {}]   ;;  %s12799_s3 = inlined_call_operand.vmem [shape: f32[1,128], index: 3, kind: input, shape index: {}]   ;;  %s12800_s4 = inlined_call_operand.vmem [shape: bf16[1152,128], index: 4, kind: input, shape index: {}]   ;;  %s12801_s5 = inlined_call_operand.vmem [shape: f32[1,128], index: 5, kind: input, shape index: {}]   ;;  %s12802_s6 = inlined_call_operand.vmem [shape: f32[1,128], index: 6, kind: input, shape index: {}]   ;;  %s12803_s7 = inlined_call_operand.vmem [shape: bf16[128,384], index: 7, kind: input, shape index: {}]   ;;  %s12804_s8 = inlined_call_operand.vmem [shape: f32[1,384], index: 8, kind: input, shape index: {}]   ;;  %s12805_s9 = inlined_call_operand.hbm [shape: f32[256,128], index: 9, kind: output, shape index: {}]  }
   0x1   :  { %v8833_v0 = vld [vmem:[%s12800_s4] sm:$0xff]  ;;  %v8838_v1 = vld [vmem:[%s12800_s4 + $0x8] sm:$0xff]  ;;  %v8843_v2 = vld [vmem:[%s12800_s4 + $0x10] sm:$0xff] }
   0x2   :  { %12963 = vst [vmem:[#allocation14_spill] sm:$0xff] %v8833_v0  ;;  %12964 = vst [vmem:[#allocation15_spill] sm:$0xff] %v8838_v1  ;;  %v8848_v3 = vld [vmem:[%s12800_s4 + $0x18] sm:$0xff]  ;;  %v8853_v4 = vld [vmem:[%s12800_s4 + $0x20] sm:$0xff] }
   0x3   :  { %12965 = vst [vmem:[#allocation16_spill] sm:$0xff] %v8843_v2  ;;  %12966 = vst [vmem:[#allocation17_spill] sm:$0xff] %v8848_v3  ;;  %v8858_v5 = vld [vmem:[%s12800_s4 + $0x28] sm:$0xff]  ;;  %v8863_v6 = vld [vmem:[%s12800_s4 + $0x30] sm:$0xff] }
   0x4   :  { %12967 = vst [vmem:[#allocation18_spill] sm:$0xff] %v8853_v4  ;;  %12968 = vst [vmem:[#allocation19_spill] sm:$0xff] %v8858_v5  ;;  %v8868_v7 = vld [vmem:[%s12800_s4 + $0x38] sm:$0xff]  ;;  %v8873_v8 = vld [vmem:[%s12800_s4 + $0x40] sm:$0xff] }
   0x5   :  { %12969 = vst [vmem:[#allocation20_spill] sm:$0xff] %v8863_v6  ;;  %12970 = vst [vmem:[#allocation21_spill] sm:$0xff] %v8868_v7  ;;  %v8878_v9 = vld [vmem:[%s12800_s4 + $0x48] sm:$0xff]  ;;  %v8883_v10 = vld [vmem:[%s12800_s4 + $0x50] sm:$0xff] }
   0x6   :  { %12971 = vst [vmem:[#allocation22_spill] sm:$0xff] %v8873_v8  ;;  %12972 = vst [vmem:[#allocation23_spill] sm:$0xff] %v8878_v9  ;;  %v8888_v11 = vld [vmem:[%s12800_s4 + $0x58] sm:$0xff]  ;;  %v8893_v12 = vld [vmem:[%s12800_s4 + $0x60] sm:$0xff] }
   0x7   :  { %12973 = vst [vmem:[#allocation24_spill] sm:$0xff] %v8883_v10  ;;  %12974 = vst [vmem:[#allocation25_spill] sm:$0xff] %v8888_v11  ;;  %v8898_v13 = vld [vmem:[%s12800_s4 + $0x68] sm:$0xff]  ;;  %v8903_v14 = vld [vmem:[%s12800_s4 + $0x70] sm:$0xff] }
   0x8   :  { %12975 = vst [vmem:[#allocation26_spill] sm:$0xff] %v8893_v12  ;;  %12976 = vst [vmem:[#allocation27_spill] sm:$0xff] %v8898_v13  ;;  %v8908_v15 = vld [vmem:[%s12800_s4 + $0x78] sm:$0xff]  ;;  %v8913_v16 = vld [vmem:[%s12800_s4 + $0x80] sm:$0xff] }
   0x9   :  { %12977 = vst [vmem:[#allocation28_spill] sm:$0xff] %v8903_v14  ;;  %12978 = vst [vmem:[#allocation29_spill] sm:$0xff] %v8908_v15  ;;  %v8918_v17 = vld [vmem:[%s12800_s4 + $0x88] sm:$0xff]  ;;  %v8923_v18 = vld [vmem:[%s12800_s4 + $0x90] sm:$0xff] }
   0xa   :  { %12979 = vst [vmem:[#allocation30_spill] sm:$0xff] %v8913_v16  ;;  %12980 = vst [vmem:[#allocation31_spill] sm:$0xff] %v8918_v17  ;;  %v8928_v19 = vld [vmem:[%s12800_s4 + $0x98] sm:$0xff]  ;;  %v8933_v20 = vld [vmem:[%s12800_s4 + $0xa0] sm:$0xff] }
   0xb   :  { %12981 = vst [vmem:[#allocation32_spill] sm:$0xff] %v8923_v18  ;;  %12982 = vst [vmem:[#allocation33_spill] sm:$0xff] %v8928_v19  ;;  %v8938_v21 = vld [vmem:[%s12800_s4 + $0xa8] sm:$0xff]  ;;  %v8943_v22 = vld [vmem:[%s12800_s4 + $0xb0] sm:$0xff] }
   0xc   :  { %12983 = vst [vmem:[#allocation34_spill] sm:$0xff] %v8933_v20  ;;  %12984 = vst [vmem:[#allocation35_spill] sm:$0xff] %v8938_v21  ;;  %v8948_v23 = vld [vmem:[%s12800_s4 + $0xb8] sm:$0xff]  ;;  %v8953_v24 = vld [vmem:[%s12800_s4 + $0xc0] sm:$0xff] }
   0xd   :  { %12985 = vst [vmem:[#allocation36_spill] sm:$0xff] %v8943_v22  ;;  %12986 = vst [vmem:[#allocation37_spill] sm:$0xff] %v8948_v23  ;;  %v8958_v25 = vld [vmem:[%s12800_s4 + $0xc8] sm:$0xff]  ;;  %v8963_v26 = vld [vmem:[%s12800_s4 + $0xd0] sm:$0xff] }
   0xe   :  { %12987 = vst [vmem:[#allocation38_spill] sm:$0xff] %v8953_v24  ;;  %12988 = vst [vmem:[#allocation39_spill] sm:$0xff] %v8958_v25  ;;  %v8968_v27 = vld [vmem:[%s12800_s4 + $0xd8] sm:$0xff]  ;;  %v8973_v28 = vld [vmem:[%s12800_s4 + $0xe0] sm:$0xff] }
   0xf   :  { %12989 = vst [vmem:[#allocation40_spill] sm:$0xff] %v8963_v26  ;;  %12990 = vst [vmem:[#allocation41_spill] sm:$0xff] %v8968_v27  ;;  %v8978_v29 = vld [vmem:[%s12800_s4 + $0xe8] sm:$0xff]  ;;  %v8983_v30 = vld [vmem:[%s12800_s4 + $0xf0] sm:$0xff] }
  0x10   :  { %12991 = vst [vmem:[#allocation42_spill] sm:$0xff] %v8973_v28  ;;  %12992 = vst [vmem:[#allocation43_spill] sm:$0xff] %v8978_v29  ;;  %v8988_v31 = vld [vmem:[%s12800_s4 + $0xf8] sm:$0xff]  ;;  %v8993_v32 = vld [vmem:[%s12800_s4 + $0x100] sm:$0xff] }
  0x11   :  { %12993 = vst [vmem:[#allocation44_spill] sm:$0xff] %v8983_v30  ;;  %12994 = vst [vmem:[#allocation45_spill] sm:$0xff] %v8988_v31  ;;  %v8998_v33 = vld [vmem:[%s12800_s4 + $0x108] sm:$0xff]  ;;  %v9003_v34 = vld [vmem:[%s12800_s4 + $0x110] sm:$0xff] }
  0x12   :  { %12995 = vst [vmem:[#allocation46_spill] sm:$0xff] %v8993_v32  ;;  %12996 = vst [vmem:[#allocation47_spill] sm:$0xff] %v8998_v33  ;;  %v9008_v35 = vld [vmem:[%s12800_s4 + $0x118] sm:$0xff]  ;;  %v9013_v36 = vld [vmem:[%s12800_s4 + $0x120] sm:$0xff] }
  0x13   :  { %12997 = vst [vmem:[#allocation48_spill] sm:$0xff] %v9003_v34  ;;  %12998 = vst [vmem:[#allocation49_spill] sm:$0xff] %v9008_v35  ;;  %v9018_v37 = vld [vmem:[%s12800_s4 + $0x128] sm:$0xff]  ;;  %v9023_v38 = vld [vmem:[%s12800_s4 + $0x130] sm:$0xff] }
  0x14   :  { %12999 = vst [vmem:[#allocation50_spill] sm:$0xff] %v9013_v36  ;;  %13000 = vst [vmem:[#allocation51_spill] sm:$0xff] %v9018_v37  ;;  %v9028_v39 = vld [vmem:[%s12800_s4 + $0x138] sm:$0xff]  ;;  %v9033_v40 = vld [vmem:[%s12800_s4 + $0x140] sm:$0xff] }
  0x15   :  { %13001 = vst [vmem:[#allocation52_spill] sm:$0xff] %v9023_v38  ;;  %13002 = vst [vmem:[#allocation53_spill] sm:$0xff] %v9028_v39  ;;  %v9038_v41 = vld [vmem:[%s12800_s4 + $0x148] sm:$0xff]  ;;  %v9043_v42 = vld [vmem:[%s12800_s4 + $0x150] sm:$0xff] }
  0x16   :  { %13003 = vst [vmem:[#allocation54_spill] sm:$0xff] %v9033_v40  ;;  %13004 = vst [vmem:[#allocation55_spill] sm:$0xff] %v9038_v41  ;;  %v9048_v43 = vld [vmem:[%s12800_s4 + $0x158] sm:$0xff]  ;;  %v9053_v44 = vld [vmem:[%s12800_s4 + $0x160] sm:$0xff] }
  0x17   :  { %13005 = vst [vmem:[#allocation56_spill] sm:$0xff] %v9043_v42  ;;  %13006 = vst [vmem:[#allocation57_spill] sm:$0xff] %v9048_v43  ;;  %v9058_v45 = vld [vmem:[%s12800_s4 + $0x168] sm:$0xff]  ;;  %v9063_v46 = vld [vmem:[%s12800_s4 + $0x170] sm:$0xff] }
  0x18   :  { %13007 = vst [vmem:[#allocation58_spill] sm:$0xff] %v9053_v44  ;;  %13008 = vst [vmem:[#allocation59_spill] sm:$0xff] %v9058_v45  ;;  %v9068_v47 = vld [vmem:[%s12800_s4 + $0x178] sm:$0xff]  ;;  %v9073_v48 = vld [vmem:[%s12800_s4 + $0x180] sm:$0xff] }
  0x19   :  { %13009 = vst [vmem:[#allocation60_spill] sm:$0xff] %v9063_v46  ;;  %13010 = vst [vmem:[#allocation61_spill] sm:$0xff] %v9068_v47  ;;  %v9078_v49 = vld [vmem:[%s12800_s4 + $0x188] sm:$0xff]  ;;  %v9083_v50 = vld [vmem:[%s12800_s4 + $0x190] sm:$0xff] }
  0x1a   :  { %13011 = vst [vmem:[#allocation62_spill] sm:$0xff] %v9073_v48  ;;  %13012 = vst [vmem:[#allocation63_spill] sm:$0xff] %v9078_v49  ;;  %v9088_v51 = vld [vmem:[%s12800_s4 + $0x198] sm:$0xff]  ;;  %v9093_v52 = vld [vmem:[%s12800_s4 + $0x1a0] sm:$0xff] }
  0x1b   :  { %13013 = vst [vmem:[#allocation64_spill] sm:$0xff] %v9083_v50  ;;  %13014 = vst [vmem:[#allocation65_spill] sm:$0xff] %v9088_v51  ;;  %v9098_v53 = vld [vmem:[%s12800_s4 + $0x1a8] sm:$0xff]  ;;  %v9103_v54 = vld [vmem:[%s12800_s4 + $0x1b0] sm:$0xff] }
  0x1c   :  { %13015 = vst [vmem:[#allocation66_spill] sm:$0xff] %v9093_v52  ;;  %13016 = vst [vmem:[#allocation67_spill] sm:$0xff] %v9098_v53  ;;  %v9108_v55 = vld [vmem:[%s12800_s4 + $0x1b8] sm:$0xff]  ;;  %v9113_v56 = vld [vmem:[%s12800_s4 + $0x1c0] sm:$0xff] }
  0x1d   :  { %13017 = vst [vmem:[#allocation68_spill] sm:$0xff] %v9103_v54  ;;  %13018 = vst [vmem:[#allocation69_spill] sm:$0xff] %v9108_v55  ;;  %v9118_v57 = vld [vmem:[%s12800_s4 + $0x1c8] sm:$0xff]  ;;  %v9123_v58 = vld [vmem:[%s12800_s4 + $0x1d0] sm:$0xff] }
  0x1e   :  { %13019 = vst [vmem:[#allocation70_spill] sm:$0xff] %v9113_v56  ;;  %13020 = vst [vmem:[#allocation71_spill] sm:$0xff] %v9118_v57  ;;  %v9128_v59 = vld [vmem:[%s12800_s4 + $0x1d8] sm:$0xff]  ;;  %v9133_v60 = vld [vmem:[%s12800_s4 + $0x1e0] sm:$0xff] }
  0x1f   :  { %13021 = vst [vmem:[#allocation72_spill] sm:$0xff] %v9123_v58  ;;  %13022 = vst [vmem:[#allocation73_spill] sm:$0xff] %v9128_v59  ;;  %v9138_v61 = vld [vmem:[%s12800_s4 + $0x1e8] sm:$0xff]  ;;  %v9143_v62 = vld [vmem:[%s12800_s4 + $0x1f0] sm:$0xff] }
  0x20   :  { %13023 = vst [vmem:[#allocation74_spill] sm:$0xff] %v9133_v60  ;;  %13024 = vst [vmem:[#allocation75_spill] sm:$0xff] %v9138_v61  ;;  %v9148_v63 = vld [vmem:[%s12800_s4 + $0x1f8] sm:$0xff]  ;;  %v9153_v55 = vld [vmem:[%s12800_s4 + $0x200] sm:$0xff] }
  0x21   :  { %13025 = vst [vmem:[#allocation76_spill] sm:$0xff] %v9143_v62  ;;  %13026 = vst [vmem:[#allocation77_spill] sm:$0xff] %v9148_v63  ;;  %v9158_v39 = vld [vmem:[%s12800_s4 + $0x208] sm:$0xff]  ;;  %v9163_v54 = vld [vmem:[%s12800_s4 + $0x210] sm:$0xff] }
  0x22   :  { %13027 = vst [vmem:[#allocation78_spill] sm:$0xff] %v9153_v55  ;;  %13028 = vst [vmem:[#allocation79_spill] sm:$0xff] %v9158_v39  ;;  %v9168_v47 = vld [vmem:[%s12800_s4 + $0x218] sm:$0xff]  ;;  %v9173_v63 = vld [vmem:[%s12800_s4 + $0x220] sm:$0xff] }
  0x23   :  { %13029 = vst [vmem:[#allocation80_spill] sm:$0xff] %v9163_v54  ;;  %13030 = vst [vmem:[#allocation81_spill] sm:$0xff] %v9168_v47  ;;  %v9178_v55 = vld [vmem:[%s12800_s4 + $0x228] sm:$0xff]  ;;  %v9183_v39 = vld [vmem:[%s12800_s4 + $0x230] sm:$0xff] }
  0x24   :  { %13031 = vst [vmem:[#allocation82_spill] sm:$0xff] %v9173_v63  ;;  %13032 = vst [vmem:[#allocation83_spill] sm:$0xff] %v9178_v55  ;;  %v9188_v54 = vld [vmem:[%s12800_s4 + $0x238] sm:$0xff] }
  0x25   :  { %13033 = vst [vmem:[#allocation84_spill] sm:$0xff] %v9183_v39  ;;  %13034 = vst [vmem:[#allocation85_spill] sm:$0xff] %v9188_v54 }
  0x26   :  { %213 = vsyncadd [#allocation6], 9216  ;;  %v232_v63 = vld [vmem:[%s12803_s7] sm:$0xf]  ;;  %v234_v47 = vld [vmem:[%s12803_s7 + $0xc] sm:$0xf] }
  0x27   :  { %233 = vst [vmem:[#allocation5] sm:$0xf] %v232_v63  ;;  %235 = vst [vmem:[#allocation5 + $0x4] sm:$0xf] %v234_v47  ;;  %v236_v39 = vld [vmem:[%s12803_s7 + $0x4] sm:$0xf] }
  0x28   :  { %v238_v55 = vld [vmem:[%s12803_s7 + $0x10] sm:$0xf]  ;;  %v240_v54 = vld [vmem:[%s12803_s7 + $0x8] sm:$0xf]  ;;  %237 = vst [vmem:[#allocation5 + $0x8] sm:$0xf] %v236_v39 }
  0x29   :  { %239 = vst [vmem:[#allocation5 + $0xc] sm:$0xf] %v238_v55  ;;  %241 = vst [vmem:[#allocation5 + $0x10] sm:$0xf] %v240_v54  ;;  %v242_v63 = vld [vmem:[%s12803_s7 + $0x14] sm:$0xff]   ;;  %v254_v55 = vld [vmem:[%s12803_s7 + $0x2c] sm:$0xff]  }
  0x2a   :  { %v246_v47 = vld [vmem:[%s12803_s7 + $0x24] sm:$0xf]  ;;  %v248_v62 = vld [vmem:[%s12803_s7 + $0x1c] sm:$0xf]  ;;  %243 = vst [vmem:[#allocation5 + $0x14] sm:$0xff] %v242_v63   ;;  %255 = vst [vmem:[#allocation5 + $0x2c] sm:$0xff] %v254_v55  }
  0x2b   :  { %247 = vst [vmem:[#allocation5 + $0x1c] sm:$0xf] %v246_v47  ;;  %249 = vst [vmem:[#allocation5 + $0x20] sm:$0xf] %v248_v62  ;;  %v250_v39 = vld [vmem:[%s12803_s7 + $0x28] sm:$0xf] }
  0x2c   :  { %v252_v54 = vld [vmem:[%s12803_s7 + $0x20] sm:$0xf]  ;;  %251 = vst [vmem:[#allocation5 + $0x24] sm:$0xf] %v250_v39  ;;  %v258_v63 = vld [vmem:[%s12803_s7 + $0x3c] sm:$0xf] }
  0x2d   :  { %253 = vst [vmem:[#allocation5 + $0x28] sm:$0xf] %v252_v54  ;;  %v260_v62 = vld [vmem:[%s12803_s7 + $0x34] sm:$0xf]  ;;  %v262_v47 = vld [vmem:[%s12803_s7 + $0x40] sm:$0xf] }
  0x2e   :  { %259 = vst [vmem:[#allocation5 + $0x34] sm:$0xf] %v258_v63  ;;  %261 = vst [vmem:[#allocation5 + $0x38] sm:$0xf] %v260_v62  ;;  %v264_v39 = vld [vmem:[%s12803_s7 + $0x38] sm:$0xf] }
  0x2f   :  { %263 = vst [vmem:[#allocation5 + $0x3c] sm:$0xf] %v262_v47  ;;  %v266_v54 = vld [vmem:[%s12803_s7 + $0x44] sm:$0xff]   ;;  %v270_v55 = vld [vmem:[%s12803_s7 + $0x54] sm:$0xf] }
  0x30   :  { %265 = vst [vmem:[#allocation5 + $0x40] sm:$0xf] %v264_v39  ;;  %267 = vst [vmem:[#allocation5 + $0x44] sm:$0xff] %v266_v54   ;;  %v272_v63 = vld [vmem:[%s12803_s7 + $0x4c] sm:$0xf]  ;;  %v278_v39 = vld [vmem:[%s12803_s7 + $0x5c] sm:$0xff]  }
  0x31   :  { %271 = vst [vmem:[#allocation5 + $0x4c] sm:$0xf] %v270_v55  ;;  %v274_v62 = vld [vmem:[%s12803_s7 + $0x58] sm:$0xf]  ;;  %v276_v47 = vld [vmem:[%s12803_s7 + $0x50] sm:$0xf] }
  0x32   :  { %273 = vst [vmem:[#allocation5 + $0x50] sm:$0xf] %v272_v63  ;;  %275 = vst [vmem:[#allocation5 + $0x54] sm:$0xf] %v274_v62  ;;  %v282_v54 = vld [vmem:[%s12803_s7 + $0x6c] sm:$0xf] }
  0x33   :  { %277 = vst [vmem:[#allocation5 + $0x58] sm:$0xf] %v276_v47  ;;  %v284_v55 = vld [vmem:[%s12803_s7 + $0x64] sm:$0xf]  ;;  %279 = vst [vmem:[#allocation5 + $0x5c] sm:$0xff] %v278_v39   ;;  %v290_v47 = vld [vmem:[%s12803_s7 + $0x74] sm:$0xff]  }
  0x34   :  { %283 = vst [vmem:[#allocation5 + $0x64] sm:$0xf] %v282_v54  ;;  %285 = vst [vmem:[#allocation5 + $0x68] sm:$0xf] %v284_v55  ;;  %v286_v63 = vld [vmem:[%s12803_s7 + $0x70] sm:$0xf] }
  0x35   :  { %v288_v62 = vld [vmem:[%s12803_s7 + $0x68] sm:$0xf]  ;;  %287 = vst [vmem:[#allocation5 + $0x6c] sm:$0xf] %v286_v63  ;;  %291 = vst [vmem:[#allocation5 + $0x74] sm:$0xff] %v290_v47  }
  0x36   :  { %289 = vst [vmem:[#allocation5 + $0x70] sm:$0xf] %v288_v62  ;;  %v294_v39 = vld [vmem:[%s12803_s7 + $0x84] sm:$0xf]  ;;  %v296_v54 = vld [vmem:[%s12803_s7 + $0x7c] sm:$0xf] }
  0x37   :  { %v298_v55 = vld [vmem:[%s12803_s7 + $0x88] sm:$0xf]  ;;  %295 = vst [vmem:[#allocation5 + $0x7c] sm:$0xf] %v294_v39  ;;  %297 = vst [vmem:[#allocation5 + $0x80] sm:$0xf] %v296_v54 }
  0x38   :  { %299 = vst [vmem:[#allocation5 + $0x84] sm:$0xf] %v298_v55  ;;  %v300_v63 = vld [vmem:[%s12803_s7 + $0x80] sm:$0xf]  ;;  %v302_v62 = vld [vmem:[%s12803_s7 + $0x8c] sm:$0xff]  }
  0x39   :  { %v306_v47 = vld [vmem:[%s12803_s7 + $0x9c] sm:$0xf]  ;;  %301 = vst [vmem:[#allocation5 + $0x88] sm:$0xf] %v300_v63  ;;  %303 = vst [vmem:[#allocation5 + $0x8c] sm:$0xff] %v302_v62   ;;  %v314_v63 = vld [vmem:[%s12803_s7 + $0xa4] sm:$0xff]  }
  0x3a   :  { %307 = vst [vmem:[#allocation5 + $0x94] sm:$0xf] %v306_v47  ;;  %v308_v39 = vld [vmem:[%s12803_s7 + $0x94] sm:$0xf]  ;;  %v310_v54 = vld [vmem:[%s12803_s7 + $0xa0] sm:$0xf] }
  0x3b   :  { %v312_v55 = vld [vmem:[%s12803_s7 + $0x98] sm:$0xf]  ;;  %309 = vst [vmem:[#allocation5 + $0x98] sm:$0xf] %v308_v39  ;;  %311 = vst [vmem:[#allocation5 + $0x9c] sm:$0xf] %v310_v54 }
  0x3c   :  { %313 = vst [vmem:[#allocation5 + $0xa0] sm:$0xf] %v312_v55  ;;  %v318_v62 = vld [vmem:[%s12803_s7 + $0xb4] sm:$0xf]  ;;  %v320_v47 = vld [vmem:[%s12803_s7 + $0xac] sm:$0xf] }
  0x3d   :  { %315 = vst [vmem:[#allocation5 + $0xa4] sm:$0xff] %v314_v63   ;;  %319 = vst [vmem:[#allocation5 + $0xac] sm:$0xf] %v318_v62  ;;  %v322_v39 = vld [vmem:[%s12803_s7 + $0xb8] sm:$0xf] }
  0x3e   :  { %321 = vst [vmem:[#allocation5 + $0xb0] sm:$0xf] %v320_v47  ;;  %v324_v54 = vld [vmem:[%s12803_s7 + $0xb0] sm:$0xf]  ;;  %v326_v55 = vld [vmem:[%s12803_s7 + $0xbc] sm:$0xf] }
  0x3f   :  { %323 = vst [vmem:[#allocation5 + $0xb4] sm:$0xf] %v322_v39  ;;  %325 = vst [vmem:[#allocation5 + $0xb8] sm:$0xf] %v324_v54 }
  0x40   :  { %327 = vst [vmem:[#allocation5 + $0xbc] sm:$0xf] %v326_v55 }
  0x41   :  { %454 = vsyncadd [#allocation6 + $0x1], 3072  ;;  %v9316_v63 = vld [vmem:[%s12797_s1 + $0x40] sm:$0xff]   ;;  %v12814_v47 = vmov 0.0   ;;  %v8529_v55 = vld [vmem:[%s12797_s1 + $0x48] sm:$0xff]   ;;  %v13035_v60 = vmov 0.0  }
  0x42   :  { %v9321_v62 = vld [vmem:[%s12797_s1 + $0xc0] sm:$0xff]   ;;  %455 = vst [vmem:[#allocation2] sm:$0xff] %v12814_v47  ;;  %456 = vst [vmem:[#allocation2 + $0x8] sm:$0x3] %v12814_v47  ;;  %6928 = vmatprep.subr.bf16.mxu0 %v9316_v63  ;;  %v8530_v63 = vld [vmem:[%s12797_s1 + $0xc8] sm:$0xff]  }
  0x43   :  { %457 = vst [vmem:[#allocation2 + $0x10] sm:$0xff] %v12814_v47  ;;  %458 = vst [vmem:[#allocation2 + $0x18] sm:$0x3] %v12814_v47  ;;  %v8527_v39 = vld [vmem:[%s12797_s1] sm:$0xff]   ;;  %7040 = vmatprep.subr.bf16.mxu1 %v9321_v62  ;;  %v8532_v62 = vld [vmem:[%s12797_s1 + $0x88] sm:$0xff]  }
  0x44   :  { %459 = vst [vmem:[#allocation2 + $0x20] sm:$0xff] %v12814_v47  ;;  %460 = vst [vmem:[#allocation2 + $0x28] sm:$0x3] %v12814_v47  ;;  %v8528_v54 = vld [vmem:[%s12797_s1 + $0x80] sm:$0xff]   ;;  %6929 = vmatpush3.bf16.msra.mxu0 %v8527_v39  ;;  %v8533_v39 = vld [vmem:[%s12797_s1 + $0x50] sm:$0xff]  }
  0x45   :  { %461 = vst [vmem:[#allocation2 + $0x30] sm:$0xff] %v12814_v47  ;;  %462 = vst [vmem:[#allocation2 + $0x38] sm:$0x3] %v12814_v47  ;;  %7041 = vmatpush3.bf16.msra.mxu1 %v8528_v54  ;;  %6930 = vmatprep.subr.bf16.mxu0 %v8529_v55  ;;  %v8534_v54 = vld [vmem:[%s12797_s1 + $0xd0] sm:$0xff]   ;;  %v9544_v46 = vld [vmem:[%s12796_s0 + $0x40] sm:$0xff] }
  0x46   :  { %463 = vst [vmem:[#allocation2 + $0x40] sm:$0xff] %v12814_v47  ;;  %464 = vst [vmem:[#allocation2 + $0x48] sm:$0x3] %v12814_v47  ;;  %7042 = vmatprep.subr.bf16.mxu1 %v8530_v63  ;;  %v8535_v55 = vld [vmem:[%s12797_s1 + $0x10] sm:$0xff]   ;;  %v8558_v52 = vld [vmem:[%s12797_s1 + $0x100] sm:$0xff]  }
  0x47   :  { %465 = vst [vmem:[#allocation2 + $0x50] sm:$0xff] %v12814_v47  ;;  %466 = vst [vmem:[#allocation2 + $0x58] sm:$0x3] %v12814_v47  ;;  %v8536_v63 = vld [vmem:[%s12797_s1 + $0x90] sm:$0xff]   ;;  %v8559_v35 = vld [vmem:[%s12797_s1 + $0x148] sm:$0xff]  }
  0x48   :  { %467 = vst [vmem:[#allocation2 + $0x60] sm:$0xff] %v12814_v47  ;;  %468 = vst [vmem:[#allocation2 + $0x68] sm:$0x3] %v12814_v47  ;;  %v9510_v53 = vld [vmem:[%s12796_s0 + $0x10] sm:$0xff]  ;;  %v9566_v50 = vld [vmem:[%s12796_s0 + $0x48] sm:$0xff] }
  0x49   :  { %469 = vst [vmem:[#allocation2 + $0x70] sm:$0xff] %v12814_v47  ;;  %470 = vst [vmem:[#allocation2 + $0x78] sm:$0x3] %v12814_v47  ;;  %7043 = vmatpush3.bf16.msra.mxu1 %v8532_v62  ;;  %v8538_v62 = vld [vmem:[%s12797_s1 + $0xd8] sm:$0xff]   ;;  %v664_v38 = vld [vmem:[#allocation2 + $0x1] sm:$0xff] }
  0x4a   :  { %471 = vst [vmem:[#allocation2 + $0x80] sm:$0xff] %v12814_v47  ;;  %472 = vst [vmem:[#allocation2 + $0x88] sm:$0x3] %v12814_v47  ;;  %7044 = vmatprep.subr.bf16.mxu1 %v8534_v54  ;;  %v8540_v54 = vld [vmem:[%s12797_s1 + $0x98] sm:$0xff]   ;;  %v8560_v58 = vld [vmem:[%s12797_s1 + $0x108] sm:$0xff]  }
  0x4b   :  { %473 = vst [vmem:[#allocation2 + $0x90] sm:$0xff] %v12814_v47  ;;  %474 = vst [vmem:[#allocation2 + $0x98] sm:$0x3] %v12814_v47  ;;  %v8562_v57 = vld [vmem:[%s12797_s1 + $0x110] sm:$0xff]   ;;  %v8564_v32 = vld [vmem:[%s12797_s1 + $0x118] sm:$0xff]  }
  0x4c   :  { %475 = vst [vmem:[#allocation2 + $0xa0] sm:$0xff] %v12814_v47  ;;  %476 = vst [vmem:[#allocation2 + $0xa8] sm:$0x3] %v12814_v47  ;;  %v9632_v56 = vld [vmem:[%s12796_s0 + $0x70] sm:$0xff]  ;;  %v9638_v23 = vld [vmem:[%s12796_s0 + $0x78] sm:$0xff] }
  0x4d   :  { %477 = vst [vmem:[#allocation2 + $0xb0] sm:$0xff] %v12814_v47  ;;  %478 = vst [vmem:[#allocation2 + $0xb8] sm:$0x3] %v12814_v47  ;;  %7045 = vmatpush3.bf16.msra.mxu1 %v8536_v63  ;;  %v8542_v63 = vld [vmem:[%s12797_s1 + $0xe0] sm:$0xff]   ;;  %v8570_v13 = vld [vmem:[%s12797_s1 + $0x1c8] sm:$0xff]  }
  0x4e   :  { %479 = vst [vmem:[#allocation2 + $0xc0] sm:$0xff] %v12814_v47  ;;  %480 = vst [vmem:[#allocation2 + $0xc8] sm:$0x3] %v12814_v47  ;;  %7046 = vmatprep.subr.bf16.mxu1 %v8538_v62  ;;  %v8544_v62 = vld [vmem:[%s12797_s1 + $0xa0] sm:$0xff]   ;;  %v8572_v20 = vld [vmem:[%s12797_s1 + $0x188] sm:$0xff]  }
  0x4f   :  { %481 = vst [vmem:[#allocation2 + $0xd0] sm:$0xff] %v12814_v47  ;;  %482 = vst [vmem:[#allocation2 + $0xd8] sm:$0x3] %v12814_v47  ;;  %v8565_v7 = vld [vmem:[%s12797_s1 + $0x160] sm:$0xff]   ;;  %v9731_v4 = vld [vmem:[%s12796_s0 + $0xb0] sm:$0xff] }
  0x50   :  { %483 = vst [vmem:[#allocation2 + $0xe0] sm:$0xff] %v12814_v47  ;;  %484 = vst [vmem:[#allocation2 + $0xe8] sm:$0x3] %v12814_v47  ;;  %v8567_v6 = vld [vmem:[%s12797_s1 + $0x120] sm:$0xff]   ;;  %v9753_v28 = vld [vmem:[%s12796_s0 + $0xc8] sm:$0xff] }
  0x51   :  { %485 = vst [vmem:[#allocation2 + $0xf0] sm:$0xff] %v12814_v47  ;;  %486 = vst [vmem:[#allocation2 + $0xf8] sm:$0x3] %v12814_v47  ;;  %7047 = vmatpush3.bf16.msra.mxu1 %v8540_v54  ;;  %v8546_v54 = vld [vmem:[%s12797_s1 + $0xe8] sm:$0xff]   ;;  %v8568_v29 = vld [vmem:[%s12797_s1 + $0x180] sm:$0xff]  }
  0x52   :  { %487 = vst [vmem:[#allocation2 + $0x100] sm:$0xff] %v12814_v47  ;;  %488 = vst [vmem:[#allocation2 + $0x108] sm:$0x3] %v12814_v47  ;;  %7048 = vmatprep.subr.bf16.mxu1 %v8542_v63  ;;  %v8548_v63 = vld [vmem:[%s12797_s1 + $0xa8] sm:$0xff]   ;;  %v8573_v27 = vld [vmem:[%s12797_s1 + $0x170] sm:$0xff]  }
  0x53   :  { %489 = vst [vmem:[#allocation2 + $0x110] sm:$0xff] %v12814_v47  ;;  %490 = vst [vmem:[#allocation2 + $0x118] sm:$0x3] %v12814_v47  ;;  %v9813_v10 = vld [vmem:[%s12796_s0 + $0xe8] sm:$0xff]  ;;  %v8579_v25 = vld [vmem:[%s12797_s1 + $0x178] sm:$0xff]  }
  0x54   :  { %491 = vst [vmem:[#allocation2 + $0x120] sm:$0xff] %v12814_v47  ;;  %492 = vst [vmem:[#allocation2 + $0x128] sm:$0x3] %v12814_v47  ;;  %v8581_v16 = vld [vmem:[%s12797_s1 + $0x1e0] sm:$0xff]   ;;  %v8584_v9 = vld [vmem:[%s12797_s1 + $0x1a8] sm:$0xff]  }
  0x55   :  { %493 = vst [vmem:[#allocation2 + $0x130] sm:$0xff] %v12814_v47  ;;  %494 = vst [vmem:[#allocation2 + $0x138] sm:$0x3] %v12814_v47  ;;  %7049 = vmatpush3.bf16.msra.mxu1 %v8544_v62  ;;  %v8550_v62 = vld [vmem:[%s12797_s1 + $0xf0] sm:$0xff]  }
  0x56   :  { %495 = vst [vmem:[#allocation2 + $0x140] sm:$0xff] %v12814_v47  ;;  %496 = vst [vmem:[#allocation2 + $0x148] sm:$0x3] %v12814_v47  ;;  %7050 = vmatprep.subr.bf16.mxu1 %v8546_v54  ;;  %v8552_v54 = vld [vmem:[%s12797_s1 + $0xb0] sm:$0xff]  }
  0x57   :  { %497 = vst [vmem:[#allocation2 + $0x150] sm:$0xff] %v12814_v47  ;;  %498 = vst [vmem:[#allocation2 + $0x158] sm:$0x3] %v12814_v47 }
  0x58   :  { %499 = vst [vmem:[#allocation2 + $0x160] sm:$0xff] %v12814_v47  ;;  %500 = vst [vmem:[#allocation2 + $0x168] sm:$0x3] %v12814_v47 }
  0x59   :  { %501 = vst [vmem:[#allocation2 + $0x170] sm:$0xff] %v12814_v47  ;;  %502 = vst [vmem:[#allocation2 + $0x178] sm:$0x3] %v12814_v47  ;;  %7051 = vmatpush3.bf16.msra.mxu1 %v8548_v63  ;;  %v8554_v63 = vld [vmem:[%s12797_s1 + $0xf8] sm:$0xff]  }
  0x5a   :  { %503 = vst [vmem:[#allocation2 + $0x180] sm:$0xff] %v12814_v47  ;;  %504 = vst [vmem:[#allocation2 + $0x188] sm:$0x3] %v12814_v47  ;;  %7052 = vmatprep.subr.bf16.mxu1 %v8550_v62  ;;  %v8556_v62 = vld [vmem:[%s12797_s1 + $0xb8] sm:$0xff]  }
  0x5b   :  { %505 = vst [vmem:[#allocation2 + $0x190] sm:$0xff] %v12814_v47  ;;  %506 = vst [vmem:[#allocation2 + $0x198] sm:$0x3] %v12814_v47 }
  0x5c   :  { %507 = vst [vmem:[#allocation2 + $0x1a0] sm:$0xff] %v12814_v47  ;;  %508 = vst [vmem:[#allocation2 + $0x1a8] sm:$0x3] %v12814_v47 }
  0x5d   :  { %509 = vst [vmem:[#allocation2 + $0x1b0] sm:$0xff] %v12814_v47  ;;  %510 = vst [vmem:[#allocation2 + $0x1b8] sm:$0x3] %v12814_v47  ;;  %7053 = vmatpush3.bf16.msra.mxu1 %v8552_v54 }
  0x5e   :  { %511 = vst [vmem:[#allocation2 + $0x1c0] sm:$0xff] %v12814_v47  ;;  %512 = vst [vmem:[#allocation2 + $0x1c8] sm:$0x3] %v12814_v47  ;;  %7054 = vmatprep.subr.bf16.mxu1 %v8554_v63  ;;  %v8557_v63 = vld [vmem:[%s12797_s1 + $0x140] sm:$0xff]  }
  0x5f   :  { %513 = vst [vmem:[#allocation2 + $0x1d0] sm:$0xff] %v12814_v47  ;;  %514 = vst [vmem:[#allocation2 + $0x1d8] sm:$0x3] %v12814_v47 }
  0x60   :  { %515 = vst [vmem:[#allocation2 + $0x1e0] sm:$0xff] %v12814_v47  ;;  %516 = vst [vmem:[#allocation2 + $0x1e8] sm:$0x3] %v12814_v47 }
  0x61   :  { %517 = vst [vmem:[#allocation2 + $0x1f0] sm:$0xff] %v12814_v47  ;;  %518 = vst [vmem:[#allocation2 + $0x1f8] sm:$0x3] %v12814_v47  ;;  %7055 = vmatpush3.bf16.msra.mxu1 %v8556_v62  ;;  %v9526_v62 = vld [vmem:[%s12796_s0 + $0x28] sm:$0xff] }
  0x62   :  { %519 = vst [vmem:[#allocation2 + $0x200] sm:$0xff] %v12814_v47  ;;  %520 = vst [vmem:[#allocation2 + $0x208] sm:$0x3] %v12814_v47 }
  0x63   :  { %521 = vst [vmem:[#allocation2 + $0x210] sm:$0xff] %v12814_v47  ;;  %522 = vst [vmem:[#allocation2 + $0x218] sm:$0x3] %v12814_v47 }
  0x64   :  { %523 = vst [vmem:[#allocation2 + $0x220] sm:$0xff] %v12814_v47  ;;  %524 = vst [vmem:[#allocation2 + $0x228] sm:$0x3] %v12814_v47 }
  0x65   :  { %525 = vst [vmem:[#allocation2 + $0x230] sm:$0xff] %v12814_v47  ;;  %526 = vst [vmem:[#allocation2 + $0x238] sm:$0x3] %v12814_v47 }
  0x66   :  { %527 = vst [vmem:[#allocation2 + $0x240] sm:$0xff] %v12814_v47  ;;  %528 = vst [vmem:[#allocation2 + $0x248] sm:$0x3] %v12814_v47 }
  0x67   :  { %529 = vst [vmem:[#allocation2 + $0x250] sm:$0xff] %v12814_v47  ;;  %530 = vst [vmem:[#allocation2 + $0x258] sm:$0x3] %v12814_v47 }
  0x68   :  { %531 = vst [vmem:[#allocation2 + $0x260] sm:$0xff] %v12814_v47  ;;  %532 = vst [vmem:[#allocation2 + $0x268] sm:$0x3] %v12814_v47 }
  0x69   :  { %533 = vst [vmem:[#allocation2 + $0x270] sm:$0xff] %v12814_v47  ;;  %534 = vst [vmem:[#allocation2 + $0x278] sm:$0x3] %v12814_v47  ;;  %v8531_v47 = vld [vmem:[%s12797_s1 + $0x8] sm:$0xff]  }
  0x6a   :  { %6931 = vmatpush3.bf16.msra.mxu0 %v8531_v47  ;;  %v8537_v47 = vld [vmem:[%s12797_s1 + $0x58] sm:$0xff]   ;;  %570 = vst [vmem:[#allocation2 + $0x31] sm:$0xff] %v9510_v53  ;;  %573 = vst [vmem:[#allocation2 + $0x61] sm:$0xff] %v9526_v62 }
  0x6b   :  { %6932 = vmatprep.subr.bf16.mxu0 %v8533_v39  ;;  %v8539_v39 = vld [vmem:[%s12797_s1 + $0x18] sm:$0xff]   ;;  %576 = vst [vmem:[#allocation2 + $0xb1] sm:$0xff] %v9544_v46  ;;  %577 = vst [vmem:[#allocation2 + $0xc1] sm:$0xff] %v9566_v50 }
  0x6c   :  { %13040 = vst [vmem:[#allocation90_spill] sm:$0xff] %v9632_v56  ;;  %582 = vst [vmem:[#allocation2 + $0x111] sm:$0xff] %v9632_v56 }
  0x6d   :  { %13041 = vst [vmem:[#allocation91_spill] sm:$0xff] %v9638_v23  ;;  %583 = vst [vmem:[#allocation2 + $0x121] sm:$0xff] %v9638_v23 }
  0x6e   :  { %6933 = vmatpush3.bf16.msra.mxu0 %v8535_v55  ;;  %v8541_v55 = vld [vmem:[%s12797_s1 + $0x60] sm:$0xff]   ;;  %590 = vst [vmem:[#allocation2 + $0x1b1] sm:$0xff] %v9731_v4  ;;  %13049 = vst [vmem:[#allocation99_spill] sm:$0xff] %v9753_v28 }
  0x6f   :  { %6934 = vmatprep.subr.bf16.mxu0 %v8537_v47  ;;  %v8543_v47 = vld [vmem:[%s12797_s1 + $0x20] sm:$0xff]   ;;  %593 = vst [vmem:[#allocation2 + $0x201] sm:$0xff] %v9753_v28  ;;  %597 = vst [vmem:[#allocation2 + $0x241] sm:$0xff] %v9813_v10 }
  0x71   :  { %v794_v43 = vld [vmem:[#allocation2 + $0x30] sm:$0xff] }
  0x72   :  { %6935 = vmatpush3.bf16.msra.mxu0 %v8539_v39  ;;  %v8545_v39 = vld [vmem:[%s12797_s1 + $0x68] sm:$0xff]   ;;  %v9578_v49 = vld [vmem:[#allocation2 + $0x32] sm:$0xff]  ;;  %v801_v21 = vld [vmem:[#allocation2 + $0xc0] sm:$0xff] }
  0x73   :  { %6936 = vmatprep.subr.bf16.mxu0 %v8541_v55  ;;  %v8547_v55 = vld [vmem:[%s12797_s1 + $0x28] sm:$0xff]   ;;  %v806_v24 = vld [vmem:[#allocation2 + $0x110] sm:$0xff] }
  0x74   :  { %v9772_v11 = vld [vmem:[#allocation2 + $0xc2] sm:$0xff] }
  0x75   :  { %v9838_v8 = vld [vmem:[#allocation2 + $0x120] sm:$0xff] }
  0x76   :  { %6937 = vmatpush3.bf16.msra.mxu0 %v8543_v47  ;;  %v8549_v47 = vld [vmem:[%s12797_s1 + $0x70] sm:$0xff]   ;;  %13054 = vst [vmem:[#allocation104_spill] sm:$0xff] %v9838_v8 }
  0x77   :  { %6938 = vmatprep.subr.bf16.mxu0 %v8545_v39  ;;  %v8551_v39 = vld [vmem:[%s12797_s1 + $0x30] sm:$0xff]  }
  0x7a   :  { %6939 = vmatpush3.bf16.msra.mxu0 %v8547_v55  ;;  %v8553_v55 = vld [vmem:[%s12797_s1 + $0x78] sm:$0xff]  }
  0x7b   :  { %6940 = vmatprep.subr.bf16.mxu0 %v8549_v47  ;;  %v8555_v47 = vld [vmem:[%s12797_s1 + $0x38] sm:$0xff]  }
  0x7e   :  { %6941 = vmatpush3.bf16.msra.mxu0 %v8551_v39  ;;  %v535_v39 = vld [vmem:[%s12796_s0] sm:$0xff] }
  0x7f   :  { %6942 = vmatprep.subr.bf16.mxu0 %v8553_v55  ;;  %568 = vst [vmem:[#allocation2 + $0x11] sm:$0xff] %v535_v39  ;;  %v696_v54 = vpack.c.bf16 %v535_v39, %v664_v38  ;;  %v9501_v55 = vld [vmem:[%s12796_s0 + $0x8] sm:$0xff]  ;;  %v9516_v38 = vld [vmem:[%s12796_s0 + $0x18] sm:$0xff] }
  0x80   :  { %569 = vst [vmem:[#allocation2 + $0x21] sm:$0xff] %v9501_v55  ;;  %571 = vst [vmem:[#allocation2 + $0x41] sm:$0xff] %v9516_v38  ;;  %v3115_v39 = vld [vmem:[#allocation2 + $0x2] sm:$0xff]  ;;  %v9558_v44 = vpack.c.bf16 %v9510_v53, %v9501_v55 }
  0x81   :  { %1929 = vmatprep.mubr.bf16.mxu0 %v696_v54  ;;  %v9534_v54 = vld [vmem:[%s12796_s0 + $0x30] sm:$0xff] }
  0x82   :  { %6943 = vmatpush3.bf16.msra.mxu0 %v8555_v47  ;;  %v9521_v47 = vld [vmem:[%s12796_s0 + $0x20] sm:$0xff]  ;;  %574 = vst [vmem:[#allocation2 + $0x71] sm:$0xff] %v9534_v54 }
  0x83   :  { %7152 = vmatprep.subr.bf16.mxu0 %v8557_v63  ;;  %572 = vst [vmem:[#allocation2 + $0x51] sm:$0xff] %v9521_v47  ;;  %v9539_v63 = vld [vmem:[%s12796_s0 + $0x38] sm:$0xff]  ;;  %v9586_v33 = vpack.c.bf16 %v9521_v47, %v9516_v38 }
  0x84   :  { %575 = vst [vmem:[#allocation2 + $0x81] sm:$0xff] %v9539_v63 }
  0x86   :  { %v792_v37 = vld [vmem:[#allocation2 + $0x10] sm:$0xff] }
  0x87   :  { %v9546_v61 = vld [vmem:[#allocation2 + $0x12] sm:$0xff]  ;;  %v793_v45 = vld [vmem:[#allocation2 + $0x20] sm:$0xff]  ;;  %v632_v36 = vpack.c.bf16 %v792_v37, %v13035_v60 }
  0x88   :  { %v760_v51 = vpack.c.bf16 %v9546_v61, %v3115_v39  ;;  %v824_v59 = vpack.c.bf16 %v793_v45, %v792_v37  ;;  %v795_v39 = vld [vmem:[#allocation2 + $0x40] sm:$0xff] }
  0x89   :  { %1930 = vmatmul.mubr.bf16.vlgmr.msra.gmra.mrb[0].mxu0 %v632_v36  ;;  %v825_v37 = vpack.c.bf16 %v795_v39, %v794_v43  ;;  %v9573_v34 = vld [vmem:[#allocation2 + $0x22] sm:$0xff]  ;;  %v8561_v36 = vld [vmem:[%s12797_s1 + $0x150] sm:$0xff]  }
  0x8a   :  { %2090 = vmatprep.mubr.bf16.mxu1 %v824_v59  ;;  %7153 = vmatpush3.bf16.msra.mxu0 %v8558_v52  ;;  %v9582_v59 = vpack.c.bf16 %v794_v43, %v793_v45  ;;  %v796_v42 = vld [vmem:[#allocation2 + $0x50] sm:$0xff]  ;;  %v761_v43 = vpack.c.bf16 %v9578_v49, %v9573_v34  ;;  %v9602_v45 = vld [vmem:[%s12796_s0 + $0x58] sm:$0xff]  ;;  %v9622_v48 = vld [vmem:[#allocation2 + $0x42] sm:$0xff] }
  0x8b   :  { %2091 = vmatmul.mubr.bf16.vlgmr.msra.gmra.mrb[0].mxu1 %v760_v51  ;;  %1937 = vmatprep.mubr.bf16.mxu0 %v9558_v44  ;;  %v797_v51 = vld [vmem:[#allocation2 + $0x60] sm:$0xff]  ;;  %13037 = vst [vmem:[#allocation87_spill] sm:$0xff] %v9602_v45  ;;  %579 = vst [vmem:[#allocation2 + $0xe1] sm:$0xff] %v9602_v45  ;;  %v9624_v41 = vld [vmem:[#allocation2 + $0x52] sm:$0xff] }
  0x8c   :  { %7154 = vmatprep.subr.bf16.mxu0 %v8559_v35  ;;  %2098 = vmatprep.mubr.bf16.mxu1 %v825_v37  ;;  %v9594_v35 = vld [vmem:[%s12796_s0 + $0x50] sm:$0xff]  ;;  %v9612_v37 = vld [vmem:[%s12796_s0 + $0x68] sm:$0xff]  ;;  %v826_v52 = vpack.c.bf16 %v797_v51, %v796_v42  ;;  %v9647_v31 = vld [vmem:[#allocation2 + $0x80] sm:$0xff]  ;;  %v762_v15 = vpack.c.bf16 %v9624_v41, %v9622_v48 }
  0x8d   :  { %13036 = vst [vmem:[#allocation86_spill] sm:$0xff] %v9594_v35  ;;  %578 = vst [vmem:[#allocation2 + $0xd1] sm:$0xff] %v9594_v35  ;;  %v798_v40 = vld [vmem:[#allocation2 + $0x70] sm:$0xff] }
  0x8e   :  { %7155 = vmatpush3.bf16.msra.mxu0 %v8560_v58  ;;  %v9607_v58 = vld [vmem:[%s12796_s0 + $0x60] sm:$0xff]  ;;  %13039 = vst [vmem:[#allocation89_spill] sm:$0xff] %v9612_v37  ;;  %581 = vst [vmem:[#allocation2 + $0x101] sm:$0xff] %v9612_v37  ;;  %v827_v22 = vpack.c.bf16 %v9647_v31, %v798_v40  ;;  %v9679_v30 = vld [vmem:[#allocation2 + $0x72] sm:$0xff]  ;;  %v9683_v5 = vpack.c.bf16 %v798_v40, %v797_v51 }
  0x8f   :  { %7156 = vmatprep.subr.bf16.mxu0 %v8561_v36  ;;  %13038 = vst [vmem:[#allocation88_spill] sm:$0xff] %v9607_v58  ;;  %580 = vst [vmem:[#allocation2 + $0xf1] sm:$0xff] %v9607_v58  ;;  %v8563_v36 = vld [vmem:[%s12797_s1 + $0x158] sm:$0xff]   ;;  %v9709_v40 = vld [vmem:[%s12796_s0 + $0xa8] sm:$0xff] }
  0x90   :  { %13047 = vst [vmem:[#allocation97_spill] sm:$0xff] %v9709_v40  ;;  %589 = vst [vmem:[#allocation2 + $0x1a1] sm:$0xff] %v9709_v40 }
  0x91   :  { %1938 = vmatmul.mubr.bf16.gmra.mrb[4].mxu0 %v9582_v59 }
  0x92   :  { %1945 = vmatprep.mubr.bf16.mxu0 %v9586_v33  ;;  %7157 = vmatpush3.bf16.msra.mxu0 %v8562_v57  ;;  %v9643_v57 = vld [vmem:[%s12796_s0 + $0x80] sm:$0xff] }
  0x93   :  { %2099 = vmatmul.mubr.bf16.gmra.mrb[4].mxu1 %v761_v43  ;;  %7158 = vmatprep.subr.bf16.mxu0 %v8563_v36  ;;  %13042 = vst [vmem:[#allocation92_spill] sm:$0xff] %v9643_v57  ;;  %584 = vst [vmem:[#allocation2 + $0x151] sm:$0xff] %v9643_v57  ;;  %v9654_v43 = vld [vmem:[%s12796_s0 + $0x88] sm:$0xff]  ;;  %v9656_v36 = vpack.c.bf16 %v796_v42, %v795_v39  ;;  %v8566_v42 = vld [vmem:[%s12797_s1 + $0x1c0] sm:$0xff]  }
  0x94   :  { %2106 = vmatprep.mubr.bf16.mxu1 %v826_v52  ;;  %13043 = vst [vmem:[#allocation93_spill] sm:$0xff] %v9654_v43  ;;  %585 = vst [vmem:[#allocation2 + $0x161] sm:$0xff] %v9654_v43  ;;  %v9664_v52 = vpack.c.bf16 %v9534_v54, %v9526_v62  ;;  %v672_v39 = vld [vmem:[#allocation2 + $0xa1] sm:$0xff]  ;;  %7264 = vmatprep.subr.bf16.mxu1 %v8566_v42  ;;  %v9696_v42 = vld [vmem:[%s12796_s0 + $0x98] sm:$0xff] }
  0x95   :  { %13045 = vst [vmem:[#allocation95_spill] sm:$0xff] %v9696_v42  ;;  %587 = vst [vmem:[#allocation2 + $0x181] sm:$0xff] %v9696_v42  ;;  %7265 = vmatpush3.bf16.msra.mxu1 %v8568_v29  ;;  %v8571_v29 = vld [vmem:[%s12797_s1 + $0x128] sm:$0xff]   ;;  %v802_v19 = vld [vmem:[#allocation2 + $0xd0] sm:$0xff] }
  0x96   :  { %7159 = vmatpush3.bf16.msra.mxu0 %v8564_v32  ;;  %v9677_v32 = vld [vmem:[#allocation2 + $0x62] sm:$0xff]  ;;  %7266 = vmatprep.subr.bf16.mxu1 %v8570_v13  ;;  %v804_v18 = vld [vmem:[#allocation2 + $0xf0] sm:$0xff]  ;;  %v9778_v26 = vpack.c.bf16 %v802_v19, %v801_v21 }
  0x97   :  { %7160 = vmatprep.subr.bf16.mxu0 %v8565_v7  ;;  %v800_v7 = vld [vmem:[#allocation2 + $0xb0] sm:$0xff]  ;;  %v763_v51 = vpack.c.bf16 %v9679_v30, %v9677_v32  ;;  %v9741_v13 = vld [vmem:[%s12796_s0 + $0xc0] sm:$0xff] }
  0x98   :  { %v828_v14 = vpack.c.bf16 %v801_v21, %v800_v7  ;;  %13048 = vst [vmem:[#allocation98_spill] sm:$0xff] %v9741_v13  ;;  %592 = vst [vmem:[#allocation2 + $0x1f1] sm:$0xff] %v9741_v13  ;;  %v636_v12 = vpack.c.bf16 %v800_v7, %v13035_v60  ;;  %v8574_v60 = vld [vmem:[%s12797_s1 + $0x1d0] sm:$0xff]   ;;  %v805_v2 = vld [vmem:[#allocation2 + $0x100] sm:$0xff] }
  0x99   :  { %1946 = vmatmul.mubr.bf16.gmra.mrb[8].mxu0 %v9656_v36  ;;  %7267 = vmatpush3.bf16.msra.mxu1 %v8572_v20  ;;  %v8575_v7 = vld [vmem:[%s12797_s1 + $0x130] sm:$0xff]   ;;  %v8577_v21 = vld [vmem:[%s12797_s1 + $0x1d8] sm:$0xff]   ;;  %v9821_v17 = vld [vmem:[#allocation2 + $0xe2] sm:$0xff] }
  0x9a   :  { %1953 = vmatprep.mubr.bf16.mxu0 %v9664_v52  ;;  %7161 = vmatpush3.bf16.msra.mxu0 %v8567_v6  ;;  %v9704_v6 = vld [vmem:[%s12796_s0 + $0xa0] sm:$0xff]  ;;  %v9823_v1 = vld [vmem:[#allocation2 + $0xf2] sm:$0xff] }
  0x9b   :  { %2107 = vmatmul.mubr.bf16.gmra.mrb[8].mxu1 %v762_v15  ;;  %v9691_v15 = vld [vmem:[%s12796_s0 + $0x90] sm:$0xff]  ;;  %13046 = vst [vmem:[#allocation96_spill] sm:$0xff] %v9704_v6  ;;  %588 = vst [vmem:[#allocation2 + $0x191] sm:$0xff] %v9704_v6  ;;  %7268 = vmatprep.subr.bf16.mxu1 %v8574_v60  ;;  %v9790_v60 = vpack.c.bf16 %v9607_v58, %v9602_v45  ;;  %v809_v58 = vld [vmem:[#allocation2 + $0x160] sm:$0xff] }
  0x9c   :  { %2114 = vmatprep.mubr.bf16.mxu1 %v827_v22  ;;  %13044 = vst [vmem:[#allocation94_spill] sm:$0xff] %v9691_v15  ;;  %v700_v22 = vpack.c.bf16 %v9544_v46, %v672_v39  ;;  %586 = vst [vmem:[#allocation2 + $0x171] sm:$0xff] %v9691_v15  ;;  %v8569_v39 = vld [vmem:[%s12797_s1 + $0x168] sm:$0xff]   ;;  %v811_v23 = vld [vmem:[#allocation2 + $0x180] sm:$0xff] }
  0x9d   :  { %7162 = vmatprep.subr.bf16.mxu0 %v8569_v39  ;;  %v9736_v39 = vld [vmem:[%s12796_s0 + $0xb8] sm:$0xff] }
  0x9e   :  { %7163 = vmatpush3.bf16.msra.mxu0 %v8571_v29  ;;  %v9745_v29 = vld [vmem:[#allocation2 + $0xb2] sm:$0xff]  ;;  %591 = vst [vmem:[#allocation2 + $0x1c1] sm:$0xff] %v9736_v39 }
  0x9f   :  { %7164 = vmatprep.subr.bf16.mxu0 %v8573_v27  ;;  %v8576_v27 = vld [vmem:[%s12797_s1 + $0x190] sm:$0xff]  }
  0xa0   :  { %7269 = vmatpush3.bf16.msra.mxu1 %v8576_v27  ;;  %v8578_v27 = vld [vmem:[%s12797_s1 + $0x198] sm:$0xff]  }
  0xa1   :  { %1954 = vmatmul.mubr.bf16.gmra.mrb[12].mxu0 %v9683_v5  ;;  %7270 = vmatprep.subr.bf16.mxu1 %v8577_v21  ;;  %v8580_v21 = vld [vmem:[%s12797_s1 + $0x138] sm:$0xff]  }
  0xa2   :  { %1961 = vmatprep.mubr.bf16.mxu0 %v700_v22  ;;  %v803_v22 = vld [vmem:[#allocation2 + $0xe0] sm:$0xff]  ;;  %7165 = vmatpush3.bf16.msra.mxu0 %v8575_v7 }
  0xa3   :  { %2115 = vmatmul.mubr.bf16.gmra.mrb[12].mxu1 %v763_v51  ;;  %v3123_v51 = vld [vmem:[#allocation2 + $0xa2] sm:$0xff]  ;;  %v829_v3 = vpack.c.bf16 %v803_v22, %v802_v19  ;;  %v9836_v0 = vpack.c.bf16 %v804_v18, %v803_v22  ;;  %7166 = vmatprep.subr.bf16.mxu0 %v8579_v25  ;;  %v9856_v22 = vld [vmem:[%s12796_s0 + $0xf0] sm:$0xff] }
  0xa4   :  { %2122 = vmatprep.mubr.bf16.mxu1 %v828_v14  ;;  %v9759_v14 = vpack.c.bf16 %v9594_v35, %v9566_v50  ;;  %v764_v20 = vpack.c.bf16 %v9745_v29, %v3123_v51  ;;  %v9807_v7 = vld [vmem:[%s12796_s0 + $0xe0] sm:$0xff]  ;;  %v830_v51 = vpack.c.bf16 %v805_v2, %v804_v18  ;;  %7271 = vmatpush3.bf16.msra.mxu1 %v8578_v27  ;;  %v8583_v25 = vld [vmem:[%s12797_s1 + $0x1e8] sm:$0xff]  }
  0xa5   :  { %13052 = vst [vmem:[#allocation102_spill] sm:$0xff] %v9807_v7  ;;  %596 = vst [vmem:[#allocation2 + $0x231] sm:$0xff] %v9807_v7  ;;  %v9845_v35 = vpack.c.bf16 %v9632_v56, %v9612_v37  ;;  %7272 = vmatprep.subr.bf16.mxu1 %v8581_v16  ;;  %v831_v18 = vpack.c.bf16 %v9838_v8, %v806_v24  ;;  %v680_v27 = vld [vmem:[#allocation2 + $0x141] sm:$0xff]  ;;  %v9863_v16 = vld [vmem:[%s12796_s0 + $0xf8] sm:$0xff] }
  0xa6   :  { %13053 = vst [vmem:[#allocation103_spill] sm:$0xff] %v9836_v0  ;;  %7167 = vmatpush3.bf16.msra.mxu0 %v8580_v21  ;;  %13056 = vst [vmem:[#allocation106_spill] sm:$0xff] %v9856_v22  ;;  %v9866_v21 = vld [vmem:[#allocation2 + $0x102] sm:$0xff]  ;;  %v808_v8 = vld [vmem:[#allocation2 + $0x150] sm:$0xff] }
  0xa7   :  { %13055 = vst [vmem:[#allocation105_spill] sm:$0xff] %v9845_v35  ;;  %598 = vst [vmem:[#allocation2 + $0x251] sm:$0xff] %v9856_v22  ;;  %v8585_v37 = vld [vmem:[%s12797_s1 + $0x1f0] sm:$0xff]  }
  0xa8   :  { %13057 = vst [vmem:[#allocation107_spill] sm:$0xff] %v9863_v16  ;;  %599 = vst [vmem:[#allocation2 + $0x261] sm:$0xff] %v9863_v16  ;;  %v9882_v16 = vpack.c.bf16 %v806_v24, %v805_v2  ;;  %v8588_v2 = vld [vmem:[%s12797_s1 + $0x1b8] sm:$0xff]   ;;  %v3131_v24 = vld [vmem:[#allocation2 + $0x142] sm:$0xff] }
  0xa9   :  { %1962 = vmatmul.mubr.bf16.gmra.mrb[16].mxu0 %v636_v12  ;;  %v9776_v12 = vld [vmem:[#allocation2 + $0xd2] sm:$0xff] }
  0xaa   :  { %1969 = vmatprep.mubr.bf16.mxu0 %v9759_v14  ;;  %v765_v19 = vpack.c.bf16 %v9776_v12, %v9772_v11  ;;  %v810_v56 = vld [vmem:[#allocation2 + $0x170] sm:$0xff] }
  0xab   :  { %2123 = vmatmul.mubr.bf16.gmra.mrb[16].mxu1 %v764_v20  ;;  %v9786_v20 = vld [vmem:[%s12796_s0 + $0xd0] sm:$0xff] }
  0xac   :  { %2130 = vmatprep.mubr.bf16.mxu1 %v829_v3  ;;  %13050 = vst [vmem:[#allocation100_spill] sm:$0xff] %v9786_v20  ;;  %594 = vst [vmem:[#allocation2 + $0x211] sm:$0xff] %v9786_v20  ;;  %v9796_v3 = vld [vmem:[%s12796_s0 + $0xd8] sm:$0xff] }
  0xad   :  { %13051 = vst [vmem:[#allocation101_spill] sm:$0xff] %v9796_v3  ;;  %595 = vst [vmem:[#allocation2 + $0x221] sm:$0xff] %v9796_v3 }
  0xb1   :  { %1970 = vmatmul.mubr.bf16.gmra.mrb[20].mxu0 %v9778_v26 }
  0xb2   :  { %1977 = vmatprep.mubr.bf16.mxu0 %v9790_v60 }
  0xb3   :  { %2131 = vmatmul.mubr.bf16.gmra.mrb[20].mxu1 %v765_v19  ;;  %v8582_v19 = vld [vmem:[%s12797_s1 + $0x1a0] sm:$0xff]  }
  0xb4   :  { %2138 = vmatprep.mubr.bf16.mxu1 %v830_v51  ;;  %v766_v51 = vpack.c.bf16 %v9823_v1, %v9821_v17  ;;  %7273 = vmatpush3.bf16.msra.mxu1 %v8582_v19  ;;  %v9868_v19 = vld [vmem:[#allocation2 + $0x112] sm:$0xff] }
  0xb5   :  { %7274 = vmatprep.subr.bf16.mxu1 %v8583_v25  ;;  %v8586_v25 = vld [vmem:[%s12797_s1 + $0x1b0] sm:$0xff]   ;;  %v767_v45 = vpack.c.bf16 %v9868_v19, %v9866_v21 }
  0xb8   :  { %7275 = vmatpush3.bf16.msra.mxu1 %v8584_v9  ;;  %v9893_v9 = vld [vmem:[%s12797_s1 + $0x200] sm:$0xff]  }
  0xb9   :  { %1978 = vmatmul.mubr.bf16.gmra.mrb[24].mxu0 %v9836_v0  ;;  %7276 = vmatprep.subr.bf16.mxu1 %v8585_v37  ;;  %v704_v0 = vpack.c.bf16 %v9643_v57, %v680_v27  ;;  %v9902_v27 = vld [vmem:[#allocation2 + $0x152] sm:$0xff]  ;;  %v9919_v37 = vpack.c.bf16 %v810_v56, %v809_v58 }
  0xba   :  { %1985 = vmatprep.mubr.bf16.mxu0 %v9845_v35  ;;  %8024 = vmatprep.subr.bf16.mxu0 %v9893_v9  ;;  %v812_v57 = vld [vmem:[#allocation2 + $0x190] sm:$0xff] }
  0xbb   :  { %2139 = vmatmul.mubr.bf16.gmra.mrb[24].mxu1 %v766_v51  ;;  %v8587_v51 = vld [vmem:[%s12797_s1 + $0x1f8] sm:$0xff]   ;;  %13059 = vst [vmem:[#allocation109_spill] sm:$0xff] %v9919_v37 }
  0xbc   :  { %2146 = vmatprep.mubr.bf16.mxu1 %v831_v18  ;;  %v832_v18 = vpack.c.bf16 %v809_v58, %v808_v8  ;;  %7277 = vmatpush3.bf16.msra.mxu1 %v8586_v25  ;;  %v9904_v25 = vld [vmem:[#allocation2] sm:$0xff]  ;;  %v9933_v58 = vld [vmem:[#allocation2 + $0x192] sm:$0xff] }
  0xbd   :  { %7278 = vmatprep.subr.bf16.mxu1 %v8587_v51  ;;  %v640_v35 = vpack.c.bf16 %v808_v8, %v9904_v25  ;;  %v833_v51 = vpack.c.bf16 %v811_v23, %v810_v56  ;;  %v9917_v8 = vld [vmem:[#allocation2 + $0x172] sm:$0xff]  ;;  %v9931_v56 = vld [vmem:[#allocation2 + $0x182] sm:$0xff]  ;;  %13061 = vst [vmem:[#allocation111_spill] sm:$0xff] %v9933_v58 }
  0xbe   :  { %13058 = vst [vmem:[#allocation108_spill] sm:$0xff] %v9917_v8 }
  0xc0   :  { %7279 = vmatpush3.bf16.msra.mxu1 %v8588_v2  ;;  %v9915_v2 = vld [vmem:[#allocation2 + $0x162] sm:$0xff] }
  0xc1   :  { %1986 = vmatmul.mubr.bf16.gmra.mrb[28].mxu0 %v9882_v16 }
  0xc2   :  { %1993 = vmatprep.mubr.bf16.mxu0 %v704_v0  ;;  %v9909_v0 = vpack.c.bf16 %v9691_v15, %v9654_v43  ;;  %v813_v43 = vld [vmem:[#allocation2 + $0x1a0] sm:$0xff]  ;;  %v814_v15 = vld [vmem:[#allocation2 + $0x1b0] sm:$0xff] }
  0xc3   :  { %2147 = vmatmul.mubr.bf16.gmra.mrb[28].mxu1 %v767_v45  ;;  %v768_v45 = vpack.c.bf16 %v9902_v27, %v3131_v24  ;;  %v9923_v24 = vpack.c.bf16 %v9704_v6, %v9696_v42  ;;  %v9937_v42 = vld [vmem:[#allocation2 + $0x1c0] sm:$0xff]  ;;  %v816_v6 = vld [vmem:[#allocation2 + $0x1f0] sm:$0xff] }
  0xc4   :  { %2154 = vmatprep.mubr.bf16.mxu1 %v832_v18  ;;  %v9935_v18 = vpack.c.bf16 %v812_v57, %v811_v23  ;;  %13063 = vst [vmem:[#allocation113_spill] sm:$0xff] %v9937_v42  ;;  %v9948_v23 = vld [vmem:[#allocation2 + $0x1a2] sm:$0xff] }
  0xc5   :  { %13060 = vst [vmem:[#allocation110_spill] sm:$0xff] %v9923_v24 }
  0xc6   :  { %13062 = vst [vmem:[#allocation112_spill] sm:$0xff] %v9935_v18 }
  0xc9   :  { %1994 = vmatmul.mubr.bf16.gmra.mrb[32].mxu0 %v640_v35  ;;  %v769_v35 = vpack.c.bf16 %v9917_v8, %v9915_v2  ;;  %v9941_v8 = vpack.c.bf16 %v9731_v4, %v9709_v40  ;;  %v817_v40 = vld [vmem:[#allocation2 + $0x200] sm:$0xff] }
  0xca   :  { %2001 = vmatprep.mubr.bf16.mxu0 %v9909_v0 }
  0xcb   :  { %2155 = vmatmul.mubr.bf16.gmra.mrb[32].mxu1 %v768_v45  ;;  %v834_v45 = vpack.c.bf16 %v813_v43, %v812_v57  ;;  %13064 = vst [vmem:[#allocation114_spill] sm:$0xff] %v9941_v8  ;;  %v9950_v57 = vld [vmem:[#allocation2 + $0x1b2] sm:$0xff] }
  0xcc   :  { %2162 = vmatprep.mubr.bf16.mxu1 %v833_v51  ;;  %v9952_v51 = vpack.c.bf16 %v814_v15, %v813_v43  ;;  %v644_v43 = vpack.c.bf16 %v816_v6, %v9904_v25 }
  0xce   :  { %13065 = vst [vmem:[#allocation115_spill] sm:$0xff] %v9952_v51 }
  0xd1   :  { %2002 = vmatmul.mubr.bf16.gmra.mrb[36].mxu0 %v9919_v37 }
  0xd2   :  { %2009 = vmatprep.mubr.bf16.mxu0 %v9923_v24  ;;  %v835_v24 = vpack.c.bf16 %v9937_v42, %v814_v15  ;;  %v771_v42 = vpack.c.bf16 %v9950_v57, %v9948_v23  ;;  %v818_v15 = vld [vmem:[#allocation2 + $0x210] sm:$0xff] }
  0xd3   :  { %2163 = vmatmul.mubr.bf16.gmra.mrb[36].mxu1 %v769_v35  ;;  %v770_v35 = vpack.c.bf16 %v9933_v58, %v9931_v56  ;;  %v836_v58 = vpack.c.bf16 %v817_v40, %v816_v6  ;;  %v820_v6 = vld [vmem:[#allocation2 + $0x230] sm:$0xff] }
  0xd4   :  { %2170 = vmatprep.mubr.bf16.mxu1 %v834_v45  ;;  %v688_v45 = vld [vmem:[#allocation2 + $0x1e1] sm:$0xff] }
  0xd5   :  { %v708_v37 = vpack.c.bf16 %v9741_v13, %v688_v45  ;;  %v9965_v45 = vpack.c.bf16 %v9786_v20, %v9753_v28  ;;  %v9977_v20 = vpack.c.bf16 %v9807_v7, %v9796_v3  ;;  %v9989_v28 = vld [vmem:[#allocation2 + $0x260] sm:$0xff]  ;;  %v9993_v7 = vpack.c.bf16 %v9856_v22, %v9813_v10 }
  0xd6   :  { %13067 = vst [vmem:[#allocation117_spill] sm:$0xff] %v9989_v28 }
  0xd7   :  { %13066 = vst [vmem:[#allocation116_spill] sm:$0xff] %v9977_v20 }
  0xd9   :  { %2010 = vmatmul.mubr.bf16.gmra.mrb[40].mxu0 %v9935_v18  ;;  %v819_v18 = vld [vmem:[#allocation2 + $0x220] sm:$0xff] }
  0xda   :  { %2017 = vmatprep.mubr.bf16.mxu0 %v9941_v8  ;;  %v9960_v8 = vld [vmem:[#allocation2 + $0x1f2] sm:$0xff] }
  0xdb   :  { %2171 = vmatmul.mubr.bf16.gmra.mrb[40].mxu1 %v770_v35  ;;  %v821_v35 = vld [vmem:[#allocation2 + $0x240] sm:$0xff] }
  0xdc   :  { %2178 = vmatprep.mubr.bf16.mxu1 %v835_v24  ;;  %v3139_v24 = vld [vmem:[#allocation2 + $0x1e2] sm:$0xff] }
  0xdd   :  { %v772_v13 = vpack.c.bf16 %v9960_v8, %v3139_v24 }
  0xe1   :  { %2018 = vmatmul.mubr.bf16.gmra.mrb[44].mxu0 %v9952_v51  ;;  %v837_v51 = vpack.c.bf16 %v819_v18, %v818_v15 }
  0xe2   :  { %2025 = vmatprep.mubr.bf16.mxu0 %v708_v37  ;;  %v9971_v37 = vld [vmem:[#allocation2 + $0x212] sm:$0xff] }
  0xe3   :  { %2179 = vmatmul.mubr.bf16.gmra.mrb[44].mxu1 %v771_v42  ;;  %v9969_v42 = vld [vmem:[#allocation2 + $0x202] sm:$0xff] }
  0xe4   :  { %2186 = vmatprep.mubr.bf16.mxu1 %v836_v58  ;;  %v9973_v58 = vpack.c.bf16 %v818_v15, %v817_v40  ;;  %v773_v24 = vpack.c.bf16 %v9971_v37, %v9969_v42  ;;  %v9985_v40 = vld [vmem:[#allocation2 + $0x232] sm:$0xff] }
  0xe5   :  { %v822_v15 = vld [vmem:[#allocation2 + $0x250] sm:$0xff] }
  0xe9   :  { %2026 = vmatmul.mubr.bf16.gmra.mrb[48].mxu0 %v644_v43  ;;  %v838_v43 = vpack.c.bf16 %v821_v35, %v820_v6 }
  0xea   :  { %2033 = vmatprep.mubr.bf16.mxu0 %v9965_v45 }
  0xeb   :  { %2187 = vmatmul.mubr.bf16.gmra.mrb[48].mxu1 %v772_v13  ;;  %v9983_v13 = vld [vmem:[#allocation2 + $0x222] sm:$0xff] }
  0xec   :  { %2194 = vmatprep.mubr.bf16.mxu1 %v837_v51  ;;  %v9987_v51 = vpack.c.bf16 %v820_v6, %v819_v18  ;;  %v774_v3 = vpack.c.bf16 %v9985_v40, %v9983_v13  ;;  %v10000_v18 = vld [vmem:[#allocation2 + $0x242] sm:$0xff]  ;;  %v10002_v6 = vld [vmem:[#allocation2 + $0x252] sm:$0xff] }
  0xed   :  { %v775_v22 = vpack.c.bf16 %v10002_v6, %v10000_v18 }
  0xf1   :  { %2034 = vmatmul.mubr.bf16.gmra.mrb[52].mxu0 %v9973_v58 }
  0xf2   :  { %2041 = vmatprep.mubr.bf16.mxu0 %v9977_v20  ;;  %v839_v20 = vpack.c.bf16 %v9989_v28, %v822_v15  ;;  %v856_v28 = vld [vmem:[#allocation2 + $0x11] sm:$0xff] }
  0xf3   :  { %2195 = vmatmul.mubr.bf16.gmra.mrb[52].mxu1 %v773_v24  ;;  %v10004_v24 = vpack.c.bf16 %v822_v15, %v821_v35  ;;  %v8590_v35 = vld [vmem:[%s12797_s1 + $0x208] sm:$0xff]   ;;  %v13082_v15 = vld [vmem:[#allocation90_spill] sm:$0xff] }
  0xf4   :  { %2202 = vmatprep.mubr.bf16.mxu1 %v838_v43  ;;  %v952_v43 = vpack.c.bf16 %v9573_v34, %v9546_v61  ;;  %v8591_v34 = vld [vmem:[%s12797_s1 + $0x210] sm:$0xff]  }
  0xf9   :  { %2042 = vmatmul.mubr.bf16.gmra.mrb[56].mxu0 %v9987_v51 }
  0xfa   :  { %2049 = vmatprep.mubr.bf16.mxu0 %v9993_v7 }
  0xfb   :  { %2203 = vmatmul.mubr.bf16.gmra.mrb[56].mxu1 %v774_v3  ;;  %v953_v3 = vpack.c.bf16 %v9622_v48, %v9578_v49  ;;  %v13068_v48 = vpack.c.bf16 %v9516_v38, %v9510_v53  ;;  %v10033_v49 = vld [vmem:[#allocation2 + $0x82] sm:$0xff]  ;;  %v13069_v38 = vpack.c.bf16 %v9526_v62, %v9521_v47  ;;  %v8596_v47 = vld [vmem:[%s12797_s1 + $0x238] sm:$0xff]   ;;  %v958_v62 = vpack.c.bf16 %v9866_v21, %v9823_v1  ;;  %v13081_v21 = vld [vmem:[#allocation104_spill] sm:$0xff] }
  0xfc   :  { %2210 = vmatprep.mubr.bf16.mxu1 %v839_v20  ;;  %v888_v20 = vpack.c.bf16 %v9501_v55, %v856_v28  ;;  %v954_v28 = vpack.c.bf16 %v9677_v32, %v9624_v41  ;;  %v1056_v41 = vld [vmem:[#allocation2 + $0x91] sm:$0xff]  ;;  %v955_v61 = vpack.c.bf16 %v10033_v49, %v9679_v30  ;;  %v8594_v53 = vld [vmem:[%s12797_s1 + $0x228] sm:$0xff]  }
  0xfd   :  { %v1084_v55 = vpack.c.bf16 %v1056_v41, %v9539_v63  ;;  %v8595_v30 = vld [vmem:[%s12797_s1 + $0x230] sm:$0xff]   ;;  %v13075_v32 = vld [vmem:[#allocation103_spill] sm:$0xff]  ;;  %v13095_v41 = vld [vmem:[#allocation114_spill] sm:$0xff] }
 0x101   :  { %2050 = vmatmul.mubr.bf16.gmra.mrb[60].mxu0 %v10004_v24 }
 0x102   :  { %2251 = vmatprep.mubr.bf16.mxu0 %v952_v43 }
 0x103   :  { %2211 = vmatmul.mubr.bf16.gmra.mrb[60].mxu1 %v775_v22  ;;  %v960_v22 = vpack.c.bf16 %v9915_v2, %v9902_v27  ;;  %v13088_v27 = vld [vmem:[#allocation109_spill] sm:$0xff]  ;;  %v13089_v2 = vld [vmem:[#allocation110_spill] sm:$0xff] }
 0x104   :  { %2412 = vmatprep.mubr.bf16.mxu1 %v9558_v44  ;;  %v8592_v44 = vld [vmem:[%s12797_s1 + $0x218] sm:$0xff]  }
 0x109   :  { %2252 = vmatmul.mubr.bf16.vlgmr.msra.gmra.mrb[64].mxu0 %v888_v20 }
 0x10a   :  { %8025 = vmatpush3.bf16.msra.mxu0 %v9893_v9  ;;  %2259 = vmatprep.mubr.bf16.mxu0 %v953_v3  ;;  %v1024_v9 = vpack.c.bf16 %v9904_v25, %v13081_v21  ;;  %v13085_v3 = vld [vmem:[#allocation93_spill] sm:$0xff] }
 0x10b   :  { %2413 = vmatmul.mubr.bf16.vlgmr.msra.gmra.mrb[64].mxu1 %v9582_v59  ;;  %8026 = vmatprep.subr.bf16.mxu0 %v8590_v35  ;;  %v956_v59 = vpack.c.bf16 %v9772_v11, %v9745_v29  ;;  %v957_v11 = vpack.c.bf16 %v9821_v17, %v9776_v12  ;;  %v10076_v17 = vld [vmem:[#allocation2 + $0x122] sm:$0xff]  ;;  %v13076_v29 = vld [vmem:[#allocation105_spill] sm:$0xff] }
 0x10c   :  { %2420 = vmatprep.mubr.bf16.mxu1 %v9586_v33  ;;  %v8593_v33 = vld [vmem:[%s12797_s1 + $0x220] sm:$0xff]   ;;  %v13078_v12 = vld [vmem:[#allocation89_spill] sm:$0xff] }
 0x10e   :  { %8027 = vmatpush3.bf16.msra.mxu0 %v8590_v35 }
 0x10f   :  { %8028 = vmatprep.subr.bf16.mxu0 %v8591_v34 }
 0x111   :  { %2260 = vmatmul.mubr.bf16.gmra.mrb[68].mxu0 %v13068_v48  ;;  %v13092_v48 = vld [vmem:[#allocation94_spill] sm:$0xff] }
 0x112   :  { %2267 = vmatprep.mubr.bf16.mxu0 %v954_v28  ;;  %8029 = vmatpush3.bf16.msra.mxu0 %v8591_v34  ;;  %v13090_v34 = vld [vmem:[#allocation111_spill] sm:$0xff] }
 0x113   :  { %2421 = vmatmul.mubr.bf16.gmra.mrb[68].mxu1 %v9656_v36  ;;  %8030 = vmatprep.subr.bf16.mxu0 %v8592_v44  ;;  %v1020_v36 = vpack.c.bf16 %v9904_v25, %v9647_v31  ;;  %v13071_v31 = vpack.c.bf16 %v9566_v50, %v9544_v46  ;;  %v1064_v46 = vld [vmem:[#allocation2 + $0x131] sm:$0xff]  ;;  %v13077_v50 = vld [vmem:[#allocation91_spill] sm:$0xff]  ;;  %v962_v28 = vpack.c.bf16 %v9948_v23, %v13090_v34 }
 0x114   :  { %2428 = vmatprep.mubr.bf16.mxu1 %v9664_v52  ;;  %v13083_v43 = vpack.c.bf16 %v13077_v50, %v13082_v15 }
 0x116   :  { %8031 = vmatpush3.bf16.msra.mxu0 %v8592_v44  ;;  %v13091_v44 = vld [vmem:[#allocation95_spill] sm:$0xff] }
 0x117   :  { %8032 = vmatprep.subr.bf16.mxu0 %v8593_v33 }
 0x119   :  { %2268 = vmatmul.mubr.bf16.gmra.mrb[72].mxu0 %v13069_v38  ;;  %v13096_v38 = vld [vmem:[#allocation97_spill] sm:$0xff] }
 0x11a   :  { %2275 = vmatprep.mubr.bf16.mxu0 %v955_v61  ;;  %8033 = vmatpush3.bf16.msra.mxu0 %v8593_v33  ;;  %v13093_v33 = vpack.c.bf16 %v13091_v44, %v13092_v48  ;;  %v1072_v61 = vld [vmem:[#allocation2 + $0x1d1] sm:$0xff] }
 0x11b   :  { %2429 = vmatmul.mubr.bf16.gmra.mrb[72].mxu1 %v9683_v5  ;;  %8034 = vmatprep.subr.bf16.mxu0 %v8594_v53  ;;  %v13070_v5 = vpack.c.bf16 %v9539_v63, %v9534_v54  ;;  %v13072_v54 = vld [vmem:[#allocation87_spill] sm:$0xff]  ;;  %v13073_v63 = vld [vmem:[#allocation86_spill] sm:$0xff] }
 0x11c   :  { %2436 = vmatprep.mubr.bf16.mxu1 %v1084_v55  ;;  %v13074_v52 = vpack.c.bf16 %v13072_v54, %v13073_v63  ;;  %v1092_v55 = vpack.c.bf16 %v1072_v61, %v9736_v39  ;;  %v13100_v63 = vld [vmem:[#allocation113_spill] sm:$0xff]  ;;  %v966_v61 = vpack.c.bf16 %v10000_v18, %v9985_v40  ;;  %v13107_v18 = vld [vmem:[#allocation102_spill] sm:$0xff] }
 0x11e   :  { %8035 = vmatpush3.bf16.msra.mxu0 %v8594_v53 }
 0x11f   :  { %8036 = vmatprep.subr.bf16.mxu0 %v8595_v30 }
 0x121   :  { %2276 = vmatmul.mubr.bf16.gmra.mrb[76].mxu0 %v13070_v5 }
 0x122   :  { %2283 = vmatprep.mubr.bf16.mxu0 %v956_v59  ;;  %8037 = vmatpush3.bf16.msra.mxu0 %v8595_v30  ;;  %v13097_v30 = vld [vmem:[#allocation96_spill] sm:$0xff]  ;;  %v13099_v59 = vld [vmem:[#allocation115_spill] sm:$0xff] }
 0x123   :  { %2437 = vmatmul.mubr.bf16.gmra.mrb[76].mxu1 %v1020_v36  ;;  %8038 = vmatprep.subr.bf16.mxu0 %v8596_v47  ;;  %v13098_v23 = vpack.c.bf16 %v13096_v38, %v13097_v30 }
 0x124   :  { %2444 = vmatprep.mubr.bf16.mxu1 %v9759_v14  ;;  %v1088_v14 = vpack.c.bf16 %v1064_v46, %v13077_v50  ;;  %v13101_v50 = vpack.c.bf16 %v9736_v39, %v9731_v4  ;;  %v965_v4 = vpack.c.bf16 %v9983_v13, %v9971_v37  ;;  %v13105_v37 = vld [vmem:[#allocation100_spill] sm:$0xff]  ;;  %v13106_v13 = vld [vmem:[#allocation101_spill] sm:$0xff] }
 0x125   :  { %v901_v48 = vpack.c.bf16 %v13106_v13, %v13105_v37  ;;  %v1115_v13 = vld [vmem:[#allocation2 + $0x42] sm:$0xff] }
 0x126   :  { %8039 = vmatpush3.bf16.msra.mxu0 %v8596_v47 }
 0x129   :  { %2284 = vmatmul.mubr.bf16.gmra.mrb[80].mxu0 %v13071_v31 }
 0x12a   :  { %2291 = vmatprep.mubr.bf16.mxu0 %v957_v11 }
 0x12b   :  { %2445 = vmatmul.mubr.bf16.gmra.mrb[80].mxu1 %v9778_v26  ;;  %v959_v26 = vpack.c.bf16 %v10076_v17, %v9868_v19  ;;  %v13084_v19 = vld [vmem:[#allocation108_spill] sm:$0xff] }
 0x12c   :  { %2452 = vmatprep.mubr.bf16.mxu1 %v9790_v60  ;;  %v13079_v60 = vld [vmem:[#allocation88_spill] sm:$0xff]  ;;  %v961_v20 = vpack.c.bf16 %v9931_v56, %v13084_v19  ;;  %v10107_v56 = vld [vmem:[#allocation2 + $0x1c2] sm:$0xff] }
 0x12d   :  { %v13080_v1 = vpack.c.bf16 %v13078_v12, %v13079_v60  ;;  %v963_v53 = vpack.c.bf16 %v10107_v56, %v9950_v57 }
 0x131   :  { %2292 = vmatmul.mubr.bf16.gmra.mrb[84].mxu0 %v13074_v52  ;;  %v1028_v52 = vpack.c.bf16 %v9904_v25, %v13100_v63 }
 0x132   :  { %2299 = vmatprep.mubr.bf16.mxu0 %v958_v62  ;;  %v964_v62 = vpack.c.bf16 %v9969_v42, %v9960_v8 }
 0x133   :  { %2453 = vmatmul.mubr.bf16.gmra.mrb[84].mxu1 %v13075_v32 }
 0x134   :  { %2460 = vmatprep.mubr.bf16.mxu1 %v13076_v29 }
 0x139   :  { %2300 = vmatmul.mubr.bf16.gmra.mrb[88].mxu0 %v13080_v1  ;;  %v13102_v1 = vld [vmem:[#allocation98_spill] sm:$0xff] }
 0x13a   :  { %2307 = vmatprep.mubr.bf16.mxu0 %v959_v26 }
 0x13b   :  { %2461 = vmatmul.mubr.bf16.gmra.mrb[88].mxu1 %v9882_v16  ;;  %v13086_v16 = vld [vmem:[#allocation92_spill] sm:$0xff] }
 0x13c   :  { %2468 = vmatprep.mubr.bf16.mxu1 %v1088_v14  ;;  %v13087_v35 = vpack.c.bf16 %v13085_v3, %v13086_v16 }
 0x141   :  { %2308 = vmatmul.mubr.bf16.gmra.mrb[92].mxu0 %v13083_v43 }
 0x142   :  { %2315 = vmatprep.mubr.bf16.mxu0 %v960_v22  ;;  %v13103_v22 = vld [vmem:[#allocation99_spill] sm:$0xff] }
 0x143   :  { %2469 = vmatmul.mubr.bf16.gmra.mrb[92].mxu1 %v1024_v9  ;;  %v900_v21 = vpack.c.bf16 %v13103_v22, %v13102_v1  ;;  %v1114_v1 = vld [vmem:[#allocation2 + $0x32] sm:$0xff] }
 0x144   :  { %2476 = vmatprep.mubr.bf16.mxu1 %v9909_v0  ;;  %v13094_v0 = vld [vmem:[#allocation112_spill] sm:$0xff] }
 0x149   :  { %2316 = vmatmul.mubr.bf16.gmra.mrb[96].mxu0 %v13087_v35 }
 0x14a   :  { %2323 = vmatprep.mubr.bf16.mxu0 %v961_v20 }
 0x14b   :  { %2477 = vmatmul.mubr.bf16.gmra.mrb[96].mxu1 %v13088_v27 }
 0x14c   :  { %2484 = vmatprep.mubr.bf16.mxu1 %v13089_v2 }
 0x151   :  { %2324 = vmatmul.mubr.bf16.gmra.mrb[100].mxu0 %v13093_v33 }
 0x152   :  { %2331 = vmatprep.mubr.bf16.mxu0 %v962_v28  ;;  %v13104_v28 = vld [vmem:[#allocation116_spill] sm:$0xff] }
 0x153   :  { %2485 = vmatmul.mubr.bf16.gmra.mrb[100].mxu1 %v13094_v0 }
 0x154   :  { %2492 = vmatprep.mubr.bf16.mxu1 %v13095_v41 }
 0x159   :  { %2332 = vmatmul.mubr.bf16.gmra.mrb[104].mxu0 %v13098_v23 }
 0x15a   :  { %2339 = vmatprep.mubr.bf16.mxu0 %v963_v53 }
 0x15b   :  { %2493 = vmatmul.mubr.bf16.gmra.mrb[104].mxu1 %v13099_v59 }
 0x15c   :  { %v6944_v36 = vpop.f32.mrb[0].mxu0  ;;  %2500 = vmatprep.mubr.bf16.mxu1 %v1092_v55 }
 0x15d   :  { %v6945_v47 = vpop.f32.mrb[1].mxu0 }
 0x15e   :  { %v7056_v5 = vpop.f32.mrb[0].mxu1  ;;  %v6946_v11 = vadd.f32 %v6945_v47, %v6944_v36  ;;  %v6947_v31 = vpop.f32.mrb[2].mxu0  ;;  %v10146_v47 = vld [vmem:[#allocation2 + $0x262] sm:$0xff] }
 0x15f   :  { %v7057_v54 = vpop.f32.mrb[1].mxu1  ;;  %v6948_v57 = vpop.f32.mrb[3].mxu0 }
 0x160   :  { %v7058_v32 = vadd.f32 %v7057_v54, %v7056_v5  ;;  %v7059_v29 = vpop.f32.mrb[2].mxu1  ;;  %v6949_v46 = vadd.f32 %v6948_v57, %v6947_v31  ;;  %v902_v31 = vpack.c.bf16 %v9813_v10, %v13107_v18  ;;  %v1113_v10 = vld [vmem:[#allocation2 + $0x22] sm:$0xff] }
 0x161   :  { %v7060_v26 = vpop.f32.mrb[3].mxu1  ;;  %2340 = vmatmul.mubr.bf16.gmra.mrb[108].mxu0 %v13101_v50  ;;  %v13108_v50 = vld [vmem:[#allocation107_spill] sm:$0xff] }
 0x162   :  { %v10124_v14 = vadd.f32 %v7058_v32, %v6946_v11  ;;  %v7061_v12 = vadd.f32 %v7060_v26, %v7059_v29  ;;  %2347 = vmatprep.mubr.bf16.mxu0 %v964_v62  ;;  %v1080_v62 = vld [vmem:[#allocation2 + $0x271] sm:$0xff] }
 0x163   :  { %2501 = vmatmul.mubr.bf16.gmra.mrb[108].mxu1 %v1028_v52  ;;  %v967_v52 = vpack.c.bf16 %v10146_v47, %v10002_v6 }
 0x164   :  { %v10126_v60 = vadd.f32 %v7061_v12, %v6949_v46  ;;  %v6950_v8 = vpop.f32.mrb[4].mxu0  ;;  %2508 = vmatprep.mubr.bf16.mxu1 %v9965_v45  ;;  %v1096_v12 = vpack.c.bf16 %v1080_v62, %v13108_v50  ;;  %v3506_v62 = vld [vmem:[#allocation2 + $0x92] sm:$0xff] }
 0x165   :  { %v6951_v42 = vpop.f32.mrb[5].mxu0 }
 0x166   :  { %v7062_v9 = vpop.f32.mrb[4].mxu1  ;;  %v6952_v15 = vadd.f32 %v6951_v42, %v6950_v8  ;;  %v6953_v43 = vpop.f32.mrb[6].mxu0 }
 0x167   :  { %v7063_v39 = vpop.f32.mrb[5].mxu1  ;;  %v6954_v19 = vpop.f32.mrb[7].mxu0 }
 0x168   :  { %v7064_v20 = vadd.f32 %v7063_v39, %v7062_v9  ;;  %v7065_v3 = vpop.f32.mrb[6].mxu1  ;;  %v6955_v16 = vadd.f32 %v6954_v19, %v6953_v43  ;;  %v13109_v9 = vld [vmem:[#allocation106_spill] sm:$0xff]  ;;  %v1145_v19 = vpack.c.bf16 %v1114_v1, %v1113_v10 }
 0x169   :  { %v7066_v35 = vpop.f32.mrb[7].mxu1  ;;  %2348 = vmatmul.mubr.bf16.gmra.mrb[112].mxu0 %v900_v21 }
 0x16a   :  { %v10133_v27 = vadd.f32 %v7064_v20, %v6952_v15  ;;  %v7067_v45 = vadd.f32 %v7066_v35, %v7065_v3  ;;  %2355 = vmatprep.mubr.bf16.mxu0 %v965_v4  ;;  %v903_v15 = vpack.c.bf16 %v13108_v50, %v13109_v9 }
 0x16b   :  { %2509 = vmatmul.mubr.bf16.gmra.mrb[112].mxu1 %v9973_v58 }
 0x16c   :  { %v10136_v2 = vadd.f32 %v7067_v45, %v6955_v16  ;;  %v6956_v34 = vpop.f32.mrb[8].mxu0  ;;  %2516 = vmatprep.mubr.bf16.mxu1 %v13104_v28  ;;  %v13110_v16 = vld [vmem:[#allocation117_spill] sm:$0xff] }
 0x16d   :  { %v6957_v44 = vpop.f32.mrb[9].mxu0  ;;  %v1032_v35 = vpack.c.bf16 %v9904_v25, %v13110_v16 }
 0x16e   :  { %v7068_v33 = vpop.f32.mrb[8].mxu1  ;;  %v6958_v0 = vadd.f32 %v6957_v44, %v6956_v34  ;;  %v6959_v41 = vpop.f32.mrb[10].mxu0 }
 0x16f   :  { %v7069_v53 = vpop.f32.mrb[9].mxu1  ;;  %v6960_v55 = vpop.f32.mrb[11].mxu0 }
 0x170   :  { %v7070_v38 = vadd.f32 %v7069_v53, %v7068_v33  ;;  %v7071_v30 = vpop.f32.mrb[10].mxu1  ;;  %v6961_v58 = vadd.f32 %v6960_v55, %v6959_v41  ;;  %v1117_v33 = vld [vmem:[#allocation2 + $0x62] sm:$0xff] }
 0x171   :  { %v7072_v23 = vpop.f32.mrb[11].mxu1  ;;  %2356 = vmatmul.mubr.bf16.gmra.mrb[116].mxu0 %v901_v48  ;;  %v1116_v48 = vld [vmem:[#allocation2 + $0x52] sm:$0xff] }
 0x172   :  { %v10143_v59 = vadd.f32 %v7070_v38, %v6958_v0  ;;  %v7073_v36 = vadd.f32 %v7072_v23, %v7071_v30  ;;  %2363 = vmatprep.mubr.bf16.mxu0 %v966_v61  ;;  %v1118_v0 = vld [vmem:[#allocation2 + $0x72] sm:$0xff]  ;;  %v1146_v55 = vpack.c.bf16 %v1116_v48, %v1115_v13 }
 0x173   :  { %2517 = vmatmul.mubr.bf16.gmra.mrb[116].mxu1 %v9987_v51 }
 0x174   :  { %v10148_v5 = vadd.f32 %v7073_v36, %v6961_v58  ;;  %v6962_v11 = vpop.f32.mrb[12].mxu0  ;;  %2524 = vmatprep.mubr.bf16.mxu1 %v9993_v7  ;;  %v1147_v58 = vpack.c.bf16 %v1118_v0, %v1117_v33 }
 0x175   :  { %v6963_v40 = vpop.f32.mrb[13].mxu0 }
 0x176   :  { %v7074_v54 = vpop.f32.mrb[12].mxu1  ;;  %v6964_v57 = vadd.f32 %v6963_v40, %v6962_v11  ;;  %v6965_v63 = vpop.f32.mrb[14].mxu0 }
 0x177   :  { %v7075_v32 = vpop.f32.mrb[13].mxu1  ;;  %v6966_v51 = vpop.f32.mrb[15].mxu0 }
 0x178   :  { %v7076_v29 = vadd.f32 %v7075_v32, %v7074_v54  ;;  %v7077_v46 = vpop.f32.mrb[14].mxu1  ;;  %v6967_v26 = vadd.f32 %v6966_v51, %v6965_v63  ;;  %v1121_v63 = vld [vmem:[#allocation2 + $0xc2] sm:$0xff] }
 0x179   :  { %v7078_v8 = vpop.f32.mrb[15].mxu1  ;;  %2364 = vmatmul.mubr.bf16.gmra.mrb[120].mxu0 %v902_v31 }
 0x17a   :  { %v10156_v7 = vadd.f32 %v7076_v29, %v6964_v57  ;;  %v7079_v42 = vadd.f32 %v7078_v8, %v7077_v46  ;;  %2371 = vmatprep.mubr.bf16.mxu0 %v967_v52  ;;  %v1122_v52 = vld [vmem:[#allocation2 + $0xd2] sm:$0xff]  ;;  %v1148_v46 = vpack.c.bf16 %v3506_v62, %v10033_v49 }
 0x17b   :  { %2525 = vmatmul.mubr.bf16.gmra.mrb[120].mxu1 %v10004_v24  ;;  %v1149_v8 = vpack.c.bf16 %v1122_v52, %v1121_v63 }
 0x17c   :  { %v10159_v22 = vadd.f32 %v7079_v42, %v6967_v26  ;;  %v6968_v6 = vpop.f32.mrb[16].mxu0  ;;  %2532 = vmatprep.mubr.bf16.mxu1 %v1096_v12 }
 0x17d   :  { %v6969_v21 = vpop.f32.mrb[17].mxu0 }
 0x17e   :  { %v7080_v43 = vpop.f32.mrb[16].mxu1  ;;  %v6970_v4 = vadd.f32 %v6969_v21, %v6968_v6  ;;  %v6971_v39 = vpop.f32.mrb[18].mxu0 }
 0x17f   :  { %v7081_v20 = vpop.f32.mrb[17].mxu1  ;;  %v6972_v3 = vpop.f32.mrb[19].mxu0 }
 0x180   :  { %v7082_v24 = vadd.f32 %v7081_v20, %v7080_v43  ;;  %v7083_v45 = vpop.f32.mrb[18].mxu1  ;;  %v6973_v34 = vadd.f32 %v6972_v3, %v6971_v39  ;;  %v1124_v39 = vld [vmem:[#allocation2 + $0xf2] sm:$0xff] }
 0x181   :  { %v7084_v28 = vpop.f32.mrb[19].mxu1  ;;  %2372 = vmatmul.mubr.bf16.gmra.mrb[124].mxu0 %v903_v15  ;;  %v1126_v20 = vld [vmem:[#allocation2 + $0x112] sm:$0xff] }
 0x182   :  { %v10165_v44 = vadd.f32 %v7082_v24, %v6970_v4  ;;  %v7085_v37 = vadd.f32 %v7084_v28, %v7083_v45  ;;  %8040 = vmatprep.mubr.bf16.mxu0 %v1145_v19  ;;  %v1123_v4 = vld [vmem:[#allocation2 + $0xe2] sm:$0xff] }
 0x183   :  { %2533 = vmatmul.mubr.bf16.gmra.mrb[124].mxu1 %v1032_v35  ;;  %v1125_v19 = vld [vmem:[#allocation2 + $0x102] sm:$0xff]  ;;  %v1150_v35 = vpack.c.bf16 %v1124_v39, %v1123_v4 }
 0x184   :  { %v10167_v41 = vadd.f32 %v7085_v37, %v6973_v34  ;;  %v6974_v61 = vpop.f32.mrb[20].mxu0  ;;  %v1151_v28 = vpack.c.bf16 %v1126_v20, %v1125_v19 }
 0x185   :  { %v6975_v53 = vpop.f32.mrb[21].mxu0 }
 0x186   :  { %v7086_v25 = vpop.f32.mrb[20].mxu1  ;;  %v6976_v38 = vadd.f32 %v6975_v53, %v6974_v61  ;;  %v6977_v30 = vpop.f32.mrb[22].mxu0  ;;  %v3514_v53 = vld [vmem:[#allocation2 + $0x132] sm:$0xff] }
 0x187   :  { %v7087_v23 = vpop.f32.mrb[21].mxu1  ;;  %v6978_v36 = vpop.f32.mrb[23].mxu0 }
 0x188   :  { %v7088_v11 = vadd.f32 %v7087_v23, %v7086_v25  ;;  %v7089_v40 = vpop.f32.mrb[22].mxu1  ;;  %v6979_v18 = vadd.f32 %v6978_v36, %v6977_v30  ;;  %v1130_v30 = vld [vmem:[#allocation2 + $0x172] sm:$0xff] }
 0x189   :  { %v7090_v31 = vpop.f32.mrb[23].mxu1  ;;  %8041 = vmatmul.mubr.bf16.vlgmr.msra.gmra.mrb[128].mxu0 %v1146_v55 }
 0x18a   :  { %v10169_v54 = vadd.f32 %v7088_v11, %v6976_v38  ;;  %v7091_v57 = vadd.f32 %v7090_v31, %v7089_v40  ;;  %8044 = vmatprep.mubr.bf16.mxu0 %v1147_v58  ;;  %v1129_v38 = vld [vmem:[#allocation2 + $0x162] sm:$0xff]  ;;  %v1152_v11 = vpack.c.bf16 %v3514_v53, %v10076_v17 }
 0x18b   :  { %v1153_v62 = vpack.c.bf16 %v1130_v30, %v1129_v38 }
 0x18c   :  { %v10171_v32 = vadd.f32 %v7091_v57, %v6979_v18  ;;  %v6980_v51 = vpop.f32.mrb[24].mxu0 }
 0x18d   :  { %v6981_v29 = vpop.f32.mrb[25].mxu0 }
 0x18e   :  { %v7092_v26 = vpop.f32.mrb[24].mxu1  ;;  %v6982_v50 = vadd.f32 %v6981_v29, %v6980_v51  ;;  %v6983_v12 = vpop.f32.mrb[26].mxu0 }
 0x18f   :  { %v7093_v42 = vpop.f32.mrb[25].mxu1  ;;  %v6984_v10 = vpop.f32.mrb[27].mxu0 }
 0x190   :  { %v7094_v1 = vadd.f32 %v7093_v42, %v7092_v26  ;;  %v7095_v6 = vpop.f32.mrb[26].mxu1  ;;  %v6985_v21 = vadd.f32 %v6984_v10, %v6983_v12  ;;  %v1131_v12 = vld [vmem:[#allocation2 + $0x182] sm:$0xff]  ;;  %v1134_v10 = vld [vmem:[#allocation2 + $0x1b2] sm:$0xff] }
 0x191   :  { %v7096_v9 = vpop.f32.mrb[27].mxu1  ;;  %8045 = vmatmul.mubr.bf16.gmra.mrb[132].mxu0 %v1148_v46  ;;  %v1133_v42 = vld [vmem:[#allocation2 + $0x1a2] sm:$0xff] }
 0x192   :  { %v10174_v15 = vadd.f32 %v7094_v1, %v6982_v50  ;;  %v7097_v43 = vadd.f32 %v7096_v9, %v7095_v6  ;;  %8048 = vmatprep.mubr.bf16.mxu0 %v1149_v8  ;;  %v1132_v8 = vld [vmem:[#allocation2 + $0x192] sm:$0xff]  ;;  %v1155_v39 = vpack.c.bf16 %v1134_v10, %v1133_v42 }
 0x194   :  { %v10176_v49 = vadd.f32 %v7097_v43, %v6985_v21  ;;  %v6986_v3 = vpop.f32.mrb[28].mxu0  ;;  %v1154_v21 = vpack.c.bf16 %v1132_v8, %v1131_v12 }
 0x195   :  { %v6987_v16 = vpop.f32.mrb[29].mxu0 }
 0x196   :  { %v7098_v24 = vpop.f32.mrb[28].mxu1  ;;  %v6988_v45 = vadd.f32 %v6987_v16, %v6986_v3  ;;  %v6989_v34 = vpop.f32.mrb[30].mxu0 }
 0x197   :  { %v7099_v37 = vpop.f32.mrb[29].mxu1  ;;  %v6990_v13 = vpop.f32.mrb[31].mxu0 }
 0x198   :  { %v7100_v48 = vadd.f32 %v7099_v37, %v7098_v24  ;;  %v7101_v33 = vpop.f32.mrb[30].mxu1  ;;  %v6991_v0 = vadd.f32 %v6990_v13, %v6989_v34  ;;  %v1137_v37 = vld [vmem:[#allocation2 + $0x202] sm:$0xff]  ;;  %v1138_v13 = vld [vmem:[#allocation2 + $0x212] sm:$0xff] }
 0x199   :  { %v7102_v61 = vpop.f32.mrb[31].mxu1  ;;  %8049 = vmatmul.mubr.bf16.gmra.mrb[136].mxu0 %v1150_v35  ;;  %v1157_v30 = vpack.c.bf16 %v1138_v13, %v1137_v37 }
 0x19a   :  { %v10178_v55 = vadd.f32 %v7100_v48, %v6988_v45  ;;  %v7103_v25 = vadd.f32 %v7102_v61, %v7101_v33  ;;  %8052 = vmatprep.mubr.bf16.mxu0 %v1151_v28  ;;  %v3522_v45 = vld [vmem:[#allocation2 + $0x1d2] sm:$0xff] }
 0x19b   :  { %v1156_v61 = vpack.c.bf16 %v3522_v45, %v10107_v56 }
 0x19c   :  { %v10180_v58 = vadd.f32 %v7103_v25, %v6991_v0  ;;  %v6992_v23 = vpop.f32.mrb[32].mxu0 }
 0x19d   :  { %v6993_v36 = vpop.f32.mrb[33].mxu0 }
 0x19e   :  { %v7104_v40 = vpop.f32.mrb[32].mxu1  ;;  %v6994_v18 = vadd.f32 %v6993_v36, %v6992_v23  ;;  %v6995_v31 = vpop.f32.mrb[34].mxu0 }
 0x19f   :  { %v7105_v57 = vpop.f32.mrb[33].mxu1  ;;  %v6996_v63 = vpop.f32.mrb[35].mxu0 }
 0x1a0   :  { %v7106_v52 = vadd.f32 %v7105_v57, %v7104_v40  ;;  %v7107_v51 = vpop.f32.mrb[34].mxu1  ;;  %v6997_v29 = vadd.f32 %v6996_v63, %v6995_v31  ;;  %v1139_v63 = vld [vmem:[#allocation2 + $0x222] sm:$0xff] }
 0x1a1   :  { %v7108_v46 = vpop.f32.mrb[35].mxu1  ;;  %8053 = vmatmul.mubr.bf16.gmra.mrb[140].mxu0 %v1152_v11 }
 0x1a2   :  { %v10183_v26 = vadd.f32 %v7106_v52, %v6994_v18  ;;  %v7109_v50 = vadd.f32 %v7108_v46, %v7107_v51  ;;  %8056 = vmatprep.mubr.bf16.mxu0 %v1153_v62  ;;  %v1140_v52 = vld [vmem:[#allocation2 + $0x232] sm:$0xff]  ;;  %v1141_v51 = vld [vmem:[#allocation2 + $0x242] sm:$0xff] }
 0x1a3   :  { %v1158_v12 = vpack.c.bf16 %v1140_v52, %v1139_v63 }
 0x1a4   :  { %v10185_v17 = vadd.f32 %v7109_v50, %v6997_v29  ;;  %v6998_v1 = vpop.f32.mrb[36].mxu0  ;;  %v1142_v29 = vld [vmem:[#allocation2 + $0x252] sm:$0xff] }
 0x1a5   :  { %v6999_v6 = vpop.f32.mrb[37].mxu0 }
 0x1a6   :  { %v7110_v9 = vpop.f32.mrb[36].mxu1  ;;  %v7000_v43 = vadd.f32 %v6999_v6, %v6998_v1  ;;  %v7001_v4 = vpop.f32.mrb[38].mxu0  ;;  %v1159_v1 = vpack.c.bf16 %v1142_v29, %v1141_v51 }
 0x1a7   :  { %v7111_v19 = vpop.f32.mrb[37].mxu1  ;;  %v7002_v20 = vpop.f32.mrb[39].mxu0 }
 0x1a8   :  { %v7112_v3 = vadd.f32 %v7111_v19, %v7110_v9  ;;  %v7113_v16 = vpop.f32.mrb[38].mxu1  ;;  %v7003_v35 = vadd.f32 %v7002_v20, %v7001_v4  ;;  %v3530_v19 = vld [vmem:[#allocation2 + $0x272] sm:$0xff] }
 0x1a9   :  { %v7114_v24 = vpop.f32.mrb[39].mxu1  ;;  %8057 = vmatmul.mubr.bf16.gmra.mrb[144].mxu0 %v1154_v21  ;;  %v1160_v45 = vpack.c.bf16 %v3530_v19, %v10146_v47 }
 0x1aa   :  { %v10187_v34 = vadd.f32 %v7112_v3, %v7000_v43  ;;  %v7115_v28 = vadd.f32 %v7114_v24, %v7113_v16  ;;  %8060 = vmatprep.mubr.bf16.mxu0 %v1155_v39 }
 0x1ac   :  { %v10189_v48 = vadd.f32 %v7115_v28, %v7003_v35  ;;  %v7004_v33 = vpop.f32.mrb[40].mxu0 }
 0x1ad   :  { %v7005_v0 = vpop.f32.mrb[41].mxu0 }
 0x1ae   :  { %v7116_v53 = vpop.f32.mrb[40].mxu1  ;;  %v7006_v25 = vadd.f32 %v7005_v0, %v7004_v33  ;;  %v7007_v38 = vpop.f32.mrb[42].mxu0 }
 0x1af   :  { %v7117_v23 = vpop.f32.mrb[41].mxu1  ;;  %v7008_v36 = vpop.f32.mrb[43].mxu0 }
 0x1b0   :  { %v7118_v11 = vadd.f32 %v7117_v23, %v7116_v53  ;;  %v7119_v40 = vpop.f32.mrb[42].mxu1  ;;  %v7009_v18 = vadd.f32 %v7008_v36, %v7007_v38 }
 0x1b1   :  { %v7120_v31 = vpop.f32.mrb[43].mxu1  ;;  %8061 = vmatmul.mubr.bf16.gmra.mrb[148].mxu0 %v1156_v61 }
 0x1b2   :  { %v10192_v62 = vadd.f32 %v7118_v11, %v7006_v25  ;;  %v7121_v57 = vadd.f32 %v7120_v31, %v7119_v40  ;;  %8064 = vmatprep.mubr.bf16.mxu0 %v1157_v30 }
 0x1b4   :  { %v10194_v56 = vadd.f32 %v7121_v57, %v7009_v18  ;;  %v7010_v46 = vpop.f32.mrb[44].mxu0 }
 0x1b5   :  { %v7011_v50 = vpop.f32.mrb[45].mxu0 }
 0x1b6   :  { %v7122_v8 = vpop.f32.mrb[44].mxu1  ;;  %v7012_v42 = vadd.f32 %v7011_v50, %v7010_v46  ;;  %v7013_v10 = vpop.f32.mrb[46].mxu0 }
 0x1b7   :  { %v7123_v6 = vpop.f32.mrb[45].mxu1  ;;  %v7014_v21 = vpop.f32.mrb[47].mxu0 }
 0x1b8   :  { %v7124_v9 = vadd.f32 %v7123_v6, %v7122_v8  ;;  %v7125_v43 = vpop.f32.mrb[46].mxu1  ;;  %v7015_v4 = vadd.f32 %v7014_v21, %v7013_v10 }
 0x1b9   :  { %v7126_v39 = vpop.f32.mrb[47].mxu1  ;;  %8065 = vmatmul.mubr.bf16.gmra.mrb[152].mxu0 %v1158_v12 }
 0x1ba   :  { %v10196_v20 = vadd.f32 %v7124_v9, %v7012_v42  ;;  %v7127_v3 = vadd.f32 %v7126_v39, %v7125_v43  ;;  %8068 = vmatprep.mubr.bf16.mxu0 %v1159_v1 }
 0x1bc   :  { %v10198_v16 = vadd.f32 %v7127_v3, %v7015_v4  ;;  %v7016_v35 = vpop.f32.mrb[48].mxu0 }
 0x1bd   :  { %v7017_v24 = vpop.f32.mrb[49].mxu0 }
 0x1be   :  { %v7128_v28 = vpop.f32.mrb[48].mxu1  ;;  %v7018_v37 = vadd.f32 %v7017_v24, %v7016_v35  ;;  %v7019_v13 = vpop.f32.mrb[50].mxu0 }
 0x1bf   :  { %v7129_v33 = vpop.f32.mrb[49].mxu1  ;;  %v7020_v0 = vpop.f32.mrb[51].mxu0 }
 0x1c0   :  { %v7130_v61 = vadd.f32 %v7129_v33, %v7128_v28  ;;  %v7131_v53 = vpop.f32.mrb[50].mxu1  ;;  %v7021_v25 = vadd.f32 %v7020_v0, %v7019_v13 }
 0x1c1   :  { %v7132_v38 = vpop.f32.mrb[51].mxu1  ;;  %8069 = vmatmul.mubr.bf16.gmra.mrb[156].mxu0 %v1160_v45 }
 0x1c2   :  { %v10201_v30 = vadd.f32 %v7130_v61, %v7018_v37  ;;  %v7133_v23 = vadd.f32 %v7132_v38, %v7131_v53 }
 0x1c4   :  { %v10203_v36 = vadd.f32 %v7133_v23, %v7021_v25  ;;  %v7022_v11 = vpop.f32.mrb[52].mxu0 }
 0x1c5   :  { %v7023_v40 = vpop.f32.mrb[53].mxu0 }
 0x1c6   :  { %v7134_v18 = vpop.f32.mrb[52].mxu1  ;;  %v7024_v31 = vadd.f32 %v7023_v40, %v7022_v11  ;;  %v7025_v47 = vpop.f32.mrb[54].mxu0 }
 0x1c7   :  { %v7135_v57 = vpop.f32.mrb[53].mxu1  ;;  %v7026_v63 = vpop.f32.mrb[55].mxu0 }
 0x1c8   :  { %v7136_v52 = vadd.f32 %v7135_v57, %v7134_v18  ;;  %v7137_v51 = vpop.f32.mrb[54].mxu1  ;;  %v7027_v29 = vadd.f32 %v7026_v63, %v7025_v47 }
 0x1c9   :  { %v7138_v46 = vpop.f32.mrb[55].mxu1 }
 0x1ca   :  { %v10205_v50 = vadd.f32 %v7136_v52, %v7024_v31  ;;  %v7139_v12 = vadd.f32 %v7138_v46, %v7137_v51 }
 0x1cc   :  { %v10207_v8 = vadd.f32 %v7139_v12, %v7027_v29  ;;  %v7028_v42 = vpop.f32.mrb[56].mxu0 }
 0x1cd   :  { %v7029_v10 = vpop.f32.mrb[57].mxu0 }
 0x1ce   :  { %v7140_v1 = vpop.f32.mrb[56].mxu1  ;;  %v7030_v6 = vadd.f32 %v7029_v10, %v7028_v42  ;;  %v7031_v21 = vpop.f32.mrb[58].mxu0 }
 0x1cf   :  { %v7141_v9 = vpop.f32.mrb[57].mxu1  ;;  %v7032_v43 = vpop.f32.mrb[59].mxu0 }
 0x1d0   :  { %v7142_v4 = vadd.f32 %v7141_v9, %v7140_v1  ;;  %v7143_v39 = vpop.f32.mrb[58].mxu1  ;;  %v7033_v19 = vadd.f32 %v7032_v43, %v7031_v21 }
 0x1d1   :  { %v7144_v3 = vpop.f32.mrb[59].mxu1 }
 0x1d2   :  { %v10209_v35 = vadd.f32 %v7142_v4, %v7030_v6  ;;  %v7145_v24 = vadd.f32 %v7144_v3, %v7143_v39 }
 0x1d4   :  { %v10211_v45 = vadd.f32 %v7145_v24, %v7033_v19  ;;  %v7034_v28 = vpop.f32.mrb[60].mxu0 }
 0x1d5   :  { %v7035_v37 = vpop.f32.mrb[61].mxu0 }
 0x1d6   :  { %v7146_v13 = vpop.f32.mrb[60].mxu1  ;;  %v7036_v33 = vadd.f32 %v7035_v37, %v7034_v28  ;;  %v7037_v0 = vpop.f32.mrb[62].mxu0 }
 0x1d7   :  { %v7147_v61 = vpop.f32.mrb[61].mxu1  ;;  %v7038_v53 = vpop.f32.mrb[63].mxu0 }
 0x1d8   :  { %v7148_v25 = vadd.f32 %v7147_v61, %v7146_v13  ;;  %v7149_v38 = vpop.f32.mrb[62].mxu1  ;;  %v7039_v23 = vadd.f32 %v7038_v53, %v7037_v0 }
 0x1d9   :  { %v7150_v11 = vpop.f32.mrb[63].mxu1 }
 0x1da   :  { %v10213_v40 = vadd.f32 %v7148_v25, %v7036_v33  ;;  %v7151_v18 = vadd.f32 %v7150_v11, %v7149_v38 }
 0x1dc   :  { %v10215_v31 = vadd.f32 %v7151_v18, %v7039_v23  ;;  %v7168_v47 = vpop.f32.mrb[64].mxu0 }
 0x1dd   :  { %v7169_v57 = vpop.f32.mrb[65].mxu0 }
 0x1de   :  { %v7170_v63 = vadd.f32 %v7169_v57, %v7168_v47  ;;  %v7171_v52 = vpop.f32.mrb[66].mxu0  ;;  %v7280_v51 = vpop.f32.mrb[64].mxu1 }
 0x1df   :  { %v7172_v29 = vpop.f32.mrb[67].mxu0  ;;  %v7281_v46 = vpop.f32.mrb[65].mxu1 }
 0x1e0   :  { %v2254_v12 = vadd.f32 %v7170_v63, %v10124_v14  ;;  %v7173_v42 = vadd.f32 %v7172_v29, %v7171_v52  ;;  %v7282_v10 = vadd.f32 %v7281_v46, %v7280_v51  ;;  %v7283_v1 = vpop.f32.mrb[66].mxu1 }
 0x1e1   :  { %v7284_v6 = vpop.f32.mrb[67].mxu1 }
 0x1e2   :  { %v2257_v21 = vadd.f32 %v7173_v42, %v10126_v60  ;;  %v7285_v9 = vadd.f32 %v7284_v6, %v7283_v1  ;;  %v10219_v43 = vadd.f32 %v7282_v10, %v2254_v12 }
 0x1e4   :  { %v7174_v4 = vpop.f32.mrb[68].mxu0  ;;  %v10221_v39 = vadd.f32 %v7285_v9, %v2257_v21 }
 0x1e5   :  { %v7175_v19 = vpop.f32.mrb[69].mxu0 }
 0x1e6   :  { %v7176_v3 = vadd.f32 %v7175_v19, %v7174_v4  ;;  %v7177_v24 = vpop.f32.mrb[70].mxu0  ;;  %v7286_v28 = vpop.f32.mrb[68].mxu1 }
 0x1e7   :  { %v7178_v37 = vpop.f32.mrb[71].mxu0  ;;  %v7287_v13 = vpop.f32.mrb[69].mxu1 }
 0x1e8   :  { %v2262_v14 = vadd.f32 %v7176_v3, %v10133_v27  ;;  %v7179_v33 = vadd.f32 %v7178_v37, %v7177_v24  ;;  %v7288_v0 = vadd.f32 %v7287_v13, %v7286_v28  ;;  %v7289_v61 = vpop.f32.mrb[70].mxu1 }
 0x1e9   :  { %v7290_v53 = vpop.f32.mrb[71].mxu1 }
 0x1ea   :  { %v2265_v60 = vadd.f32 %v7179_v33, %v10136_v2  ;;  %v7291_v25 = vadd.f32 %v7290_v53, %v7289_v61  ;;  %v10225_v38 = vadd.f32 %v7288_v0, %v2262_v14 }
 0x1ec   :  { %v7180_v23 = vpop.f32.mrb[72].mxu0  ;;  %v10227_v11 = vadd.f32 %v7291_v25, %v2265_v60 }
 0x1ed   :  { %v7181_v18 = vpop.f32.mrb[73].mxu0 }
 0x1ee   :  { %v7182_v47 = vadd.f32 %v7181_v18, %v7180_v23  ;;  %v7183_v57 = vpop.f32.mrb[74].mxu0  ;;  %v7292_v63 = vpop.f32.mrb[72].mxu1 }
 0x1ef   :  { %v7184_v52 = vpop.f32.mrb[75].mxu0  ;;  %v7293_v51 = vpop.f32.mrb[73].mxu1 }
 0x1f0   :  { %v2270_v27 = vadd.f32 %v7182_v47, %v10143_v59  ;;  %v7185_v29 = vadd.f32 %v7184_v52, %v7183_v57  ;;  %v7294_v46 = vadd.f32 %v7293_v51, %v7292_v63  ;;  %v7295_v12 = vpop.f32.mrb[74].mxu1 }
 0x1f1   :  { %v7296_v42 = vpop.f32.mrb[75].mxu1 }
 0x1f2   :  { %v2273_v2 = vadd.f32 %v7185_v29, %v10148_v5  ;;  %v7297_v10 = vadd.f32 %v7296_v42, %v7295_v12  ;;  %v10231_v1 = vadd.f32 %v7294_v46, %v2270_v27 }
 0x1f4   :  { %v7186_v6 = vpop.f32.mrb[76].mxu0  ;;  %v10233_v21 = vadd.f32 %v7297_v10, %v2273_v2 }
 0x1f5   :  { %v7187_v9 = vpop.f32.mrb[77].mxu0 }
 0x1f6   :  { %v7188_v4 = vadd.f32 %v7187_v9, %v7186_v6  ;;  %v7189_v19 = vpop.f32.mrb[78].mxu0  ;;  %v7298_v3 = vpop.f32.mrb[76].mxu1 }
 0x1f7   :  { %v7190_v24 = vpop.f32.mrb[79].mxu0  ;;  %v7299_v28 = vpop.f32.mrb[77].mxu1 }
 0x1f8   :  { %v2278_v59 = vadd.f32 %v7188_v4, %v10156_v7  ;;  %v7191_v37 = vadd.f32 %v7190_v24, %v7189_v19  ;;  %v7300_v13 = vadd.f32 %v7299_v28, %v7298_v3  ;;  %v7301_v14 = vpop.f32.mrb[78].mxu1 }
 0x1f9   :  { %v7302_v33 = vpop.f32.mrb[79].mxu1 }
 0x1fa   :  { %v2281_v5 = vadd.f32 %v7191_v37, %v10159_v22  ;;  %v7303_v0 = vadd.f32 %v7302_v33, %v7301_v14  ;;  %v10237_v61 = vadd.f32 %v7300_v13, %v2278_v59 }
 0x1fc   :  { %v7192_v53 = vpop.f32.mrb[80].mxu0  ;;  %v10239_v60 = vadd.f32 %v7303_v0, %v2281_v5 }
 0x1fd   :  { %v7193_v25 = vpop.f32.mrb[81].mxu0 }
 0x1fe   :  { %v7194_v23 = vadd.f32 %v7193_v25, %v7192_v53  ;;  %v7195_v18 = vpop.f32.mrb[82].mxu0  ;;  %v7304_v47 = vpop.f32.mrb[80].mxu1 }
 0x1ff   :  { %v7196_v57 = vpop.f32.mrb[83].mxu0  ;;  %v7305_v63 = vpop.f32.mrb[81].mxu1 }
 0x200   :  { %v2286_v7 = vadd.f32 %v7194_v23, %v10165_v44  ;;  %v7197_v52 = vadd.f32 %v7196_v57, %v7195_v18  ;;  %v7306_v51 = vadd.f32 %v7305_v63, %v7304_v47  ;;  %v7307_v27 = vpop.f32.mrb[82].mxu1 }
 0x201   :  { %v7308_v29 = vpop.f32.mrb[83].mxu1 }
 0x202   :  { %v2289_v22 = vadd.f32 %v7197_v52, %v10167_v41  ;;  %v7309_v46 = vadd.f32 %v7308_v29, %v7307_v27  ;;  %v10243_v12 = vadd.f32 %v7306_v51, %v2286_v7 }
 0x204   :  { %v7198_v42 = vpop.f32.mrb[84].mxu0  ;;  %v10245_v2 = vadd.f32 %v7309_v46, %v2289_v22 }
 0x205   :  { %v7199_v10 = vpop.f32.mrb[85].mxu0 }
 0x206   :  { %v7200_v6 = vadd.f32 %v7199_v10, %v7198_v42  ;;  %v7201_v9 = vpop.f32.mrb[86].mxu0  ;;  %v7310_v4 = vpop.f32.mrb[84].mxu1 }
 0x207   :  { %v7202_v19 = vpop.f32.mrb[87].mxu0  ;;  %v7311_v3 = vpop.f32.mrb[85].mxu1 }
 0x208   :  { %v2294_v44 = vadd.f32 %v7200_v6, %v10169_v54  ;;  %v7203_v24 = vadd.f32 %v7202_v19, %v7201_v9  ;;  %v7312_v28 = vadd.f32 %v7311_v3, %v7310_v4  ;;  %v7313_v59 = vpop.f32.mrb[86].mxu1 }
 0x209   :  { %v7314_v37 = vpop.f32.mrb[87].mxu1 }
 0x20a   :  { %v2297_v41 = vadd.f32 %v7203_v24, %v10171_v32  ;;  %v7315_v13 = vadd.f32 %v7314_v37, %v7313_v59  ;;  %v10249_v14 = vadd.f32 %v7312_v28, %v2294_v44 }
 0x20c   :  { %v7204_v33 = vpop.f32.mrb[88].mxu0  ;;  %v10251_v5 = vadd.f32 %v7315_v13, %v2297_v41 }
 0x20d   :  { %v7205_v0 = vpop.f32.mrb[89].mxu0 }
 0x20e   :  { %v7206_v53 = vadd.f32 %v7205_v0, %v7204_v33  ;;  %v7207_v25 = vpop.f32.mrb[90].mxu0  ;;  %v7316_v23 = vpop.f32.mrb[88].mxu1 }
 0x20f   :  { %v7208_v18 = vpop.f32.mrb[91].mxu0  ;;  %v7317_v47 = vpop.f32.mrb[89].mxu1 }
 0x210   :  { %v2302_v54 = vadd.f32 %v7206_v53, %v10174_v15  ;;  %v7209_v57 = vadd.f32 %v7208_v18, %v7207_v25  ;;  %v7318_v63 = vadd.f32 %v7317_v47, %v7316_v23  ;;  %v7319_v7 = vpop.f32.mrb[90].mxu1 }
 0x211   :  { %v7320_v52 = vpop.f32.mrb[91].mxu1 }
 0x212   :  { %v2305_v32 = vadd.f32 %v7209_v57, %v10176_v49  ;;  %v7321_v51 = vadd.f32 %v7320_v52, %v7319_v7  ;;  %v10255_v27 = vadd.f32 %v7318_v63, %v2302_v54 }
 0x214   :  { %v7210_v29 = vpop.f32.mrb[92].mxu0  ;;  %v10257_v22 = vadd.f32 %v7321_v51, %v2305_v32 }
 0x215   :  { %v7211_v46 = vpop.f32.mrb[93].mxu0 }
 0x216   :  { %v7212_v42 = vadd.f32 %v7211_v46, %v7210_v29  ;;  %v7213_v10 = vpop.f32.mrb[94].mxu0  ;;  %v7322_v6 = vpop.f32.mrb[92].mxu1 }
 0x217   :  { %v7214_v9 = vpop.f32.mrb[95].mxu0  ;;  %v7323_v4 = vpop.f32.mrb[93].mxu1 }
 0x218   :  { %v2310_v15 = vadd.f32 %v7212_v42, %v10178_v55  ;;  %v7215_v19 = vadd.f32 %v7214_v9, %v7213_v10  ;;  %v7324_v3 = vadd.f32 %v7323_v4, %v7322_v6  ;;  %v7325_v44 = vpop.f32.mrb[94].mxu1 }
 0x219   :  { %v7326_v24 = vpop.f32.mrb[95].mxu1 }
 0x21a   :  { %v2313_v49 = vadd.f32 %v7215_v19, %v10180_v58  ;;  %v7327_v28 = vadd.f32 %v7326_v24, %v7325_v44  ;;  %v10261_v59 = vadd.f32 %v7324_v3, %v2310_v15 }
 0x21c   :  { %v7216_v37 = vpop.f32.mrb[96].mxu0  ;;  %v10263_v41 = vadd.f32 %v7327_v28, %v2313_v49 }
 0x21d   :  { %v7217_v13 = vpop.f32.mrb[97].mxu0 }
 0x21e   :  { %v7218_v33 = vadd.f32 %v7217_v13, %v7216_v37  ;;  %v7219_v0 = vpop.f32.mrb[98].mxu0  ;;  %v7328_v53 = vpop.f32.mrb[96].mxu1 }
 0x21f   :  { %v7220_v25 = vpop.f32.mrb[99].mxu0  ;;  %v7329_v23 = vpop.f32.mrb[97].mxu1 }
 0x220   :  { %v2318_v55 = vadd.f32 %v7218_v33, %v10183_v26  ;;  %v7221_v18 = vadd.f32 %v7220_v25, %v7219_v0  ;;  %v7330_v47 = vadd.f32 %v7329_v23, %v7328_v53  ;;  %v7331_v54 = vpop.f32.mrb[98].mxu1 }
 0x221   :  { %v7332_v57 = vpop.f32.mrb[99].mxu1 }
 0x222   :  { %v2321_v58 = vadd.f32 %v7221_v18, %v10185_v17  ;;  %v7333_v63 = vadd.f32 %v7332_v57, %v7331_v54  ;;  %v10267_v7 = vadd.f32 %v7330_v47, %v2318_v55 }
 0x224   :  { %v7222_v52 = vpop.f32.mrb[100].mxu0  ;;  %v10269_v32 = vadd.f32 %v7333_v63, %v2321_v58 }
 0x225   :  { %v7223_v51 = vpop.f32.mrb[101].mxu0 }
 0x226   :  { %v7224_v29 = vadd.f32 %v7223_v51, %v7222_v52  ;;  %v7225_v46 = vpop.f32.mrb[102].mxu0  ;;  %v7334_v42 = vpop.f32.mrb[100].mxu1 }
 0x227   :  { %v7226_v10 = vpop.f32.mrb[103].mxu0  ;;  %v7335_v6 = vpop.f32.mrb[101].mxu1 }
 0x228   :  { %v2326_v26 = vadd.f32 %v7224_v29, %v10187_v34  ;;  %v7227_v9 = vadd.f32 %v7226_v10, %v7225_v46  ;;  %v7336_v4 = vadd.f32 %v7335_v6, %v7334_v42  ;;  %v7337_v15 = vpop.f32.mrb[102].mxu1 }
 0x229   :  { %v7338_v19 = vpop.f32.mrb[103].mxu1 }
 0x22a   :  { %v2329_v17 = vadd.f32 %v7227_v9, %v10189_v48  ;;  %v7339_v3 = vadd.f32 %v7338_v19, %v7337_v15  ;;  %v10273_v44 = vadd.f32 %v7336_v4, %v2326_v26 }
 0x22c   :  { %v7228_v24 = vpop.f32.mrb[104].mxu0  ;;  %v10275_v49 = vadd.f32 %v7339_v3, %v2329_v17 }
 0x22d   :  { %v7229_v28 = vpop.f32.mrb[105].mxu0 }
 0x22e   :  { %v7230_v37 = vadd.f32 %v7229_v28, %v7228_v24  ;;  %v7231_v13 = vpop.f32.mrb[106].mxu0  ;;  %v7340_v33 = vpop.f32.mrb[104].mxu1 }
 0x22f   :  { %v7232_v0 = vpop.f32.mrb[107].mxu0  ;;  %v7341_v53 = vpop.f32.mrb[105].mxu1 }
 0x230   :  { %v2334_v34 = vadd.f32 %v7230_v37, %v10192_v62  ;;  %v7233_v25 = vadd.f32 %v7232_v0, %v7231_v13  ;;  %v7342_v23 = vadd.f32 %v7341_v53, %v7340_v33  ;;  %v7343_v55 = vpop.f32.mrb[106].mxu1 }
 0x231   :  { %v7344_v18 = vpop.f32.mrb[107].mxu1 }
 0x232   :  { %v2337_v48 = vadd.f32 %v7233_v25, %v10194_v56  ;;  %v7345_v47 = vadd.f32 %v7344_v18, %v7343_v55  ;;  %v10279_v54 = vadd.f32 %v7342_v23, %v2334_v34 }
 0x234   :  { %v7234_v57 = vpop.f32.mrb[108].mxu0  ;;  %v10281_v58 = vadd.f32 %v7345_v47, %v2337_v48 }
 0x235   :  { %v7235_v63 = vpop.f32.mrb[109].mxu0 }
 0x236   :  { %v7236_v52 = vadd.f32 %v7235_v63, %v7234_v57  ;;  %v7237_v51 = vpop.f32.mrb[110].mxu0  ;;  %v7346_v29 = vpop.f32.mrb[108].mxu1 }
 0x237   :  { %v7238_v46 = vpop.f32.mrb[111].mxu0  ;;  %v7347_v42 = vpop.f32.mrb[109].mxu1 }
 0x238   :  { %v2342_v62 = vadd.f32 %v7236_v52, %v10196_v20  ;;  %v7239_v10 = vadd.f32 %v7238_v46, %v7237_v51  ;;  %v7348_v6 = vadd.f32 %v7347_v42, %v7346_v29  ;;  %v7349_v26 = vpop.f32.mrb[110].mxu1 }
 0x239   :  { %v7350_v9 = vpop.f32.mrb[111].mxu1 }
 0x23a   :  { %v2345_v56 = vadd.f32 %v7239_v10, %v10198_v16  ;;  %v7351_v4 = vadd.f32 %v7350_v9, %v7349_v26  ;;  %v10285_v15 = vadd.f32 %v7348_v6, %v2342_v62 }
 0x23c   :  { %v7240_v19 = vpop.f32.mrb[112].mxu0  ;;  %v10287_v17 = vadd.f32 %v7351_v4, %v2345_v56 }
 0x23d   :  { %v7241_v3 = vpop.f32.mrb[113].mxu0 }
 0x23e   :  { %v7242_v24 = vadd.f32 %v7241_v3, %v7240_v19  ;;  %v7243_v28 = vpop.f32.mrb[114].mxu0  ;;  %v7352_v37 = vpop.f32.mrb[112].mxu1 }
 0x23f   :  { %v7244_v13 = vpop.f32.mrb[115].mxu0  ;;  %v7353_v33 = vpop.f32.mrb[113].mxu1 }
 0x240   :  { %v2350_v20 = vadd.f32 %v7242_v24, %v10201_v30  ;;  %v7245_v0 = vadd.f32 %v7244_v13, %v7243_v28  ;;  %v7354_v53 = vadd.f32 %v7353_v33, %v7352_v37  ;;  %v7355_v34 = vpop.f32.mrb[114].mxu1 }
 0x241   :  { %v7356_v25 = vpop.f32.mrb[115].mxu1 }
 0x242   :  { %v2353_v16 = vadd.f32 %v7245_v0, %v10203_v36  ;;  %v7357_v23 = vadd.f32 %v7356_v25, %v7355_v34  ;;  %v10291_v55 = vadd.f32 %v7354_v53, %v2350_v20 }
 0x244   :  { %v7246_v18 = vpop.f32.mrb[116].mxu0  ;;  %v10293_v48 = vadd.f32 %v7357_v23, %v2353_v16 }
 0x245   :  { %v7247_v47 = vpop.f32.mrb[117].mxu0 }
 0x246   :  { %v7248_v57 = vadd.f32 %v7247_v47, %v7246_v18  ;;  %v7249_v63 = vpop.f32.mrb[118].mxu0  ;;  %v7358_v52 = vpop.f32.mrb[116].mxu1 }
 0x247   :  { %v7250_v51 = vpop.f32.mrb[119].mxu0  ;;  %v7359_v29 = vpop.f32.mrb[117].mxu1 }
 0x248   :  { %v2358_v30 = vadd.f32 %v7248_v57, %v10205_v50  ;;  %v7251_v46 = vadd.f32 %v7250_v51, %v7249_v63  ;;  %v7360_v42 = vadd.f32 %v7359_v29, %v7358_v52  ;;  %v7361_v62 = vpop.f32.mrb[118].mxu1 }
 0x249   :  { %v7362_v10 = vpop.f32.mrb[119].mxu1 }
 0x24a   :  { %v2361_v36 = vadd.f32 %v7251_v46, %v10207_v8  ;;  %v7363_v6 = vadd.f32 %v7362_v10, %v7361_v62  ;;  %v10297_v26 = vadd.f32 %v7360_v42, %v2358_v30 }
 0x24c   :  { %v7252_v9 = vpop.f32.mrb[120].mxu0  ;;  %v10299_v56 = vadd.f32 %v7363_v6, %v2361_v36 }
 0x24d   :  { %v7253_v4 = vpop.f32.mrb[121].mxu0 }
 0x24e   :  { %v7254_v19 = vadd.f32 %v7253_v4, %v7252_v9  ;;  %v7255_v3 = vpop.f32.mrb[122].mxu0  ;;  %v7364_v24 = vpop.f32.mrb[120].mxu1 }
 0x24f   :  { %v7256_v28 = vpop.f32.mrb[123].mxu0  ;;  %v7365_v37 = vpop.f32.mrb[121].mxu1 }
 0x250   :  { %v2366_v50 = vadd.f32 %v7254_v19, %v10209_v35  ;;  %v7257_v13 = vadd.f32 %v7256_v28, %v7255_v3  ;;  %v7366_v33 = vadd.f32 %v7365_v37, %v7364_v24  ;;  %v7367_v20 = vpop.f32.mrb[122].mxu1 }
 0x251   :  { %v7368_v0 = vpop.f32.mrb[123].mxu1 }
 0x252   :  { %v2369_v8 = vadd.f32 %v7257_v13, %v10211_v45  ;;  %v7369_v53 = vadd.f32 %v7368_v0, %v7367_v20  ;;  %v10303_v34 = vadd.f32 %v7366_v33, %v2366_v50 }
 0x254   :  { %v7258_v25 = vpop.f32.mrb[124].mxu0  ;;  %v10305_v16 = vadd.f32 %v7369_v53, %v2369_v8 }
 0x255   :  { %v7259_v23 = vpop.f32.mrb[125].mxu0 }
 0x256   :  { %v7260_v18 = vadd.f32 %v7259_v23, %v7258_v25  ;;  %v7261_v47 = vpop.f32.mrb[126].mxu0  ;;  %v7370_v57 = vpop.f32.mrb[124].mxu1 }
 0x257   :  { %v7262_v63 = vpop.f32.mrb[127].mxu0  ;;  %v7371_v52 = vpop.f32.mrb[125].mxu1 }
 0x258   :  { %v2374_v35 = vadd.f32 %v7260_v18, %v10213_v40  ;;  %v7263_v51 = vadd.f32 %v7262_v63, %v7261_v47  ;;  %v7372_v29 = vadd.f32 %v7371_v52, %v7370_v57  ;;  %v7373_v30 = vpop.f32.mrb[126].mxu1 }
 0x259   :  { %v7374_v46 = vpop.f32.mrb[127].mxu1 }
 0x25a   :  { %v2377_v45 = vadd.f32 %v7263_v51, %v10215_v31  ;;  %v7375_v42 = vadd.f32 %v7374_v46, %v7373_v30  ;;  %v10309_v62 = vadd.f32 %v7372_v29, %v2374_v35 }
 0x25c   :  { %v8042_v10 = vpop.f32.mrb[128].mxu0  ;;  %v10311_v36 = vadd.f32 %v7375_v42, %v2377_v45 }
 0x25d   :  { %v10314_v6 = vadd.f32 %v8042_v10, %v10225_v38  ;;  %v2575_v9 = vpop.f32.mrb[129].mxu0 }
 0x25e   :  { %v10317_v4 = vadd.f32 %v2575_v9, %v10219_v43  ;;  %v8043_v40 = vpop.f32.mrb[130].mxu0 }
 0x25f   :  { %v10320_v19 = vadd.f32 %v8043_v40, %v10227_v11  ;;  %v2578_v3 = vpop.f32.mrb[131].mxu0 }
 0x260   :  { %v10323_v31 = vadd.f32 %v2578_v3, %v10221_v39 }
 0x262   :  { %v2704_v24 = vadd.f32 %v10323_v31, %v10317_v4 }
 0x264   :  { %v2705_v28 = vadd.f32 %v2704_v24, %v10314_v6  ;;  %v8046_v37 = vpop.f32.mrb[132].mxu0 }
 0x265   :  { %v10329_v38 = vadd.f32 %v8046_v37, %v10237_v61  ;;  %v2591_v50 = vpop.f32.mrb[133].mxu0 }
 0x266   :  { %v10332_v43 = vadd.f32 %v2591_v50, %v10231_v1  ;;  %v2706_v11 = vadd.f32 %v2705_v28, %v10320_v19  ;;  %v8047_v13 = vpop.f32.mrb[134].mxu0 }
 0x267   :  { %v10336_v33 = vadd.f32 %v8047_v13, %v10239_v60  ;;  %v2594_v39 = vpop.f32.mrb[135].mxu0 }
 0x268   :  { %v2707_v20 = vadd.f32 %v2706_v11, %v10332_v43  ;;  %v10340_v0 = vadd.f32 %v2594_v39, %v10233_v21 }
 0x26a   :  { %v2708_v8 = vadd.f32 %v2707_v20, %v10340_v0 }
 0x26c   :  { %v2709_v61 = vadd.f32 %v2708_v8, %v10329_v38  ;;  %v8050_v53 = vpop.f32.mrb[136].mxu0 }
 0x26d   :  { %v10345_v1 = vadd.f32 %v8050_v53, %v10249_v14  ;;  %v2607_v25 = vpop.f32.mrb[137].mxu0 }
 0x26e   :  { %v10348_v23 = vadd.f32 %v2607_v25, %v10243_v12  ;;  %v2710_v60 = vadd.f32 %v2709_v61, %v10336_v33  ;;  %v8051_v18 = vpop.f32.mrb[138].mxu0 }
 0x26f   :  { %v10352_v47 = vadd.f32 %v8051_v18, %v10251_v5  ;;  %v2610_v21 = vpop.f32.mrb[139].mxu0 }
 0x270   :  { %v2711_v57 = vadd.f32 %v2710_v60, %v10348_v23  ;;  %v10356_v63 = vadd.f32 %v2610_v21, %v10245_v2 }
 0x272   :  { %v2712_v52 = vadd.f32 %v2711_v57, %v10356_v63 }
 0x274   :  { %v2713_v14 = vadd.f32 %v2712_v52, %v10345_v1  ;;  %v8054_v35 = vpop.f32.mrb[140].mxu0 }
 0x275   :  { %v10361_v12 = vadd.f32 %v8054_v35, %v10261_v59  ;;  %v2623_v51 = vpop.f32.mrb[141].mxu0 }
 0x276   :  { %v10364_v29 = vadd.f32 %v2623_v51, %v10255_v27  ;;  %v2714_v5 = vadd.f32 %v2713_v14, %v10352_v47  ;;  %v8055_v30 = vpop.f32.mrb[142].mxu0 }
 0x277   :  { %v10368_v46 = vadd.f32 %v8055_v30, %v10263_v41  ;;  %v2626_v2 = vpop.f32.mrb[143].mxu0 }
 0x278   :  { %v2715_v45 = vadd.f32 %v2714_v5, %v10364_v29  ;;  %v10372_v42 = vadd.f32 %v2626_v2, %v10257_v22 }
 0x27a   :  { %v2716_v10 = vadd.f32 %v2715_v45, %v10372_v42 }
 0x27c   :  { %v2717_v59 = vadd.f32 %v2716_v10, %v10361_v12  ;;  %v8058_v9 = vpop.f32.mrb[144].mxu0 }
 0x27d   :  { %v10377_v27 = vadd.f32 %v8058_v9, %v10273_v44  ;;  %v2639_v40 = vpop.f32.mrb[145].mxu0 }
 0x27e   :  { %v2640_v3 = vadd.f32 %v2639_v40, %v10267_v7  ;;  %v2718_v41 = vadd.f32 %v2717_v59, %v10368_v46  ;;  %v8059_v24 = vpop.f32.mrb[146].mxu0 }
 0x27f   :  { %v2651_v28 = vadd.f32 %v8059_v24, %v10275_v49  ;;  %v2642_v37 = vpop.f32.mrb[147].mxu0 }
 0x280   :  { %v2719_v50 = vadd.f32 %v2718_v41, %v2640_v3  ;;  %v2643_v22 = vadd.f32 %v2642_v37, %v10269_v32 }
 0x282   :  { %v2720_v11 = vadd.f32 %v2719_v50, %v2643_v22 }
 0x284   :  { %v2721_v13 = vadd.f32 %v2720_v11, %v10377_v27  ;;  %v8062_v39 = vpop.f32.mrb[148].mxu0 }
 0x285   :  { %v2664_v20 = vadd.f32 %v8062_v39, %v10285_v15  ;;  %v2655_v44 = vpop.f32.mrb[149].mxu0 }
 0x286   :  { %v2656_v8 = vadd.f32 %v2655_v44, %v10279_v54  ;;  %v2722_v61 = vadd.f32 %v2721_v13, %v2651_v28  ;;  %v8063_v7 = vpop.f32.mrb[150].mxu0 }
 0x287   :  { %v2667_v53 = vadd.f32 %v8063_v7, %v10287_v17  ;;  %v2658_v25 = vpop.f32.mrb[151].mxu0 }
 0x288   :  { %v2723_v60 = vadd.f32 %v2722_v61, %v2656_v8  ;;  %v2659_v49 = vadd.f32 %v2658_v25, %v10281_v58 }
 0x28a   :  { %v2724_v18 = vadd.f32 %v2723_v60, %v2659_v49 }
 0x28c   :  { %v2725_v21 = vadd.f32 %v2724_v18, %v2664_v20  ;;  %v8066_v32 = vpop.f32.mrb[152].mxu0 }
 0x28d   :  { %v2680_v57 = vadd.f32 %v8066_v32, %v10297_v26  ;;  %v2671_v52 = vpop.f32.mrb[153].mxu0 }
 0x28e   :  { %v2672_v14 = vadd.f32 %v2671_v52, %v10291_v55  ;;  %v2726_v15 = vadd.f32 %v2725_v21, %v2667_v53  ;;  %v8067_v35 = vpop.f32.mrb[154].mxu0 }
 0x28f   :  { %v2683_v54 = vadd.f32 %v8067_v35, %v10299_v56  ;;  %v2674_v51 = vpop.f32.mrb[155].mxu0 }
 0x290   :  { %v2727_v5 = vadd.f32 %v2726_v15, %v2672_v14  ;;  %v2675_v17 = vadd.f32 %v2674_v51, %v10293_v48 }
 0x292   :  { %v2728_v30 = vadd.f32 %v2727_v5, %v2675_v17 }
 0x294   :  { %v2729_v2 = vadd.f32 %v2728_v30, %v2680_v57  ;;  %v8070_v45 = vpop.f32.mrb[156].mxu0 }
 0x295   :  { %v2696_v58 = vadd.f32 %v8070_v45, %v10309_v62  ;;  %v2687_v10 = vpop.f32.mrb[157].mxu0 }
 0x296   :  { %v2688_v59 = vadd.f32 %v2687_v10, %v10303_v34  ;;  %v2730_v26 = vadd.f32 %v2729_v2, %v2683_v54  ;;  %v8071_v9 = vpop.f32.mrb[158].mxu0 }
 0x297   :  { %v2699_v55 = vadd.f32 %v8071_v9, %v10311_v36  ;;  %v2690_v40 = vpop.f32.mrb[159].mxu0 }
 0x298   :  { %v2731_v41 = vadd.f32 %v2730_v26, %v2688_v59  ;;  %v2691_v56 = vadd.f32 %v2690_v40, %v10305_v16 }
 0x29a   :  { %v2732_v24 = vadd.f32 %v2731_v41, %v2691_v56 }
 0x29c   :  { %v2733_v37 = vadd.f32 %v2732_v24, %v2696_v58 }
 0x29e   :  { %v2734_v50 = vadd.f32 %v2733_v37, %v2699_v55 }
 0x2a0   :  { %v2735_v48 = vrot.slane %v2734_v50, 4 }
 0x2a2   :  { %v2736_v11 = vadd.f32 %v2735_v48, %v2734_v50 }
 0x2a4   :  { %v2737_v13 = vrot.slane %v2736_v11, 2 }
 0x2a6   :  { %v2738_v39 = vadd.f32 %v2737_v13, %v2736_v11 }
 0x2a8   :  { %v2739_v44 = vrot.slane %v2738_v39, 1 }
 0x2aa   :  { %v2740_v62 = vadd.f32 %v2739_v44, %v2738_v39 }
 0x2ac   :  { %v2741_v61 = vmul.f32 0.00390625, %v2740_v62 }
 0x2ae   :  { %v10397_v34 = vsub.f32 %v10348_v23, %v2741_v61  ;;  %v10400_v7 = vsub.f32 %v10356_v63, %v2741_v61  ;;  %v10403_v36 = vsub.f32 %v10345_v1, %v2741_v61  ;;  %v10406_v16 = vsub.f32 %v10352_v47, %v2741_v61 }
 0x2af   :  { %v10409_v25 = vsub.f32 %v10364_v29, %v2741_v61  ;;  %v10412_v60 = vsub.f32 %v10372_v42, %v2741_v61  ;;  %v10415_v18 = vsub.f32 %v10361_v12, %v2741_v61  ;;  %v10418_v23 = vsub.f32 %v10368_v46, %v2741_v61 }
 0x2b0   :  { %v10420_v63 = vsub.f32 %v2640_v3, %v2741_v61  ;;  %v10422_v21 = vsub.f32 %v2643_v22, %v2741_v61  ;;  %v10425_v1 = vsub.f32 %v10377_v27, %v2741_v61  ;;  %v10427_v47 = vsub.f32 %v2651_v28, %v2741_v61 }
 0x2b1   :  { %v10429_v29 = vsub.f32 %v2656_v8, %v2741_v61  ;;  %v10431_v32 = vsub.f32 %v2659_v49, %v2741_v61  ;;  %v10433_v42 = vsub.f32 %v2664_v20, %v2741_v61  ;;  %v10435_v12 = vsub.f32 %v2667_v53, %v2741_v61 }
 0x2b2   :  { %v10437_v52 = vsub.f32 %v2672_v14, %v2741_v61  ;;  %v10439_v46 = vsub.f32 %v2675_v17, %v2741_v61  ;;  %v10441_v3 = vsub.f32 %v2680_v57, %v2741_v61  ;;  %v10443_v22 = vsub.f32 %v2683_v54, %v2741_v61 }
 0x2b3   :  { %v10445_v27 = vsub.f32 %v2688_v59, %v2741_v61  ;;  %v10447_v28 = vsub.f32 %v2691_v56, %v2741_v61  ;;  %v10449_v8 = vsub.f32 %v2696_v58, %v2741_v61  ;;  %v10451_v49 = vsub.f32 %v2699_v55, %v2741_v61 }
 0x2b4   :  { %v10454_v20 = vsub.f32 %v10317_v4, %v2741_v61  ;;  %v10457_v53 = vsub.f32 %v10323_v31, %v2741_v61  ;;  %v10460_v14 = vsub.f32 %v10314_v6, %v2741_v61  ;;  %v10467_v35 = vsub.f32 %v10320_v19, %v2741_v61 }
 0x2b5   :  { %v10470_v54 = vsub.f32 %v10332_v43, %v2741_v61  ;;  %v10475_v51 = vsub.f32 %v10340_v0, %v2741_v61  ;;  %v10480_v17 = vsub.f32 %v10329_v38, %v2741_v61  ;;  %v10485_v43 = vsub.f32 %v10336_v33, %v2741_v61 }
 0x2b6   :  { %v2774_v57 = vmul.f32 %v10454_v20, %v10454_v20  ;;  %v2775_v15 = vmul.f32 %v10457_v53, %v10457_v53  ;;  %v2776_v4 = vmul.f32 %v10460_v14, %v10460_v14  ;;  %v2777_v6 = vmul.f32 %v10467_v35, %v10467_v35 }
 0x2b7   :  { %v2778_v19 = vmul.f32 %v10470_v54, %v10470_v54  ;;  %v2779_v2 = vmul.f32 %v10475_v51, %v10475_v51  ;;  %v2780_v0 = vmul.f32 %v10480_v17, %v10480_v17  ;;  %v2781_v10 = vmul.f32 %v10485_v43, %v10485_v43 }
 0x2b8   :  { %v2806_v31 = vadd.f32 %v2775_v15, %v2774_v57  ;;  %v2782_v59 = vmul.f32 %v10397_v34, %v10397_v34  ;;  %v2783_v33 = vmul.f32 %v10400_v7, %v10400_v7  ;;  %v2784_v55 = vmul.f32 %v10403_v36, %v10403_v36 }
 0x2b9   :  { %v2785_v41 = vmul.f32 %v10406_v16, %v10406_v16  ;;  %v2786_v24 = vmul.f32 %v10409_v25, %v10409_v25  ;;  %v2787_v50 = vmul.f32 %v10412_v60, %v10412_v60  ;;  %v2788_v11 = vmul.f32 %v10415_v18, %v10415_v18 }
 0x2ba   :  { %v2807_v5 = vadd.f32 %v2806_v31, %v2776_v4  ;;  %v2789_v39 = vmul.f32 %v10418_v23, %v10418_v23  ;;  %v2790_v62 = vmul.f32 %v10420_v63, %v10420_v63  ;;  %v2791_v57 = vmul.f32 %v10422_v21, %v10422_v21 }
 0x2bb   :  { %v2792_v4 = vmul.f32 %v10425_v1, %v10425_v1 }
 0x2bc   :  { %v2808_v30 = vadd.f32 %v2807_v5, %v2777_v6  ;;  %v2793_v6 = vmul.f32 %v10427_v47, %v10427_v47 }
 0x2be   :  { %v2809_v45 = vadd.f32 %v2808_v30, %v2778_v19  ;;  %v2794_v19 = vmul.f32 %v10429_v29, %v10429_v29 }
 0x2c0   :  { %v2810_v58 = vadd.f32 %v2809_v45, %v2779_v2  ;;  %v2795_v2 = vmul.f32 %v10431_v32, %v10431_v32 }
 0x2c2   :  { %v2811_v38 = vadd.f32 %v2810_v58, %v2780_v0  ;;  %v2796_v0 = vmul.f32 %v10433_v42, %v10433_v42 }
 0x2c4   :  { %v2812_v26 = vadd.f32 %v2811_v38, %v2781_v10  ;;  %v2797_v10 = vmul.f32 %v10435_v12, %v10435_v12 }
 0x2c6   :  { %v2813_v9 = vadd.f32 %v2812_v26, %v2782_v59  ;;  %v2798_v59 = vmul.f32 %v10437_v52, %v10437_v52 }
 0x2c8   :  { %v2814_v40 = vadd.f32 %v2813_v9, %v2783_v33  ;;  %v2799_v33 = vmul.f32 %v10439_v46, %v10439_v46 }
 0x2ca   :  { %v2815_v56 = vadd.f32 %v2814_v40, %v2784_v55  ;;  %v2800_v55 = vmul.f32 %v10441_v3, %v10441_v3 }
 0x2cc   :  { %v2816_v37 = vadd.f32 %v2815_v56, %v2785_v41  ;;  %v2801_v41 = vmul.f32 %v10443_v22, %v10443_v22 }
 0x2ce   :  { %v2817_v48 = vadd.f32 %v2816_v37, %v2786_v24  ;;  %v2802_v24 = vmul.f32 %v10445_v27, %v10445_v27 }
 0x2d0   :  { %v2818_v13 = vadd.f32 %v2817_v48, %v2787_v50  ;;  %v2803_v50 = vmul.f32 %v10447_v28, %v10447_v28 }
 0x2d2   :  { %v2819_v44 = vadd.f32 %v2818_v13, %v2788_v11  ;;  %v2804_v11 = vmul.f32 %v10449_v8, %v10449_v8 }
 0x2d4   :  { %v2820_v61 = vadd.f32 %v2819_v44, %v2789_v39  ;;  %v2805_v39 = vmul.f32 %v10451_v49, %v10451_v49 }
 0x2d6   :  { %v2821_v15 = vadd.f32 %v2820_v61, %v2790_v62 }
 0x2d8   :  { %v2822_v31 = vadd.f32 %v2821_v15, %v2791_v57 }
 0x2da   :  { %v2823_v5 = vadd.f32 %v2822_v31, %v2792_v4 }
 0x2dc   :  { %v2824_v30 = vadd.f32 %v2823_v5, %v2793_v6 }
 0x2de   :  { %v2825_v45 = vadd.f32 %v2824_v30, %v2794_v19  ;;  %v2848_v30 = vlaneseq }
 0x2e0   :  { %v2826_v58 = vadd.f32 %v2825_v45, %v2795_v2  ;;  %v10541_v2 = vshrl.u32 %v2848_v30, 7  ;;  %v2702_v45 = vld [vmem:[%s12798_s2] sm:$0x1] }
 0x2e2   :  { %v2827_v38 = vadd.f32 %v2826_v58, %v2796_v0  ;;  %13111 = vst [vmem:[#allocation87_spill] sm:$0xff] %v10541_v2  ;;  %v10547_v0 = vsub.s32 0, %v10541_v2 }
 0x2e4   :  { %v2828_v26 = vadd.f32 %v2827_v38, %v2797_v10  ;;  %13112 = vst [vmem:[#allocation86_spill] sm:$0xff] %v10547_v0 }
 0x2e6   :  { %v2829_v9 = vadd.f32 %v2828_v26, %v2798_v59 }
 0x2e8   :  { %v2830_v40 = vadd.f32 %v2829_v9, %v2799_v33 }
 0x2ea   :  { %v2831_v56 = vadd.f32 %v2830_v40, %v2800_v55 }
 0x2ec   :  { %v2832_v37 = vadd.f32 %v2831_v56, %v2801_v41 }
 0x2ee   :  { %v2833_v48 = vadd.f32 %v2832_v37, %v2802_v24 }
 0x2f0   :  { %v2834_v13 = vadd.f32 %v2833_v48, %v2803_v50 }
 0x2f2   :  { %v2835_v44 = vadd.f32 %v2834_v13, %v2804_v11 }
 0x2f4   :  { %v2836_v62 = vadd.f32 %v2835_v44, %v2805_v39 }
 0x2f6   :  { %v2837_v61 = vrot.slane %v2836_v62, 4 }
 0x2f8   :  { %v2838_v57 = vadd.f32 %v2837_v61, %v2836_v62 }
 0x2fa   :  { %v2839_v15 = vrot.slane %v2838_v57, 2 }
 0x2fc   :  { %v2840_v4 = vadd.f32 %v2839_v15, %v2838_v57 }
 0x2fe   :  { %v2841_v31 = vrot.slane %v2840_v4, 1 }
 0x300   :  { %v2842_v6 = vadd.f32 %v2841_v31, %v2840_v4 }
 0x302   :  { %v2843_v5 = vmul.f32 0.00390625, %v2842_v6 }
 0x304   :  { %v2844_v19 = vadd.f32 1e-05, %v2843_v5 }
 0x306   :  { %8597 = vrsqrt.f32 %v2844_v19 }
 0x310   :  { %v8598_v58 = vpop.eup %8597 }
 0x311   :  { %v2846_v10 = vmul.f32 %v8598_v58, %v2702_v45 }
 0x313   :  { %v2851_v38 = vrot.slane %v2846_v10, %v10547_v0 }
 0x315   :  { %v2853_v59 = vmul.f32 %v2851_v38, %v10454_v20  ;;  %v2854_v26 = vmul.f32 %v2851_v38, %v10457_v53  ;;  %v2855_v33 = vmul.f32 %v2851_v38, %v10460_v14  ;;  %v2856_v9 = vmul.f32 %v2851_v38, %v10467_v35 }
 0x316   :  { %v2857_v55 = vmul.f32 %v2851_v38, %v10470_v54  ;;  %v2858_v40 = vmul.f32 %v2851_v38, %v10475_v51  ;;  %v2859_v41 = vmul.f32 %v2851_v38, %v10480_v17  ;;  %v2860_v56 = vmul.f32 %v2851_v38, %v10485_v43 }
 0x317   :  { %v2861_v24 = vmul.f32 %v2851_v38, %v10397_v34  ;;  %v2862_v37 = vmul.f32 %v2851_v38, %v10400_v7  ;;  %v2863_v20 = vmul.f32 %v2851_v38, %v10403_v36  ;;  %v2864_v53 = vmul.f32 %v2851_v38, %v10406_v16  ;;  %v6892_v36 = vld [vmem:[%s12799_s3] ss:$0 sm:$0xff] }
 0x318   :  { %v2865_v14 = vmul.f32 %v2851_v38, %v10409_v25  ;;  %v2866_v35 = vmul.f32 %v2851_v38, %v10412_v60  ;;  %v2867_v54 = vmul.f32 %v2851_v38, %v10415_v18  ;;  %v2868_v51 = vmul.f32 %v2851_v38, %v10418_v23 }
 0x319   :  { %v2869_v17 = vmul.f32 %v2851_v38, %v10420_v63  ;;  %v2870_v43 = vmul.f32 %v2851_v38, %v10422_v21  ;;  %v2871_v34 = vmul.f32 %v2851_v38, %v10425_v1  ;;  %v2872_v7 = vmul.f32 %v2851_v38, %v10427_v47 }
 0x31a   :  { %v2873_v16 = vmul.f32 %v2851_v38, %v10429_v29  ;;  %v2874_v25 = vmul.f32 %v2851_v38, %v10431_v32  ;;  %v2875_v60 = vmul.f32 %v2851_v38, %v10433_v42  ;;  %v2876_v18 = vmul.f32 %v2851_v38, %v10435_v12 }
 0x31b   :  { %v2877_v23 = vmul.f32 %v2851_v38, %v10437_v52  ;;  %v2878_v63 = vmul.f32 %v2851_v38, %v10439_v46  ;;  %v2879_v21 = vmul.f32 %v2851_v38, %v10441_v3  ;;  %v2880_v1 = vmul.f32 %v2851_v38, %v10443_v22 }
 0x31c   :  { %v2881_v47 = vmul.f32 %v2851_v38, %v10445_v27  ;;  %v2882_v50 = vmul.f32 %v2851_v38, %v10447_v28  ;;  %v2883_v29 = vmul.f32 %v2851_v38, %v10449_v8  ;;  %v2884_v32 = vmul.f32 %v2851_v38, %v10451_v49 }
 0x31d   :  { %v2891_v48 = vadd.f32 %v6892_v36, %v2853_v59  ;;  %v2892_v42 = vadd.f32 %v6892_v36, %v2854_v26  ;;  %v2893_v11 = vadd.f32 %v6892_v36, %v2855_v33  ;;  %v2894_v12 = vadd.f32 %v6892_v36, %v2856_v9 }
 0x31e   :  { %v2895_v13 = vadd.f32 %v6892_v36, %v2857_v55  ;;  %v2896_v52 = vadd.f32 %v6892_v36, %v2858_v40  ;;  %v2897_v39 = vadd.f32 %v6892_v36, %v2859_v41  ;;  %v2898_v46 = vadd.f32 %v6892_v36, %v2860_v56 }
 0x31f   :  { %v2899_v44 = vadd.f32 %v6892_v36, %v2861_v24  ;;  %v2900_v3 = vadd.f32 %v6892_v36, %v2862_v37  ;;  %v2901_v62 = vadd.f32 %v6892_v36, %v2863_v20  ;;  %v2902_v22 = vadd.f32 %v6892_v36, %v2864_v53 }
 0x320   :  { %v2903_v61 = vadd.f32 %v6892_v36, %v2865_v14  ;;  %v2904_v27 = vadd.f32 %v6892_v36, %v2866_v35  ;;  %v2905_v57 = vadd.f32 %v6892_v36, %v2867_v54  ;;  %v2906_v28 = vadd.f32 %v6892_v36, %v2868_v51 }
 0x321   :  { %v2907_v15 = vadd.f32 %v6892_v36, %v2869_v17  ;;  %v2908_v8 = vadd.f32 %v6892_v36, %v2870_v43  ;;  %v2909_v4 = vadd.f32 %v6892_v36, %v2871_v34  ;;  %v2910_v49 = vadd.f32 %v6892_v36, %v2872_v7 }
 0x322   :  { %v2911_v31 = vadd.f32 %v6892_v36, %v2873_v16  ;;  %v2912_v6 = vadd.f32 %v6892_v36, %v2874_v25  ;;  %v2913_v5 = vadd.f32 %v6892_v36, %v2875_v60  ;;  %v2914_v19 = vadd.f32 %v6892_v36, %v2876_v18 }
 0x323   :  { %v2915_v30 = vadd.f32 %v6892_v36, %v2877_v23  ;;  %v2916_v45 = vadd.f32 %v6892_v36, %v2878_v63  ;;  %v2917_v58 = vadd.f32 %v6892_v36, %v2879_v21  ;;  %v2918_v10 = vadd.f32 %v6892_v36, %v2880_v1 }
 0x324   :  { %v2919_v38 = vadd.f32 %v6892_v36, %v2881_v47  ;;  %v2920_v59 = vadd.f32 %v6892_v36, %v2882_v50  ;;  %v2921_v26 = vadd.f32 %v6892_v36, %v2883_v29  ;;  %v2922_v33 = vadd.f32 %v6892_v36, %v2884_v32 }
 0x325   :  { %v10585_v9 = vmax.f32 %v2891_v48, 0.0  ;;  %v10587_v55 = vmax.f32 %v2892_v42, 0.0  ;;  %v10589_v40 = vmax.f32 %v2893_v11, 0.0  ;;  %v10591_v41 = vmax.f32 %v2894_v12, 0.0  ;;  %v10677_v11 = vld [vmem:[#allocation2 + $0x1] sm:$0xff] }
 0x326   :  { %v10593_v56 = vmax.f32 %v2895_v13, 0.0  ;;  %v10595_v24 = vmax.f32 %v2896_v52, 0.0  ;;  %v10597_v37 = vmax.f32 %v2897_v39, 0.0  ;;  %v10599_v20 = vmax.f32 %v2898_v46, 0.0 }
 0x327   :  { %13113 = vst [vmem:[#allocation103_spill] sm:$0xff] %v10587_v55  ;;  %13114 = vst [vmem:[#allocation105_spill] sm:$0xff] %v10589_v40  ;;  %v10601_v53 = vmax.f32 %v2899_v44, 0.0  ;;  %v10603_v14 = vmax.f32 %v2900_v3, 0.0  ;;  %v10605_v35 = vmax.f32 %v2901_v62, 0.0  ;;  %v10607_v54 = vmax.f32 %v2902_v22, 0.0 }
 0x328   :  { %13115 = vst [vmem:[#allocation91_spill] sm:$0xff] %v10591_v41  ;;  %13116 = vst [vmem:[#allocation89_spill] sm:$0xff] %v10593_v56  ;;  %v10613_v51 = vmax.f32 %v2903_v61, 0.0  ;;  %v10615_v17 = vmax.f32 %v2904_v27, 0.0  ;;  %v10617_v43 = vmax.f32 %v2905_v57, 0.0  ;;  %v10619_v34 = vmax.f32 %v2906_v28, 0.0 }
 0x329   :  { %13117 = vst [vmem:[#allocation88_spill] sm:$0xff] %v10595_v24  ;;  %13118 = vst [vmem:[#allocation104_spill] sm:$0xff] %v10597_v37  ;;  %v10625_v7 = vmax.f32 %v2907_v15, 0.0  ;;  %v10627_v36 = vmax.f32 %v2908_v8, 0.0  ;;  %v10629_v16 = vmax.f32 %v2909_v4, 0.0  ;;  %v10631_v25 = vmax.f32 %v2910_v49, 0.0 }
 0x32a   :  { %13119 = vst [vmem:[#allocation90_spill] sm:$0xff] %v10603_v14  ;;  %13120 = vst [vmem:[#allocation108_spill] sm:$0xff] %v10605_v35  ;;  %v10637_v60 = vmax.f32 %v2911_v31, 0.0  ;;  %v10639_v18 = vmax.f32 %v2912_v6, 0.0  ;;  %v10641_v23 = vmax.f32 %v2913_v5, 0.0  ;;  %v10643_v63 = vmax.f32 %v2914_v19, 0.0 }
 0x32b   :  { %13121 = vst [vmem:[#allocation93_spill] sm:$0xff] %v10607_v54  ;;  %2955 = vst [vmem:[#allocation2 + $0x11] sm:$0xff] %v10585_v9  ;;  %v10649_v21 = vmax.f32 %v2915_v30, 0.0  ;;  %v10651_v1 = vmax.f32 %v2916_v45, 0.0  ;;  %v10653_v47 = vmax.f32 %v2917_v58, 0.0  ;;  %v10655_v50 = vmax.f32 %v2918_v10, 0.0 }
 0x32c   :  { %2956 = vst [vmem:[#allocation2 + $0x21] sm:$0xff] %v10587_v55  ;;  %2957 = vst [vmem:[#allocation2 + $0x31] sm:$0xff] %v10589_v40  ;;  %v10661_v29 = vmax.f32 %v2919_v38, 0.0  ;;  %v10663_v32 = vmax.f32 %v2920_v59, 0.0  ;;  %v10665_v48 = vmax.f32 %v2921_v26, 0.0  ;;  %v10667_v42 = vmax.f32 %v2922_v33, 0.0 }
 0x32d   :  { %2958 = vst [vmem:[#allocation2 + $0x41] sm:$0xff] %v10591_v41  ;;  %13122 = vst [vmem:[#allocation92_spill] sm:$0xff] %v10613_v51  ;;  %v10683_v13 = vpack.c.bf16 %v10589_v40, %v10587_v55  ;;  %v10687_v52 = vpack.c.bf16 %v10593_v56, %v10591_v41  ;;  %v10691_v39 = vpack.c.bf16 %v10597_v37, %v10595_v24  ;;  %v10703_v62 = vld [vmem:[#allocation2 + $0xa1] sm:$0xff] }
 0x32e   :  { %13123 = vst [vmem:[#allocation109_spill] sm:$0xff] %v10615_v17  ;;  %13124 = vst [vmem:[#allocation110_spill] sm:$0xff] %v10617_v43  ;;  %v10709_v61 = vpack.c.bf16 %v10605_v35, %v10603_v14  ;;  %v10713_v27 = vpack.c.bf16 %v10613_v51, %v10607_v54  ;;  %v10717_v57 = vpack.c.bf16 %v10617_v43, %v10615_v17  ;;  %v10725_v4 = vld [vmem:[#allocation2] sm:$0xff] }
 0x32f   :  { %2959 = vst [vmem:[#allocation2 + $0x51] sm:$0xff] %v10593_v56  ;;  %2960 = vst [vmem:[#allocation2 + $0x61] sm:$0xff] %v10595_v24  ;;  %v10733_v6 = vld [vmem:[#allocation2 + $0x141] sm:$0xff]  ;;  %v10739_v19 = vpack.c.bf16 %v10629_v16, %v10627_v36  ;;  %v10753_v38 = vpack.c.bf16 %v10637_v60, %v10631_v25  ;;  %v10757_v59 = vpack.c.bf16 %v10641_v23, %v10639_v18 }
 0x330   :  { %2961 = vst [vmem:[#allocation2 + $0x71] sm:$0xff] %v10597_v37  ;;  %2962 = vst [vmem:[#allocation2 + $0x81] sm:$0xff] %v10599_v20  ;;  %v10759_v26 = vld [vmem:[#allocation2 + $0x1e1] sm:$0xff]  ;;  %v10777_v0 = vpack.c.bf16 %v10653_v47, %v10651_v1  ;;  %v10781_v33 = vpack.c.bf16 %v10661_v29, %v10655_v50 }
 0x331   :  { %13125 = vst [vmem:[#allocation111_spill] sm:$0xff] %v10625_v7  ;;  %13126 = vst [vmem:[#allocation95_spill] sm:$0xff] %v10627_v36  ;;  %v10931_v41 = vld [vmem:[#allocation2 + $0xa2] sm:$0xff] }
 0x332   :  { %13127 = vst [vmem:[#allocation94_spill] sm:$0xff] %v10629_v16  ;;  %13128 = vst [vmem:[#allocation112_spill] sm:$0xff] %v10631_v25  ;;  %v10697_v46 = vld [vmem:[#allocation2 + $0x10] sm:$0xff] }
 0x333   :  { %2963 = vst [vmem:[#allocation2 + $0xb1] sm:$0xff] %v10601_v53  ;;  %2964 = vst [vmem:[#allocation2 + $0xc1] sm:$0xff] %v10603_v14  ;;  %v10699_v44 = vld [vmem:[#allocation2 + $0x20] sm:$0xff]  ;;  %v10701_v3 = vld [vmem:[#allocation2 + $0x30] sm:$0xff] }
 0x334   :  { %2965 = vst [vmem:[#allocation2 + $0xd1] sm:$0xff] %v10605_v35  ;;  %2966 = vst [vmem:[#allocation2 + $0xe1] sm:$0xff] %v10607_v54  ;;  %v10719_v28 = vld [vmem:[#allocation2 + $0x40] sm:$0xff]  ;;  %v10731_v31 = vpack.c.bf16 %v10701_v3, %v10699_v44 }
 0x335   :  { %13129 = vst [vmem:[#allocation114_spill] sm:$0xff] %v10637_v60  ;;  %13130 = vst [vmem:[#allocation97_spill] sm:$0xff] %v10639_v18 }
 0x336   :  { %13131 = vst [vmem:[#allocation96_spill] sm:$0xff] %v10641_v23  ;;  %2967 = vst [vmem:[#allocation2 + $0xf1] sm:$0xff] %v10613_v51  ;;  %v10721_v15 = vld [vmem:[#allocation2 + $0x50] sm:$0xff]  ;;  %v10723_v8 = vld [vmem:[#allocation2 + $0x60] sm:$0xff] }
 0x337   :  { %2968 = vst [vmem:[#allocation2 + $0x101] sm:$0xff] %v10615_v17  ;;  %2969 = vst [vmem:[#allocation2 + $0x111] sm:$0xff] %v10617_v43  ;;  %v10741_v30 = vld [vmem:[#allocation2 + $0x70] sm:$0xff]  ;;  %v10749_v10 = vpack.c.bf16 %v10721_v15, %v10719_v28  ;;  %v10903_v55 = vld [vmem:[#allocation2 + $0x62] sm:$0xff] }
 0x338   :  { %2970 = vst [vmem:[#allocation2 + $0x121] sm:$0xff] %v10619_v34  ;;  %13132 = vst [vmem:[#allocation115_spill] sm:$0xff] %v10649_v21  ;;  %v10771_v12 = vpack.c.bf16 %v10741_v30, %v10723_v8 }
 0x339   :  { %13133 = vst [vmem:[#allocation113_spill] sm:$0xff] %v10651_v1  ;;  %13134 = vst [vmem:[#allocation98_spill] sm:$0xff] %v10653_v47 }
 0x33a   :  { %13135 = vst [vmem:[#allocation99_spill] sm:$0xff] %v10655_v50  ;;  %2971 = vst [vmem:[#allocation2 + $0x151] sm:$0xff] %v10625_v7  ;;  %v10743_v45 = vld [vmem:[#allocation2 + $0xb0] sm:$0xff]  ;;  %v10745_v58 = vld [vmem:[#allocation2 + $0xc0] sm:$0xff] }
 0x33b   :  { %2972 = vst [vmem:[#allocation2 + $0x161] sm:$0xff] %v10627_v36  ;;  %2973 = vst [vmem:[#allocation2 + $0x171] sm:$0xff] %v10629_v16  ;;  %v10763_v5 = vld [vmem:[#allocation2 + $0xd0] sm:$0xff]  ;;  %v10765_v22 = vld [vmem:[#allocation2 + $0xe0] sm:$0xff] }
 0x33c   :  { %2974 = vst [vmem:[#allocation2 + $0x181] sm:$0xff] %v10631_v25  ;;  %13136 = vst [vmem:[#allocation116_spill] sm:$0xff] %v10661_v29  ;;  %v10923_v56 = vld [vmem:[#allocation2 + $0xd2] sm:$0xff]  ;;  %v10925_v24 = vld [vmem:[#allocation2 + $0xe2] sm:$0xff] }
 0x33d   :  { %13137 = vst [vmem:[#allocation100_spill] sm:$0xff] %v10663_v32  ;;  %13138 = vst [vmem:[#allocation101_spill] sm:$0xff] %v10665_v48  ;;  %v10767_v49 = vld [vmem:[#allocation2 + $0xf0] sm:$0xff]  ;;  %v10979_v36 = vld [vmem:[#allocation2 + $0x142] sm:$0xff] }
 0x33e   :  { %13139 = vst [vmem:[#allocation102_spill] sm:$0xff] %v10667_v42  ;;  %2975 = vst [vmem:[#allocation2 + $0x191] sm:$0xff] %v10637_v60  ;;  %v10795_v2 = vpack.c.bf16 %v10767_v49, %v10765_v22  ;;  %v10939_v14 = vld [vmem:[#allocation2 + $0xf2] sm:$0xff]  ;;  %v10941_v37 = vld [vmem:[#allocation2 + $0x102] sm:$0xff] }
 0x33f   :  { %2976 = vst [vmem:[#allocation2 + $0x1a1] sm:$0xff] %v10639_v18  ;;  %2977 = vst [vmem:[#allocation2 + $0x1b1] sm:$0xff] %v10641_v23  ;;  %v10963_v35 = vpack.c.bf16 %v10939_v14, %v10925_v24 }
 0x340   :  { %2978 = vst [vmem:[#allocation2 + $0x1c1] sm:$0xff] %v10643_v63  ;;  %2979 = vst [vmem:[#allocation2 + $0x1f1] sm:$0xff] %v10649_v21  ;;  %v11017_v21 = vld [vmem:[#allocation2 + $0x1e2] sm:$0xff] }
 0x341   :  { %2980 = vst [vmem:[#allocation2 + $0x201] sm:$0xff] %v10651_v1  ;;  %2981 = vst [vmem:[#allocation2 + $0x211] sm:$0xff] %v10653_v47 }
 0x342   :  { %2982 = vst [vmem:[#allocation2 + $0x221] sm:$0xff] %v10655_v50  ;;  %13140 = vst [vmem:[#allocation107_spill] sm:$0xff] %v10691_v39  ;;  %v10957_v51 = vld [vmem:[#allocation2 + $0x162] sm:$0xff]  ;;  %v10959_v17 = vld [vmem:[#allocation2 + $0x172] sm:$0xff] }
 0x343   :  { %2983 = vst [vmem:[#allocation2 + $0x231] sm:$0xff] %v10661_v29  ;;  %2984 = vst [vmem:[#allocation2 + $0x241] sm:$0xff] %v10663_v32  ;;  %v10985_v7 = vpack.c.bf16 %v10959_v17, %v10957_v51 }
 0x344   :  { %2985 = vst [vmem:[#allocation2 + $0x251] sm:$0xff] %v10665_v48  ;;  %2986 = vst [vmem:[#allocation2 + $0x261] sm:$0xff] %v10667_v42  ;;  %v13216_v42 = vld [vmem:[#allocation22_spill] sm:$0xff] }
 0x345   :  { %13141 = vst [vmem:[#allocation106_spill] sm:$0xff] %v10703_v62  ;;  %13142 = vst [vmem:[#allocation117_spill] sm:$0xff] %v10709_v61  ;;  %v10975_v16 = vld [vmem:[#allocation2 + $0x192] sm:$0xff]  ;;  %7400 = vmatprep.subr.bf16.mxu1 %v13216_v42 }
 0x346   :  { %13143 = vst [vmem:[#allocation118_spill] sm:$0xff] %v10713_v27  ;;  %13144 = vst [vmem:[#allocation119_spill] sm:$0xff] %v10717_v57  ;;  %v10805_v57 = vld [vmem:[#allocation2 + $0x170] sm:$0xff]  ;;  %v10807_v27 = vld [vmem:[#allocation2 + $0x180] sm:$0xff] }
 0x347   :  { %13145 = vst [vmem:[#allocation120_spill] sm:$0xff] %v10721_v15  ;;  %13146 = vst [vmem:[#allocation121_spill] sm:$0xff] %v10723_v8  ;;  %v10821_v62 = vld [vmem:[#allocation2 + $0x1a0] sm:$0xff]  ;;  %v10991_v23 = vld [vmem:[#allocation2 + $0x1b2] sm:$0xff] }
 0x348   :  { %13147 = vst [vmem:[#allocation122_spill] sm:$0xff] %v10733_v6  ;;  %13148 = vst [vmem:[#allocation123_spill] sm:$0xff] %v10739_v19  ;;  %v10791_v19 = vpack.c.bf16 %v10763_v5, %v10745_v58  ;;  %v10803_v6 = vld [vmem:[#allocation2 + $0x160] sm:$0xff]  ;;  %v10839_v15 = vld [vmem:[#allocation2 + $0x210] sm:$0xff] }
 0x349   :  { %13149 = vst [vmem:[#allocation124_spill] sm:$0xff] %v10749_v10  ;;  %13150 = vst [vmem:[#allocation125_spill] sm:$0xff] %v10753_v38  ;;  %v10787_v38 = vld [vmem:[#allocation2 + $0x150] sm:$0xff]  ;;  %v10827_v39 = vpack.c.bf16 %v10805_v57, %v10803_v6  ;;  %v10837_v10 = vld [vmem:[#allocation2 + $0x200] sm:$0xff] }
 0x34a   :  { %13151 = vst [vmem:[#allocation126_spill] sm:$0xff] %v10757_v59  ;;  %13152 = vst [vmem:[#allocation127_spill] sm:$0xff] %v10759_v26  ;;  %v10783_v26 = vld [vmem:[#allocation2 + $0x100] sm:$0xff]  ;;  %v10785_v59 = vld [vmem:[#allocation2 + $0x110] sm:$0xff] }
 0x34b   :  { %13153 = vst [vmem:[#allocation128_spill] sm:$0xff] %v10763_v5  ;;  %13154 = vst [vmem:[#allocation129_spill] sm:$0xff] %v10765_v22  ;;  %v10869_v61 = vld [vmem:[#allocation2 + $0x250] sm:$0xff]  ;;  %v10921_v5 = vld [vmem:[#allocation2 + $0xc2] sm:$0xff] }
 0x34c   :  { %13155 = vst [vmem:[#allocation130_spill] sm:$0xff] %v10767_v49  ;;  %13156 = vst [vmem:[#allocation131_spill] sm:$0xff] %v10771_v12  ;;  %v10823_v12 = vld [vmem:[#allocation2 + $0x1b0] sm:$0xff]  ;;  %v10973_v22 = vld [vmem:[#allocation2 + $0x182] sm:$0xff] }
 0x34d   :  { %13157 = vst [vmem:[#allocation132_spill] sm:$0xff] %v10777_v0  ;;  %13158 = vst [vmem:[#allocation133_spill] sm:$0xff] %v10781_v33  ;;  %v10799_v0 = vpack.c.bf16 %v10665_v48, %v10663_v32  ;;  %v10819_v33 = vld [vmem:[#allocation2 + $0x190] sm:$0xff]  ;;  %v10977_v25 = vld [vmem:[#allocation2 + $0x1a2] sm:$0xff] }
 0x34e   :  { %13159 = vst [vmem:[#allocation134_spill] sm:$0xff] %v10783_v26  ;;  %13160 = vst [vmem:[#allocation135_spill] sm:$0xff] %v10787_v38  ;;  %v10843_v8 = vpack.c.bf16 %v10819_v33, %v10807_v27  ;;  %v10855_v49 = vld [vmem:[#allocation2 + $0x230] sm:$0xff]  ;;  %v10877_v38 = vld [vmem:[#allocation2 + $0x22] sm:$0xff]  ;;  %v11015_v1 = vpack.c.bf16 %v10991_v23, %v10977_v25 }
 0x34f   :  { %13161 = vst [vmem:[#allocation136_spill] sm:$0xff] %v10791_v19  ;;  %13162 = vst [vmem:[#allocation137_spill] sm:$0xff] %v10795_v2  ;;  %v10811_v19 = vpack.c.bf16 %v10785_v59, %v10783_v26  ;;  %v10857_v26 = vld [vmem:[#allocation2 + $0x240] sm:$0xff]  ;;  %v10993_v60 = vld [vmem:[#allocation2 + $0x1f2] sm:$0xff] }
 0x350   :  { %13163 = vst [vmem:[#allocation138_spill] sm:$0xff] %v10799_v0  ;;  %13164 = vst [vmem:[#allocation139_spill] sm:$0xff] %v10803_v6  ;;  %v10835_v0 = vld [vmem:[#allocation2 + $0x1f0] sm:$0xff]  ;;  %v10887_v2 = vpack.c.bf16 %v10869_v61, %v10857_v26  ;;  %v10947_v6 = vpack.c.bf16 %v10923_v56, %v10921_v5  ;;  %v10995_v18 = vld [vmem:[#allocation2 + $0x202] sm:$0xff] }
 0x351   :  { %13165 = vst [vmem:[#allocation140_spill] sm:$0xff] %v10805_v57  ;;  %13166 = vst [vmem:[#allocation141_spill] sm:$0xff] %v10807_v27  ;;  %v10875_v27 = vld [vmem:[#allocation2 + $0x12] sm:$0xff]  ;;  %v11009_v47 = vld [vmem:[#allocation2 + $0x222] sm:$0xff] }
 0x352   :  { %13167 = vst [vmem:[#allocation142_spill] sm:$0xff] %v10811_v19  ;;  %13168 = vst [vmem:[#allocation143_spill] sm:$0xff] %v10819_v33  ;;  %v10853_v19 = vld [vmem:[#allocation2 + $0x220] sm:$0xff]  ;;  %v11011_v50 = vld [vmem:[#allocation2 + $0x232] sm:$0xff] }
 0x353   :  { %13169 = vst [vmem:[#allocation144_spill] sm:$0xff] %v10821_v62  ;;  %13170 = vst [vmem:[#allocation145_spill] sm:$0xff] %v10827_v39  ;;  %v10847_v39 = vpack.c.bf16 %v10823_v12, %v10821_v62  ;;  %v10873_v57 = vpack.c.bf16 %v10855_v49, %v10853_v19  ;;  %v10895_v33 = vld [vmem:[#allocation2 + $0x2] sm:$0xff]  ;;  %v10943_v62 = vld [vmem:[#allocation2 + $0x112] sm:$0xff] }
 0x354   :  { %13171 = vst [vmem:[#allocation146_spill] sm:$0xff] %v10835_v0  ;;  %13172 = vst [vmem:[#allocation147_spill] sm:$0xff] %v10837_v10  ;;  %v10889_v0 = vld [vmem:[#allocation2 + $0x32] sm:$0xff]  ;;  %v10967_v54 = vpack.c.bf16 %v10943_v62, %v10941_v37  ;;  %v11025_v48 = vld [vmem:[#allocation2 + $0x242] sm:$0xff] }
 0x355   :  { %13173 = vst [vmem:[#allocation148_spill] sm:$0xff] %v10839_v15  ;;  %13174 = vst [vmem:[#allocation149_spill] sm:$0xff] %v10843_v8  ;;  %v10863_v8 = vpack.c.bf16 %v10839_v15, %v10837_v10  ;;  %v10893_v10 = vld [vmem:[#allocation2 + $0x52] sm:$0xff] }
 0x356   :  { %13175 = vst [vmem:[#allocation150_spill] sm:$0xff] %v10847_v39  ;;  %13176 = vst [vmem:[#allocation151_spill] sm:$0xff] %v10853_v19  ;;  %v10955_v39 = vld [vmem:[#allocation2 + $0x152] sm:$0xff] }
 0x357   :  { %13177 = vst [vmem:[#allocation152_spill] sm:$0xff] %v10855_v49  ;;  %13178 = vst [vmem:[#allocation153_spill] sm:$0xff] %v10857_v26  ;;  %v10907_v49 = vld [vmem:[#allocation2 + $0xb2] sm:$0xff]  ;;  %v10911_v26 = vpack.c.bf16 %v10889_v0, %v10877_v38 }
 0x358   :  { %13179 = vst [vmem:[#allocation154_spill] sm:$0xff] %v10863_v8  ;;  %13180 = vst [vmem:[#allocation155_spill] sm:$0xff] %v10873_v57  ;;  %v10891_v57 = vld [vmem:[#allocation2 + $0x42] sm:$0xff]  ;;  %v11007_v8 = vld [vmem:[#allocation2 + $0x212] sm:$0xff] }
 0x359   :  { %13181 = vst [vmem:[#allocation156_spill] sm:$0xff] %v10877_v38  ;;  %13182 = vst [vmem:[#allocation157_spill] sm:$0xff] %v10887_v2  ;;  %v10905_v2 = vld [vmem:[#allocation2 + $0x72] sm:$0xff]  ;;  %v10915_v15 = vpack.c.bf16 %v10893_v10, %v10891_v57  ;;  %v11031_v32 = vpack.c.bf16 %v11007_v8, %v10995_v18  ;;  %v11035_v38 = vpack.c.bf16 %v11011_v50, %v11009_v47 }
 0x35a   :  { %13183 = vst [vmem:[#allocation158_spill] sm:$0xff] %v10889_v0  ;;  %13184 = vst [vmem:[#allocation159_spill] sm:$0xff] %v10891_v57  ;;  %v10929_v40 = vpack.c.bf16 %v10905_v2, %v10903_v55  ;;  %v11027_v29 = vld [vmem:[#allocation2 + $0x252] sm:$0xff]  ;;  %v11051_v0 = vld [vmem:[#allocation2 + $0x260] sm:$0xff] }
 0x35b   :  { %13185 = vst [vmem:[#allocation160_spill] sm:$0xff] %v10893_v10  ;;  %13186 = vst [vmem:[#allocation161_spill] sm:$0xff] %v10903_v55  ;;  %v11045_v43 = vpack.c.bf16 %v11027_v29, %v11025_v48  ;;  %v11047_v10 = vld [vmem:[#allocation2 + $0x120] sm:$0xff]  ;;  %v11115_v19 = vld [vmem:[#allocation2 + $0x92] sm:$0xff] }
 0x35c   :  { %13187 = vst [vmem:[#allocation162_spill] sm:$0xff] %v10911_v26  ;;  %13188 = vst [vmem:[#allocation163_spill] sm:$0xff] %v10915_v15  ;;  %v11049_v55 = vld [vmem:[#allocation2 + $0x1c0] sm:$0xff] }
 0x35d   :  { %13189 = vst [vmem:[#allocation164_spill] sm:$0xff] %v10921_v5  ;;  %13190 = vst [vmem:[#allocation165_spill] sm:$0xff] %v10923_v56  ;;  %v11065_v5 = vld [vmem:[#allocation2 + $0x82] sm:$0xff]  ;;  %v11107_v56 = vld [vmem:[#allocation2 + $0x1d1] sm:$0xff] }
 0x35e   :  { %13191 = vst [vmem:[#allocation166_spill] sm:$0xff] %v10925_v24  ;;  %13192 = vst [vmem:[#allocation167_spill] sm:$0xff] %v10929_v40  ;;  %v11069_v57 = vld [vmem:[#allocation2 + $0x1c2] sm:$0xff] }
 0x35f   :  { %13193 = vst [vmem:[#allocation168_spill] sm:$0xff] %v10939_v14  ;;  %13194 = vst [vmem:[#allocation169_spill] sm:$0xff] %v10947_v6  ;;  %v11073_v14 = vld [vmem:[#allocation2 + $0x262] sm:$0xff] }
 0x360   :  { %13195 = vst [vmem:[#allocation170_spill] sm:$0xff] %v10957_v51  ;;  %13196 = vst [vmem:[#allocation171_spill] sm:$0xff] %v10959_v17 }
 0x361   :  { %13197 = vst [vmem:[#allocation172_spill] sm:$0xff] %v10963_v35  ;;  %13198 = vst [vmem:[#allocation173_spill] sm:$0xff] %v10967_v54  ;;  %v10999_v54 = vpack.c.bf16 %v10975_v16, %v10973_v22 }
 0x362   :  { %13199 = vst [vmem:[#allocation174_spill] sm:$0xff] %v10985_v7  ;;  %13200 = vst [vmem:[#allocation175_spill] sm:$0xff] %v10995_v18  ;;  %v11099_v18 = vld [vmem:[#allocation2 + $0x91] sm:$0xff] }
 0x363   :  { %13201 = vst [vmem:[#allocation176_spill] sm:$0xff] %v10999_v54  ;;  %13202 = vst [vmem:[#allocation177_spill] sm:$0xff] %v11007_v8  ;;  %v11127_v8 = vld [vmem:[#allocation2 + $0x272] sm:$0xff] }
 0x364   :  { %13203 = vst [vmem:[#allocation178_spill] sm:$0xff] %v11011_v50  ;;  %13204 = vst [vmem:[#allocation179_spill] sm:$0xff] %v11015_v1  ;;  %v11037_v1 = vld [vmem:[#allocation2 + $0x80] sm:$0xff]  ;;  %v11119_v50 = vld [vmem:[#allocation2 + $0x132] sm:$0xff] }
 0x365   :  { %13205 = vst [vmem:[#allocation180_spill] sm:$0xff] %v11025_v48  ;;  %13206 = vst [vmem:[#allocation181_spill] sm:$0xff] %v11027_v29  ;;  %v11111_v29 = vld [vmem:[#allocation2 + $0x271] sm:$0xff] }
 0x366   :  { %13207 = vst [vmem:[#allocation182_spill] sm:$0xff] %v11031_v32  ;;  %13208 = vst [vmem:[#allocation183_spill] sm:$0xff] %v11035_v38  ;;  %v11103_v38 = vld [vmem:[#allocation2 + $0x131] sm:$0xff] }
 0x367   :  { %13209 = vst [vmem:[#allocation184_spill] sm:$0xff] %v11045_v43  ;;  %v11067_v43 = vld [vmem:[#allocation2 + $0x122] sm:$0xff]  ;;  %13210 = vst [vmem:[#allocation185_spill] sm:$0xff] %v11073_v14  ;;  %v11123_v48 = vld [vmem:[#allocation2 + $0x1d2] sm:$0xff] }
 0x368   :  { %13211 = vst [vmem:[#allocation186_spill] sm:$0xff] %v11111_v29  ;;  %13212 = vst [vmem:[#allocation187_spill] sm:$0xff] %v11115_v19  ;;  %v13217_v29 = vld [vmem:[#allocation38_spill] sm:$0xff] }
 0x369   :  { %13213 = vst [vmem:[#allocation188_spill] sm:$0xff] %v11119_v50  ;;  %13214 = vst [vmem:[#allocation189_spill] sm:$0xff] %v11123_v48  ;;  %7512 = vmatprep.subr.bf16.mxu0 %v13217_v29 }
 0x36a   :  { %13215 = vst [vmem:[#allocation190_spill] sm:$0xff] %v11127_v8 }
 0x36b   :  { %8769 = dma.done.wait [#allocation6], 9216 }
 0x36c   :  { %8770 = vsyncadd [#allocation6], 4294958080  ;;  %v13218_v17 = vld [vmem:[#allocation14_spill] sm:$0xff]  ;;  %v13220_v7 = vld [vmem:[#allocation23_spill] sm:$0xff]  ;;  %v13222_v24 = vpack.c.bf16 %v10585_v9, %v10677_v11  ;;  %v13223_v51 = vpack.c.bf16 %v10699_v44, %v10697_v46 }
 0x36d   :  { %7401 = vmatpush3.bf16.msra.mxu1 %v13218_v17  ;;  %v13219_v19 = vld [vmem:[#allocation30_spill] sm:$0xff]  ;;  %v13221_v50 = vld [vmem:[#allocation39_spill] sm:$0xff]  ;;  %v13226_v8 = vld [vmem:[#allocation24_spill] sm:$0xff] }
 0x36e   :  { %7513 = vmatpush3.bf16.msra.mxu0 %v13219_v19  ;;  %7402 = vmatprep.subr.bf16.mxu1 %v13220_v7  ;;  %v13224_v42 = vld [vmem:[#allocation15_spill] sm:$0xff]  ;;  %v13227_v17 = vld [vmem:[#allocation40_spill] sm:$0xff]  ;;  %v13231_v11 = vld [vmem:[#allocation41_spill] sm:$0xff] }
 0x36f   :  { %7514 = vmatprep.subr.bf16.mxu0 %v13221_v50  ;;  %3815 = vmatprep.mubr.bf16.mxu1 %v13222_v24  ;;  %v13225_v29 = vld [vmem:[#allocation31_spill] sm:$0xff]  ;;  %v13228_v19 = vld [vmem:[#allocation16_spill] sm:$0xff]  ;;  %v13230_v50 = vld [vmem:[#allocation25_spill] sm:$0xff] }
 0x370   :  { %3976 = vmatprep.mubr.bf16.mxu0 %v13223_v51  ;;  %v13229_v7 = vld [vmem:[#allocation32_spill] sm:$0xff]  ;;  %v13232_v24 = vld [vmem:[#allocation17_spill] sm:$0xff]  ;;  %v13234_v51 = vld [vmem:[#allocation26_spill] sm:$0xff] }
 0x371   :  { %7403 = vmatpush3.bf16.msra.mxu1 %v13224_v42  ;;  %v13233_v44 = vld [vmem:[#allocation33_spill] sm:$0xff]  ;;  %v13235_v42 = vld [vmem:[#allocation42_spill] sm:$0xff] }
 0x372   :  { %7515 = vmatpush3.bf16.msra.mxu0 %v13225_v29  ;;  %7404 = vmatprep.subr.bf16.mxu1 %v13226_v8  ;;  %v13236_v29 = vld [vmem:[#allocation18_spill] sm:$0xff]  ;;  %v13321_v48 = vld [vmem:[#allocation141_spill] sm:$0xff] }
 0x373   :  { %7516 = vmatprep.subr.bf16.mxu0 %v13227_v17  ;;  %v13237_v8 = vld [vmem:[#allocation34_spill] sm:$0xff]  ;;  %v13238_v17 = vld [vmem:[#allocation27_spill] sm:$0xff] }
 0x375   :  { %7405 = vmatpush3.bf16.msra.mxu1 %v13228_v19  ;;  %v13239_v19 = vld [vmem:[#allocation43_spill] sm:$0xff] }
 0x376   :  { %7517 = vmatpush3.bf16.msra.mxu0 %v13229_v7  ;;  %7406 = vmatprep.subr.bf16.mxu1 %v13230_v50  ;;  %v13240_v7 = vld [vmem:[#allocation19_spill] sm:$0xff] }
 0x377   :  { %7518 = vmatprep.subr.bf16.mxu0 %v13231_v11  ;;  %v13241_v50 = vld [vmem:[#allocation35_spill] sm:$0xff]  ;;  %v13242_v11 = vld [vmem:[#allocation28_spill] sm:$0xff] }
 0x379   :  { %7407 = vmatpush3.bf16.msra.mxu1 %v13232_v24  ;;  %v13243_v24 = vld [vmem:[#allocation44_spill] sm:$0xff] }
 0x37a   :  { %7519 = vmatpush3.bf16.msra.mxu0 %v13233_v44  ;;  %7408 = vmatprep.subr.bf16.mxu1 %v13234_v51  ;;  %v13244_v44 = vld [vmem:[#allocation20_spill] sm:$0xff] }
 0x37b   :  { %7520 = vmatprep.subr.bf16.mxu0 %v13235_v42  ;;  %v13245_v51 = vld [vmem:[#allocation36_spill] sm:$0xff]  ;;  %v13246_v42 = vld [vmem:[#allocation29_spill] sm:$0xff] }
 0x37d   :  { %7409 = vmatpush3.bf16.msra.mxu1 %v13236_v29  ;;  %v13247_v29 = vld [vmem:[#allocation45_spill] sm:$0xff] }
 0x37e   :  { %7521 = vmatpush3.bf16.msra.mxu0 %v13237_v8  ;;  %7410 = vmatprep.subr.bf16.mxu1 %v13238_v17  ;;  %v13248_v8 = vld [vmem:[#allocation21_spill] sm:$0xff] }
 0x37f   :  { %7522 = vmatprep.subr.bf16.mxu0 %v13239_v19  ;;  %v13249_v17 = vld [vmem:[#allocation37_spill] sm:$0xff]  ;;  %v13250_v19 = vld [vmem:[#allocation54_spill] sm:$0xff] }
 0x381   :  { %7411 = vmatpush3.bf16.msra.mxu1 %v13240_v7  ;;  %v13251_v7 = vld [vmem:[#allocation70_spill] sm:$0xff] }
 0x382   :  { %7523 = vmatpush3.bf16.msra.mxu0 %v13241_v50  ;;  %7412 = vmatprep.subr.bf16.mxu1 %v13242_v11  ;;  %v13252_v50 = vpack.c.bf16 %v10697_v46, %v10725_v4  ;;  %v13253_v11 = vpack.c.bf16 %v10875_v27, %v10895_v33  ;;  %v13259_v46 = vld [vmem:[#allocation47_spill] sm:$0xff] }
 0x383   :  { %7524 = vmatprep.subr.bf16.mxu0 %v13243_v24  ;;  %v13254_v24 = vld [vmem:[#allocation46_spill] sm:$0xff]  ;;  %v13261_v33 = vld [vmem:[#allocation63_spill] sm:$0xff] }
 0x385   :  { %7413 = vmatpush3.bf16.msra.mxu1 %v13244_v44  ;;  %v13255_v44 = vpack.c.bf16 %v10719_v28, %v10701_v3  ;;  %v13262_v3 = vld [vmem:[#allocation121_spill] sm:$0xff]  ;;  %v13263_v28 = vld [vmem:[#allocation120_spill] sm:$0xff] }
 0x386   :  { %7525 = vmatpush3.bf16.msra.mxu0 %v13245_v51  ;;  %7414 = vmatprep.subr.bf16.mxu1 %v13246_v42  ;;  %v13256_v51 = vld [vmem:[#allocation55_spill] sm:$0xff]  ;;  %v13257_v42 = vld [vmem:[#allocation62_spill] sm:$0xff] }
 0x387   :  { %7526 = vmatprep.subr.bf16.mxu0 %v13247_v29  ;;  %v13258_v29 = vld [vmem:[#allocation71_spill] sm:$0xff] }
 0x389   :  { %7415 = vmatpush3.bf16.msra.mxu1 %v13248_v8  ;;  %v13260_v8 = vld [vmem:[#allocation56_spill] sm:$0xff] }
 0x38a   :  { %7527 = vmatpush3.bf16.msra.mxu0 %v13249_v17  ;;  %7624 = vmatprep.subr.bf16.mxu1 %v13250_v19  ;;  %v13264_v17 = vpack.c.bf16 %v13262_v3, %v13263_v28  ;;  %v13265_v19 = vld [vmem:[#allocation48_spill] sm:$0xff]  ;;  %v13277_v3 = vld [vmem:[#allocation74_spill] sm:$0xff]  ;;  %v13278_v28 = vld [vmem:[#allocation59_spill] sm:$0xff] }
 0x38b   :  { %7736 = vmatprep.subr.bf16.mxu0 %v13251_v7  ;;  %v13266_v7 = vld [vmem:[#allocation72_spill] sm:$0xff] }
 0x38c   :  { %3816 = vmatmul.mubr.bf16.vlgmr.msra.gmra.mrb[128].mxu1 %v13252_v50  ;;  %v13267_v50 = vld [vmem:[#allocation57_spill] sm:$0xff] }
 0x38d   :  { %3977 = vmatmul.mubr.bf16.vlgmr.msra.gmra.mrb[160].mxu0 %v13253_v11  ;;  %7625 = vmatpush3.bf16.msra.mxu1 %v13254_v24  ;;  %v13268_v11 = vld [vmem:[#allocation64_spill] sm:$0xff]  ;;  %v13269_v24 = vld [vmem:[#allocation73_spill] sm:$0xff] }
 0x38e   :  { %3823 = vmatprep.mubr.bf16.mxu1 %v10683_v13  ;;  %3984 = vmatprep.mubr.bf16.mxu0 %v13255_v44  ;;  %v13270_v44 = vld [vmem:[#allocation49_spill] sm:$0xff] }
 0x38f   :  { %7626 = vmatprep.subr.bf16.mxu1 %v13256_v51  ;;  %7737 = vmatpush3.bf16.msra.mxu0 %v13257_v42  ;;  %v13271_v51 = vld [vmem:[#allocation58_spill] sm:$0xff]  ;;  %v13272_v42 = vld [vmem:[#allocation65_spill] sm:$0xff] }
 0x390   :  { %7738 = vmatprep.subr.bf16.mxu0 %v13258_v29  ;;  %v13273_v29 = vld [vmem:[#allocation124_spill] sm:$0xff] }
 0x391   :  { %7627 = vmatpush3.bf16.msra.mxu1 %v13259_v46  ;;  %v13274_v46 = vld [vmem:[#allocation107_spill] sm:$0xff] }
 0x392   :  { %7628 = vmatprep.subr.bf16.mxu1 %v13260_v8  ;;  %v13275_v8 = vpack.c.bf16 %v11037_v1, %v10741_v30  ;;  %v13285_v30 = vld [vmem:[#allocation106_spill] sm:$0xff] }
 0x393   :  { %7739 = vmatpush3.bf16.msra.mxu0 %v13261_v33  ;;  %v13276_v33 = vld [vmem:[#allocation50_spill] sm:$0xff] }
 0x394   :  { %3824 = vmatmul.mubr.bf16.gmra.mrb[132].mxu1 %v10731_v31  ;;  %7740 = vmatprep.subr.bf16.mxu0 %v13266_v7  ;;  %v13281_v7 = vld [vmem:[#allocation51_spill] sm:$0xff] }
 0x395   :  { %3985 = vmatmul.mubr.bf16.gmra.mrb[164].mxu0 %v10911_v26  ;;  %3831 = vmatprep.mubr.bf16.mxu1 %v10687_v52 }
 0x396   :  { %3992 = vmatprep.mubr.bf16.mxu0 %v13264_v17  ;;  %7629 = vmatpush3.bf16.msra.mxu1 %v13265_v19  ;;  %v13279_v17 = vld [vmem:[#allocation66_spill] sm:$0xff]  ;;  %v13280_v19 = vld [vmem:[#allocation75_spill] sm:$0xff] }
 0x397   :  { %7630 = vmatprep.subr.bf16.mxu1 %v13267_v50  ;;  %7741 = vmatpush3.bf16.msra.mxu0 %v13268_v11  ;;  %v13282_v50 = vld [vmem:[#allocation60_spill] sm:$0xff]  ;;  %v13283_v11 = vld [vmem:[#allocation67_spill] sm:$0xff] }
 0x398   :  { %7742 = vmatprep.subr.bf16.mxu0 %v13269_v24  ;;  %v13284_v24 = vld [vmem:[#allocation131_spill] sm:$0xff] }
 0x39a   :  { %7631 = vmatpush3.bf16.msra.mxu1 %v13270_v44  ;;  %v13286_v44 = vpack.c.bf16 %v10601_v53, %v13285_v30  ;;  %v13299_v30 = vld [vmem:[#allocation129_spill] sm:$0xff] }
 0x39b   :  { %7632 = vmatprep.subr.bf16.mxu1 %v13271_v51  ;;  %7743 = vmatpush3.bf16.msra.mxu0 %v13272_v42  ;;  %v13287_v51 = vpack.c.bf16 %v10745_v58, %v10743_v45  ;;  %v13288_v42 = vld [vmem:[#allocation52_spill] sm:$0xff]  ;;  %v13296_v58 = vpack.c.bf16 %v10743_v45, %v10725_v4 }
 0x39c   :  { %3832 = vmatmul.mubr.bf16.gmra.mrb[136].mxu1 %v13273_v29  ;;  %7744 = vmatprep.subr.bf16.mxu0 %v13277_v3  ;;  %v13291_v3 = vld [vmem:[#allocation68_spill] sm:$0xff] }
 0x39d   :  { %3993 = vmatmul.mubr.bf16.gmra.mrb[168].mxu0 %v10915_v15  ;;  %3839 = vmatprep.mubr.bf16.mxu1 %v13274_v46  ;;  %v13344_v15 = vld [vmem:[#allocation151_spill] sm:$0xff] }
 0x39e   :  { %4000 = vmatprep.mubr.bf16.mxu0 %v13275_v8  ;;  %7633 = vmatpush3.bf16.msra.mxu1 %v13276_v33  ;;  %v13289_v8 = vld [vmem:[#allocation76_spill] sm:$0xff]  ;;  %v13290_v33 = vld [vmem:[#allocation61_spill] sm:$0xff] }
 0x39f   :  { %7634 = vmatprep.subr.bf16.mxu1 %v13278_v28  ;;  %7745 = vmatpush3.bf16.msra.mxu0 %v13279_v17  ;;  %v13292_v28 = vld [vmem:[#allocation77_spill] sm:$0xff] }
 0x3a0   :  { %7746 = vmatprep.subr.bf16.mxu0 %v13280_v19  ;;  %v13293_v17 = vld [vmem:[#allocation53_spill] sm:$0xff] }
 0x3a1   :  { %v13294_v19 = vld [vmem:[#allocation69_spill] sm:$0xff] }
 0x3a2   :  { %7635 = vmatpush3.bf16.msra.mxu1 %v13281_v7  ;;  %v13295_v7 = vld [vmem:[#allocation78_spill] sm:$0xff] }
 0x3a3   :  { %7636 = vmatprep.subr.bf16.mxu1 %v13282_v50  ;;  %7747 = vmatpush3.bf16.msra.mxu0 %v13283_v11  ;;  %v13297_v50 = vpack.c.bf16 %v10907_v49, %v10931_v41  ;;  %v13298_v11 = vld [vmem:[#allocation117_spill] sm:$0xff]  ;;  %v13308_v41 = vld [vmem:[#allocation119_spill] sm:$0xff] }
 0x3a4   :  { %3840 = vmatmul.mubr.bf16.gmra.mrb[140].mxu1 %v13284_v24  ;;  %7748 = vmatprep.subr.bf16.mxu0 %v13289_v8  ;;  %v13303_v8 = vld [vmem:[#allocation118_spill] sm:$0xff] }
 0x3a5   :  { %4001 = vmatmul.mubr.bf16.gmra.mrb[172].mxu0 %v10929_v40  ;;  %3847 = vmatprep.mubr.bf16.mxu1 %v13286_v44  ;;  %v13300_v44 = vld [vmem:[#allocation128_spill] sm:$0xff] }
 0x3a6   :  { %4008 = vmatprep.mubr.bf16.mxu0 %v13287_v51  ;;  %7637 = vmatpush3.bf16.msra.mxu1 %v13288_v42  ;;  %v13301_v51 = vpack.c.bf16 %v13299_v30, %v13300_v44  ;;  %v13302_v42 = vld [vmem:[#allocation136_spill] sm:$0xff]  ;;  %v13313_v30 = vld [vmem:[#allocation122_spill] sm:$0xff] }
 0x3a7   :  { %7638 = vmatprep.subr.bf16.mxu1 %v13290_v33  ;;  %7749 = vmatpush3.bf16.msra.mxu0 %v13291_v3  ;;  %v13304_v33 = vld [vmem:[#allocation134_spill] sm:$0xff] }
 0x3a8   :  { %7750 = vmatprep.subr.bf16.mxu0 %v13292_v28  ;;  %v13305_v3 = vld [vmem:[#allocation130_spill] sm:$0xff]  ;;  %v13307_v28 = vld [vmem:[#allocation137_spill] sm:$0xff] }
 0x3a9   :  { %v13306_v45 = vpack.c.bf16 %v13304_v33, %v13305_v3  ;;  %v13316_v33 = vld [vmem:[#allocation135_spill] sm:$0xff] }
 0x3aa   :  { %7639 = vmatpush3.bf16.msra.mxu1 %v13293_v17  ;;  %v13309_v17 = vpack.c.bf16 %v11047_v10, %v10785_v59  ;;  %v13319_v59 = vpack.c.bf16 %v10955_v39, %v10979_v36  ;;  %v13331_v36 = vld [vmem:[#allocation126_spill] sm:$0xff] }
 0x3ab   :  { %7751 = vmatpush3.bf16.msra.mxu0 %v13294_v19  ;;  %8072 = vmatprep.subr.bf16.mxu1 %v13295_v7  ;;  %v13310_v19 = vld [vmem:[#allocation142_spill] sm:$0xff] }
 0x3ac   :  { %3848 = vmatmul.mubr.bf16.gmra.mrb[144].mxu1 %v13296_v58  ;;  %v13311_v58 = vld [vmem:[#allocation173_spill] sm:$0xff] }
 0x3ad   :  { %4009 = vmatmul.mubr.bf16.gmra.mrb[176].mxu0 %v13297_v50  ;;  %3855 = vmatprep.mubr.bf16.mxu1 %v13298_v11  ;;  %v13312_v50 = vld [vmem:[#allocation111_spill] sm:$0xff] }
 0x3ae   :  { %4016 = vmatprep.mubr.bf16.mxu0 %v13301_v51  ;;  %v13314_v44 = vpack.c.bf16 %v13312_v50, %v13313_v30  ;;  %v13315_v51 = vld [vmem:[#allocation139_spill] sm:$0xff]  ;;  %v13324_v30 = vld [vmem:[#allocation145_spill] sm:$0xff] }
 0x3af   :  { %v13317_v3 = vpack.c.bf16 %v13315_v51, %v13316_v33  ;;  %v13326_v51 = vld [vmem:[#allocation125_spill] sm:$0xff] }
 0x3b4   :  { %3856 = vmatmul.mubr.bf16.gmra.mrb[148].mxu1 %v13302_v42 }
 0x3b5   :  { %4017 = vmatmul.mubr.bf16.gmra.mrb[180].mxu0 %v10947_v6  ;;  %3863 = vmatprep.mubr.bf16.mxu1 %v13303_v8  ;;  %v13328_v6 = vld [vmem:[#allocation143_spill] sm:$0xff] }
 0x3b6   :  { %4024 = vmatprep.mubr.bf16.mxu0 %v13306_v45  ;;  %v13318_v45 = vpack.c.bf16 %v13316_v33, %v10725_v4 }
 0x3bc   :  { %3864 = vmatmul.mubr.bf16.gmra.mrb[152].mxu1 %v13307_v28 }
 0x3bd   :  { %4025 = vmatmul.mubr.bf16.gmra.mrb[184].mxu0 %v10963_v35  ;;  %3871 = vmatprep.mubr.bf16.mxu1 %v13308_v41 }
 0x3be   :  { %4032 = vmatprep.mubr.bf16.mxu0 %v13309_v17  ;;  %v13320_v17 = vld [vmem:[#allocation123_spill] sm:$0xff] }
 0x3c4   :  { %3872 = vmatmul.mubr.bf16.gmra.mrb[156].mxu1 %v13310_v19 }
 0x3c5   :  { %4033 = vmatmul.mubr.bf16.gmra.mrb[188].mxu0 %v13311_v58  ;;  %3879 = vmatprep.mubr.bf16.mxu1 %v13314_v44  ;;  %v13322_v58 = vld [vmem:[#allocation140_spill] sm:$0xff]  ;;  %v13325_v44 = vld [vmem:[#allocation174_spill] sm:$0xff] }
 0x3c6   :  { %4040 = vmatprep.mubr.bf16.mxu0 %v13317_v3  ;;  %v13323_v35 = vpack.c.bf16 %v13321_v48, %v13322_v58  ;;  %v13327_v3 = vld [vmem:[#allocation144_spill] sm:$0xff]  ;;  %v13332_v48 = vpack.c.bf16 %v11049_v55, %v10823_v12  ;;  %v13334_v58 = vld [vmem:[#allocation179_spill] sm:$0xff]  ;;  %v13342_v12 = vpack.c.bf16 %v10993_v60, %v11017_v21 }
 0x3c7   :  { %v13329_v33 = vpack.c.bf16 %v13327_v3, %v13328_v6  ;;  %v13338_v6 = vld [vmem:[#allocation147_spill] sm:$0xff]  ;;  %v13339_v3 = vld [vmem:[#allocation146_spill] sm:$0xff] }
 0x3c8   :  { %v13353_v21 = vld [vmem:[#allocation183_spill] sm:$0xff] }
 0x3cc   :  { %3880 = vmatmul.mubr.bf16.gmra.mrb[160].mxu1 %v13318_v45  ;;  %v13330_v45 = vld [vmem:[#allocation149_spill] sm:$0xff] }
 0x3cd   :  { %4041 = vmatmul.mubr.bf16.gmra.mrb[192].mxu0 %v13319_v59  ;;  %3887 = vmatprep.mubr.bf16.mxu1 %v13320_v17  ;;  %v13335_v59 = vld [vmem:[#allocation115_spill] sm:$0xff] }
 0x3ce   :  { %4048 = vmatprep.mubr.bf16.mxu0 %v13323_v35  ;;  %v13333_v35 = vld [vmem:[#allocation150_spill] sm:$0xff] }
 0x3d4   :  { %3888 = vmatmul.mubr.bf16.gmra.mrb[164].mxu1 %v13324_v30 }
 0x3d5   :  { %4049 = vmatmul.mubr.bf16.gmra.mrb[196].mxu0 %v13325_v44  ;;  %3895 = vmatprep.mubr.bf16.mxu1 %v13326_v51  ;;  %v13336_v44 = vld [vmem:[#allocation127_spill] sm:$0xff] }
 0x3d6   :  { %4056 = vmatprep.mubr.bf16.mxu0 %v13329_v33  ;;  %v13337_v40 = vpack.c.bf16 %v13335_v59, %v13336_v44  ;;  %v13340_v33 = vpack.c.bf16 %v13338_v6, %v13339_v3  ;;  %v13347_v44 = vld [vmem:[#allocation154_spill] sm:$0xff]  ;;  %v13349_v6 = vld [vmem:[#allocation153_spill] sm:$0xff] }
 0x3dc   :  { %3896 = vmatmul.mubr.bf16.gmra.mrb[168].mxu1 %v13330_v45 }
 0x3dd   :  { %4057 = vmatmul.mubr.bf16.gmra.mrb[200].mxu0 %v10999_v54  ;;  %3903 = vmatprep.mubr.bf16.mxu1 %v13331_v36  ;;  %v13341_v54 = vpack.c.bf16 %v13339_v3, %v10725_v4 }
 0x3de   :  { %4064 = vmatprep.mubr.bf16.mxu0 %v13332_v48  ;;  %v13343_v48 = vld [vmem:[#allocation132_spill] sm:$0xff] }
 0x3e4   :  { %3904 = vmatmul.mubr.bf16.gmra.mrb[172].mxu1 %v13333_v35 }
 0x3e5   :  { %4065 = vmatmul.mubr.bf16.gmra.mrb[204].mxu0 %v13334_v58  ;;  %3911 = vmatprep.mubr.bf16.mxu1 %v13337_v40  ;;  %v13345_v58 = vld [vmem:[#allocation148_spill] sm:$0xff]  ;;  %v13348_v40 = vld [vmem:[#allocation133_spill] sm:$0xff] }
 0x3e6   :  { %4072 = vmatprep.mubr.bf16.mxu0 %v13340_v33  ;;  %v13346_v26 = vpack.c.bf16 %v13344_v15, %v13345_v58  ;;  %v13350_v33 = vld [vmem:[#allocation152_spill] sm:$0xff]  ;;  %v13355_v15 = vpack.c.bf16 %v11051_v0, %v10869_v61  ;;  %v13362_v61 = vld [vmem:[#allocation159_spill] sm:$0xff] }
 0x3e7   :  { %v13351_v3 = vpack.c.bf16 %v13349_v6, %v13350_v33  ;;  %v13357_v58 = vld [vmem:[#allocation184_spill] sm:$0xff]  ;;  %v13360_v6 = vld [vmem:[#allocation103_spill] sm:$0xff] }
 0x3e8   :  { %v13361_v33 = vpack.c.bf16 %v13360_v6, %v10585_v9  ;;  %v13375_v6 = vld [vmem:[#allocation88_spill] sm:$0xff] }
 0x3ec   :  { %3912 = vmatmul.mubr.bf16.gmra.mrb[176].mxu1 %v13341_v54  ;;  %v13352_v54 = vld [vmem:[#allocation155_spill] sm:$0xff] }
 0x3ed   :  { %4073 = vmatmul.mubr.bf16.gmra.mrb[208].mxu0 %v13342_v12  ;;  %3919 = vmatprep.mubr.bf16.mxu1 %v13343_v48  ;;  %v13354_v12 = vld [vmem:[#allocation138_spill] sm:$0xff] }
 0x3ee   :  { %4080 = vmatprep.mubr.bf16.mxu0 %v13346_v26  ;;  %v13356_v26 = vld [vmem:[#allocation157_spill] sm:$0xff] }
 0x3f4   :  { %3920 = vmatmul.mubr.bf16.gmra.mrb[180].mxu1 %v13347_v44 }
 0x3f5   :  { %4081 = vmatmul.mubr.bf16.gmra.mrb[212].mxu0 %v11031_v32  ;;  %3927 = vmatprep.mubr.bf16.mxu1 %v13348_v40  ;;  %v13358_v32 = vld [vmem:[#allocation156_spill] sm:$0xff] }
 0x3f6   :  { %4088 = vmatprep.mubr.bf16.mxu0 %v13351_v3  ;;  %v13359_v14 = vpack.c.bf16 %v13358_v32, %v10875_v27  ;;  %v13363_v3 = vld [vmem:[#allocation158_spill] sm:$0xff]  ;;  %v13367_v32 = vld [vmem:[#allocation91_spill] sm:$0xff]  ;;  %v13370_v27 = vld [vmem:[#allocation161_spill] sm:$0xff] }
 0x3fc   :  { %3928 = vmatmul.mubr.bf16.gmra.mrb[184].mxu1 %v13352_v54 }
 0x3fd   :  { %4089 = vmatmul.mubr.bf16.gmra.mrb[216].mxu0 %v13353_v21  ;;  %3935 = vmatprep.mubr.bf16.mxu1 %v13354_v12 }
 0x3fe   :  { %4096 = vmatprep.mubr.bf16.mxu0 %v13355_v15  ;;  %v13364_v15 = vpack.c.bf16 %v13362_v61, %v13363_v3  ;;  %v13380_v3 = vld [vmem:[#allocation83_spill] sm:$0xff] }
 0x404   :  { %3936 = vmatmul.mubr.bf16.gmra.mrb[188].mxu1 %v13356_v26 }
 0x405   :  { %4097 = vmatmul.mubr.bf16.gmra.mrb[220].mxu0 %v13357_v58  ;;  %4137 = vmatprep.mubr.bf16.mxu1 %v13359_v14  ;;  %v13365_v58 = vld [vmem:[#allocation79_spill] sm:$0xff]  ;;  %v13366_v14 = vld [vmem:[#allocation80_spill] sm:$0xff] }
 0x406   :  { %4298 = vmatprep.mubr.bf16.mxu0 %v10683_v13  ;;  %v13368_v13 = vld [vmem:[#allocation105_spill] sm:$0xff] }
 0x407   :  { %v13369_v9 = vpack.c.bf16 %v13367_v32, %v13368_v13  ;;  %v13387_v13 = vld [vmem:[#allocation85_spill] sm:$0xff] }
 0x40c   :  { %4138 = vmatmul.mubr.bf16.vlgmr.msra.gmra.mrb[192].mxu1 %v13361_v33  ;;  %v13376_v33 = vld [vmem:[#allocation89_spill] sm:$0xff] }
 0x40d   :  { %4299 = vmatmul.mubr.bf16.vlgmr.msra.gmra.mrb[224].mxu0 %v10731_v31  ;;  %8073 = vmatpush3.bf16.msra.mxu1 %v13295_v7  ;;  %v13371_v31 = vld [vmem:[#allocation160_spill] sm:$0xff]  ;;  %v13377_v61 = vpack.c.bf16 %v13375_v6, %v13376_v33  ;;  %v13402_v33 = vpack.c.bf16 %v11103_v38, %v10619_v34  ;;  %v13410_v38 = vld [vmem:[#allocation171_spill] sm:$0xff] }
 0x40e   :  { %4145 = vmatprep.mubr.bf16.mxu1 %v13364_v15  ;;  %4306 = vmatprep.mubr.bf16.mxu0 %v10687_v52  ;;  %v13372_v7 = vpack.c.bf16 %v13370_v27, %v13371_v31  ;;  %v13373_v52 = vld [vmem:[#allocation81_spill] sm:$0xff]  ;;  %v13381_v15 = vld [vmem:[#allocation84_spill] sm:$0xff] }
 0x40f   :  { %8074 = vmatprep.subr.bf16.mxu1 %v13365_v58  ;;  %v13391_v27 = vld [vmem:[#allocation165_spill] sm:$0xff] }
 0x411   :  { %8075 = vmatpush3.bf16.msra.mxu1 %v13365_v58  ;;  %v13374_v58 = vld [vmem:[#allocation82_spill] sm:$0xff] }
 0x412   :  { %8076 = vmatprep.subr.bf16.mxu1 %v13366_v14 }
 0x414   :  { %4146 = vmatmul.mubr.bf16.gmra.mrb[196].mxu1 %v13369_v9  ;;  %v13388_v9 = vld [vmem:[#allocation90_spill] sm:$0xff] }
 0x415   :  { %4307 = vmatmul.mubr.bf16.gmra.mrb[228].mxu0 %v13273_v29  ;;  %4153 = vmatprep.mubr.bf16.mxu1 %v13372_v7  ;;  %v13378_v29 = vpack.c.bf16 %v11065_v5, %v10905_v2  ;;  %v13384_v2 = vpack.c.bf16 %v10725_v4, %v11037_v1  ;;  %v13390_v1 = vld [vmem:[#allocation166_spill] sm:$0xff] }
 0x416   :  { %4314 = vmatprep.mubr.bf16.mxu0 %v13274_v46  ;;  %8077 = vmatpush3.bf16.msra.mxu1 %v13366_v14  ;;  %v13379_v46 = vpack.c.bf16 %v11099_v18, %v10599_v20  ;;  %v13382_v14 = vld [vmem:[#allocation104_spill] sm:$0xff]  ;;  %v13392_v31 = vpack.c.bf16 %v13390_v1, %v13391_v27  ;;  %v13424_v27 = vld [vmem:[#allocation175_spill] sm:$0xff] }
 0x417   :  { %8078 = vmatprep.subr.bf16.mxu1 %v13373_v52  ;;  %v13383_v32 = vpack.c.bf16 %v10599_v20, %v13382_v14  ;;  %v13389_v20 = vpack.c.bf16 %v13388_v9, %v10601_v53  ;;  %v13398_v53 = vld [vmem:[#allocation109_spill] sm:$0xff] }
 0x41a   :  { %8079 = vmatpush3.bf16.msra.mxu1 %v13373_v52  ;;  %v13396_v52 = vld [vmem:[#allocation168_spill] sm:$0xff] }
 0x41b   :  { %8080 = vmatprep.subr.bf16.mxu1 %v13374_v58 }
 0x41c   :  { %4154 = vmatmul.mubr.bf16.gmra.mrb[200].mxu1 %v13377_v61  ;;  %v13406_v61 = vld [vmem:[#allocation170_spill] sm:$0xff] }
 0x41d   :  { %4315 = vmatmul.mubr.bf16.gmra.mrb[232].mxu0 %v13284_v24  ;;  %4161 = vmatprep.mubr.bf16.mxu1 %v13378_v29  ;;  %v13385_v24 = vld [vmem:[#allocation164_spill] sm:$0xff]  ;;  %v13407_v29 = vpack.c.bf16 %v13406_v61, %v10955_v39  ;;  %v13415_v39 = vpack.c.bf16 %v10977_v25, %v10975_v16 }
 0x41e   :  { %4322 = vmatprep.mubr.bf16.mxu0 %v13379_v46  ;;  %8081 = vmatpush3.bf16.msra.mxu1 %v13374_v58  ;;  %v13386_v18 = vpack.c.bf16 %v13385_v24, %v10907_v49  ;;  %v13393_v49 = vld [vmem:[#allocation93_spill] sm:$0xff]  ;;  %v13397_v58 = vpack.c.bf16 %v10941_v37, %v13396_v52  ;;  %v13413_v46 = vld [vmem:[#allocation94_spill] sm:$0xff] }
 0x41f   :  { %8082 = vmatprep.subr.bf16.mxu1 %v13380_v3 }
 0x422   :  { %8083 = vmatpush3.bf16.msra.mxu1 %v13380_v3 }
 0x423   :  { %8084 = vmatprep.subr.bf16.mxu1 %v13381_v15 }
 0x424   :  { %4162 = vmatmul.mubr.bf16.gmra.mrb[204].mxu1 %v13383_v32 }
 0x425   :  { %4323 = vmatmul.mubr.bf16.gmra.mrb[236].mxu0 %v13384_v2  ;;  %4169 = vmatprep.mubr.bf16.mxu1 %v13386_v18 }
 0x426   :  { %4330 = vmatprep.mubr.bf16.mxu0 %v13298_v11  ;;  %8085 = vmatpush3.bf16.msra.mxu1 %v13381_v15  ;;  %v13394_v11 = vld [vmem:[#allocation108_spill] sm:$0xff] }
 0x427   :  { %8086 = vmatprep.subr.bf16.mxu1 %v13387_v13  ;;  %v13395_v7 = vpack.c.bf16 %v13393_v49, %v13394_v11 }
 0x42a   :  { %8087 = vmatpush3.bf16.msra.mxu1 %v13387_v13 }
 0x42c   :  { %4170 = vmatmul.mubr.bf16.gmra.mrb[208].mxu1 %v13389_v20 }
 0x42d   :  { %4331 = vmatmul.mubr.bf16.gmra.mrb[240].mxu0 %v13302_v42  ;;  %4177 = vmatprep.mubr.bf16.mxu1 %v13392_v31  ;;  %v13399_v42 = vld [vmem:[#allocation92_spill] sm:$0xff]  ;;  %v13425_v31 = vpack.c.bf16 %v13424_v27, %v10993_v60 }
 0x42e   :  { %4338 = vmatprep.mubr.bf16.mxu0 %v13303_v8  ;;  %v13400_v6 = vpack.c.bf16 %v13398_v53, %v13399_v42  ;;  %v13401_v8 = vpack.c.bf16 %v11067_v43, %v10943_v62  ;;  %v13408_v62 = vld [vmem:[#allocation95_spill] sm:$0xff]  ;;  %v13437_v27 = vld [vmem:[#allocation116_spill] sm:$0xff] }
 0x434   :  { %4178 = vmatmul.mubr.bf16.gmra.mrb[212].mxu1 %v13395_v7 }
 0x435   :  { %4339 = vmatmul.mubr.bf16.gmra.mrb[244].mxu0 %v13307_v28  ;;  %4185 = vmatprep.mubr.bf16.mxu1 %v13397_v58  ;;  %v13403_v28 = vld [vmem:[#allocation110_spill] sm:$0xff] }
 0x436   :  { %4346 = vmatprep.mubr.bf16.mxu0 %v13308_v41  ;;  %v13404_v37 = vpack.c.bf16 %v10619_v34, %v13403_v28  ;;  %v13405_v41 = vpack.c.bf16 %v10725_v4, %v11047_v10  ;;  %v13411_v34 = vpack.c.bf16 %v10973_v22, %v13410_v38  ;;  %v13412_v10 = vld [vmem:[#allocation112_spill] sm:$0xff]  ;;  %v13419_v22 = vpack.c.bf16 %v11069_v57, %v10991_v23 }
 0x437   :  { %v13414_v3 = vpack.c.bf16 %v13412_v10, %v13413_v46  ;;  %v13421_v23 = vld [vmem:[#allocation96_spill] sm:$0xff] }
 0x438   :  { %v13422_v20 = vpack.c.bf16 %v10643_v63, %v13421_v23 }
 0x43c   :  { %4186 = vmatmul.mubr.bf16.gmra.mrb[216].mxu1 %v13400_v6 }
 0x43d   :  { %4347 = vmatmul.mubr.bf16.gmra.mrb[248].mxu0 %v13310_v19  ;;  %4193 = vmatprep.mubr.bf16.mxu1 %v13401_v8  ;;  %v13409_v19 = vpack.c.bf16 %v13408_v62, %v13312_v50  ;;  %v13416_v50 = vld [vmem:[#allocation97_spill] sm:$0xff] }
 0x43e   :  { %4354 = vmatprep.mubr.bf16.mxu0 %v13402_v33 }
 0x444   :  { %4194 = vmatmul.mubr.bf16.gmra.mrb[220].mxu1 %v13404_v37  ;;  %v13426_v37 = vld [vmem:[#allocation113_spill] sm:$0xff] }
 0x445   :  { %4355 = vmatmul.mubr.bf16.gmra.mrb[252].mxu0 %v13405_v41  ;;  %4201 = vmatprep.mubr.bf16.mxu1 %v13407_v29  ;;  %v13427_v60 = vpack.c.bf16 %v13426_v37, %v13335_v59  ;;  %v13428_v41 = vld [vmem:[#allocation177_spill] sm:$0xff] }
 0x446   :  { %4362 = vmatprep.mubr.bf16.mxu0 %v13320_v17  ;;  %v13417_v17 = vld [vmem:[#allocation114_spill] sm:$0xff]  ;;  %v13429_v61 = vpack.c.bf16 %v11009_v47, %v13428_v41 }
 0x44c   :  { %4202 = vmatmul.mubr.bf16.gmra.mrb[224].mxu1 %v13409_v19 }
 0x44d   :  { %4363 = vmatmul.mubr.bf16.gmra.mrb[0].mxu0 %v13324_v30  ;;  %4209 = vmatprep.mubr.bf16.mxu1 %v13411_v34  ;;  %v13418_v30 = vpack.c.bf16 %v13416_v50, %v13417_v17 }
 0x44e   :  { %4370 = vmatprep.mubr.bf16.mxu0 %v13326_v51  ;;  %v13420_v51 = vpack.c.bf16 %v11107_v56, %v10643_v63  ;;  %v13423_v56 = vpack.c.bf16 %v10725_v4, %v11049_v55 }
 0x454   :  { %4210 = vmatmul.mubr.bf16.gmra.mrb[228].mxu1 %v13414_v3 }
 0x455   :  { %4371 = vmatmul.mubr.bf16.gmra.mrb[4].mxu0 %v13330_v45  ;;  %4217 = vmatprep.mubr.bf16.mxu1 %v13415_v39 }
 0x456   :  { %4378 = vmatprep.mubr.bf16.mxu0 %v13331_v36 }
 0x45c   :  { %4218 = vmatmul.mubr.bf16.gmra.mrb[232].mxu1 %v13418_v30  ;;  %v13430_v30 = vld [vmem:[#allocation99_spill] sm:$0xff] }
 0x45d   :  { %4379 = vmatmul.mubr.bf16.gmra.mrb[8].mxu0 %v13333_v35  ;;  %4225 = vmatprep.mubr.bf16.mxu1 %v13419_v22  ;;  %v13431_v22 = vld [vmem:[#allocation98_spill] sm:$0xff] }
 0x45e   :  { %4386 = vmatprep.mubr.bf16.mxu0 %v13420_v51  ;;  %v13432_v47 = vpack.c.bf16 %v13430_v30, %v13431_v22  ;;  %v13433_v51 = vld [vmem:[#allocation180_spill] sm:$0xff] }
 0x45f   :  { %v7416_v45 = vpop.f32.mrb[128].mxu1 }
 0x460   :  { %v7528_v15 = vpop.f32.mrb[160].mxu0  ;;  %v7417_v16 = vpop.f32.mrb[129].mxu1 }
 0x461   :  { %v7529_v25 = vpop.f32.mrb[161].mxu0  ;;  %v7418_v14 = vadd.f32 %v7417_v16, %v7416_v45  ;;  %v7419_v32 = vpop.f32.mrb[130].mxu1  ;;  %v13434_v45 = vld [vmem:[#allocation178_spill] sm:$0xff] }
 0x462   :  { %v7530_v36 = vadd.f32 %v7529_v25, %v7528_v15  ;;  %v7531_v2 = vpop.f32.mrb[162].mxu0  ;;  %v7420_v24 = vpop.f32.mrb[131].mxu1  ;;  %v13435_v15 = vpack.c.bf16 %v13433_v51, %v13434_v45 }
 0x463   :  { %v7532_v18 = vpop.f32.mrb[163].mxu0  ;;  %v7421_v35 = vadd.f32 %v7420_v24, %v7419_v32 }
 0x464   :  { %v11433_v13 = vadd.f32 %v7530_v36, %v7418_v14  ;;  %v7533_v9 = vadd.f32 %v7532_v18, %v7531_v2  ;;  %4226 = vmatmul.mubr.bf16.gmra.mrb[236].mxu1 %v13422_v20 }
 0x465   :  { %4387 = vmatmul.mubr.bf16.gmra.mrb[12].mxu0 %v13423_v56  ;;  %4233 = vmatprep.mubr.bf16.mxu1 %v13425_v31  ;;  %v13436_v56 = vld [vmem:[#allocation100_spill] sm:$0xff] }
 0x466   :  { %v11441_v1 = vadd.f32 %v7533_v9, %v7421_v35  ;;  %4394 = vmatprep.mubr.bf16.mxu0 %v13343_v48  ;;  %v13438_v31 = vpack.c.bf16 %v13436_v56, %v13437_v27 }
 0x467   :  { %v7422_v49 = vpop.f32.mrb[132].mxu1 }
 0x468   :  { %v7534_v11 = vpop.f32.mrb[164].mxu0  ;;  %v7423_v7 = vpop.f32.mrb[133].mxu1 }
 0x469   :  { %v7535_v52 = vpop.f32.mrb[165].mxu0  ;;  %v7424_v58 = vadd.f32 %v7423_v7, %v7422_v49  ;;  %v7425_v63 = vpop.f32.mrb[134].mxu1  ;;  %v13439_v49 = vld [vmem:[#allocation185_spill] sm:$0xff] }
 0x46a   :  { %v7536_v53 = vadd.f32 %v7535_v52, %v7534_v11  ;;  %v7537_v42 = vpop.f32.mrb[166].mxu0  ;;  %v7426_v6 = vpop.f32.mrb[135].mxu1  ;;  %v13440_v11 = vld [vmem:[#allocation181_spill] sm:$0xff]  ;;  %v13442_v52 = vld [vmem:[#allocation186_spill] sm:$0xff] }
 0x46b   :  { %v7538_v8 = vpop.f32.mrb[167].mxu0  ;;  %v7427_v33 = vadd.f32 %v7426_v6, %v7425_v63  ;;  %v13441_v7 = vpack.c.bf16 %v13439_v49, %v13440_v11 }
 0x46c   :  { %v11447_v55 = vadd.f32 %v7536_v53, %v7424_v58  ;;  %v7539_v28 = vadd.f32 %v7538_v8, %v7537_v42  ;;  %4234 = vmatmul.mubr.bf16.gmra.mrb[240].mxu1 %v13427_v60  ;;  %v13443_v58 = vld [vmem:[#allocation102_spill] sm:$0xff] }
 0x46d   :  { %4395 = vmatmul.mubr.bf16.gmra.mrb[16].mxu0 %v13347_v44  ;;  %4241 = vmatprep.mubr.bf16.mxu1 %v13429_v61  ;;  %v13444_v53 = vpack.c.bf16 %v13442_v52, %v13443_v58 }
 0x46e   :  { %v11453_v48 = vadd.f32 %v7539_v28, %v7427_v33  ;;  %4402 = vmatprep.mubr.bf16.mxu0 %v13348_v40 }
 0x46f   :  { %v7428_v29 = vpop.f32.mrb[136].mxu1 }
 0x470   :  { %v7540_v62 = vpop.f32.mrb[168].mxu0  ;;  %v7429_v19 = vpop.f32.mrb[137].mxu1 }
 0x471   :  { %v7541_v38 = vpop.f32.mrb[169].mxu0  ;;  %v7430_v34 = vadd.f32 %v7429_v19, %v7428_v29  ;;  %v7431_v46 = vpop.f32.mrb[138].mxu1  ;;  %v13445_v19 = vld [vmem:[#allocation101_spill] sm:$0xff] }
 0x472   :  { %v7542_v10 = vadd.f32 %v7541_v38, %v7540_v62  ;;  %v7543_v3 = vpop.f32.mrb[170].mxu0  ;;  %v7432_v59 = vpop.f32.mrb[139].mxu1  ;;  %v13446_v38 = vpack.c.bf16 %v13443_v58, %v13445_v19 }
 0x473   :  { %v7544_v39 = vpop.f32.mrb[171].mxu0  ;;  %v7433_v44 = vadd.f32 %v7432_v59, %v7431_v46  ;;  %v13448_v46 = vld [vmem:[#allocation162_spill] sm:$0xff] }
 0x474   :  { %v11459_v50 = vadd.f32 %v7542_v10, %v7430_v34  ;;  %v7545_v17 = vadd.f32 %v7544_v39, %v7543_v3  ;;  %4242 = vmatmul.mubr.bf16.gmra.mrb[244].mxu1 %v13432_v47  ;;  %v13447_v34 = vpack.c.bf16 %v10725_v4, %v11051_v0  ;;  %v13449_v0 = vld [vmem:[#allocation163_spill] sm:$0xff] }
 0x475   :  { %4403 = vmatmul.mubr.bf16.gmra.mrb[20].mxu0 %v13352_v54  ;;  %4249 = vmatprep.mubr.bf16.mxu1 %v13435_v15 }
 0x476   :  { %v11465_v40 = vadd.f32 %v7545_v17, %v7433_v44  ;;  %4410 = vmatprep.mubr.bf16.mxu0 %v13354_v12 }
 0x477   :  { %v7434_v16 = vpop.f32.mrb[140].mxu1 }
 0x478   :  { %v7546_v25 = vpop.f32.mrb[172].mxu0  ;;  %v7435_v14 = vpop.f32.mrb[141].mxu1 }
 0x479   :  { %v7547_v36 = vpop.f32.mrb[173].mxu0  ;;  %v7436_v32 = vadd.f32 %v7435_v14, %v7434_v16  ;;  %v7437_v24 = vpop.f32.mrb[142].mxu1  ;;  %v13450_v14 = vld [vmem:[#allocation167_spill] sm:$0xff] }
 0x47a   :  { %v7548_v2 = vadd.f32 %v7547_v36, %v7546_v25  ;;  %v7549_v18 = vpop.f32.mrb[174].mxu0  ;;  %v7438_v35 = vpop.f32.mrb[143].mxu1 }
 0x47b   :  { %v7550_v9 = vpop.f32.mrb[175].mxu0  ;;  %v7439_v54 = vadd.f32 %v7438_v35, %v7437_v24 }
 0x47c   :  { %v11471_v23 = vadd.f32 %v7548_v2, %v7436_v32  ;;  %v7551_v20 = vadd.f32 %v7550_v9, %v7549_v18  ;;  %4250 = vmatmul.mubr.bf16.gmra.mrb[248].mxu1 %v13438_v31 }
 0x47d   :  { %4411 = vmatmul.mubr.bf16.gmra.mrb[24].mxu0 %v13356_v26  ;;  %4257 = vmatprep.mubr.bf16.mxu1 %v13441_v7  ;;  %v13451_v7 = vld [vmem:[#allocation187_spill] sm:$0xff] }
 0x47e   :  { %v11477_v12 = vadd.f32 %v7551_v20, %v7439_v54  ;;  %4418 = vmatprep.mubr.bf16.mxu0 %v13444_v53  ;;  %v13452_v52 = vpack.c.bf16 %v13451_v7, %v11065_v5  ;;  %v13453_v53 = vld [vmem:[#allocation169_spill] sm:$0xff]  ;;  %v13454_v5 = vld [vmem:[#allocation172_spill] sm:$0xff] }
 0x47f   :  { %v7440_v63 = vpop.f32.mrb[144].mxu1 }
 0x480   :  { %v7552_v42 = vpop.f32.mrb[176].mxu0  ;;  %v7441_v6 = vpop.f32.mrb[145].mxu1 }
 0x481   :  { %v7553_v8 = vpop.f32.mrb[177].mxu0  ;;  %v7442_v33 = vadd.f32 %v7441_v6, %v7440_v63  ;;  %v7443_v37 = vpop.f32.mrb[146].mxu1 }
 0x482   :  { %v7554_v28 = vadd.f32 %v7553_v8, %v7552_v42  ;;  %v7555_v60 = vpop.f32.mrb[178].mxu0  ;;  %v7444_v41 = vpop.f32.mrb[147].mxu1 }
 0x483   :  { %v7556_v26 = vpop.f32.mrb[179].mxu0  ;;  %v7445_v29 = vadd.f32 %v7444_v41, %v7443_v37 }
 0x484   :  { %v11485_v61 = vadd.f32 %v7554_v28, %v7442_v33  ;;  %v7557_v62 = vadd.f32 %v7556_v26, %v7555_v60  ;;  %4258 = vmatmul.mubr.bf16.gmra.mrb[252].mxu1 %v13446_v38 }
 0x485   :  { %4419 = vmatmul.mubr.bf16.gmra.mrb[28].mxu0 %v13447_v34  ;;  %8088 = vmatprep.mubr.bf16.mxu1 %v13448_v46  ;;  %v13455_v34 = vld [vmem:[#allocation173_spill] sm:$0xff] }
 0x486   :  { %v11493_v10 = vadd.f32 %v7557_v62, %v7445_v29 }
 0x487   :  { %v7446_v3 = vpop.f32.mrb[148].mxu1 }
 0x488   :  { %v7558_v59 = vpop.f32.mrb[180].mxu0  ;;  %v7447_v39 = vpop.f32.mrb[149].mxu1 }
 0x489   :  { %v7559_v44 = vpop.f32.mrb[181].mxu0  ;;  %v7448_v17 = vadd.f32 %v7447_v39, %v7446_v3  ;;  %v7449_v22 = vpop.f32.mrb[150].mxu1 }
 0x48a   :  { %v7560_v30 = vadd.f32 %v7559_v44, %v7558_v59  ;;  %v7561_v47 = vpop.f32.mrb[182].mxu0  ;;  %v7450_v51 = vpop.f32.mrb[151].mxu1 }
 0x48b   :  { %v7562_v45 = vpop.f32.mrb[183].mxu0  ;;  %v7451_v16 = vadd.f32 %v7450_v51, %v7449_v22 }
 0x48c   :  { %v11496_v15 = vadd.f32 %v7560_v30, %v7448_v17  ;;  %v7563_v25 = vadd.f32 %v7562_v45, %v7561_v47  ;;  %8089 = vmatmul.mubr.bf16.vlgmr.msra.gmra.mrb[0].mxu1 %v13449_v0  ;;  %v13456_v0 = vld [vmem:[#allocation188_spill] sm:$0xff] }
 0x48d   :  { %8092 = vmatprep.mubr.bf16.mxu1 %v13450_v14  ;;  %v13457_v14 = vpack.c.bf16 %v13456_v0, %v11067_v43  ;;  %v13459_v43 = vld [vmem:[#allocation176_spill] sm:$0xff] }
 0x48e   :  { %v11499_v4 = vadd.f32 %v7563_v25, %v7451_v16 }
 0x48f   :  { %v7452_v36 = vpop.f32.mrb[152].mxu1 }
 0x490   :  { %v7564_v32 = vpop.f32.mrb[184].mxu0  ;;  %v7453_v2 = vpop.f32.mrb[153].mxu1 }
 0x491   :  { %v7565_v24 = vpop.f32.mrb[185].mxu0  ;;  %v7454_v18 = vadd.f32 %v7453_v2, %v7452_v36  ;;  %v7455_v9 = vpop.f32.mrb[154].mxu1 }
 0x492   :  { %v7566_v35 = vadd.f32 %v7565_v24, %v7564_v32  ;;  %v7567_v54 = vpop.f32.mrb[186].mxu0  ;;  %v7456_v20 = vpop.f32.mrb[155].mxu1  ;;  %v13458_v32 = vld [vmem:[#allocation174_spill] sm:$0xff] }
 0x493   :  { %v7568_v56 = vpop.f32.mrb[187].mxu0  ;;  %v7457_v31 = vadd.f32 %v7456_v20, %v7455_v9 }
 0x494   :  { %v11502_v27 = vadd.f32 %v7566_v35, %v7454_v18  ;;  %v7569_v11 = vadd.f32 %v7568_v56, %v7567_v54  ;;  %8093 = vmatmul.mubr.bf16.gmra.mrb[4].mxu1 %v13452_v52 }
 0x495   :  { %8096 = vmatprep.mubr.bf16.mxu1 %v13453_v53 }
 0x496   :  { %v11507_v58 = vadd.f32 %v7569_v11, %v7457_v31 }
 0x497   :  { %v7458_v63 = vpop.f32.mrb[156].mxu1 }
 0x498   :  { %v7570_v42 = vpop.f32.mrb[188].mxu0  ;;  %v7459_v6 = vpop.f32.mrb[157].mxu1 }
 0x499   :  { %v7571_v8 = vpop.f32.mrb[189].mxu0  ;;  %v7460_v33 = vadd.f32 %v7459_v6, %v7458_v63  ;;  %v7461_v37 = vpop.f32.mrb[158].mxu1 }
 0x49a   :  { %v7572_v28 = vadd.f32 %v7571_v8, %v7570_v42  ;;  %v7573_v60 = vpop.f32.mrb[190].mxu0  ;;  %v7462_v41 = vpop.f32.mrb[159].mxu1  ;;  %v13460_v42 = vld [vmem:[#allocation179_spill] sm:$0xff] }
 0x49b   :  { %v7574_v26 = vpop.f32.mrb[191].mxu0  ;;  %v7463_v62 = vadd.f32 %v7462_v41, %v7461_v37 }
 0x49c   :  { %v11510_v29 = vadd.f32 %v7572_v28, %v7460_v33  ;;  %v7575_v19 = vadd.f32 %v7574_v26, %v7573_v60  ;;  %8097 = vmatmul.mubr.bf16.gmra.mrb[8].mxu1 %v13454_v5 }
 0x49d   :  { %8100 = vmatprep.mubr.bf16.mxu1 %v13455_v34 }
 0x49e   :  { %v11513_v38 = vadd.f32 %v7575_v19, %v7463_v62 }
 0x49f   :  { %v7464_v46 = vpop.f32.mrb[160].mxu1 }
 0x4a0   :  { %v7576_v3 = vpop.f32.mrb[192].mxu0  ;;  %v7465_v59 = vpop.f32.mrb[161].mxu1 }
 0x4a1   :  { %v7577_v39 = vpop.f32.mrb[193].mxu0  ;;  %v7466_v44 = vadd.f32 %v7465_v59, %v7464_v46  ;;  %v7467_v30 = vpop.f32.mrb[162].mxu1 }
 0x4a2   :  { %v7578_v17 = vadd.f32 %v7577_v39, %v7576_v3  ;;  %v7579_v22 = vpop.f32.mrb[194].mxu0  ;;  %v7468_v47 = vpop.f32.mrb[163].mxu1  ;;  %v13461_v3 = vld [vmem:[#allocation189_spill] sm:$0xff] }
 0x4a3   :  { %v7580_v51 = vpop.f32.mrb[195].mxu0  ;;  %v7469_v16 = vadd.f32 %v7468_v47, %v7467_v30  ;;  %v13462_v59 = vpack.c.bf16 %v13461_v3, %v11069_v57 }
 0x4a4   :  { %v11516_v45 = vadd.f32 %v7578_v17, %v7466_v44  ;;  %v7581_v25 = vadd.f32 %v7580_v51, %v7579_v22  ;;  %8101 = vmatmul.mubr.bf16.gmra.mrb[12].mxu1 %v13457_v14  ;;  %v13463_v44 = vld [vmem:[#allocation182_spill] sm:$0xff] }
 0x4a5   :  { %8104 = vmatprep.mubr.bf16.mxu1 %v13458_v32 }
 0x4a6   :  { %v11521_v36 = vadd.f32 %v7581_v25, %v7469_v16 }
 0x4a7   :  { %v7470_v2 = vpop.f32.mrb[164].mxu1 }
 0x4a8   :  { %v7582_v24 = vpop.f32.mrb[196].mxu0  ;;  %v7471_v18 = vpop.f32.mrb[165].mxu1 }
 0x4a9   :  { %v7583_v35 = vpop.f32.mrb[197].mxu0  ;;  %v7472_v9 = vadd.f32 %v7471_v18, %v7470_v2  ;;  %v7473_v20 = vpop.f32.mrb[166].mxu1 }
 0x4aa   :  { %v7584_v54 = vadd.f32 %v7583_v35, %v7582_v24  ;;  %v7585_v56 = vpop.f32.mrb[198].mxu0  ;;  %v7474_v31 = vpop.f32.mrb[167].mxu1  ;;  %v13464_v35 = vld [vmem:[#allocation184_spill] sm:$0xff] }
 0x4ab   :  { %v7586_v11 = vpop.f32.mrb[199].mxu0  ;;  %v7475_v52 = vadd.f32 %v7474_v31, %v7473_v20 }
 0x4ac   :  { %v11524_v7 = vadd.f32 %v7584_v54, %v7472_v9  ;;  %v7587_v53 = vadd.f32 %v7586_v11, %v7585_v56  ;;  %8105 = vmatmul.mubr.bf16.gmra.mrb[16].mxu1 %v13459_v43 }
 0x4ad   :  { %8108 = vmatprep.mubr.bf16.mxu1 %v13460_v42 }
 0x4ae   :  { %v11527_v63 = vadd.f32 %v7587_v53, %v7475_v52 }
 0x4af   :  { %v7476_v6 = vpop.f32.mrb[168].mxu1 }
 0x4b0   :  { %v7588_v8 = vpop.f32.mrb[200].mxu0  ;;  %v7477_v33 = vpop.f32.mrb[169].mxu1 }
 0x4b1   :  { %v7589_v28 = vpop.f32.mrb[201].mxu0  ;;  %v7478_v37 = vadd.f32 %v7477_v33, %v7476_v6  ;;  %v7479_v41 = vpop.f32.mrb[170].mxu1 }
 0x4b2   :  { %v7590_v60 = vadd.f32 %v7589_v28, %v7588_v8  ;;  %v7591_v26 = vpop.f32.mrb[202].mxu0  ;;  %v7480_v62 = vpop.f32.mrb[171].mxu1  ;;  %v13465_v28 = vld [vmem:[#allocation190_spill] sm:$0xff] }
 0x4b3   :  { %v7592_v19 = vpop.f32.mrb[203].mxu0  ;;  %v7481_v34 = vadd.f32 %v7480_v62, %v7479_v41 }
 0x4b4   :  { %v11530_v5 = vadd.f32 %v7590_v60, %v7478_v37  ;;  %v7593_v46 = vadd.f32 %v7592_v19, %v7591_v26  ;;  %8109 = vmatmul.mubr.bf16.gmra.mrb[20].mxu1 %v13462_v59 }
 0x4b5   :  { %8112 = vmatprep.mubr.bf16.mxu1 %v13463_v44 }
 0x4b6   :  { %v11535_v39 = vadd.f32 %v7593_v46, %v7481_v34 }
 0x4b7   :  { %v7482_v17 = vpop.f32.mrb[172].mxu1 }
 0x4b8   :  { %v7594_v30 = vpop.f32.mrb[204].mxu0  ;;  %v7483_v22 = vpop.f32.mrb[173].mxu1 }
 0x4b9   :  { %v7595_v47 = vpop.f32.mrb[205].mxu0  ;;  %v7484_v51 = vadd.f32 %v7483_v22, %v7482_v17  ;;  %v7485_v25 = vpop.f32.mrb[174].mxu1 }
 0x4ba   :  { %v7596_v16 = vadd.f32 %v7595_v47, %v7594_v30  ;;  %v7597_v0 = vpop.f32.mrb[206].mxu0  ;;  %v7486_v14 = vpop.f32.mrb[175].mxu1 }
 0x4bb   :  { %v7598_v32 = vpop.f32.mrb[207].mxu0  ;;  %v7487_v24 = vadd.f32 %v7486_v14, %v7485_v25 }
 0x4bc   :  { %v11538_v2 = vadd.f32 %v7596_v16, %v7484_v51  ;;  %v7599_v18 = vadd.f32 %v7598_v32, %v7597_v0  ;;  %8113 = vmatmul.mubr.bf16.gmra.mrb[24].mxu1 %v13353_v21  ;;  %v13466_v21 = vpack.c.bf16 %v13465_v28, %v13439_v49 }
 0x4bd   :  { %8116 = vmatprep.mubr.bf16.mxu1 %v13464_v35 }
 0x4be   :  { %v11541_v57 = vadd.f32 %v7599_v18, %v7487_v24 }
 0x4bf   :  { %v7488_v9 = vpop.f32.mrb[176].mxu1 }
 0x4c0   :  { %v7600_v54 = vpop.f32.mrb[208].mxu0  ;;  %v7489_v20 = vpop.f32.mrb[177].mxu1 }
 0x4c1   :  { %v7601_v56 = vpop.f32.mrb[209].mxu0  ;;  %v7490_v31 = vadd.f32 %v7489_v20, %v7488_v9  ;;  %v7491_v52 = vpop.f32.mrb[178].mxu1 }
 0x4c2   :  { %v7602_v11 = vadd.f32 %v7601_v56, %v7600_v54  ;;  %v7603_v53 = vpop.f32.mrb[210].mxu0  ;;  %v7492_v43 = vpop.f32.mrb[179].mxu1 }
 0x4c3   :  { %v7604_v42 = vpop.f32.mrb[211].mxu0  ;;  %v7493_v8 = vadd.f32 %v7492_v43, %v7491_v52 }
 0x4c4   :  { %v11544_v6 = vadd.f32 %v7602_v11, %v7490_v31  ;;  %v7605_v33 = vadd.f32 %v7604_v42, %v7603_v53  ;;  %8117 = vmatmul.mubr.bf16.gmra.mrb[28].mxu1 %v13466_v21 }
 0x4c6   :  { %v11549_v37 = vadd.f32 %v7605_v33, %v7493_v8 }
 0x4c7   :  { %v7494_v60 = vpop.f32.mrb[180].mxu1 }
 0x4c8   :  { %v7606_v41 = vpop.f32.mrb[212].mxu0  ;;  %v7495_v26 = vpop.f32.mrb[181].mxu1 }
 0x4c9   :  { %v7607_v62 = vpop.f32.mrb[213].mxu0  ;;  %v7496_v19 = vadd.f32 %v7495_v26, %v7494_v60  ;;  %v7497_v46 = vpop.f32.mrb[182].mxu1 }
 0x4ca   :  { %v7608_v34 = vadd.f32 %v7607_v62, %v7606_v41  ;;  %v7609_v3 = vpop.f32.mrb[214].mxu0  ;;  %v7498_v59 = vpop.f32.mrb[183].mxu1 }
 0x4cb   :  { %v7610_v44 = vpop.f32.mrb[215].mxu0  ;;  %v7499_v30 = vadd.f32 %v7498_v59, %v7497_v46 }
 0x4cc   :  { %v11551_v17 = vadd.f32 %v7608_v34, %v7496_v19  ;;  %v7611_v22 = vadd.f32 %v7610_v44, %v7609_v3 }
 0x4ce   :  { %v11553_v47 = vadd.f32 %v7611_v22, %v7499_v30 }
 0x4cf   :  { %v7500_v49 = vpop.f32.mrb[184].mxu1 }
 0x4d0   :  { %v7612_v51 = vpop.f32.mrb[216].mxu0  ;;  %v7501_v16 = vpop.f32.mrb[185].mxu1 }
 0x4d1   :  { %v7613_v25 = vpop.f32.mrb[217].mxu0  ;;  %v7502_v0 = vadd.f32 %v7501_v16, %v7500_v49  ;;  %v7503_v32 = vpop.f32.mrb[186].mxu1 }
 0x4d2   :  { %v7614_v14 = vadd.f32 %v7613_v25, %v7612_v51  ;;  %v7615_v24 = vpop.f32.mrb[218].mxu0  ;;  %v7504_v18 = vpop.f32.mrb[187].mxu1 }
 0x4d3   :  { %v7616_v35 = vpop.f32.mrb[219].mxu0  ;;  %v7505_v54 = vadd.f32 %v7504_v18, %v7503_v32 }
 0x4d4   :  { %v11555_v9 = vadd.f32 %v7614_v14, %v7502_v0  ;;  %v7617_v20 = vadd.f32 %v7616_v35, %v7615_v24 }
 0x4d6   :  { %v11557_v56 = vadd.f32 %v7617_v20, %v7505_v54 }
 0x4d7   :  { %v7506_v31 = vpop.f32.mrb[188].mxu1 }
 0x4d8   :  { %v7618_v11 = vpop.f32.mrb[220].mxu0  ;;  %v7507_v52 = vpop.f32.mrb[189].mxu1 }
 0x4d9   :  { %v7619_v53 = vpop.f32.mrb[221].mxu0  ;;  %v7508_v43 = vadd.f32 %v7507_v52, %v7506_v31  ;;  %v7509_v8 = vpop.f32.mrb[190].mxu1 }
 0x4da   :  { %v7620_v42 = vadd.f32 %v7619_v53, %v7618_v11  ;;  %v7621_v33 = vpop.f32.mrb[222].mxu0  ;;  %v7510_v28 = vpop.f32.mrb[191].mxu1 }
 0x4db   :  { %v7622_v21 = vpop.f32.mrb[223].mxu0  ;;  %v7511_v41 = vadd.f32 %v7510_v28, %v7509_v8 }
 0x4dc   :  { %v11559_v60 = vadd.f32 %v7620_v42, %v7508_v43  ;;  %v7623_v26 = vadd.f32 %v7622_v21, %v7621_v33 }
 0x4de   :  { %v11561_v62 = vadd.f32 %v7623_v26, %v7511_v41 }
 0x4df   :  { %v7640_v19 = vpop.f32.mrb[192].mxu1 }
 0x4e0   :  { %v7752_v34 = vpop.f32.mrb[224].mxu0  ;;  %v7641_v46 = vpop.f32.mrb[193].mxu1 }
 0x4e1   :  { %v7753_v3 = vpop.f32.mrb[225].mxu0  ;;  %v7642_v59 = vadd.f32 %v7641_v46, %v7640_v19  ;;  %v7643_v44 = vpop.f32.mrb[194].mxu1 }
 0x4e2   :  { %v7754_v30 = vadd.f32 %v7753_v3, %v7752_v34  ;;  %v7755_v22 = vpop.f32.mrb[226].mxu0  ;;  %v7644_v49 = vpop.f32.mrb[195].mxu1 }
 0x4e3   :  { %v7756_v51 = vpop.f32.mrb[227].mxu0  ;;  %v4140_v16 = vadd.f32 %v7642_v59, %v11433_v13  ;;  %v7645_v25 = vadd.f32 %v7644_v49, %v7643_v44 }
 0x4e4   :  { %v7757_v0 = vadd.f32 %v7756_v51, %v7755_v22 }
 0x4e5   :  { %v4143_v14 = vadd.f32 %v7645_v25, %v11441_v1  ;;  %v11565_v32 = vadd.f32 %v7754_v30, %v4140_v16 }
 0x4e7   :  { %v7646_v24 = vpop.f32.mrb[196].mxu1  ;;  %v11567_v35 = vadd.f32 %v7757_v0, %v4143_v14 }
 0x4e8   :  { %v7758_v18 = vpop.f32.mrb[228].mxu0  ;;  %v7647_v54 = vpop.f32.mrb[197].mxu1 }
 0x4e9   :  { %v7759_v20 = vpop.f32.mrb[229].mxu0  ;;  %v7648_v31 = vadd.f32 %v7647_v54, %v7646_v24  ;;  %v7649_v11 = vpop.f32.mrb[198].mxu1 }
 0x4ea   :  { %v7760_v52 = vadd.f32 %v7759_v20, %v7758_v18  ;;  %v7761_v53 = vpop.f32.mrb[230].mxu0  ;;  %v7650_v43 = vpop.f32.mrb[199].mxu1 }
 0x4eb   :  { %v7762_v42 = vpop.f32.mrb[231].mxu0  ;;  %v4148_v13 = vadd.f32 %v7648_v31, %v11447_v55  ;;  %v7651_v8 = vadd.f32 %v7650_v43, %v7649_v11 }
 0x4ec   :  { %v7763_v33 = vadd.f32 %v7762_v42, %v7761_v53 }
 0x4ed   :  { %v4151_v1 = vadd.f32 %v7651_v8, %v11453_v48  ;;  %v11571_v28 = vadd.f32 %v7760_v52, %v4148_v13 }
 0x4ef   :  { %v7652_v21 = vpop.f32.mrb[200].mxu1  ;;  %v11573_v26 = vadd.f32 %v7763_v33, %v4151_v1 }
 0x4f0   :  { %v7764_v41 = vpop.f32.mrb[232].mxu0  ;;  %v7653_v19 = vpop.f32.mrb[201].mxu1 }
 0x4f1   :  { %v7765_v34 = vpop.f32.mrb[233].mxu0  ;;  %v7654_v46 = vadd.f32 %v7653_v19, %v7652_v21  ;;  %v7655_v3 = vpop.f32.mrb[202].mxu1 }
 0x4f2   :  { %v7766_v59 = vadd.f32 %v7765_v34, %v7764_v41  ;;  %v7767_v44 = vpop.f32.mrb[234].mxu0  ;;  %v7656_v30 = vpop.f32.mrb[203].mxu1 }
 0x4f3   :  { %v7768_v22 = vpop.f32.mrb[235].mxu0  ;;  %v4156_v55 = vadd.f32 %v7654_v46, %v11459_v50  ;;  %v7657_v49 = vadd.f32 %v7656_v30, %v7655_v3 }
 0x4f4   :  { %v7769_v51 = vadd.f32 %v7768_v22, %v7767_v44 }
 0x4f5   :  { %v4159_v48 = vadd.f32 %v7657_v49, %v11465_v40  ;;  %v11577_v16 = vadd.f32 %v7766_v59, %v4156_v55 }
 0x4f7   :  { %v7658_v25 = vpop.f32.mrb[204].mxu1  ;;  %v11579_v14 = vadd.f32 %v7769_v51, %v4159_v48 }
 0x4f8   :  { %v7770_v0 = vpop.f32.mrb[236].mxu0  ;;  %v7659_v24 = vpop.f32.mrb[205].mxu1 }
 0x4f9   :  { %v7771_v18 = vpop.f32.mrb[237].mxu0  ;;  %v7660_v54 = vadd.f32 %v7659_v24, %v7658_v25  ;;  %v7661_v20 = vpop.f32.mrb[206].mxu1 }
 0x4fa   :  { %v7772_v31 = vadd.f32 %v7771_v18, %v7770_v0  ;;  %v7773_v11 = vpop.f32.mrb[238].mxu0  ;;  %v7662_v52 = vpop.f32.mrb[207].mxu1 }
 0x4fb   :  { %v7774_v53 = vpop.f32.mrb[239].mxu0  ;;  %v4164_v50 = vadd.f32 %v7660_v54, %v11471_v23  ;;  %v7663_v43 = vadd.f32 %v7662_v52, %v7661_v20 }
 0x4fc   :  { %v7775_v42 = vadd.f32 %v7774_v53, %v7773_v11 }
 0x4fd   :  { %v4167_v40 = vadd.f32 %v7663_v43, %v11477_v12  ;;  %v11583_v13 = vadd.f32 %v7772_v31, %v4164_v50 }
 0x4ff   :  { %v7664_v8 = vpop.f32.mrb[208].mxu1  ;;  %v11585_v1 = vadd.f32 %v7775_v42, %v4167_v40 }
 0x500   :  { %v7776_v33 = vpop.f32.mrb[240].mxu0  ;;  %v7665_v21 = vpop.f32.mrb[209].mxu1 }
 0x501   :  { %v7777_v41 = vpop.f32.mrb[241].mxu0  ;;  %v7666_v19 = vadd.f32 %v7665_v21, %v7664_v8  ;;  %v7667_v34 = vpop.f32.mrb[210].mxu1 }
 0x502   :  { %v7778_v46 = vadd.f32 %v7777_v41, %v7776_v33  ;;  %v7779_v3 = vpop.f32.mrb[242].mxu0  ;;  %v7668_v59 = vpop.f32.mrb[211].mxu1 }
 0x503   :  { %v7780_v44 = vpop.f32.mrb[243].mxu0  ;;  %v4172_v23 = vadd.f32 %v7666_v19, %v11485_v61  ;;  %v7669_v30 = vadd.f32 %v7668_v59, %v7667_v34 }
 0x504   :  { %v7781_v22 = vadd.f32 %v7780_v44, %v7779_v3 }
 0x505   :  { %v4175_v12 = vadd.f32 %v7669_v30, %v11493_v10  ;;  %v11589_v55 = vadd.f32 %v7778_v46, %v4172_v23 }
 0x507   :  { %v7670_v49 = vpop.f32.mrb[212].mxu1  ;;  %v11591_v48 = vadd.f32 %v7781_v22, %v4175_v12 }
 0x508   :  { %v7782_v51 = vpop.f32.mrb[244].mxu0  ;;  %v7671_v25 = vpop.f32.mrb[213].mxu1 }
 0x509   :  { %v7783_v0 = vpop.f32.mrb[245].mxu0  ;;  %v7672_v24 = vadd.f32 %v7671_v25, %v7670_v49  ;;  %v7673_v18 = vpop.f32.mrb[214].mxu1 }
 0x50a   :  { %v7784_v54 = vadd.f32 %v7783_v0, %v7782_v51  ;;  %v7785_v20 = vpop.f32.mrb[246].mxu0  ;;  %v7674_v31 = vpop.f32.mrb[215].mxu1 }
 0x50b   :  { %v7786_v11 = vpop.f32.mrb[247].mxu0  ;;  %v4180_v61 = vadd.f32 %v7672_v24, %v11496_v15  ;;  %v7675_v52 = vadd.f32 %v7674_v31, %v7673_v18 }
 0x50c   :  { %v7787_v53 = vadd.f32 %v7786_v11, %v7785_v20 }
 0x50d   :  { %v4183_v10 = vadd.f32 %v7675_v52, %v11499_v4  ;;  %v11595_v50 = vadd.f32 %v7784_v54, %v4180_v61 }
 0x50f   :  { %v7676_v43 = vpop.f32.mrb[216].mxu1  ;;  %v11597_v40 = vadd.f32 %v7787_v53, %v4183_v10 }
 0x510   :  { %v7788_v42 = vpop.f32.mrb[248].mxu0  ;;  %v7677_v8 = vpop.f32.mrb[217].mxu1 }
 0x511   :  { %v7789_v33 = vpop.f32.mrb[249].mxu0  ;;  %v7678_v21 = vadd.f32 %v7677_v8, %v7676_v43  ;;  %v7679_v41 = vpop.f32.mrb[218].mxu1 }
 0x512   :  { %v7790_v19 = vadd.f32 %v7789_v33, %v7788_v42  ;;  %v7791_v34 = vpop.f32.mrb[250].mxu0  ;;  %v7680_v46 = vpop.f32.mrb[219].mxu1 }
 0x513   :  { %v7792_v3 = vpop.f32.mrb[251].mxu0  ;;  %v4188_v15 = vadd.f32 %v7678_v21, %v11502_v27  ;;  %v7681_v59 = vadd.f32 %v7680_v46, %v7679_v41 }
 0x514   :  { %v7793_v44 = vadd.f32 %v7792_v3, %v7791_v34 }
 0x515   :  { %v4191_v4 = vadd.f32 %v7681_v59, %v11507_v58  ;;  %v11601_v23 = vadd.f32 %v7790_v19, %v4188_v15 }
 0x517   :  { %v7682_v30 = vpop.f32.mrb[220].mxu1  ;;  %v11603_v12 = vadd.f32 %v7793_v44, %v4191_v4 }
 0x518   :  { %v7794_v22 = vpop.f32.mrb[252].mxu0  ;;  %v7683_v49 = vpop.f32.mrb[221].mxu1 }
 0x519   :  { %v7795_v51 = vpop.f32.mrb[253].mxu0  ;;  %v7684_v25 = vadd.f32 %v7683_v49, %v7682_v30  ;;  %v7685_v0 = vpop.f32.mrb[222].mxu1 }
 0x51a   :  { %v7796_v24 = vadd.f32 %v7795_v51, %v7794_v22  ;;  %v7797_v18 = vpop.f32.mrb[254].mxu0  ;;  %v7686_v54 = vpop.f32.mrb[223].mxu1 }
 0x51b   :  { %v7798_v20 = vpop.f32.mrb[255].mxu0  ;;  %v4196_v27 = vadd.f32 %v7684_v25, %v11510_v29  ;;  %v7687_v31 = vadd.f32 %v7686_v54, %v7685_v0 }
 0x51c   :  { %v7799_v11 = vadd.f32 %v7798_v20, %v7797_v18 }
 0x51d   :  { %v4199_v58 = vadd.f32 %v7687_v31, %v11513_v38  ;;  %v11607_v61 = vadd.f32 %v7796_v24, %v4196_v27 }
 0x51f   :  { %v7688_v52 = vpop.f32.mrb[224].mxu1  ;;  %v11609_v10 = vadd.f32 %v7799_v11, %v4199_v58 }
 0x520   :  { %v7800_v53 = vpop.f32.mrb[0].mxu0  ;;  %v7689_v43 = vpop.f32.mrb[225].mxu1 }
 0x521   :  { %v7801_v42 = vpop.f32.mrb[1].mxu0  ;;  %v7690_v8 = vadd.f32 %v7689_v43, %v7688_v52  ;;  %v7691_v33 = vpop.f32.mrb[226].mxu1 }
 0x522   :  { %v7802_v21 = vadd.f32 %v7801_v42, %v7800_v53  ;;  %v7803_v41 = vpop.f32.mrb[2].mxu0  ;;  %v7692_v19 = vpop.f32.mrb[227].mxu1 }
 0x523   :  { %v7804_v34 = vpop.f32.mrb[3].mxu0  ;;  %v4204_v29 = vadd.f32 %v7690_v8, %v11516_v45  ;;  %v7693_v46 = vadd.f32 %v7692_v19, %v7691_v33 }
 0x524   :  { %v7805_v3 = vadd.f32 %v7804_v34, %v7803_v41 }
 0x525   :  { %v4207_v38 = vadd.f32 %v7693_v46, %v11521_v36  ;;  %v11613_v15 = vadd.f32 %v7802_v21, %v4204_v29 }
 0x527   :  { %v7694_v59 = vpop.f32.mrb[228].mxu1  ;;  %v11615_v4 = vadd.f32 %v7805_v3, %v4207_v38 }
 0x528   :  { %v7806_v44 = vpop.f32.mrb[4].mxu0  ;;  %v7695_v30 = vpop.f32.mrb[229].mxu1 }
 0x529   :  { %v7807_v22 = vpop.f32.mrb[5].mxu0  ;;  %v7696_v49 = vadd.f32 %v7695_v30, %v7694_v59  ;;  %v7697_v51 = vpop.f32.mrb[230].mxu1 }
 0x52a   :  { %v7808_v25 = vadd.f32 %v7807_v22, %v7806_v44  ;;  %v7809_v0 = vpop.f32.mrb[6].mxu0  ;;  %v7698_v24 = vpop.f32.mrb[231].mxu1 }
 0x52b   :  { %v7810_v18 = vpop.f32.mrb[7].mxu0  ;;  %v4212_v45 = vadd.f32 %v7696_v49, %v11524_v7  ;;  %v7699_v54 = vadd.f32 %v7698_v24, %v7697_v51 }
 0x52c   :  { %v7811_v20 = vadd.f32 %v7810_v18, %v7809_v0 }
 0x52d   :  { %v4215_v36 = vadd.f32 %v7699_v54, %v11527_v63  ;;  %v11619_v27 = vadd.f32 %v7808_v25, %v4212_v45 }
 0x52f   :  { %v7700_v31 = vpop.f32.mrb[232].mxu1  ;;  %v11621_v58 = vadd.f32 %v7811_v20, %v4215_v36 }
 0x530   :  { %v7812_v11 = vpop.f32.mrb[8].mxu0  ;;  %v7701_v52 = vpop.f32.mrb[233].mxu1 }
 0x531   :  { %v7813_v53 = vpop.f32.mrb[9].mxu0  ;;  %v7702_v43 = vadd.f32 %v7701_v52, %v7700_v31  ;;  %v7703_v42 = vpop.f32.mrb[234].mxu1 }
 0x532   :  { %v7814_v8 = vadd.f32 %v7813_v53, %v7812_v11  ;;  %v7815_v33 = vpop.f32.mrb[10].mxu0  ;;  %v7704_v21 = vpop.f32.mrb[235].mxu1 }
 0x533   :  { %v7816_v41 = vpop.f32.mrb[11].mxu0  ;;  %v4220_v7 = vadd.f32 %v7702_v43, %v11530_v5  ;;  %v7705_v19 = vadd.f32 %v7704_v21, %v7703_v42 }
 0x534   :  { %v7817_v34 = vadd.f32 %v7816_v41, %v7815_v33 }
 0x535   :  { %v4223_v63 = vadd.f32 %v7705_v19, %v11535_v39  ;;  %v11625_v29 = vadd.f32 %v7814_v8, %v4220_v7 }
 0x537   :  { %v7706_v46 = vpop.f32.mrb[236].mxu1  ;;  %v11627_v38 = vadd.f32 %v7817_v34, %v4223_v63 }
 0x538   :  { %v7818_v3 = vpop.f32.mrb[12].mxu0  ;;  %v7707_v59 = vpop.f32.mrb[237].mxu1 }
 0x539   :  { %v7819_v44 = vpop.f32.mrb[13].mxu0  ;;  %v7708_v30 = vadd.f32 %v7707_v59, %v7706_v46  ;;  %v7709_v22 = vpop.f32.mrb[238].mxu1 }
 0x53a   :  { %v7820_v49 = vadd.f32 %v7819_v44, %v7818_v3  ;;  %v7821_v51 = vpop.f32.mrb[14].mxu0  ;;  %v7710_v25 = vpop.f32.mrb[239].mxu1 }
 0x53b   :  { %v7822_v0 = vpop.f32.mrb[15].mxu0  ;;  %v4228_v5 = vadd.f32 %v7708_v30, %v11538_v2  ;;  %v7711_v24 = vadd.f32 %v7710_v25, %v7709_v22 }
 0x53c   :  { %v7823_v18 = vadd.f32 %v7822_v0, %v7821_v51 }
 0x53d   :  { %v4231_v39 = vadd.f32 %v7711_v24, %v11541_v57  ;;  %v11631_v45 = vadd.f32 %v7820_v49, %v4228_v5 }
 0x53f   :  { %v7712_v54 = vpop.f32.mrb[240].mxu1  ;;  %v11633_v36 = vadd.f32 %v7823_v18, %v4231_v39 }
 0x540   :  { %v7824_v20 = vpop.f32.mrb[16].mxu0  ;;  %v7713_v31 = vpop.f32.mrb[241].mxu1 }
 0x541   :  { %v7825_v11 = vpop.f32.mrb[17].mxu0  ;;  %v7714_v52 = vadd.f32 %v7713_v31, %v7712_v54  ;;  %v7715_v53 = vpop.f32.mrb[242].mxu1 }
 0x542   :  { %v7826_v43 = vadd.f32 %v7825_v11, %v7824_v20  ;;  %v7827_v42 = vpop.f32.mrb[18].mxu0  ;;  %v7716_v8 = vpop.f32.mrb[243].mxu1 }
 0x543   :  { %v7828_v33 = vpop.f32.mrb[19].mxu0  ;;  %v4236_v2 = vadd.f32 %v7714_v52, %v11544_v6  ;;  %v7717_v21 = vadd.f32 %v7716_v8, %v7715_v53 }
 0x544   :  { %v7829_v41 = vadd.f32 %v7828_v33, %v7827_v42 }
 0x545   :  { %v4239_v57 = vadd.f32 %v7717_v21, %v11549_v37  ;;  %v11637_v7 = vadd.f32 %v7826_v43, %v4236_v2 }
 0x547   :  { %v7718_v19 = vpop.f32.mrb[244].mxu1  ;;  %v11639_v63 = vadd.f32 %v7829_v41, %v4239_v57 }
 0x548   :  { %v7830_v34 = vpop.f32.mrb[20].mxu0  ;;  %v7719_v46 = vpop.f32.mrb[245].mxu1 }
 0x549   :  { %v7831_v3 = vpop.f32.mrb[21].mxu0  ;;  %v7720_v59 = vadd.f32 %v7719_v46, %v7718_v19  ;;  %v7721_v44 = vpop.f32.mrb[246].mxu1 }
 0x54a   :  { %v7832_v30 = vadd.f32 %v7831_v3, %v7830_v34  ;;  %v7833_v22 = vpop.f32.mrb[22].mxu0  ;;  %v7722_v49 = vpop.f32.mrb[247].mxu1 }
 0x54b   :  { %v7834_v51 = vpop.f32.mrb[23].mxu0  ;;  %v4244_v6 = vadd.f32 %v7720_v59, %v11551_v17  ;;  %v7723_v25 = vadd.f32 %v7722_v49, %v7721_v44 }
 0x54c   :  { %v7835_v0 = vadd.f32 %v7834_v51, %v7833_v22 }
 0x54d   :  { %v4247_v37 = vadd.f32 %v7723_v25, %v11553_v47  ;;  %v11643_v5 = vadd.f32 %v7832_v30, %v4244_v6 }
 0x54f   :  { %v7724_v24 = vpop.f32.mrb[248].mxu1  ;;  %v11645_v39 = vadd.f32 %v7835_v0, %v4247_v37 }
 0x550   :  { %v7836_v18 = vpop.f32.mrb[24].mxu0  ;;  %v7725_v54 = vpop.f32.mrb[249].mxu1 }
 0x551   :  { %v7837_v20 = vpop.f32.mrb[25].mxu0  ;;  %v7726_v31 = vadd.f32 %v7725_v54, %v7724_v24  ;;  %v7727_v11 = vpop.f32.mrb[250].mxu1 }
 0x552   :  { %v7838_v52 = vadd.f32 %v7837_v20, %v7836_v18  ;;  %v7839_v53 = vpop.f32.mrb[26].mxu0  ;;  %v7728_v43 = vpop.f32.mrb[251].mxu1 }
 0x553   :  { %v7840_v42 = vpop.f32.mrb[27].mxu0  ;;  %v4252_v17 = vadd.f32 %v7726_v31, %v11555_v9  ;;  %v7729_v8 = vadd.f32 %v7728_v43, %v7727_v11 }
 0x554   :  { %v7841_v33 = vadd.f32 %v7840_v42, %v7839_v53 }
 0x555   :  { %v4255_v47 = vadd.f32 %v7729_v8, %v11557_v56  ;;  %v11649_v2 = vadd.f32 %v7838_v52, %v4252_v17 }
 0x557   :  { %v7730_v21 = vpop.f32.mrb[252].mxu1  ;;  %v11651_v57 = vadd.f32 %v7841_v33, %v4255_v47 }
 0x558   :  { %v7842_v41 = vpop.f32.mrb[28].mxu0  ;;  %v7731_v19 = vpop.f32.mrb[253].mxu1 }
 0x559   :  { %v7843_v34 = vpop.f32.mrb[29].mxu0  ;;  %v7732_v46 = vadd.f32 %v7731_v19, %v7730_v21  ;;  %v7733_v3 = vpop.f32.mrb[254].mxu1 }
 0x55a   :  { %v7844_v59 = vadd.f32 %v7843_v34, %v7842_v41  ;;  %v7845_v44 = vpop.f32.mrb[30].mxu0  ;;  %v7734_v30 = vpop.f32.mrb[255].mxu1 }
 0x55b   :  { %v7846_v22 = vpop.f32.mrb[31].mxu0  ;;  %v4260_v9 = vadd.f32 %v7732_v46, %v11559_v60  ;;  %v7735_v49 = vadd.f32 %v7734_v30, %v7733_v3 }
 0x55c   :  { %v7847_v51 = vadd.f32 %v7846_v22, %v7845_v44 }
 0x55d   :  { %v4263_v56 = vadd.f32 %v7735_v49, %v11561_v62  ;;  %v11655_v6 = vadd.f32 %v7844_v59, %v4260_v9 }
 0x55f   :  { %v8090_v25 = vpop.f32.mrb[0].mxu1  ;;  %v11657_v0 = vadd.f32 %v7847_v51, %v4263_v56 }
 0x560   :  { %v11660_v37 = vadd.f32 %v8090_v25, %v11571_v28  ;;  %v4461_v24 = vpop.f32.mrb[1].mxu1 }
 0x561   :  { %v11663_v18 = vadd.f32 %v4461_v24, %v11565_v32  ;;  %v8091_v54 = vpop.f32.mrb[2].mxu1 }
 0x562   :  { %v11666_v20 = vadd.f32 %v8091_v54, %v11573_v26  ;;  %v4464_v60 = vpop.f32.mrb[3].mxu1 }
 0x563   :  { %v11669_v31 = vadd.f32 %v4464_v60, %v11567_v35 }
 0x565   :  { %v4590_v62 = vadd.f32 %v11669_v31, %v11663_v18 }
 0x567   :  { %v4591_v11 = vadd.f32 %v4590_v62, %v11660_v37  ;;  %v8094_v52 = vpop.f32.mrb[4].mxu1 }
 0x568   :  { %v11675_v28 = vadd.f32 %v8094_v52, %v11583_v13  ;;  %v4477_v53 = vpop.f32.mrb[5].mxu1 }
 0x569   :  { %v11678_v32 = vadd.f32 %v4477_v53, %v11577_v16  ;;  %v4592_v26 = vadd.f32 %v4591_v11, %v11666_v20  ;;  %v8095_v43 = vpop.f32.mrb[6].mxu1 }
 0x56a   :  { %v11682_v42 = vadd.f32 %v8095_v43, %v11585_v1  ;;  %v4480_v35 = vpop.f32.mrb[7].mxu1 }
 0x56b   :  { %v4593_v17 = vadd.f32 %v4592_v26, %v11678_v32  ;;  %v11686_v8 = vadd.f32 %v4480_v35, %v11579_v14 }
 0x56d   :  { %v4594_v33 = vadd.f32 %v4593_v17, %v11686_v8 }
 0x56f   :  { %v4595_v13 = vadd.f32 %v4594_v33, %v11675_v28  ;;  %v8098_v47 = vpop.f32.mrb[8].mxu1 }
 0x570   :  { %v11691_v16 = vadd.f32 %v8098_v47, %v11595_v50  ;;  %v4493_v21 = vpop.f32.mrb[9].mxu1 }
 0x571   :  { %v11694_v41 = vadd.f32 %v4493_v21, %v11589_v55  ;;  %v4596_v1 = vadd.f32 %v4595_v13, %v11682_v42  ;;  %v8099_v19 = vpop.f32.mrb[10].mxu1 }
 0x572   :  { %v11698_v34 = vadd.f32 %v8099_v19, %v11597_v40  ;;  %v4496_v14 = vpop.f32.mrb[11].mxu1 }
 0x573   :  { %v4597_v46 = vadd.f32 %v4596_v1, %v11694_v41  ;;  %v11702_v3 = vadd.f32 %v4496_v14, %v11591_v48 }
 0x575   :  { %v4598_v59 = vadd.f32 %v4597_v46, %v11702_v3 }
 0x577   :  { %v4599_v50 = vadd.f32 %v4598_v59, %v11691_v16  ;;  %v8102_v44 = vpop.f32.mrb[12].mxu1 }
 0x578   :  { %v11707_v55 = vadd.f32 %v8102_v44, %v11607_v61  ;;  %v4509_v30 = vpop.f32.mrb[13].mxu1 }
 0x579   :  { %v11710_v22 = vadd.f32 %v4509_v30, %v11601_v23  ;;  %v4600_v40 = vadd.f32 %v4599_v50, %v11698_v34  ;;  %v8103_v9 = vpop.f32.mrb[14].mxu1 }
 0x57a   :  { %v11714_v49 = vadd.f32 %v8103_v9, %v11609_v10  ;;  %v4512_v48 = vpop.f32.mrb[15].mxu1 }
 0x57b   :  { %v4601_v51 = vadd.f32 %v4600_v40, %v11710_v22  ;;  %v11718_v56 = vadd.f32 %v4512_v48, %v11603_v12 }
 0x57d   :  { %v4602_v25 = vadd.f32 %v4601_v51, %v11718_v56 }
 0x57f   :  { %v4603_v61 = vadd.f32 %v4602_v25, %v11707_v55  ;;  %v8106_v24 = vpop.f32.mrb[16].mxu1 }
 0x580   :  { %v11723_v23 = vadd.f32 %v8106_v24, %v11619_v27  ;;  %v4525_v54 = vpop.f32.mrb[17].mxu1 }
 0x581   :  { %v4526_v60 = vadd.f32 %v4525_v54, %v11613_v15  ;;  %v4604_v10 = vadd.f32 %v4603_v61, %v11714_v49  ;;  %v8107_v62 = vpop.f32.mrb[18].mxu1 }
 0x582   :  { %v4537_v11 = vadd.f32 %v8107_v62, %v11621_v58  ;;  %v4528_v52 = vpop.f32.mrb[19].mxu1 }
 0x583   :  { %v4605_v53 = vadd.f32 %v4604_v10, %v4526_v60  ;;  %v4529_v12 = vadd.f32 %v4528_v52, %v11615_v4 }
 0x585   :  { %v4606_v26 = vadd.f32 %v4605_v53, %v4529_v12 }
 0x587   :  { %v4607_v43 = vadd.f32 %v4606_v26, %v11723_v23  ;;  %v8110_v35 = vpop.f32.mrb[20].mxu1 }
 0x588   :  { %v4550_v17 = vadd.f32 %v8110_v35, %v11631_v45  ;;  %v4541_v27 = vpop.f32.mrb[21].mxu1 }
 0x589   :  { %v4542_v33 = vadd.f32 %v4541_v27, %v11625_v29  ;;  %v4608_v13 = vadd.f32 %v4607_v43, %v4537_v11  ;;  %v8111_v15 = vpop.f32.mrb[22].mxu1 }
 0x58a   :  { %v4553_v47 = vadd.f32 %v8111_v15, %v11633_v36  ;;  %v4544_v21 = vpop.f32.mrb[23].mxu1 }
 0x58b   :  { %v4609_v1 = vadd.f32 %v4608_v13, %v4542_v33  ;;  %v4545_v58 = vadd.f32 %v4544_v21, %v11627_v38 }
 0x58d   :  { %v4610_v19 = vadd.f32 %v4609_v1, %v4545_v58 }
 0x58f   :  { %v4611_v14 = vadd.f32 %v4610_v19, %v4550_v17  ;;  %v8114_v4 = vpop.f32.mrb[24].mxu1 }
 0x590   :  { %v4566_v46 = vadd.f32 %v8114_v4, %v11643_v5  ;;  %v4557_v59 = vpop.f32.mrb[25].mxu1 }
 0x591   :  { %v4558_v50 = vadd.f32 %v4557_v59, %v11637_v7  ;;  %v4612_v45 = vadd.f32 %v4611_v14, %v4553_v47  ;;  %v8115_v44 = vpop.f32.mrb[26].mxu1 }
 0x592   :  { %v4569_v29 = vadd.f32 %v8115_v44, %v11645_v39  ;;  %v4560_v30 = vpop.f32.mrb[27].mxu1 }
 0x593   :  { %v4613_v40 = vadd.f32 %v4612_v45, %v4558_v50  ;;  %v4561_v36 = vadd.f32 %v4560_v30, %v11639_v63 }
 0x595   :  { %v4614_v9 = vadd.f32 %v4613_v40, %v4561_v36 }
 0x597   :  { %v4615_v48 = vadd.f32 %v4614_v9, %v4566_v46  ;;  %v8118_v51 = vpop.f32.mrb[28].mxu1 }
 0x598   :  { %v4582_v38 = vadd.f32 %v8118_v51, %v11655_v6  ;;  %v4573_v25 = vpop.f32.mrb[29].mxu1 }
 0x599   :  { %v4574_v61 = vadd.f32 %v4573_v25, %v11649_v2  ;;  %v4616_v5 = vadd.f32 %v4615_v48, %v4569_v29  ;;  %v8119_v24 = vpop.f32.mrb[30].mxu1 }
 0x59a   :  { %v4585_v7 = vadd.f32 %v8119_v24, %v11657_v0  ;;  %v4576_v54 = vpop.f32.mrb[31].mxu1 }
 0x59b   :  { %v4617_v10 = vadd.f32 %v4616_v5, %v4574_v61  ;;  %v4577_v39 = vadd.f32 %v4576_v54, %v11651_v57 }
 0x59d   :  { %v4618_v62 = vadd.f32 %v4617_v10, %v4577_v39 }
 0x59f   :  { %v4619_v52 = vadd.f32 %v4618_v62, %v4582_v38 }
 0x5a1   :  { %v4620_v53 = vadd.f32 %v4619_v52, %v4585_v7 }
 0x5a3   :  { %v4621_v63 = vrot.slane %v4620_v53, 4 }
 0x5a5   :  { %v4622_v26 = vadd.f32 %v4621_v63, %v4620_v53 }
 0x5a7   :  { %v4623_v43 = vrot.slane %v4622_v26, 2 }
 0x5a9   :  { %v4624_v35 = vadd.f32 %v4623_v43, %v4622_v26 }
 0x5ab   :  { %v4625_v27 = vrot.slane %v4624_v35, 1 }
 0x5ad   :  { %v4626_v6 = vadd.f32 %v4625_v27, %v4624_v35 }
 0x5af   :  { %v4627_v13 = vmul.f32 0.00390625, %v4626_v6 }
 0x5b1   :  { %v11743_v2 = vsub.f32 %v11694_v41, %v4627_v13  ;;  %v11746_v15 = vsub.f32 %v11702_v3, %v4627_v13  ;;  %v11749_v0 = vsub.f32 %v11691_v16, %v4627_v13  ;;  %v11752_v57 = vsub.f32 %v11698_v34, %v4627_v13 }
 0x5b2   :  { %v11755_v21 = vsub.f32 %v11710_v22, %v4627_v13  ;;  %v11758_v1 = vsub.f32 %v11718_v56, %v4627_v13  ;;  %v11761_v19 = vsub.f32 %v11707_v55, %v4627_v13  ;;  %v11764_v41 = vsub.f32 %v11714_v49, %v4627_v13 }
 0x5b3   :  { %v11766_v3 = vsub.f32 %v4526_v60, %v4627_v13  ;;  %v11768_v14 = vsub.f32 %v4529_v12, %v4627_v13  ;;  %v11771_v16 = vsub.f32 %v11723_v23, %v4627_v13  ;;  %v11773_v34 = vsub.f32 %v4537_v11, %v4627_v13 }
 0x5b4   :  { %v11775_v22 = vsub.f32 %v4542_v33, %v4627_v13  ;;  %v11777_v4 = vsub.f32 %v4545_v58, %v4627_v13  ;;  %v11779_v56 = vsub.f32 %v4550_v17, %v4627_v13  ;;  %v11781_v55 = vsub.f32 %v4553_v47, %v4627_v13 }
 0x5b5   :  { %v11783_v59 = vsub.f32 %v4558_v50, %v4627_v13  ;;  %v11785_v49 = vsub.f32 %v4561_v36, %v4627_v13  ;;  %v11787_v60 = vsub.f32 %v4566_v46, %v4627_v13  ;;  %v11789_v12 = vsub.f32 %v4569_v29, %v4627_v13 }
 0x5b6   :  { %v11791_v23 = vsub.f32 %v4574_v61, %v4627_v13  ;;  %v11793_v11 = vsub.f32 %v4577_v39, %v4627_v13  ;;  %v11795_v33 = vsub.f32 %v4582_v38, %v4627_v13  ;;  %v11797_v58 = vsub.f32 %v4585_v7, %v4627_v13 }
 0x5b7   :  { %v11800_v17 = vsub.f32 %v11663_v18, %v4627_v13  ;;  %v11803_v47 = vsub.f32 %v11669_v31, %v4627_v13  ;;  %v11806_v50 = vsub.f32 %v11660_v37, %v4627_v13  ;;  %v11813_v44 = vsub.f32 %v11666_v20, %v4627_v13 }
 0x5b8   :  { %v11816_v29 = vsub.f32 %v11678_v32, %v4627_v13  ;;  %v11821_v30 = vsub.f32 %v11686_v8, %v4627_v13  ;;  %v11826_v36 = vsub.f32 %v11675_v28, %v4627_v13  ;;  %v11831_v32 = vsub.f32 %v11682_v42, %v4627_v13 }
 0x5b9   :  { %v4660_v46 = vmul.f32 %v11800_v17, %v11800_v17  ;;  %v4661_v45 = vmul.f32 %v11803_v47, %v11803_v47  ;;  %v4662_v18 = vmul.f32 %v11806_v50, %v11806_v50  ;;  %v4663_v37 = vmul.f32 %v11813_v44, %v11813_v44 }
 0x5ba   :  { %v4664_v20 = vmul.f32 %v11816_v29, %v11816_v29  ;;  %v4665_v48 = vmul.f32 %v11821_v30, %v11821_v30  ;;  %v4666_v8 = vmul.f32 %v11826_v36, %v11826_v36  ;;  %v4667_v25 = vmul.f32 %v11831_v32, %v11831_v32 }
 0x5bb   :  { %v4692_v31 = vadd.f32 %v4661_v45, %v4660_v46  ;;  %v4668_v61 = vmul.f32 %v11743_v2, %v11743_v2  ;;  %v4669_v42 = vmul.f32 %v11746_v15, %v11746_v15  ;;  %v4670_v7 = vmul.f32 %v11749_v0, %v11749_v0 }
 0x5bc   :  { %v4671_v10 = vmul.f32 %v11752_v57, %v11752_v57  ;;  %v4672_v62 = vmul.f32 %v11755_v21, %v11755_v21  ;;  %v4673_v53 = vmul.f32 %v11758_v1, %v11758_v1  ;;  %v4674_v26 = vmul.f32 %v11761_v19, %v11761_v19 }
 0x5bd   :  { %v4693_v40 = vadd.f32 %v4692_v31, %v4662_v18  ;;  %v4675_v35 = vmul.f32 %v11764_v41, %v11764_v41  ;;  %v4676_v6 = vmul.f32 %v11766_v3, %v11766_v3  ;;  %v4677_v46 = vmul.f32 %v11768_v14, %v11768_v14 }
 0x5be   :  { %v4678_v18 = vmul.f32 %v11771_v16, %v11771_v16 }
 0x5bf   :  { %v4694_v9 = vadd.f32 %v4693_v40, %v4663_v37  ;;  %v4679_v37 = vmul.f32 %v11773_v34, %v11773_v34 }
 0x5c1   :  { %v4695_v51 = vadd.f32 %v4694_v9, %v4664_v20  ;;  %v4680_v20 = vmul.f32 %v11775_v22, %v11775_v22 }
 0x5c3   :  { %v4696_v38 = vadd.f32 %v4695_v51, %v4665_v48  ;;  %v4681_v48 = vmul.f32 %v11777_v4, %v11777_v4 }
 0x5c5   :  { %v4697_v28 = vadd.f32 %v4696_v38, %v4666_v8  ;;  %v4682_v8 = vmul.f32 %v11779_v56, %v11779_v56 }
 0x5c7   :  { %v4698_v5 = vadd.f32 %v4697_v28, %v4667_v25  ;;  %v4683_v25 = vmul.f32 %v11781_v55, %v11781_v55 }
 0x5c9   :  { %v4699_v24 = vadd.f32 %v4698_v5, %v4668_v61  ;;  %v4684_v61 = vmul.f32 %v11783_v59, %v11783_v59 }
 0x5cb   :  { %v4700_v54 = vadd.f32 %v4699_v24, %v4669_v42  ;;  %v4685_v42 = vmul.f32 %v11785_v49, %v11785_v49 }
 0x5cd   :  { %v4701_v39 = vadd.f32 %v4700_v54, %v4670_v7  ;;  %v4686_v7 = vmul.f32 %v11787_v60, %v11787_v60 }
 0x5cf   :  { %v4702_v52 = vadd.f32 %v4701_v39, %v4671_v10  ;;  %v4687_v10 = vmul.f32 %v11789_v12, %v11789_v12 }
 0x5d1   :  { %v4703_v63 = vadd.f32 %v4702_v52, %v4672_v62  ;;  %v4688_v62 = vmul.f32 %v11791_v23, %v11791_v23 }
 0x5d3   :  { %v4704_v43 = vadd.f32 %v4703_v63, %v4673_v53  ;;  %v4689_v53 = vmul.f32 %v11793_v11, %v11793_v11 }
 0x5d5   :  { %v4705_v27 = vadd.f32 %v4704_v43, %v4674_v26  ;;  %v4690_v26 = vmul.f32 %v11795_v33, %v11795_v33 }
 0x5d7   :  { %v4706_v13 = vadd.f32 %v4705_v27, %v4675_v35  ;;  %v4691_v35 = vmul.f32 %v11797_v58, %v11797_v58 }
 0x5d9   :  { %v4707_v45 = vadd.f32 %v4706_v13, %v4676_v6 }
 0x5db   :  { %v4708_v31 = vadd.f32 %v4707_v45, %v4677_v46 }
 0x5dd   :  { %v4709_v40 = vadd.f32 %v4708_v31, %v4678_v18 }
 0x5df   :  { %v4710_v9 = vadd.f32 %v4709_v40, %v4679_v37 }
 0x5e1   :  { %v4711_v51 = vadd.f32 %v4710_v9, %v4680_v20  ;;  %v4588_v9 = vld [vmem:[%s12801_s5] sm:$0x1] }
 0x5e3   :  { %v4712_v38 = vadd.f32 %v4711_v51, %v4681_v48 }
 0x5e5   :  { %v4713_v28 = vadd.f32 %v4712_v38, %v4682_v8  ;;  %v13467_v8 = vld [vmem:[#allocation86_spill] sm:$0xff] }
 0x5e7   :  { %v4714_v5 = vadd.f32 %v4713_v28, %v4683_v25 }
 0x5e9   :  { %v4715_v24 = vadd.f32 %v4714_v5, %v4684_v61 }
 0x5eb   :  { %v4716_v54 = vadd.f32 %v4715_v24, %v4685_v42 }
 0x5ed   :  { %v4717_v39 = vadd.f32 %v4716_v54, %v4686_v7 }
 0x5ef   :  { %v4718_v52 = vadd.f32 %v4717_v39, %v4687_v10 }
 0x5f1   :  { %v4719_v63 = vadd.f32 %v4718_v52, %v4688_v62 }
 0x5f3   :  { %v4720_v43 = vadd.f32 %v4719_v63, %v4689_v53 }
 0x5f5   :  { %v4721_v27 = vadd.f32 %v4720_v43, %v4690_v26 }
 0x5f7   :  { %v4722_v6 = vadd.f32 %v4721_v27, %v4691_v35 }
 0x5f9   :  { %v4723_v13 = vrot.slane %v4722_v6, 4 }
 0x5fb   :  { %v4724_v46 = vadd.f32 %v4723_v13, %v4722_v6 }
 0x5fd   :  { %v4725_v45 = vrot.slane %v4724_v46, 2 }
 0x5ff   :  { %v4726_v18 = vadd.f32 %v4725_v45, %v4724_v46 }
 0x601   :  { %v4727_v31 = vrot.slane %v4726_v18, 1 }
 0x603   :  { %v4728_v37 = vadd.f32 %v4727_v31, %v4726_v18 }
 0x605   :  { %v4729_v40 = vmul.f32 0.00390625, %v4728_v37 }
 0x607   :  { %v4730_v20 = vadd.f32 1e-05, %v4729_v40 }
 0x609   :  { %8617 = vrsqrt.f32 %v4730_v20 }
 0x613   :  { %v8618_v48 = vpop.eup %8617 }
 0x614   :  { %v4732_v51 = vmul.f32 %v8618_v48, %v4588_v9 }
 0x616   :  { %v4737_v38 = vrot.slane %v4732_v51, %v13467_v8 }
 0x618   :  { %v4739_v25 = vmul.f32 %v4737_v38, %v11800_v17  ;;  %v4740_v28 = vmul.f32 %v4737_v38, %v11803_v47  ;;  %v4741_v61 = vmul.f32 %v4737_v38, %v11806_v50  ;;  %v4742_v5 = vmul.f32 %v4737_v38, %v11813_v44 }
 0x619   :  { %v4743_v42 = vmul.f32 %v4737_v38, %v11816_v29  ;;  %v4744_v24 = vmul.f32 %v4737_v38, %v11821_v30  ;;  %v4745_v7 = vmul.f32 %v4737_v38, %v11826_v36  ;;  %v4746_v54 = vmul.f32 %v4737_v38, %v11831_v32 }
 0x61a   :  { %v4747_v10 = vmul.f32 %v4737_v38, %v11743_v2  ;;  %v4748_v39 = vmul.f32 %v4737_v38, %v11746_v15  ;;  %v4749_v17 = vmul.f32 %v4737_v38, %v11749_v0  ;;  %v4750_v47 = vmul.f32 %v4737_v38, %v11752_v57  ;;  %v11914_v0 = vld [vmem:[%s12802_s6] ss:$0 sm:$0xff] }
 0x61b   :  { %v4751_v50 = vmul.f32 %v4737_v38, %v11755_v21  ;;  %v4752_v44 = vmul.f32 %v4737_v38, %v11758_v1  ;;  %v4753_v29 = vmul.f32 %v4737_v38, %v11761_v19  ;;  %v4754_v30 = vmul.f32 %v4737_v38, %v11764_v41 }
 0x61c   :  { %v4755_v36 = vmul.f32 %v4737_v38, %v11766_v3  ;;  %v4756_v32 = vmul.f32 %v4737_v38, %v11768_v14  ;;  %v4757_v2 = vmul.f32 %v4737_v38, %v11771_v16  ;;  %v4758_v15 = vmul.f32 %v4737_v38, %v11773_v34 }
 0x61d   :  { %v4759_v57 = vmul.f32 %v4737_v38, %v11775_v22  ;;  %v4760_v21 = vmul.f32 %v4737_v38, %v11777_v4  ;;  %v4761_v1 = vmul.f32 %v4737_v38, %v11779_v56  ;;  %v4762_v19 = vmul.f32 %v4737_v38, %v11781_v55 }
 0x61e   :  { %v4763_v41 = vmul.f32 %v4737_v38, %v11783_v59  ;;  %v4764_v3 = vmul.f32 %v4737_v38, %v11785_v49  ;;  %v4765_v14 = vmul.f32 %v4737_v38, %v11787_v60  ;;  %v4766_v16 = vmul.f32 %v4737_v38, %v11789_v12 }
 0x61f   :  { %v4767_v34 = vmul.f32 %v4737_v38, %v11791_v23  ;;  %v4768_v62 = vmul.f32 %v4737_v38, %v11793_v11  ;;  %v4769_v22 = vmul.f32 %v4737_v38, %v11795_v33  ;;  %v4770_v4 = vmul.f32 %v4737_v38, %v11797_v58 }
 0x620   :  { %v11929_v56 = vadd.f32 %v11914_v0, %v4739_v25  ;;  %v11932_v55 = vadd.f32 %v11914_v0, %v4740_v28  ;;  %v11935_v59 = vadd.f32 %v11914_v0, %v4741_v61  ;;  %v11938_v49 = vadd.f32 %v11914_v0, %v4742_v5 }
 0x621   :  { %v11941_v60 = vadd.f32 %v11914_v0, %v4743_v42  ;;  %v11944_v12 = vadd.f32 %v11914_v0, %v4744_v24  ;;  %v11947_v23 = vadd.f32 %v11914_v0, %v4745_v7  ;;  %v11950_v11 = vadd.f32 %v11914_v0, %v4746_v54 }
 0x622   :  { %v11953_v33 = vadd.f32 %v11914_v0, %v4747_v10  ;;  %v11956_v58 = vadd.f32 %v11914_v0, %v4748_v39  ;;  %v11959_v52 = vadd.f32 %v11914_v0, %v4749_v17  ;;  %v11962_v53 = vadd.f32 %v11914_v0, %v4750_v47  ;;  %4809 = vst [vmem:[#allocation7] sm:$0xff] %v11929_v56 }
 0x623   :  { %4810 = vst [vmem:[#allocation7 + $0x8] sm:$0xff] %v11932_v55  ;;  %4811 = vst [vmem:[#allocation7 + $0x10] sm:$0xff] %v11935_v59  ;;  %v11969_v63 = vadd.f32 %v11914_v0, %v4751_v50  ;;  %v11972_v26 = vadd.f32 %v11914_v0, %v4752_v44  ;;  %v11975_v43 = vadd.f32 %v11914_v0, %v4753_v29 }
 0x624   :  { %4812 = vst [vmem:[#allocation7 + $0x18] sm:$0xff] %v11938_v49  ;;  %v11978_v35 = vadd.f32 %v11914_v0, %v4754_v30  ;;  %4813 = vst [vmem:[#allocation7 + $0x20] sm:$0xff] %v11941_v60  ;;  %v11985_v27 = vadd.f32 %v11914_v0, %v4755_v36  ;;  %v11988_v6 = vadd.f32 %v11914_v0, %v4756_v32 }
 0x625   :  { %4814 = vst [vmem:[#allocation7 + $0x28] sm:$0xff] %v11944_v12  ;;  %4815 = vst [vmem:[#allocation7 + $0x30] sm:$0xff] %v11947_v23  ;;  %v11991_v13 = vadd.f32 %v11914_v0, %v4757_v2  ;;  %v11994_v46 = vadd.f32 %v11914_v0, %v4758_v15  ;;  %v12001_v45 = vadd.f32 %v11914_v0, %v4759_v57 }
 0x626   :  { %4816 = vst [vmem:[#allocation7 + $0x38] sm:$0xff] %v11950_v11  ;;  %4817 = vst [vmem:[#allocation7 + $0x40] sm:$0xff] %v11953_v33  ;;  %v12004_v18 = vadd.f32 %v11914_v0, %v4760_v21  ;;  %v12007_v31 = vadd.f32 %v11914_v0, %v4761_v1  ;;  %v12010_v37 = vadd.f32 %v11914_v0, %v4762_v19 }
 0x627   :  { %4818 = vst [vmem:[#allocation7 + $0x48] sm:$0xff] %v11956_v58  ;;  %4819 = vst [vmem:[#allocation7 + $0x50] sm:$0xff] %v11959_v52  ;;  %v12017_v40 = vadd.f32 %v11914_v0, %v4763_v41  ;;  %v12020_v20 = vadd.f32 %v11914_v0, %v4764_v3  ;;  %v12023_v9 = vadd.f32 %v11914_v0, %v4765_v14 }
 0x628   :  { %4820 = vst [vmem:[#allocation7 + $0x58] sm:$0xff] %v11962_v53  ;;  %4821 = vst [vmem:[#allocation7 + $0x60] sm:$0xff] %v11969_v63  ;;  %v12026_v48 = vadd.f32 %v11914_v0, %v4766_v16  ;;  %v12033_v51 = vadd.f32 %v11914_v0, %v4767_v34  ;;  %v12036_v38 = vadd.f32 %v11914_v0, %v4768_v62 }
 0x629   :  { %4822 = vst [vmem:[#allocation7 + $0x68] sm:$0xff] %v11972_v26  ;;  %4823 = vst [vmem:[#allocation7 + $0x70] sm:$0xff] %v11975_v43  ;;  %v12039_v25 = vadd.f32 %v11914_v0, %v4769_v22  ;;  %v12042_v28 = vadd.f32 %v11914_v0, %v4770_v4 }
 0x62a   :  { %4824 = vst [vmem:[#allocation7 + $0x78] sm:$0xff] %v11978_v35  ;;  %4825 = vst [vmem:[#allocation7 + $0x80] sm:$0xff] %v11985_v27 }
 0x62b   :  { %4826 = vst [vmem:[#allocation7 + $0x88] sm:$0xff] %v11988_v6  ;;  %4827 = vst [vmem:[#allocation7 + $0x90] sm:$0xff] %v11991_v13 }
 0x62c   :  { %4828 = vst [vmem:[#allocation7 + $0x98] sm:$0xff] %v11994_v46  ;;  %4829 = vst [vmem:[#allocation7 + $0xa0] sm:$0xff] %v12001_v45 }
 0x62d   :  { %4830 = vst [vmem:[#allocation7 + $0xa8] sm:$0xff] %v12004_v18  ;;  %4831 = vst [vmem:[#allocation7 + $0xb0] sm:$0xff] %v12007_v31 }
 0x62e   :  { %4832 = vst [vmem:[#allocation7 + $0xb8] sm:$0xff] %v12010_v37  ;;  %4833 = vst [vmem:[#allocation7 + $0xc0] sm:$0xff] %v12017_v40 }
 0x62f   :  { %4834 = vst [vmem:[#allocation7 + $0xc8] sm:$0xff] %v12020_v20  ;;  %4835 = vst [vmem:[#allocation7 + $0xd0] sm:$0xff] %v12023_v9 }
 0x630   :  { %4836 = vst [vmem:[#allocation7 + $0xd8] sm:$0xff] %v12026_v48  ;;  %4837 = vst [vmem:[#allocation7 + $0xe0] sm:$0xff] %v12033_v51 }
 0x631   :  { %4838 = vst [vmem:[#allocation7 + $0xe8] sm:$0xff] %v12036_v38  ;;  %4839 = vst [vmem:[#allocation7 + $0xf0] sm:$0xff] %v12039_v25 }
 0x632   :  { %4840 = vst [vmem:[#allocation7 + $0xf8] sm:$0xff] %v12042_v28 }
 0x633   :  { %8771 = dma.done.wait [#allocation6 + $0x1], 3072 }
 0x634   :  { %8772 = vsyncadd [#allocation6 + $0x1], 4294964224  ;;  %v4845_v61 = vpack.c.bf16 %v11932_v55, %v11929_v56  ;;  %v8776_v5 = vmov 0   ;;  %v4863_v42 = vld [vmem:[#allocation5 + $0x10] sm:$0xff]  ;;  %v4862_v24 = vld [vmem:[#allocation5 + $0x8] sm:$0xff]  ;;  %v4846_v16 = vpack.c.bf16 %v11938_v49, %v11935_v59  ;;  %v4847_v34 = vpack.c.bf16 %v11944_v12, %v11941_v60  ;;  %s8777_s10 = smov [#allocation7]  }
 0x635   :  { %4934 = vmatprep.mubr.bf16.mxu0 %v8776_v5  ;;  %v4861_v7 = vld [vmem:[#allocation5] sm:$0xff]  ;;  %8120 = vmatprep.subr.bf16.mxu1 %v4863_v42  ;;  %v4866_v54 = vld [vmem:[#allocation5 + $0x28] sm:$0xff]  ;;  %v4864_v39 = vld [vmem:[#allocation5 + $0x18] sm:$0xff]  ;;  %v4848_v62 = vpack.c.bf16 %v11950_v11, %v11947_v23  ;;  %v4849_v22 = vpack.c.bf16 %v11956_v58, %v11953_v33  ;;  %v4850_v4 = vpack.c.bf16 %v11962_v53, %v11959_v52  ;;  %vm5708_vm0 = vcmask 523264   ;;  %s6774_s11 = sshll.u32 %s8777_s10, 4  ;;  %s6775_s11 = int_to_ptr.vmem [resolvable:$true] %s6774_s11 }
 0x636   :  { %8136 = vmatprep.mubr.bf16.mxu1 %v4845_v61  ;;  %4902 = vmatprep.subr.bf16.mxu0 %v4862_v24  ;;  %v4865_v10 = vld [vmem:[#allocation5 + $0x20] sm:$0xff]  ;;  %v4868_v47 = vld [vmem:[#allocation5 + $0x38] sm:$0xff]  ;;  %v4867_v50 = vld [vmem:[#allocation5 + $0x30] sm:$0xff]  ;;  %v4851_v56 = vpack.c.bf16 %v11972_v26, %v11969_v63  ;;  %v4852_v55 = vpack.c.bf16 %v11978_v35, %v11975_v43  ;;  %v4853_v59 = vpack.c.bf16 %v11988_v6, %v11985_v27  ;;  %s8747_s12 = scalar_lea.vmem %s6775_s11, 4096  ;;  %p8752_p1 = scmp.lt.s32.totalorder %s6775_s11, %s6775_s11 }
 0x637   :  { %8121 = vmatpush3.bf16.msra.mxu1 %v4863_v42  ;;  %4903 = vmatpush1.bf16.msra.mxu0 %v4861_v7  ;;  %v4869_v17 = vld [vmem:[#allocation5 + $0x40] sm:$0xff]  ;;  %v4872_v44 = vld [vmem:[#allocation5 + $0x58] sm:$0xff]  ;;  %v4871_v29 = vld [vmem:[#allocation5 + $0x50] sm:$0xff]  ;;  %v4854_v49 = vpack.c.bf16 %v11994_v46, %v11991_v13  ;;  %v4855_v60 = vpack.c.bf16 %v12004_v18, %v12001_v45  ;;  %v4856_v12 = vpack.c.bf16 %v12010_v37, %v12007_v31  ;;  %p8748_p0 = scmp.ne.s32.totalorder %s6775_s11, %s8747_s12  ;;  %p8753_p2 = scmp.lt.s32.totalorder %s8747_s12, %s8747_s12 }
 0x638   :  { %8122 = vmatprep.subr.bf16.mxu1 %v4866_v54  ;;  %4904 = vmatprep.subr.bf16.mxu0 %v4865_v10  ;;  %v4870_v30 = vld [vmem:[#allocation5 + $0x48] sm:$0xff]  ;;  %v4875_v36 = vld [vmem:[#allocation5 + $0x70] sm:$0xff]  ;;  %v4873_v2 = vld [vmem:[#allocation5 + $0x60] sm:$0xff]  ;;  %v4857_v23 = vpack.c.bf16 %v12020_v20, %v12017_v40  ;;  %v4858_v11 = vpack.c.bf16 %v12026_v48, %v12023_v9  ;;  %v4859_v33 = vpack.c.bf16 %v12036_v38, %v12033_v51 }
 0x639   :  { %v4874_v32 = vld [vmem:[#allocation5 + $0x68] sm:$0xff]  ;;  %v4877_v0 = vld [vmem:[#allocation5 + $0x80] sm:$0xff]  ;;  %v4876_v57 = vld [vmem:[#allocation5 + $0x78] sm:$0xff]  ;;  %v4860_v58 = vpack.c.bf16 %v12042_v28, %v12039_v25  ;;  %p8754_p3 = por %p8753_p2, %p8752_p1 }
 0x63a   :  { %v4878_v15 = vld [vmem:[#allocation5 + $0x88] sm:$0xff]  ;;  %v4881_v21 = vld [vmem:[#allocation5 + $0xa0] sm:$0xff]  ;;  %v4880_v1 = vld [vmem:[#allocation5 + $0x98] sm:$0xff] }
 0x63b   :  { %8123 = vmatpush3.bf16.msra.mxu1 %v4866_v54  ;;  %4905 = vmatpush1.bf16.msra.mxu0 %v4864_v39  ;;  %v4879_v19 = vld [vmem:[#allocation5 + $0x90] sm:$0xff]  ;;  %v4884_v41 = vld [vmem:[#allocation5 + $0xb8] sm:$0xff]  ;;  %v4882_v14 = vld [vmem:[#allocation5 + $0xa8] sm:$0xff]  ;;  %p8755_p4 = pnand %p8754_p3, %p8748_p0 }
 0x63c   :  { %8124 = vmatprep.subr.bf16.mxu1 %v4869_v17  ;;  %4906 = vmatprep.subr.bf16.mxu0 %v4868_v47  ;;  %v4883_v3 = vld [vmem:[#allocation5 + $0xb0] sm:$0xff]  ;;  %v4885_v52 = vld [vmem:[%s12804_s8] sm:$0x7]  ;;  %v13468_v53 = vld [vmem:[#allocation87_spill] sm:$0xff] }
 0x63d   :  { %v4893_v63 = vsub.s32 1, %v13468_v53  ;;  %v4897_v26 = vsub.s32 2, %v13468_v53  ;;  %v12110_v43 = vrot.slane %v4885_v52, %v13467_v8 }
 0x63f   :  { %8125 = vmatpush3.bf16.msra.mxu1 %v4869_v17  ;;  %4907 = vmatpush1.bf16.msra.mxu0 %v4867_v50  ;;  %v12112_v35 = vrot.slane %v4885_v52, %v4893_v63  ;;  %v12114_v27 = vrot.slane %v4885_v52, %v4897_v26 }
 0x640   :  { %8126 = vmatprep.subr.bf16.mxu1 %v4872_v44  ;;  %4908 = vmatprep.subr.bf16.mxu0 %v4871_v29 }
 0x643   :  { %8127 = vmatpush3.bf16.msra.mxu1 %v4872_v44  ;;  %4909 = vmatpush1.bf16.msra.mxu0 %v4870_v30 }
 0x644   :  { %8128 = vmatprep.subr.bf16.mxu1 %v4875_v36  ;;  %4910 = vmatprep.subr.bf16.mxu0 %v4874_v32 }
 0x647   :  { %8129 = vmatpush3.bf16.msra.mxu1 %v4875_v36  ;;  %4911 = vmatpush1.bf16.msra.mxu0 %v4873_v2 }
 0x648   :  { %8130 = vmatprep.subr.bf16.mxu1 %v4878_v15  ;;  %4912 = vmatprep.subr.bf16.mxu0 %v4877_v0 }
 0x64b   :  { %8131 = vmatpush3.bf16.msra.mxu1 %v4878_v15  ;;  %4913 = vmatpush1.bf16.msra.mxu0 %v4876_v57 }
 0x64c   :  { %8132 = vmatprep.subr.bf16.mxu1 %v4881_v21  ;;  %4914 = vmatprep.subr.bf16.mxu0 %v4880_v1 }
 0x64f   :  { %8133 = vmatpush3.bf16.msra.mxu1 %v4881_v21  ;;  %4915 = vmatpush1.bf16.msra.mxu0 %v4879_v19 }
 0x650   :  { %8134 = vmatprep.subr.bf16.mxu1 %v4884_v41  ;;  %4916 = vmatprep.subr.bf16.mxu0 %v4883_v3 }
 0x653   :  { %8135 = vmatpush3.bf16.msra.mxu1 %v4884_v41  ;;  %4917 = vmatpush1.bf16.msra.mxu0 %v4882_v14 }
 0x656   :  { %8137 = vmatmul.mubr.bf16.vlgmr.msra.gmra.mrb[32].mxu1 %v4846_v16  ;;  %4935 = vmatmul.mubr.bf16.vlgmr.msra.gmra.mrb[32].mxu0 %v4845_v61 }
 0x657   :  { %8140 = vmatprep.mubr.bf16.mxu1 %v4847_v34  ;;  %4944 = vmatprep.mubr.bf16.mxu0 %v8776_v5 }
 0x65e   :  { %8141 = vmatmul.mubr.bf16.gmra.mrb[36].mxu1 %v4848_v62  ;;  %4945 = vmatmul.mubr.bf16.gmra.mrb[36].mxu0 %v4846_v16 }
 0x65f   :  { %8144 = vmatprep.mubr.bf16.mxu1 %v4849_v22  ;;  %4954 = vmatprep.mubr.bf16.mxu0 %v8776_v5 }
 0x666   :  { %8145 = vmatmul.mubr.bf16.gmra.mrb[40].mxu1 %v4850_v4  ;;  %4955 = vmatmul.mubr.bf16.gmra.mrb[40].mxu0 %v4847_v34 }
 0x667   :  { %8148 = vmatprep.mubr.bf16.mxu1 %v4851_v56  ;;  %4964 = vmatprep.mubr.bf16.mxu0 %v8776_v5 }
 0x66e   :  { %8149 = vmatmul.mubr.bf16.gmra.mrb[44].mxu1 %v4852_v55  ;;  %4965 = vmatmul.mubr.bf16.gmra.mrb[44].mxu0 %v4848_v62 }
 0x66f   :  { %8152 = vmatprep.mubr.bf16.mxu1 %v4853_v59  ;;  %4974 = vmatprep.mubr.bf16.mxu0 %v8776_v5 }
 0x676   :  { %8153 = vmatmul.mubr.bf16.gmra.mrb[48].mxu1 %v4854_v49  ;;  %4975 = vmatmul.mubr.bf16.gmra.mrb[48].mxu0 %v4849_v22 }
 0x677   :  { %4984 = vmatprep.mubr.bf16.mxu0 %v8776_v5  ;;  %8156 = vmatprep.mubr.bf16.mxu1 %v4855_v60 }
 0x67e   :  { %4985 = vmatmul.mubr.bf16.gmra.mrb[52].mxu0 %v4850_v4  ;;  %8157 = vmatmul.mubr.bf16.gmra.mrb[52].mxu1 %v4856_v12 }
 0x67f   :  { %4994 = vmatprep.mubr.bf16.mxu0 %v8776_v5  ;;  %8160 = vmatprep.mubr.bf16.mxu1 %v4857_v23 }
 0x686   :  { %4995 = vmatmul.mubr.bf16.gmra.mrb[56].mxu0 %v4851_v56  ;;  %8161 = vmatmul.mubr.bf16.gmra.mrb[56].mxu1 %v4858_v11 }
 0x687   :  { %5004 = vmatprep.mubr.bf16.mxu0 %v8776_v5  ;;  %8164 = vmatprep.mubr.bf16.mxu1 %v4859_v33 }
 0x68e   :  { %5005 = vmatmul.mubr.bf16.gmra.mrb[60].mxu0 %v4852_v55  ;;  %8165 = vmatmul.mubr.bf16.gmra.mrb[60].mxu1 %v4860_v58 }
 0x68f   :  { %5014 = vmatprep.mubr.bf16.mxu0 %v8776_v5 }
 0x696   :  { %5015 = vmatmul.mubr.bf16.gmra.mrb[64].mxu0 %v4853_v59 }
 0x697   :  { %5024 = vmatprep.mubr.bf16.mxu0 %v8776_v5 }
 0x69e   :  { %5025 = vmatmul.mubr.bf16.gmra.mrb[68].mxu0 %v4854_v49 }
 0x69f   :  { %5034 = vmatprep.mubr.bf16.mxu0 %v8776_v5 }
 0x6a6   :  { %5035 = vmatmul.mubr.bf16.gmra.mrb[72].mxu0 %v4855_v60 }
 0x6a7   :  { %5044 = vmatprep.mubr.bf16.mxu0 %v8776_v5 }
 0x6ae   :  { %5045 = vmatmul.mubr.bf16.gmra.mrb[76].mxu0 %v4856_v12 }
 0x6af   :  { %5054 = vmatprep.mubr.bf16.mxu0 %v8776_v5 }
 0x6b6   :  { %5055 = vmatmul.mubr.bf16.gmra.mrb[80].mxu0 %v4857_v23 }
 0x6b7   :  { %5064 = vmatprep.mubr.bf16.mxu0 %v8776_v5 }
 0x6be   :  { %5065 = vmatmul.mubr.bf16.gmra.mrb[84].mxu0 %v4858_v11 }
 0x6bf   :  { %5074 = vmatprep.mubr.bf16.mxu0 %v8776_v5 }
 0x6c6   :  { %5075 = vmatmul.mubr.bf16.gmra.mrb[88].mxu0 %v4859_v33 }
 0x6c7   :  { %5084 = vmatprep.mubr.bf16.mxu0 %v8776_v5 }
 0x6ce   :  { %5085 = vmatmul.mubr.bf16.gmra.mrb[92].mxu0 %v4860_v58 }
 0x729   :  { %v8138_v6 = vpop.f32.mrb[32].mxu1  ;;  %v4936_v13 = vpop.f32.mrb[32].mxu0 }
 0x72a   :  { %v5129_v46 = vpop.f32.mrb[33].mxu1  ;;  %v4937_v45 = vadd.f32 %v4936_v13, %v12110_v43  ;;  %v4938_v18 = vpop.f32.mrb[33].mxu0  ;;  %v5138_v20 = vadd.f32 %v8138_v6, %v12114_v27 }
 0x72b   :  { %v8139_v31 = vpop.f32.mrb[34].mxu1  ;;  %v4939_v37 = vadd.f32 %v4938_v18, %v12112_v35  ;;  %v4940_v40 = vpop.f32.mrb[34].mxu0  ;;  %v5130_v38 = vadd.f32 %v5129_v46, %v12114_v27 }
 0x72c   :  { %v5141_v9 = vadd.f32 %v8139_v31, %v12114_v27  ;;  %v5132_v8 = vpop.f32.mrb[35].mxu1  ;;  %v4941_v48 = vadd.f32 %v4940_v40, %v12110_v43  ;;  %v12121_v51 = vpop.f32.mrb[35].mxu0 }
 0x72d   :  { %v5133_v25 = vadd.f32 %v5132_v8, %v12114_v27  ;;  %8184 = vmatprep.mubr.f32.mxu1 %v4939_v37 }
 0x72e   :  { %v8396_v28 = vpack.c.bf16 %v5141_v9, %v5138_v20  ;;  %v12125_v61 = vpack.c.bf16 %v4941_v48, %v4937_v45 }
 0x72f   :  { %v8392_v5 = vpack.c.bf16 %v5133_v25, %v5130_v38 }
 0x731   :  { %v8142_v42 = vpop.f32.mrb[36].mxu1  ;;  %8393 = vmatprep.subr.bf16.mxu1 %v8392_v5  ;;  %v4946_v24 = vpop.f32.mrb[36].mxu0 }
 0x732   :  { %v5154_v7 = vadd.f32 %v8142_v42, %v12114_v27  ;;  %v5145_v54 = vpop.f32.mrb[37].mxu1  ;;  %8395 = vmatpush3.bf16.xpose.msra.mxu1 %v8392_v5  ;;  %v4947_v10 = vadd.f32 %v4946_v24, %v12110_v43  ;;  %v12129_v39 = vpop.f32.mrb[37].mxu0 }
 0x733   :  { %v5146_v17 = vadd.f32 %v5145_v54, %v12114_v27  ;;  %v8143_v47 = vpop.f32.mrb[38].mxu1  ;;  %8397 = vmatprep.subr.bf16.mxu1 %v8396_v28  ;;  %v4950_v50 = vpop.f32.mrb[38].mxu0 }
 0x734   :  { %v5157_v44 = vadd.f32 %v8143_v47, %v12114_v27  ;;  %v5148_v29 = vpop.f32.mrb[39].mxu1  ;;  %v4951_v30 = vadd.f32 %v4950_v50, %v12110_v43  ;;  %v12134_v36 = vpop.f32.mrb[39].mxu0 }
 0x735   :  { %v5149_v32 = vadd.f32 %v5148_v29, %v12114_v27  ;;  %v4943_v29 = vadd.f32 %v12121_v51, %v12112_v35 }
 0x736   :  { %v8404_v2 = vpack.c.bf16 %v5157_v44, %v5154_v7  ;;  %v12137_v15 = vpack.c.bf16 %v4951_v30, %v4947_v10 }
 0x737   :  { %v8400_v0 = vpack.c.bf16 %v5149_v32, %v5146_v17 }
 0x739   :  { %v8146_v57 = vpop.f32.mrb[40].mxu1  ;;  %v4956_v21 = vpop.f32.mrb[40].mxu0 }
 0x73a   :  { %v5170_v1 = vadd.f32 %v8146_v57, %v12114_v27  ;;  %v5161_v19 = vpop.f32.mrb[41].mxu1  ;;  %8399 = vmatpush3.bf16.xpose.msra.mxu1 %v8396_v28  ;;  %v4957_v41 = vadd.f32 %v4956_v21, %v12110_v43  ;;  %v12141_v3 = vpop.f32.mrb[41].mxu0 }
 0x73b   :  { %v5162_v14 = vadd.f32 %v5161_v19, %v12114_v27  ;;  %v8147_v16 = vpop.f32.mrb[42].mxu1  ;;  %8401 = vmatprep.subr.bf16.mxu1 %v8400_v0  ;;  %v4960_v34 = vpop.f32.mrb[42].mxu0  ;;  %v4953_v19 = vadd.f32 %v12134_v36, %v12112_v35 }
 0x73c   :  { %v5173_v62 = vadd.f32 %v8147_v16, %v12114_v27  ;;  %v5164_v22 = vpop.f32.mrb[43].mxu1  ;;  %v4961_v4 = vadd.f32 %v4960_v34, %v12110_v43  ;;  %v12146_v56 = vpop.f32.mrb[43].mxu0 }
 0x73d   :  { %v5165_v55 = vadd.f32 %v5164_v22, %v12114_v27 }
 0x73e   :  { %v12149_v59 = vpack.c.bf16 %v5173_v62, %v5170_v1  ;;  %v12151_v49 = vpack.c.bf16 %v4961_v4, %v4957_v41 }
 0x73f   :  { %v8408_v60 = vpack.c.bf16 %v5165_v55, %v5162_v14 }
 0x741   :  { %v8150_v12 = vpop.f32.mrb[44].mxu1  ;;  %v4966_v23 = vpop.f32.mrb[44].mxu0 }
 0x742   :  { %v5186_v11 = vadd.f32 %v8150_v12, %v12114_v27  ;;  %v5177_v33 = vpop.f32.mrb[45].mxu1  ;;  %8403 = vmatpush3.bf16.xpose.msra.mxu1 %v8400_v0  ;;  %v4967_v58 = vadd.f32 %v4966_v23, %v12110_v43  ;;  %v12155_v52 = vpop.f32.mrb[45].mxu0 }
 0x743   :  { %v5178_v53 = vadd.f32 %v5177_v33, %v12114_v27  ;;  %v8151_v63 = vpop.f32.mrb[46].mxu1  ;;  %8405 = vmatprep.subr.bf16.mxu1 %v8404_v2  ;;  %v4970_v26 = vpop.f32.mrb[46].mxu0 }
 0x744   :  { %v5189_v6 = vadd.f32 %v8151_v63, %v12114_v27  ;;  %v5180_v13 = vpop.f32.mrb[47].mxu1  ;;  %v4971_v46 = vadd.f32 %v4970_v26, %v12110_v43  ;;  %v12160_v45 = vpop.f32.mrb[47].mxu0 }
 0x745   :  { %v5181_v18 = vadd.f32 %v5180_v13, %v12114_v27 }
 0x746   :  { %v12163_v31 = vpack.c.bf16 %v5189_v6, %v5186_v11  ;;  %v12165_v37 = vpack.c.bf16 %v4971_v46, %v4967_v58  ;;  %v4969_v11 = vadd.f32 %v12155_v52, %v12112_v35 }
 0x747   :  { %v12167_v40 = vpack.c.bf16 %v5181_v18, %v5178_v53 }
 0x749   :  { %v8154_v20 = vpop.f32.mrb[48].mxu1  ;;  %v4976_v9 = vpop.f32.mrb[48].mxu0 }
 0x74a   :  { %v5202_v8 = vadd.f32 %v8154_v20, %v12114_v27  ;;  %v5193_v48 = vpop.f32.mrb[49].mxu1  ;;  %8407 = vmatpush3.bf16.xpose.msra.mxu1 %v8404_v2  ;;  %v4977_v38 = vadd.f32 %v4976_v9, %v12110_v43  ;;  %v4978_v25 = vpop.f32.mrb[49].mxu0  ;;  %v4949_v2 = vadd.f32 %v12129_v39, %v12112_v35  ;;  %v4959_v39 = vadd.f32 %v12141_v3, %v12112_v35 }
 0x74b   :  { %v5194_v28 = vadd.f32 %v5193_v48, %v12114_v27  ;;  %v8155_v5 = vpop.f32.mrb[50].mxu1  ;;  %8409 = vmatprep.subr.bf16.mxu1 %v8408_v60  ;;  %v4980_v42 = vpop.f32.mrb[50].mxu0 }
 0x74c   :  { %v5205_v24 = vadd.f32 %v8155_v5, %v12114_v27  ;;  %v5196_v7 = vpop.f32.mrb[51].mxu1  ;;  %v4981_v54 = vadd.f32 %v4980_v42, %v12110_v43  ;;  %v12174_v10 = vpop.f32.mrb[51].mxu0 }
 0x74d   :  { %v5197_v17 = vadd.f32 %v5196_v7, %v12114_v27 }
 0x74e   :  { %v8428_v47 = vpack.c.bf16 %v5205_v24, %v5202_v8  ;;  %v12177_v50 = vpack.c.bf16 %v4981_v54, %v4977_v38 }
 0x74f   :  { %v8424_v44 = vpack.c.bf16 %v5197_v17, %v5194_v28 }
 0x751   :  { %8185 = vmatmul.mubr.f32.vlgmr.msra.gmra.mrb[64].mxu1 %v4943_v29  ;;  %8425 = vmatprep.subr.bf16.mxu0 %v8424_v44  ;;  %v8158_v30 = vpop.f32.mrb[52].mxu1  ;;  %v4986_v32 = vpop.f32.mrb[52].mxu0 }
 0x752   :  { %8411 = vmatpush3.bf16.xpose.msra.mxu1 %v8408_v60  ;;  %8427 = vmatpush3.bf16.xpose.msra.mxu0 %v8424_v44  ;;  %v5218_v0 = vadd.f32 %v8158_v30, %v12114_v27  ;;  %v5209_v57 = vpop.f32.mrb[53].mxu1  ;;  %v4987_v21 = vadd.f32 %v4986_v32, %v12110_v43  ;;  %v12185_v1 = vpop.f32.mrb[53].mxu0  ;;  %v4963_v60 = vadd.f32 %v12146_v56, %v12112_v35 }
 0x753   :  { %8413 = vmatprep.subr.bf16.mxu1 %v12149_v59  ;;  %8429 = vmatprep.subr.bf16.mxu0 %v8428_v47  ;;  %v5210_v51 = vadd.f32 %v5209_v57, %v12114_v27  ;;  %v8159_v41 = vpop.f32.mrb[54].mxu1  ;;  %v4990_v14 = vpop.f32.mrb[54].mxu0  ;;  %v4973_v56 = vadd.f32 %v12160_v45, %v12112_v35 }
 0x754   :  { %8187 = vmatprep.mubr.f32.mxu1 %v4949_v2  ;;  %v5221_v16 = vadd.f32 %v8159_v41, %v12114_v27  ;;  %v5212_v34 = vpop.f32.mrb[55].mxu1  ;;  %v4991_v62 = vadd.f32 %v4990_v14, %v12110_v43  ;;  %v12195_v22 = vpop.f32.mrb[55].mxu0 }
 0x755   :  { %8188 = vmatmul.mubr.f32.gmra.mrb[66].mxu1 %v4953_v19  ;;  %v5213_v36 = vadd.f32 %v5212_v34, %v12114_v27  ;;  %v4989_v34 = vadd.f32 %v12185_v1, %v12112_v35 }
 0x756   :  { %v8436_v4 = vpack.c.bf16 %v5221_v16, %v5218_v0  ;;  %8190 = vmatprep.mubr.f32.mxu1 %v4959_v39  ;;  %v12198_v55 = vpack.c.bf16 %v4991_v62, %v4987_v21  ;;  %v4983_v16 = vadd.f32 %v12174_v10, %v12112_v35 }
 0x757   :  { %v8432_v12 = vpack.c.bf16 %v5213_v36, %v5210_v51 }
 0x759   :  { %8191 = vmatmul.mubr.f32.gmra.mrb[68].mxu1 %v4963_v60  ;;  %v4996_v3 = vpop.f32.mrb[56].mxu0  ;;  %v8162_v23 = vpop.f32.mrb[56].mxu1  ;;  %v4993_v60 = vadd.f32 %v12195_v22, %v12112_v35 }
 0x75a   :  { %8415 = vmatpush3.bf16.xpose.msra.mxu1 %v12149_v59  ;;  %8431 = vmatpush3.bf16.xpose.msra.mxu0 %v8428_v47  ;;  %v4997_v33 = vadd.f32 %v4996_v3, %v12110_v43  ;;  %v12206_v58 = vpop.f32.mrb[57].mxu0  ;;  %v5234_v53 = vadd.f32 %v8162_v23, %v12114_v27  ;;  %v5225_v63 = vpop.f32.mrb[57].mxu1  ;;  %v4979_v59 = vadd.f32 %v4978_v25, %v12112_v35 }
 0x75b   :  { %8417 = vmatprep.subr.bf16.mxu1 %v12167_v40  ;;  %8433 = vmatprep.subr.bf16.mxu0 %v8432_v12  ;;  %v5000_v26 = vpop.f32.mrb[58].mxu0  ;;  %v5226_v6 = vadd.f32 %v5225_v63, %v12114_v27  ;;  %v8163_v52 = vpop.f32.mrb[58].mxu1  ;;  %v4999_v1 = vadd.f32 %v12206_v58, %v12112_v35 }
 0x75c   :  { %8193 = vmatprep.mubr.f32.mxu1 %v4969_v11  ;;  %v5001_v13 = vadd.f32 %v5000_v26, %v12110_v43  ;;  %v12215_v46 = vpop.f32.mrb[59].mxu0  ;;  %v5237_v18 = vadd.f32 %v8163_v52, %v12114_v27  ;;  %v5228_v20 = vpop.f32.mrb[59].mxu1 }
 0x75d   :  { %8194 = vmatmul.mubr.f32.gmra.mrb[70].mxu1 %v4973_v56  ;;  %v5229_v45 = vadd.f32 %v5228_v20, %v12114_v27  ;;  %v5003_v11 = vadd.f32 %v12215_v46, %v12112_v35 }
 0x75e   :  { %v12219_v9 = vpack.c.bf16 %v5001_v13, %v4997_v33  ;;  %v12221_v8 = vpack.c.bf16 %v5237_v18, %v5234_v53  ;;  %8212 = vmatprep.mubr.f32.mxu1 %v4979_v59 }
 0x75f   :  { %v8440_v48 = vpack.c.bf16 %v5229_v45, %v5226_v6 }
 0x761   :  { %v5006_v38 = vpop.f32.mrb[60].mxu0  ;;  %v8166_v28 = vpop.f32.mrb[60].mxu1 }
 0x762   :  { %8419 = vmatpush3.bf16.xpose.msra.mxu1 %v12167_v40  ;;  %8435 = vmatpush3.bf16.xpose.msra.mxu0 %v8432_v12  ;;  %v5007_v25 = vadd.f32 %v5006_v38, %v12110_v43  ;;  %v5008_v5 = vpop.f32.mrb[61].mxu0  ;;  %v5250_v42 = vadd.f32 %v8166_v28, %v12114_v27  ;;  %v5241_v24 = vpop.f32.mrb[61].mxu1 }
 0x763   :  { %8421 = vmatprep.subr.bf16.mxu1 %v12163_v31  ;;  %8437 = vmatprep.subr.bf16.mxu0 %v8436_v4  ;;  %v5010_v7 = vpop.f32.mrb[62].mxu0  ;;  %v5242_v54 = vadd.f32 %v5241_v24, %v12114_v27  ;;  %v8167_v17 = vpop.f32.mrb[62].mxu1  ;;  %v5009_v33 = vadd.f32 %v5008_v5, %v12112_v35 }
 0x764   :  { %v5011_v47 = vadd.f32 %v5010_v7, %v12110_v43  ;;  %v5012_v44 = vpop.f32.mrb[63].mxu0  ;;  %v5253_v29 = vadd.f32 %v8167_v17, %v12114_v27  ;;  %v5244_v40 = vpop.f32.mrb[63].mxu1 }
 0x765   :  { %v5245_v30 = vadd.f32 %v5244_v40, %v12114_v27  ;;  %v5013_v63 = vadd.f32 %v5012_v44, %v12112_v35 }
 0x766   :  { %v12231_v32 = vpack.c.bf16 %v5011_v47, %v5007_v25  ;;  %v12233_v2 = vpack.c.bf16 %v5253_v29, %v5250_v42 }
 0x767   :  { %v12235_v0 = vpack.c.bf16 %v5245_v30, %v5242_v54 }
 0x769   :  { %v5016_v57 = vpop.f32.mrb[64].mxu0 }
 0x76a   :  { %8423 = vmatpush3.bf16.xpose.msra.mxu1 %v12163_v31  ;;  %8439 = vmatpush3.bf16.xpose.msra.mxu0 %v8436_v4  ;;  %v5017_v21 = vadd.f32 %v5016_v57, %v12110_v43  ;;  %v5018_v19 = vpop.f32.mrb[65].mxu0 }
 0x76b   :  { %v5019_v51 = vadd.f32 %v5018_v19, %v12112_v35  ;;  %v5020_v41 = vpop.f32.mrb[66].mxu0  ;;  %8457 = vmatprep.subr.bf16.mxu0 %v12125_v61  ;;  %8441 = vmatprep.subr.bf16.mxu1 %v8440_v48 }
 0x76c   :  { %v5021_v27 = vadd.f32 %v5020_v41, %v12110_v43  ;;  %v5022_v14 = vpop.f32.mrb[67].mxu0 }
 0x76d   :  { %8240 = vmatprep.mubr.f32.mxu0 %v5019_v51  ;;  %v5023_v31 = vadd.f32 %v5022_v14, %v12112_v35 }
 0x76e   :  { %v12242_v39 = vpack.c.bf16 %v5021_v27, %v5017_v21 }
 0x771   :  { %8213 = vmatmul.mubr.f32.vlgmr.msra.gmra.mrb[72].mxu1 %v4983_v16  ;;  %8241 = vmatmul.mubr.f32.vlgmr.msra.gmra.mrb[96].mxu0 %v5023_v31  ;;  %v5026_v62 = vpop.f32.mrb[68].mxu0 }
 0x772   :  { %8443 = vmatpush3.bf16.xpose.msra.mxu1 %v8440_v48  ;;  %8459 = vmatpush3.bf16.msra.mxu0 %v12125_v61  ;;  %v5027_v36 = vadd.f32 %v5026_v62, %v12110_v43  ;;  %v5028_v4 = vpop.f32.mrb[69].mxu0 }
 0x773   :  { %8215 = vmatprep.mubr.f32.mxu1 %v4989_v34  ;;  %8461 = vmatprep.subr.bf16.mxu0 %v12137_v15  ;;  %v5029_v10 = vadd.f32 %v5028_v4, %v12112_v35  ;;  %v5030_v12 = vpop.f32.mrb[70].mxu0 }
 0x774   :  { %8445 = vmatprep.subr.bf16.mxu1 %v12221_v8  ;;  %v5031_v3 = vadd.f32 %v5030_v12, %v12110_v43  ;;  %v5032_v61 = vpop.f32.mrb[71].mxu0 }
 0x775   :  { %8216 = vmatmul.mubr.f32.gmra.mrb[74].mxu1 %v4993_v60  ;;  %v5033_v23 = vadd.f32 %v5032_v61, %v12112_v35  ;;  %8243 = vmatprep.mubr.f32.mxu0 %v5029_v10 }
 0x776   :  { %8463 = vmatpush3.bf16.msra.mxu0 %v12137_v15  ;;  %v12261_v22 = vpack.c.bf16 %v5031_v3, %v5027_v36  ;;  %8218 = vmatprep.mubr.f32.mxu1 %v4999_v1 }
 0x777   :  { %8244 = vmatmul.mubr.f32.gmra.mrb[98].mxu0 %v5033_v23  ;;  %8465 = vmatprep.subr.bf16.mxu0 %v12151_v49 }
 0x779   :  { %8219 = vmatmul.mubr.f32.gmra.mrb[76].mxu1 %v5003_v11  ;;  %v5036_v58 = vpop.f32.mrb[72].mxu0 }
 0x77a   :  { %8447 = vmatpush3.bf16.xpose.msra.mxu1 %v12221_v8  ;;  %v5037_v53 = vadd.f32 %v5036_v58, %v12110_v43  ;;  %8467 = vmatpush3.bf16.msra.mxu0 %v12151_v49  ;;  %v5038_v15 = vpop.f32.mrb[73].mxu0 }
 0x77b   :  { %v5039_v56 = vadd.f32 %v5038_v15, %v12112_v35  ;;  %8449 = vmatprep.subr.bf16.mxu1 %v12235_v0  ;;  %v5040_v26 = vpop.f32.mrb[74].mxu0  ;;  %8221 = vmatprep.mubr.f32.mxu1 %v5009_v33 }
 0x77c   :  { %v5041_v6 = vadd.f32 %v5040_v26, %v12110_v43  ;;  %v5042_v52 = vpop.f32.mrb[75].mxu0  ;;  %8469 = vmatprep.subr.bf16.mxu0 %v12165_v37 }
 0x77d   :  { %v5043_v59 = vadd.f32 %v5042_v52, %v12112_v35  ;;  %8222 = vmatmul.mubr.f32.gmra.mrb[78].mxu1 %v5013_v63  ;;  %8246 = vmatprep.mubr.f32.mxu0 %v5039_v56 }
 0x77e   :  { %v12276_v13 = vpack.c.bf16 %v5041_v6, %v5037_v53  ;;  %8471 = vmatpush3.bf16.msra.mxu0 %v12165_v37 }
 0x77f   :  { %8247 = vmatmul.mubr.f32.gmra.mrb[100].mxu0 %v5043_v59  ;;  %8489 = vmatprep.subr.bf16.mxu0 %v12242_v39 }
 0x781   :  { %v5046_v49 = vpop.f32.mrb[76].mxu0 }
 0x782   :  { %8451 = vmatpush3.bf16.xpose.msra.mxu1 %v12235_v0  ;;  %v5047_v46 = vadd.f32 %v5046_v49, %v12110_v43  ;;  %v5048_v18 = vpop.f32.mrb[77].mxu0 }
 0x783   :  { %v5049_v20 = vadd.f32 %v5048_v18, %v12112_v35  ;;  %v5050_v45 = vpop.f32.mrb[78].mxu0  ;;  %8453 = vmatprep.subr.bf16.mxu1 %v12233_v2 }
 0x784   :  { %v5051_v8 = vadd.f32 %v5050_v45, %v12110_v43  ;;  %v5052_v48 = vpop.f32.mrb[79].mxu0 }
 0x785   :  { %v5053_v38 = vadd.f32 %v5052_v48, %v12112_v35  ;;  %8249 = vmatprep.mubr.f32.mxu0 %v5049_v20 }
 0x786   :  { %v12286_v37 = vpack.c.bf16 %v5051_v8, %v5047_v46 }
 0x787   :  { %8250 = vmatmul.mubr.f32.gmra.mrb[102].mxu0 %v5053_v38 }
 0x789   :  { %v5056_v28 = vpop.f32.mrb[80].mxu0 }
 0x78a   :  { %8455 = vmatpush3.bf16.xpose.msra.mxu1 %v12233_v2  ;;  %v5057_v25 = vadd.f32 %v5056_v28, %v12110_v43  ;;  %v5058_v5 = vpop.f32.mrb[81].mxu0 }
 0x78b   :  { %v5059_v42 = vadd.f32 %v5058_v5, %v12112_v35  ;;  %v5060_v24 = vpop.f32.mrb[82].mxu0  ;;  %8473 = vmatprep.subr.bf16.mxu1 %v12177_v50 }
 0x78c   :  { %v5061_v7 = vadd.f32 %v5060_v24, %v12110_v43  ;;  %v5062_v54 = vpop.f32.mrb[83].mxu0 }
 0x78d   :  { %8268 = vmatprep.mubr.f32.mxu1 %v5059_v42  ;;  %v5063_v47 = vadd.f32 %v5062_v54, %v12112_v35 }
 0x78e   :  { %v12293_v17 = vpack.c.bf16 %v5061_v7, %v5057_v25 }
 0x791   :  { %8269 = vmatmul.mubr.f32.vlgmr.msra.gmra.mrb[80].mxu1 %v5063_v47  ;;  %v5066_v44 = vpop.f32.mrb[84].mxu0 }
 0x792   :  { %8475 = vmatpush3.bf16.msra.mxu1 %v12177_v50  ;;  %v5067_v29 = vadd.f32 %v5066_v44, %v12110_v43  ;;  %v5068_v40 = vpop.f32.mrb[85].mxu0 }
 0x793   :  { %v5069_v30 = vadd.f32 %v5068_v40, %v12112_v35  ;;  %v5070_v2 = vpop.f32.mrb[86].mxu0  ;;  %8477 = vmatprep.subr.bf16.mxu1 %v12198_v55 }
 0x794   :  { %v5071_v0 = vadd.f32 %v5070_v2, %v12110_v43  ;;  %v5072_v57 = vpop.f32.mrb[87].mxu0 }
 0x795   :  { %v5073_v21 = vadd.f32 %v5072_v57, %v12112_v35  ;;  %8271 = vmatprep.mubr.f32.mxu1 %v5069_v30 }
 0x796   :  { %v12302_v19 = vpack.c.bf16 %v5071_v0, %v5067_v29  ;;  %8479 = vmatpush3.bf16.msra.mxu1 %v12198_v55 }
 0x797   :  { %8272 = vmatmul.mubr.f32.gmra.mrb[82].mxu1 %v5073_v21  ;;  %8481 = vmatprep.subr.bf16.mxu1 %v12219_v9 }
 0x799   :  { %v5076_v50 = vpop.f32.mrb[88].mxu0 }
 0x79a   :  { %v5077_v51 = vadd.f32 %v5076_v50, %v12110_v43  ;;  %v5078_v41 = vpop.f32.mrb[89].mxu0  ;;  %8483 = vmatpush3.bf16.msra.mxu1 %v12219_v9 }
 0x79b   :  { %v5079_v27 = vadd.f32 %v5078_v41, %v12112_v35  ;;  %v5080_v14 = vpop.f32.mrb[90].mxu0  ;;  %8485 = vmatprep.subr.bf16.mxu1 %v12231_v32 }
 0x79c   :  { %v5081_v16 = vadd.f32 %v5080_v14, %v12110_v43  ;;  %v5082_v31 = vpop.f32.mrb[91].mxu0 }
 0x79d   :  { %v5083_v34 = vadd.f32 %v5082_v31, %v12112_v35  ;;  %8274 = vmatprep.mubr.f32.mxu1 %v5079_v27 }
 0x79e   :  { %v12312_v55 = vpack.c.bf16 %v5081_v16, %v5077_v51  ;;  %8487 = vmatpush3.bf16.msra.mxu1 %v12231_v32 }
 0x79f   :  { %8275 = vmatmul.mubr.f32.gmra.mrb[84].mxu1 %v5083_v34  ;;  %8505 = vmatprep.subr.bf16.mxu1 %v12293_v17 }
 0x7a1   :  { %v5086_v62 = vpop.f32.mrb[92].mxu0 }
 0x7a2   :  { %v5087_v9 = vadd.f32 %v5086_v62, %v12110_v43  ;;  %v5088_v36 = vpop.f32.mrb[93].mxu0 }
 0x7a3   :  { %v5089_v4 = vadd.f32 %v5088_v36, %v12112_v35  ;;  %v5090_v60 = vpop.f32.mrb[94].mxu0 }
 0x7a4   :  { %v5091_v10 = vadd.f32 %v5090_v60, %v12110_v43  ;;  %v5092_v12 = vpop.f32.mrb[95].mxu0 }
 0x7a5   :  { %v5093_v1 = vadd.f32 %v5092_v12, %v12112_v35  ;;  %8277 = vmatprep.mubr.f32.mxu1 %v5089_v4 }
 0x7a6   :  { %v12320_v3 = vpack.c.bf16 %v5091_v10, %v5087_v9 }
 0x7a7   :  { %8278 = vmatmul.mubr.f32.gmra.mrb[86].mxu1 %v5093_v1 }
 0x824   :  { %v8186_v32 = vpop.f32.mrb[64].mxu1 }
 0x825   :  { %v12322_v61 = vmul.f32 0.25, %v8186_v32  ;;  %v5322_v23 = vpop.f32.mrb[65].mxu1 }
 0x826   :  { %v12324_v11 = vmul.f32 0.25, %v5322_v23 }
 0x827   :  { %v5712_v33 = vsel %vm5708_vm0, %v12322_v61, -inf }
 0x828   :  { %5713 = vmax.xlane.f32.xlu1 %v5712_v33  ;;  %v5709_v43 = vsel %vm5708_vm0, %v12324_v11, -inf  ;;  %v8189_v58 = vpop.f32.mrb[66].mxu1 }
 0x829   :  { %5710 = vmax.xlane.f32.xlu0 %v5709_v43  ;;  %v12330_v35 = vmul.f32 0.25, %v8189_v58  ;;  %v5332_v53 = vpop.f32.mrb[67].mxu1 }
 0x82a   :  { %v12334_v63 = vmul.f32 0.25, %v5332_v53 }
 0x82b   :  { %v5718_v15 = vsel %vm5708_vm0, %v12330_v35, -inf }
 0x82c   :  { %v8192_v56 = vpop.f32.mrb[68].mxu1  ;;  %v5715_v6 = vsel %vm5708_vm0, %v12334_v63, -inf }
 0x82d   :  { %5719 = vmax.xlane.f32.xlu0 %v5718_v15  ;;  %v5342_v26 = vpop.f32.mrb[69].mxu1  ;;  %v12338_v52 = vmul.f32 0.25, %v8192_v56 }
 0x82e   :  { %v12342_v18 = vmul.f32 0.25, %v5342_v26 }
 0x82f   :  { %v5724_v46 = vsel %vm5708_vm0, %v12338_v52, -inf }
 0x830   :  { %v8195_v59 = vpop.f32.mrb[70].mxu1  ;;  %v5721_v20 = vsel %vm5708_vm0, %v12342_v18, -inf }
 0x831   :  { %5716 = vmax.xlane.f32.xlu0 %v5715_v6  ;;  %v5352_v49 = vpop.f32.mrb[71].mxu1  ;;  %v12346_v45 = vmul.f32 0.25, %v8195_v59 }
 0x832   :  { %v12350_v48 = vmul.f32 0.25, %v5352_v49 }
 0x833   :  { %v5730_v8 = vsel %vm5708_vm0, %v12346_v45, -inf }
 0x834   :  { %v5727_v38 = vsel %vm5708_vm0, %v12350_v48, -inf }
 0x835   :  { %5725 = vmax.xlane.f32.xlu0 %v5724_v46 }
 0x839   :  { %5722 = vmax.xlane.f32.xlu0 %v5721_v20 }
 0x83d   :  { %5731 = vmax.xlane.f32.xlu0 %v5730_v8 }
 0x841   :  { %5728 = vmax.xlane.f32.xlu0 %v5727_v38 }
 0x844   :  { %v8214_v28 = vpop.f32.mrb[72].mxu1  ;;  %v8242_v25 = vpop.f32.mrb[96].mxu0 }
 0x845   :  { %v12354_v5 = vmul.f32 0.25, %v8214_v28  ;;  %v5427_v42 = vpop.f32.mrb[73].mxu1  ;;  %v5532_v24 = vpop.f32.mrb[97].mxu0  ;;  %v12360_v44 = vmul.f32 0.25, %v8242_v25 }
 0x846   :  { %v12356_v7 = vmul.f32 0.25, %v5427_v42  ;;  %v12370_v50 = vmul.f32 0.25, %v5532_v24 }
 0x847   :  { %v5736_v54 = vsel %vm5708_vm0, %v12354_v5, -inf  ;;  %v5760_v51 = vsel %vm5708_vm0, %v12360_v44, -inf }
 0x848   :  { %5737 = vmax.xlane.f32.xlu1 %v5736_v54  ;;  %v8217_v47 = vpop.f32.mrb[74].mxu1  ;;  %v5733_v29 = vsel %vm5708_vm0, %v12356_v7, -inf  ;;  %v5757_v34 = vsel %vm5708_vm0, %v12370_v50, -inf }
 0x849   :  { %v12364_v40 = vmul.f32 0.25, %v8217_v47  ;;  %5734 = vmax.xlane.f32.xlu0 %v5733_v29  ;;  %v5437_v30 = vpop.f32.mrb[75].mxu1 }
 0x84a   :  { %v8245_v2 = vpop.f32.mrb[98].mxu0  ;;  %v12368_v57 = vmul.f32 0.25, %v5437_v30 }
 0x84b   :  { %v5742_v0 = vsel %vm5708_vm0, %v12364_v40, -inf  ;;  %v5542_v21 = vpop.f32.mrb[99].mxu0  ;;  %v12378_v31 = vmul.f32 0.25, %v8245_v2 }
 0x84c   :  { %5743 = vmax.xlane.f32.xlu1 %v5742_v0  ;;  %v8220_v41 = vpop.f32.mrb[76].mxu1  ;;  %v5739_v14 = vsel %vm5708_vm0, %v12368_v57, -inf  ;;  %v12386_v12 = vmul.f32 0.25, %v5542_v21 }
 0x84d   :  { %5761 = vmax.xlane.f32.xlu0 %v5760_v51  ;;  %v5447_v27 = vpop.f32.mrb[77].mxu1  ;;  %v12376_v16 = vmul.f32 0.25, %v8220_v41  ;;  %v5766_v1 = vsel %vm5708_vm0, %v12378_v31, -inf }
 0x84e   :  { %v12384_v60 = vmul.f32 0.25, %v5447_v27  ;;  %v5763_v43 = vsel %vm5708_vm0, %v12386_v12, -inf }
 0x84f   :  { %v5748_v4 = vsel %vm5708_vm0, %v12376_v16, -inf }
 0x850   :  { %5740 = vmax.xlane.f32.xlu1 %v5739_v14  ;;  %v8223_v62 = vpop.f32.mrb[78].mxu1  ;;  %v5745_v32 = vsel %vm5708_vm0, %v12384_v60, -inf }
 0x851   :  { %5758 = vmax.xlane.f32.xlu0 %v5757_v34  ;;  %v5457_v9 = vpop.f32.mrb[79].mxu1  ;;  %v12392_v23 = vmul.f32 0.25, %v8223_v62 }
 0x852   :  { %v8248_v36 = vpop.f32.mrb[100].mxu0  ;;  %v12400_v15 = vmul.f32 0.25, %v5457_v9 }
 0x853   :  { %v5552_v10 = vpop.f32.mrb[101].mxu0  ;;  %v12394_v33 = vmul.f32 0.25, %v8248_v36  ;;  %v5754_v53 = vsel %vm5708_vm0, %v12392_v23, -inf }
 0x854   :  { %5749 = vmax.xlane.f32.xlu1 %v5748_v4  ;;  %v12402_v26 = vmul.f32 0.25, %v5552_v10  ;;  %v5751_v59 = vsel %vm5708_vm0, %v12400_v15, -inf }
 0x855   :  { %5767 = vmax.xlane.f32.xlu0 %v5766_v1  ;;  %v5772_v6 = vsel %vm5708_vm0, %v12394_v33, -inf }
 0x856   :  { %v5769_v46 = vsel %vm5708_vm0, %v12402_v26, -inf }
 0x858   :  { %5746 = vmax.xlane.f32.xlu1 %v5745_v32 }
 0x859   :  { %5764 = vmax.xlane.f32.xlu0 %v5763_v43 }
 0x85a   :  { %v8251_v58 = vpop.f32.mrb[102].mxu0 }
 0x85b   :  { %v5562_v56 = vpop.f32.mrb[103].mxu0  ;;  %v12412_v20 = vmul.f32 0.25, %v8251_v58 }
 0x85c   :  { %5755 = vmax.xlane.f32.xlu1 %v5754_v53  ;;  %v12408_v49 = vmul.f32 0.25, %v5562_v56 }
 0x85d   :  { %5773 = vmax.xlane.f32.xlu0 %v5772_v6  ;;  %v5778_v54 = vsel %vm5708_vm0, %v12412_v20, -inf }
 0x85e   :  { %v5775_v38 = vsel %vm5708_vm0, %v12408_v49, -inf }
 0x860   :  { %5752 = vmax.xlane.f32.xlu1 %v5751_v59 }
 0x861   :  { %5770 = vmax.xlane.f32.xlu0 %v5769_v46 }
 0x864   :  { %v8270_v8 = vpop.f32.mrb[80].mxu1 }
 0x865   :  { %v12416_v28 = vmul.f32 0.25, %v8270_v8  ;;  %5776 = vmax.xlane.f32.xlu0 %v5775_v38  ;;  %v5637_v25 = vpop.f32.mrb[81].mxu1 }
 0x866   :  { %v12420_v24 = vmul.f32 0.25, %v5637_v25 }
 0x867   :  { %v5784_v42 = vsel %vm5708_vm0, %v12416_v28, -inf }
 0x868   :  { %5785 = vmax.xlane.f32.xlu1 %v5784_v42  ;;  %v5781_v29 = vsel %vm5708_vm0, %v12420_v24, -inf }
 0x869   :  { %5779 = vmax.xlane.f32.xlu0 %v5778_v54 }
 0x86a   :  { %v8273_v47 = vpop.f32.mrb[82].mxu1 }
 0x86b   :  { %v12426_v30 = vmul.f32 0.25, %v8273_v47  ;;  %v5647_v2 = vpop.f32.mrb[83].mxu1 }
 0x86c   :  { %5782 = vmax.xlane.f32.xlu1 %v5781_v29  ;;  %v12430_v21 = vmul.f32 0.25, %v5647_v2 }
 0x86d   :  { %v5790_v0 = vsel %vm5708_vm0, %v12426_v30, -inf }
 0x86e   :  { %v5787_v41 = vsel %vm5708_vm0, %v12430_v21, -inf }
 0x870   :  { %5791 = vmax.xlane.f32.xlu1 %v5790_v0 }
 0x872   :  { %v8276_v51 = vpop.f32.mrb[84].mxu1 }
 0x873   :  { %v12434_v27 = vmul.f32 0.25, %v8276_v51  ;;  %v5657_v14 = vpop.f32.mrb[85].mxu1 }
 0x874   :  { %5788 = vmax.xlane.f32.xlu1 %v5787_v41  ;;  %v12438_v62 = vmul.f32 0.25, %v5657_v14 }
 0x875   :  { %v5796_v34 = vsel %vm5708_vm0, %v12434_v27, -inf }
 0x876   :  { %v5793_v36 = vsel %vm5708_vm0, %v12438_v62, -inf }
 0x878   :  { %5797 = vmax.xlane.f32.xlu1 %v5796_v34 }
 0x87a   :  { %v8279_v9 = vpop.f32.mrb[86].mxu1 }
 0x87b   :  { %v5667_v4 = vpop.f32.mrb[87].mxu1  ;;  %v12446_v32 = vmul.f32 0.25, %v8279_v9 }
 0x87c   :  { %5794 = vmax.xlane.f32.xlu1 %v5793_v36  ;;  %v12442_v10 = vmul.f32 0.25, %v5667_v4 }
 0x87d   :  { %v5802_v43 = vsel %vm5708_vm0, %v12446_v32, -inf }
 0x87e   :  { %v5799_v1 = vsel %vm5708_vm0, %v12442_v10, -inf }
 0x880   :  { %5800 = vmax.xlane.f32.xlu1 %v5799_v1 }
 0x884   :  { %5803 = vmax.xlane.f32.xlu1 %v5802_v43 }
 0x8b5   :  { %v5714_v58 = vpop.xlane.xlu1 %5713 }
 0x8b6   :  { %v5806_v53 = vsub.f32 %v12322_v61, %v5714_v58  ;;  %v5711_v56 = vpop.xlane.xlu0 %5710 }
 0x8b7   :  { %v5805_v6 = vsub.f32 %v12324_v11, %v5711_v56 }
 0x8b8   :  { %v5839_v59 = vmul.f32 1.442695, %v5806_v53 }
 0x8b9   :  { %v5837_v46 = vmul.f32 1.442695, %v5805_v6 }
 0x8ba   :  { %8619 = vpow2.f32 %v5839_v59  ;;  %v5720_v8 = vpop.xlane.xlu0 %5719 }
 0x8bb   :  { %v5808_v38 = vsub.f32 %v12330_v35, %v5720_v8  ;;  %8621 = vpow2.f32 %v5837_v46 }
 0x8bd   :  { %v5843_v25 = vmul.f32 1.442695, %v5808_v38 }
 0x8be   :  { %v5717_v42 = vpop.xlane.xlu0 %5716 }
 0x8bf   :  { %v5807_v54 = vsub.f32 %v12334_v63, %v5717_v42  ;;  %8623 = vpow2.f32 %v5843_v25 }
 0x8c1   :  { %v5841_v47 = vmul.f32 1.442695, %v5807_v54 }
 0x8c2   :  { %v5726_v29 = vpop.xlane.xlu0 %5725 }
 0x8c3   :  { %v5810_v2 = vsub.f32 %v12338_v52, %v5726_v29  ;;  %8625 = vpow2.f32 %v5841_v47 }
 0x8c4   :  { %v12455_v61 = vpop.eup %8619 }
 0x8c5   :  { %v5847_v11 = vmul.f32 1.442695, %v5810_v2  ;;  %v5904_v0 = vsel %vm5708_vm0, %v12455_v61, 0.0  ;;  %v12459_v51 = vpop.eup %8621 }
 0x8c6   :  { %v5723_v35 = vpop.xlane.xlu0 %5722  ;;  %5905 = vadd.xlane.f32.xlu0 %v5904_v0  ;;  %v5901_v14 = vsel %vm5708_vm0, %v12459_v51, 0.0 }
 0x8c7   :  { %v5809_v41 = vsub.f32 %v12342_v18, %v5723_v35  ;;  %8627 = vpow2.f32 %v5847_v11 }
 0x8c9   :  { %v5845_v63 = vmul.f32 1.442695, %v5809_v41  ;;  %v12464_v34 = vpop.eup %8623 }
 0x8ca   :  { %v5732_v52 = vpop.xlane.xlu0 %5731  ;;  %5902 = vadd.xlane.f32.xlu0 %v5901_v14  ;;  %v5910_v4 = vsel %vm5708_vm0, %v12464_v34, 0.0 }
 0x8cb   :  { %v5812_v9 = vsub.f32 %v12346_v45, %v5732_v52  ;;  %8629 = vpow2.f32 %v5845_v63 }
 0x8cd   :  { %v5851_v36 = vmul.f32 1.442695, %v5812_v9  ;;  %v12469_v1 = vpop.eup %8625 }
 0x8ce   :  { %v5729_v43 = vpop.xlane.xlu0 %5728  ;;  %5911 = vadd.xlane.f32.xlu0 %v5910_v4  ;;  %v5907_v53 = vsel %vm5708_vm0, %v12469_v1, 0.0 }
 0x8cf   :  { %v5811_v18 = vsub.f32 %v12350_v48, %v5729_v43  ;;  %8631 = vpow2.f32 %v5851_v36 }
 0x8d1   :  { %v5849_v58 = vmul.f32 1.442695, %v5811_v18  ;;  %v12474_v56 = vpop.eup %8627 }
 0x8d2   :  { %5908 = vadd.xlane.f32.xlu0 %v5907_v53  ;;  %v5916_v6 = vsel %vm5708_vm0, %v12474_v56, 0.0 }
 0x8d3   :  { %8633 = vpow2.f32 %v5849_v58 }
 0x8d5   :  { %v5738_v45 = vpop.xlane.xlu1 %5737  ;;  %v12478_v59 = vpop.eup %8629 }
 0x8d6   :  { %v5814_v46 = vsub.f32 %v12354_v5, %v5738_v45  ;;  %5917 = vadd.xlane.f32.xlu0 %v5916_v6  ;;  %v5735_v8 = vpop.xlane.xlu0 %5734  ;;  %v5913_v54 = vsel %vm5708_vm0, %v12478_v59, 0.0 }
 0x8d7   :  { %v5813_v48 = vsub.f32 %v12356_v7, %v5735_v8 }
 0x8d8   :  { %v5855_v38 = vmul.f32 1.442695, %v5814_v46 }
 0x8d9   :  { %v5853_v25 = vmul.f32 1.442695, %v5813_v48  ;;  %v5744_v42 = vpop.xlane.xlu1 %5743  ;;  %v12484_v47 = vpop.eup %8631 }
 0x8da   :  { %8635 = vpow2.f32 %v5855_v38  ;;  %v5816_v29 = vsub.f32 %v12364_v40, %v5744_v42  ;;  %5914 = vadd.xlane.f32.xlu0 %v5913_v54  ;;  %v5762_v2 = vpop.xlane.xlu0 %5761  ;;  %v5922_v7 = vsel %vm5708_vm0, %v12484_v47, 0.0 }
 0x8db   :  { %v5822_v11 = vsub.f32 %v12360_v44, %v5762_v2  ;;  %8637 = vpow2.f32 %v5853_v25 }
 0x8dc   :  { %v5859_v5 = vmul.f32 1.442695, %v5816_v29 }
 0x8dd   :  { %v5871_v0 = vmul.f32 1.442695, %v5822_v11  ;;  %v5741_v35 = vpop.xlane.xlu1 %5740  ;;  %v12490_v41 = vpop.eup %8633 }
 0x8de   :  { %v5815_v63 = vsub.f32 %v12368_v57, %v5741_v35  ;;  %5923 = vadd.xlane.f32.xlu0 %v5922_v7  ;;  %v5759_v14 = vpop.xlane.xlu0 %5758  ;;  %v5919_v36 = vsel %vm5708_vm0, %v12490_v41, 0.0 }
 0x8df   :  { %8639 = vpow2.f32 %v5871_v0  ;;  %v5821_v40 = vsub.f32 %v12370_v50, %v5759_v14 }
 0x8e0   :  { %8641 = vpow2.f32 %v5859_v5  ;;  %v5857_v52 = vmul.f32 1.442695, %v5815_v63 }
 0x8e1   :  { %v5869_v9 = vmul.f32 1.442695, %v5821_v40  ;;  %v5750_v44 = vpop.xlane.xlu1 %5749 }
 0x8e2   :  { %v5818_v4 = vsub.f32 %v12376_v16, %v5750_v44  ;;  %5920 = vadd.xlane.f32.xlu0 %v5919_v36  ;;  %v5768_v43 = vpop.xlane.xlu0 %5767 }
 0x8e3   :  { %8643 = vpow2.f32 %v5869_v9  ;;  %v5824_v18 = vsub.f32 %v12378_v31, %v5768_v43 }
 0x8e4   :  { %v12498_v57 = vpop.eup %8635  ;;  %8645 = vpow2.f32 %v5857_v52  ;;  %v5863_v58 = vmul.f32 1.442695, %v5818_v4 }
 0x8e5   :  { %v5875_v53 = vmul.f32 1.442695, %v5824_v18  ;;  %v5747_v50 = vpop.xlane.xlu1 %5746  ;;  %v5928_v45 = vsel %vm5708_vm0, %v12498_v57, 0.0  ;;  %v12502_v6 = vpop.eup %8637 }
 0x8e6   :  { %v5817_v46 = vsub.f32 %v12384_v60, %v5747_v50  ;;  %v5765_v8 = vpop.xlane.xlu0 %5764  ;;  %5929 = vadd.xlane.f32.xlu1 %v5928_v45  ;;  %v5925_v42 = vsel %vm5708_vm0, %v12502_v6, 0.0 }
 0x8e7   :  { %8647 = vpow2.f32 %v5875_v53  ;;  %v5823_v16 = vsub.f32 %v12386_v12, %v5765_v8 }
 0x8e8   :  { %8649 = vpow2.f32 %v5863_v58  ;;  %v5861_v31 = vmul.f32 1.442695, %v5817_v46 }
 0x8e9   :  { %v12506_v48 = vpop.eup %8639  ;;  %v5873_v38 = vmul.f32 1.442695, %v5823_v16  ;;  %v5756_v25 = vpop.xlane.xlu1 %5755 }
 0x8ea   :  { %v12510_v54 = vpop.eup %8641  ;;  %v5820_v29 = vsub.f32 %v12392_v23, %v5756_v25  ;;  %v5774_v2 = vpop.xlane.xlu0 %5773  ;;  %5926 = vadd.xlane.f32.xlu1 %v5925_v42  ;;  %v5952_v60 = vsel %vm5708_vm0, %v12506_v48, 0.0 }
 0x8eb   :  { %8651 = vpow2.f32 %v5873_v38  ;;  %v5826_v12 = vsub.f32 %v12394_v33, %v5774_v2  ;;  %5953 = vadd.xlane.f32.xlu0 %v5952_v60  ;;  %v5934_v7 = vsel %vm5708_vm0, %v12510_v54, 0.0 }
 0x8ec   :  { %8653 = vpow2.f32 %v5861_v31  ;;  %v5867_v11 = vmul.f32 1.442695, %v5820_v29 }
 0x8ed   :  { %v12516_v5 = vpop.eup %8643  ;;  %v5879_v0 = vmul.f32 1.442695, %v5826_v12  ;;  %v5753_v35 = vpop.xlane.xlu1 %5752 }
 0x8ee   :  { %v12520_v63 = vpop.eup %8645  ;;  %v5819_v23 = vsub.f32 %v12400_v15, %v5753_v35  ;;  %v5771_v14 = vpop.xlane.xlu0 %5770  ;;  %5935 = vadd.xlane.f32.xlu1 %v5934_v7  ;;  %v5949_v40 = vsel %vm5708_vm0, %v12516_v5, 0.0 }
 0x8ef   :  { %8655 = vpow2.f32 %v5879_v0  ;;  %v5825_v33 = vsub.f32 %v12402_v26, %v5771_v14  ;;  %5950 = vadd.xlane.f32.xlu0 %v5949_v40  ;;  %v5931_v36 = vsel %vm5708_vm0, %v12520_v63, 0.0 }
 0x8f0   :  { %8657 = vpow2.f32 %v5867_v11  ;;  %v5865_v52 = vmul.f32 1.442695, %v5819_v23 }
 0x8f1   :  { %v12526_v9 = vpop.eup %8647  ;;  %v5877_v44 = vmul.f32 1.442695, %v5825_v33 }
 0x8f2   :  { %v12530_v4 = vpop.eup %8649  ;;  %v5777_v15 = vpop.xlane.xlu0 %5776  ;;  %5932 = vadd.xlane.f32.xlu1 %v5931_v36  ;;  %v5958_v43 = vsel %vm5708_vm0, %v12526_v9, 0.0 }
 0x8f3   :  { %8659 = vpow2.f32 %v5877_v44  ;;  %v5827_v18 = vsub.f32 %v12408_v49, %v5777_v15  ;;  %5959 = vadd.xlane.f32.xlu0 %v5958_v43  ;;  %v5940_v50 = vsel %vm5708_vm0, %v12530_v4, 0.0 }
 0x8f4   :  { %8661 = vpow2.f32 %v5865_v52 }
 0x8f5   :  { %v12535_v26 = vpop.eup %8651  ;;  %v5881_v58 = vmul.f32 1.442695, %v5827_v18  ;;  %v5786_v53 = vpop.xlane.xlu1 %5785 }
 0x8f6   :  { %v12539_v45 = vpop.eup %8653  ;;  %v5830_v46 = vsub.f32 %v12416_v28, %v5786_v53  ;;  %v5780_v8 = vpop.xlane.xlu0 %5779  ;;  %5941 = vadd.xlane.f32.xlu1 %v5940_v50  ;;  %v5955_v16 = vsel %vm5708_vm0, %v12535_v26, 0.0 }
 0x8f7   :  { %8663 = vpow2.f32 %v5881_v58  ;;  %v5828_v49 = vsub.f32 %v12412_v20, %v5780_v8  ;;  %5956 = vadd.xlane.f32.xlu0 %v5955_v16  ;;  %v5937_v29 = vsel %vm5708_vm0, %v12539_v45, 0.0 }
 0x8f8   :  { %v5887_v31 = vmul.f32 1.442695, %v5830_v46 }
 0x8f9   :  { %v12545_v38 = vpop.eup %8655  ;;  %v5883_v25 = vmul.f32 1.442695, %v5828_v49  ;;  %v5783_v42 = vpop.xlane.xlu1 %5782 }
 0x8fa   :  { %v12549_v2 = vpop.eup %8657  ;;  %8665 = vpow2.f32 %v5887_v31  ;;  %v5829_v28 = vsub.f32 %v12420_v24, %v5783_v42  ;;  %5938 = vadd.xlane.f32.xlu1 %v5937_v29  ;;  %v5964_v60 = vsel %vm5708_vm0, %v12545_v38, 0.0 }
 0x8fb   :  { %8667 = vpow2.f32 %v5883_v25  ;;  %5965 = vadd.xlane.f32.xlu0 %v5964_v60  ;;  %v5946_v0 = vsel %vm5708_vm0, %v12549_v2, 0.0 }
 0x8fc   :  { %v5885_v20 = vmul.f32 1.442695, %v5829_v28 }
 0x8fd   :  { %v12554_v12 = vpop.eup %8659  ;;  %v5792_v11 = vpop.xlane.xlu1 %5791 }
 0x8fe   :  { %v12558_v35 = vpop.eup %8661  ;;  %8669 = vpow2.f32 %v5885_v20  ;;  %v5832_v7 = vsub.f32 %v12426_v30, %v5792_v11  ;;  %5947 = vadd.xlane.f32.xlu1 %v5946_v0  ;;  %v5961_v24 = vsel %vm5708_vm0, %v12554_v12, 0.0 }
 0x8ff   :  { %5962 = vadd.xlane.f32.xlu0 %v5961_v24  ;;  %v5943_v33 = vsel %vm5708_vm0, %v12558_v35, 0.0 }
 0x900   :  { %v5891_v23 = vmul.f32 1.442695, %v5832_v7 }
 0x901   :  { %v12563_v14 = vpop.eup %8663  ;;  %v5789_v40 = vpop.xlane.xlu1 %5788 }
 0x902   :  { %8671 = vpow2.f32 %v5891_v23  ;;  %v5831_v52 = vsub.f32 %v12430_v21, %v5789_v40  ;;  %5944 = vadd.xlane.f32.xlu1 %v5943_v33  ;;  %v5967_v44 = vsel %vm5708_vm0, %v12563_v14, 0.0 }
 0x903   :  { %5968 = vadd.xlane.f32.xlu0 %v5967_v44 }
 0x904   :  { %v12570_v30 = vpop.eup %8665  ;;  %v5889_v36 = vmul.f32 1.442695, %v5831_v52 }
 0x905   :  { %v12572_v15 = vpop.eup %8667  ;;  %v5798_v43 = vpop.xlane.xlu1 %5797  ;;  %v5976_v18 = vsel %vm5708_vm0, %v12570_v30, 0.0 }
 0x906   :  { %8673 = vpow2.f32 %v5889_v36  ;;  %v5834_v58 = vsub.f32 %v12434_v27, %v5798_v43  ;;  %5977 = vadd.xlane.f32.xlu1 %v5976_v18  ;;  %v5970_v21 = vsel %vm5708_vm0, %v12572_v15, 0.0 }
 0x907   :  { %5971 = vadd.xlane.f32.xlu0 %v5970_v21 }
 0x908   :  { %v12579_v53 = vpop.eup %8669  ;;  %v5895_v50 = vmul.f32 1.442695, %v5834_v58 }
 0x909   :  { %v5795_v46 = vpop.xlane.xlu1 %5794  ;;  %v5973_v8 = vsel %vm5708_vm0, %v12579_v53, 0.0 }
 0x90a   :  { %8675 = vpow2.f32 %v5895_v50  ;;  %v5833_v16 = vsub.f32 %v12438_v62, %v5795_v46  ;;  %5974 = vadd.xlane.f32.xlu1 %v5973_v8 }
 0x90c   :  { %v12584_v49 = vpop.eup %8671  ;;  %v5893_v31 = vmul.f32 1.442695, %v5833_v16 }
 0x90d   :  { %v5801_v27 = vpop.xlane.xlu1 %5800  ;;  %v5982_v25 = vsel %vm5708_vm0, %v12584_v49, 0.0 }
 0x90e   :  { %8677 = vpow2.f32 %v5893_v31  ;;  %v5835_v42 = vsub.f32 %v12442_v10, %v5801_v27  ;;  %5983 = vadd.xlane.f32.xlu1 %v5982_v25 }
 0x910   :  { %v12589_v29 = vpop.eup %8673  ;;  %v5897_v28 = vmul.f32 1.442695, %v5835_v42 }
 0x911   :  { %v5804_v60 = vpop.xlane.xlu1 %5803  ;;  %v5979_v20 = vsel %vm5708_vm0, %v12589_v29, 0.0 }
 0x912   :  { %8679 = vpow2.f32 %v5897_v28  ;;  %v5836_v62 = vsub.f32 %v12446_v32, %v5804_v60  ;;  %5980 = vadd.xlane.f32.xlu1 %v5979_v20 }
 0x914   :  { %v12594_v11 = vpop.eup %8675  ;;  %v5899_v0 = vmul.f32 1.442695, %v5836_v62 }
 0x915   :  { %v5988_v7 = vsel %vm5708_vm0, %v12594_v11, 0.0 }
 0x916   :  { %8681 = vpow2.f32 %v5899_v0  ;;  %5989 = vadd.xlane.f32.xlu1 %v5988_v7 }
 0x918   :  { %v12598_v10 = vpop.eup %8677 }
 0x919   :  { %v5985_v24 = vsel %vm5708_vm0, %v12598_v10, 0.0 }
 0x91a   :  { %5986 = vadd.xlane.f32.xlu1 %v5985_v24 }
 0x91c   :  { %v12602_v23 = vpop.eup %8679 }
 0x91d   :  { %v5991_v32 = vsel %vm5708_vm0, %v12602_v23, 0.0 }
 0x91e   :  { %5992 = vadd.xlane.f32.xlu1 %v5991_v32 }
 0x920   :  { %v12606_v40 = vpop.eup %8681 }
 0x921   :  { %v5994_v33 = vsel %vm5708_vm0, %v12606_v40, 0.0 }
 0x922   :  { %5995 = vadd.xlane.f32.xlu1 %v5994_v33 }
 0x953   :  { %v5906_v52 = vpop.xlane.xlu0 %5905 }
 0x954   :  { %8683 = vrcp.f32 %v5906_v52 }
 0x957   :  { %v5903_v44 = vpop.xlane.xlu0 %5902 }
 0x958   :  { %8685 = vrcp.f32 %v5903_v44 }
 0x95b   :  { %v5912_v36 = vpop.xlane.xlu0 %5911 }
 0x95c   :  { %8687 = vrcp.f32 %v5912_v36 }
 0x95e   :  { %v8684_v18 = vpop.eup %8683 }
 0x95f   :  { %v5909_v43 = vpop.xlane.xlu0 %5908  ;;  %v6030_v46 = vmul.f32 %v8684_v18, %v12455_v61 }
 0x960   :  { %8689 = vrcp.f32 %v5909_v43 }
 0x962   :  { %v8686_v58 = vpop.eup %8685 }
 0x963   :  { %v5918_v21 = vpop.xlane.xlu0 %5917  ;;  %v6029_v50 = vmul.f32 %v8686_v58, %v12459_v51 }
 0x964   :  { %8691 = vrcp.f32 %v5918_v21 }
 0x965   :  { %8296 = vmatprep.mubr.msk.f32.mxu0 %vm5708_vm0, %v6029_v50 }
 0x966   :  { %8297 = vmatmul.mubr.msk.f32.vlgmr.msra.gmra.mrb[104].mxu0 %vm5708_vm0, %v6030_v46  ;;  %v8688_v16 = vpop.eup %8687 }
 0x967   :  { %8491 = vmatpush3.bf16.msra.mxu0 %v12242_v39  ;;  %v5915_v8 = vpop.xlane.xlu0 %5914  ;;  %v6032_v61 = vmul.f32 %v8688_v16, %v12464_v34 }
 0x968   :  { %8693 = vrcp.f32 %v5915_v8  ;;  %8493 = vmatprep.subr.bf16.mxu0 %v12261_v22 }
 0x96a   :  { %v8690_v31 = vpop.eup %8689 }
 0x96b   :  { %8495 = vmatpush3.bf16.msra.mxu0 %v12261_v22  ;;  %v5924_v27 = vpop.xlane.xlu0 %5923  ;;  %v6031_v51 = vmul.f32 %v8690_v31, %v12469_v1 }
 0x96c   :  { %8497 = vmatprep.subr.bf16.mxu0 %v12276_v13  ;;  %8695 = vrcp.f32 %v5924_v27 }
 0x96d   :  { %8299 = vmatprep.mubr.msk.f32.mxu0 %vm5708_vm0, %v6031_v51 }
 0x96e   :  { %8300 = vmatmul.mubr.msk.f32.gmra.mrb[106].mxu0 %vm5708_vm0, %v6032_v61  ;;  %v8692_v25 = vpop.eup %8691 }
 0x96f   :  { %8499 = vmatpush3.bf16.msra.mxu0 %v12276_v13  ;;  %v5921_v39 = vpop.xlane.xlu0 %5920  ;;  %v6034_v34 = vmul.f32 %v8692_v25, %v12474_v56 }
 0x970   :  { %8697 = vrcp.f32 %v5921_v39  ;;  %8501 = vmatprep.subr.bf16.mxu0 %v12286_v37 }
 0x972   :  { %v8694_v22 = vpop.eup %8693 }
 0x973   :  { %8503 = vmatpush3.bf16.msra.mxu0 %v12286_v37  ;;  %v5930_v1 = vpop.xlane.xlu1 %5929  ;;  %v6033_v42 = vmul.f32 %v8694_v22, %v12478_v59 }
 0x974   :  { %8699 = vrcp.f32 %v5930_v1 }
 0x975   :  { %8302 = vmatprep.mubr.msk.f32.mxu0 %vm5708_vm0, %v6033_v42 }
 0x976   :  { %8303 = vmatmul.mubr.msk.f32.gmra.mrb[108].mxu0 %vm5708_vm0, %v6034_v34  ;;  %v8696_v60 = vpop.eup %8695 }
 0x977   :  { %v5927_v28 = vpop.xlane.xlu1 %5926  ;;  %v6036_v7 = vmul.f32 %v8696_v60, %v12484_v47 }
 0x978   :  { %8701 = vrcp.f32 %v5927_v28  ;;  %v5954_v13 = vpop.xlane.xlu0 %5953 }
 0x979   :  { %8703 = vrcp.f32 %v5954_v13 }
 0x97a   :  { %v8698_v20 = vpop.eup %8697 }
 0x97b   :  { %v5936_v62 = vpop.xlane.xlu1 %5935  ;;  %v6035_v0 = vmul.f32 %v8698_v20, %v12490_v41 }
 0x97c   :  { %v5951_v37 = vpop.xlane.xlu0 %5950 }
 0x97d   :  { %8705 = vrcp.f32 %v5951_v37  ;;  %8305 = vmatprep.mubr.msk.f32.mxu0 %vm5708_vm0, %v6035_v0 }
 0x97e   :  { %8306 = vmatmul.mubr.msk.f32.gmra.mrb[110].mxu0 %vm5708_vm0, %v6036_v7  ;;  %8707 = vrcp.f32 %v5936_v62  ;;  %v8700_v24 = vpop.eup %8699 }
 0x97f   :  { %v5933_v56 = vpop.xlane.xlu1 %5932  ;;  %v6038_v41 = vmul.f32 %v8700_v24, %v12498_v57 }
 0x980   :  { %8709 = vrcp.f32 %v5933_v56  ;;  %v5960_v59 = vpop.xlane.xlu0 %5959 }
 0x981   :  { %8711 = vrcp.f32 %v5960_v59 }
 0x982   :  { %v8702_v32 = vpop.eup %8701 }
 0x983   :  { %v5942_v33 = vpop.xlane.xlu1 %5941  ;;  %v6037_v52 = vmul.f32 %v8702_v32, %v12502_v6  ;;  %v8704_v47 = vpop.eup %8703 }
 0x984   :  { %v5957_v44 = vpop.xlane.xlu0 %5956  ;;  %v6046_v58 = vmul.f32 %v8704_v47, %v12506_v48  ;;  %v6577_v47 = vld [vmem:[#allocation7] sm:$0xff] }
 0x985   :  { %8713 = vrcp.f32 %v5957_v44  ;;  %8324 = vmatprep.mubr.msk.f32.mxu1 %vm5708_vm0, %v6037_v52  ;;  %v6578_v44 = vld [vmem:[#allocation7 + $0x8] sm:$0xff] }
 0x986   :  { %8325 = vmatmul.mubr.msk.f32.vlgmr.msra.gmra.mrb[88].mxu1 %vm5708_vm0, %v6038_v41  ;;  %8715 = vrcp.f32 %v5942_v33 }
 0x987   :  { %v8706_v36 = vpop.eup %8705  ;;  %8507 = vmatpush3.bf16.msra.mxu1 %v12293_v17  ;;  %v5939_v43 = vpop.xlane.xlu1 %5938 }
 0x988   :  { %8509 = vmatprep.subr.bf16.mxu1 %v12302_v19  ;;  %8717 = vrcp.f32 %v5939_v43  ;;  %v5966_v18 = vpop.xlane.xlu0 %5965  ;;  %v6045_v6 = vmul.f32 %v8706_v36, %v12516_v5  ;;  %v8708_v57 = vpop.eup %8707 }
 0x989   :  { %8719 = vrcp.f32 %v5966_v18  ;;  %v6040_v8 = vmul.f32 %v8708_v57, %v12510_v54 }
 0x98a   :  { %v8710_v21 = vpop.eup %8709  ;;  %8352 = vmatprep.mubr.msk.f32.mxu0 %vm5708_vm0, %v6045_v6 }
 0x98b   :  { %8511 = vmatpush3.bf16.msra.mxu1 %v12302_v19  ;;  %v5948_v50 = vpop.xlane.xlu1 %5947  ;;  %8353 = vmatmul.mubr.msk.f32.vlgmr.msra.gmra.mrb[112].mxu0 %vm5708_vm0, %v6046_v58  ;;  %v6039_v17 = vmul.f32 %v8710_v21, %v12520_v63  ;;  %v8712_v48 = vpop.eup %8711  ;;  %v6580_v21 = vld [vmem:[#allocation7 + $0x18] sm:$0xff] }
 0x98c   :  { %8513 = vmatprep.subr.bf16.mxu1 %v12312_v55  ;;  %v5963_v46 = vpop.xlane.xlu0 %5962  ;;  %v6048_v54 = vmul.f32 %v8712_v48, %v12526_v9 }
 0x98d   :  { %8721 = vrcp.f32 %v5963_v46  ;;  %8327 = vmatprep.mubr.msk.f32.mxu1 %vm5708_vm0, %v6039_v17  ;;  %v6644_v46 = vld [vmem:[%s12796_s0 + $0x18] sm:$0xff] }
 0x98e   :  { %8328 = vmatmul.mubr.msk.f32.gmra.mrb[90].mxu1 %vm5708_vm0, %v6040_v8  ;;  %8723 = vrcp.f32 %v5948_v50  ;;  %v6579_v50 = vld [vmem:[#allocation7 + $0x10] sm:$0xff] }
 0x98f   :  { %v8714_v5 = vpop.eup %8713  ;;  %8515 = vmatpush3.bf16.msra.mxu1 %v12312_v55  ;;  %v5945_v19 = vpop.xlane.xlu1 %5944 }
 0x990   :  { %8517 = vmatprep.subr.bf16.mxu1 %v12320_v3  ;;  %8725 = vrcp.f32 %v5945_v19  ;;  %v5969_v63 = vpop.xlane.xlu0 %5968  ;;  %v6047_v16 = vmul.f32 %v8714_v5, %v12535_v26  ;;  %v8716_v31 = vpop.eup %8715  ;;  %v6643_v5 = vld [vmem:[%s12796_s0 + $0x10] sm:$0xff] }
 0x991   :  { %8727 = vrcp.f32 %v5969_v63  ;;  %v6042_v39 = vmul.f32 %v8716_v31, %v12530_v4 }
 0x992   :  { %v8718_v27 = vpop.eup %8717  ;;  %8355 = vmatprep.mubr.msk.f32.mxu0 %vm5708_vm0, %v6047_v16 }
 0x993   :  { %8519 = vmatpush3.bf16.msra.mxu1 %v12320_v3  ;;  %v5978_v51 = vpop.xlane.xlu1 %5977  ;;  %8356 = vmatmul.mubr.msk.f32.gmra.mrb[114].mxu0 %vm5708_vm0, %v6048_v54  ;;  %v6041_v55 = vmul.f32 %v8718_v27, %v12539_v45  ;;  %v8720_v26 = vpop.eup %8719  ;;  %v6582_v27 = vld [vmem:[#allocation7 + $0x28] sm:$0xff] }
 0x994   :  { %v5972_v61 = vpop.xlane.xlu0 %5971  ;;  %v6050_v1 = vmul.f32 %v8720_v26, %v12545_v38 }
 0x995   :  { %8729 = vrcp.f32 %v5972_v61  ;;  %8330 = vmatprep.mubr.msk.f32.mxu1 %vm5708_vm0, %v6041_v55  ;;  %v6646_v61 = vld [vmem:[%s12796_s0 + $0x28] sm:$0xff] }
 0x996   :  { %8331 = vmatmul.mubr.msk.f32.gmra.mrb[92].mxu1 %vm5708_vm0, %v6042_v39  ;;  %8731 = vrcp.f32 %v5978_v51  ;;  %v6581_v51 = vld [vmem:[#allocation7 + $0x20] sm:$0xff] }
 0x997   :  { %v8722_v9 = vpop.eup %8721  ;;  %v5975_v25 = vpop.xlane.xlu1 %5974 }
 0x998   :  { %8733 = vrcp.f32 %v5975_v25  ;;  %v6049_v3 = vmul.f32 %v8722_v9, %v12554_v12  ;;  %v8724_v22 = vpop.eup %8723  ;;  %v6645_v9 = vld [vmem:[%s12796_s0 + $0x20] sm:$0xff] }
 0x999   :  { %v6044_v28 = vmul.f32 %v8724_v22, %v12549_v2 }
 0x99a   :  { %v8726_v42 = vpop.eup %8725  ;;  %8358 = vmatprep.mubr.msk.f32.mxu0 %vm5708_vm0, %v6049_v3 }
 0x99b   :  { %v8728_v45 = vpop.eup %8727  ;;  %v5984_v4 = vpop.xlane.xlu1 %5983  ;;  %8359 = vmatmul.mubr.msk.f32.gmra.mrb[116].mxu0 %vm5708_vm0, %v6050_v1  ;;  %v6043_v34 = vmul.f32 %v8726_v42, %v12558_v35 }
 0x99c   :  { %v6051_v13 = vmul.f32 %v8728_v45, %v12563_v14  ;;  %8735 = vrcp.f32 %v5984_v4  ;;  %v6584_v45 = vld [vmem:[#allocation7 + $0x38] sm:$0xff]  ;;  %v6583_v4 = vld [vmem:[#allocation7 + $0x30] sm:$0xff] }
 0x99d   :  { %8333 = vmatprep.mubr.msk.f32.mxu1 %vm5708_vm0, %v6043_v34 }
 0x99e   :  { %8334 = vmatmul.mubr.msk.f32.gmra.mrb[94].mxu1 %vm5708_vm0, %v6044_v28  ;;  %8361 = vmatprep.mubr.msk.f32.mxu0 %vm5708_vm0, %v6051_v13  ;;  %v6648_v28 = vld [vmem:[%s12796_s0 + $0x38] sm:$0xff] }
 0x99f   :  { %v8730_v38 = vpop.eup %8729  ;;  %v5981_v12 = vpop.xlane.xlu1 %5980 }
 0x9a0   :  { %8737 = vrcp.f32 %v5981_v12  ;;  %v6052_v60 = vmul.f32 %v8730_v38, %v12572_v15  ;;  %v8732_v20 = vpop.eup %8731  ;;  %v6647_v12 = vld [vmem:[%s12796_s0 + $0x30] sm:$0xff] }
 0x9a1   :  { %v6054_v14 = vmul.f32 %v8732_v20, %v12570_v30 }
 0x9a2   :  { %v8734_v62 = vpop.eup %8733  ;;  %8362 = vmatmul.mubr.msk.f32.gmra.mrb[118].mxu0 %vm5708_vm0, %v6052_v60 }
 0x9a3   :  { %v5990_v35 = vpop.xlane.xlu1 %5989  ;;  %v6053_v2 = vmul.f32 %v8734_v62, %v12579_v53 }
 0x9a4   :  { %8739 = vrcp.f32 %v5990_v35 }
 0x9a5   :  { %8380 = vmatprep.mubr.msk.f32.mxu1 %vm5708_vm0, %v6053_v2 }
 0x9a6   :  { %8381 = vmatmul.mubr.msk.f32.vlgmr.msra.gmra.mrb[96].mxu1 %vm5708_vm0, %v6054_v14  ;;  %v8736_v37 = vpop.eup %8735  ;;  %v6586_v14 = vld [vmem:[#allocation7 + $0x48] sm:$0xff] }
 0x9a7   :  { %v5987_v0 = vpop.xlane.xlu1 %5986  ;;  %v6056_v59 = vmul.f32 %v8736_v37, %v12584_v49 }
 0x9a8   :  { %8741 = vrcp.f32 %v5987_v0  ;;  %v6585_v0 = vld [vmem:[#allocation7 + $0x40] sm:$0xff] }
 0x9aa   :  { %v8738_v7 = vpop.eup %8737 }
 0x9ab   :  { %v5993_v56 = vpop.xlane.xlu1 %5992  ;;  %v6055_v15 = vmul.f32 %v8738_v7, %v12589_v29  ;;  %v6650_v7 = vld [vmem:[%s12796_s0 + $0x48] sm:$0xff] }
 0x9ac   :  { %8743 = vrcp.f32 %v5993_v56 }
 0x9ad   :  { %8383 = vmatprep.mubr.msk.f32.mxu1 %vm5708_vm0, %v6055_v15 }
 0x9ae   :  { %8384 = vmatmul.mubr.msk.f32.gmra.mrb[98].mxu1 %vm5708_vm0, %v6056_v59  ;;  %v8740_v53 = vpop.eup %8739  ;;  %v6649_v59 = vld [vmem:[%s12796_s0 + $0x40] sm:$0xff] }
 0x9af   :  { %v5996_v30 = vpop.xlane.xlu1 %5995  ;;  %v6058_v33 = vmul.f32 %v8740_v53, %v12594_v11  ;;  %v6642_v11 = vld [vmem:[%s12796_s0 + $0x8] sm:$0xff] }
 0x9b0   :  { %8745 = vrcp.f32 %v5996_v30 }
 0x9b2   :  { %v8742_v24 = vpop.eup %8741 }
 0x9b3   :  { %v6057_v32 = vmul.f32 %v8742_v24, %v12598_v10  ;;  %v6594_v24 = vld [vmem:[#allocation7 + $0x88] sm:$0xff] }
 0x9b5   :  { %8386 = vmatprep.mubr.msk.f32.mxu1 %vm5708_vm0, %v6057_v32 }
 0x9b6   :  { %v8744_v52 = vpop.eup %8743  ;;  %8387 = vmatmul.mubr.msk.f32.gmra.mrb[100].mxu1 %vm5708_vm0, %v6058_v33  ;;  %v6593_v33 = vld [vmem:[#allocation7 + $0x80] sm:$0xff] }
 0x9b7   :  { %v6059_v29 = vmul.f32 %v8744_v52, %v12602_v23  ;;  %v6641_v23 = vld [vmem:[%s12796_s0] sm:$0xff] }
 0x9b9   :  { %8389 = vmatprep.mubr.msk.f32.mxu1 %vm5708_vm0, %v6059_v29 }
 0x9ba   :  { %v8746_v49 = vpop.eup %8745 }
 0x9bb   :  { %v6060_v41 = vmul.f32 %v8746_v49, %v12606_v40  ;;  %v6658_v49 = vld [vmem:[%s12796_s0 + $0x88] sm:$0xff] }
 0x9bd   :  { %8390 = vmatmul.mubr.msk.f32.gmra.mrb[102].mxu1 %vm5708_vm0, %v6060_v41 }
 0xa39   :  { %v8298_v36 = vpop.f32.mrb[104].mxu0 }
 0xa3a   :  { %v6610_v10 = vadd.f32 %v8298_v36, %v6578_v44  ;;  %v6151_v43 = vpop.f32.mrb[105].mxu0  ;;  %v6657_v36 = vld [vmem:[%s12796_s0 + $0x80] sm:$0xff] }
 0xa3b   :  { %v6609_v18 = vadd.f32 %v6577_v47, %v6151_v43  ;;  %v6587_v43 = vld [vmem:[#allocation7 + $0x50] sm:$0xff] }
 0xa3c   :  { %v6674_v6 = vadd.f32 %v6642_v11, %v6610_v10  ;;  %v6588_v11 = vld [vmem:[#allocation7 + $0x58] sm:$0xff] }
 0xa3d   :  { %v6673_v57 = vadd.f32 %v6641_v23, %v6609_v18 }
 0xa3e   :  { %v6706_v58 = vmax.f32 %v6674_v6, 0.0  ;;  %v6652_v6 = vld [vmem:[%s12796_s0 + $0x58] sm:$0xff] }
 0xa3f   :  { %v6705_v40 = vmax.f32 %v6673_v57, 0.0 }
 0xa40   :  { %6738 = vst [vmem:[#allocation7 + $0x8] sm:$0xff] %v6706_v58 }
 0xa41   :  { %6737 = vst [vmem:[#allocation7] sm:$0xff] %v6705_v40  ;;  %v8301_v17 = vpop.f32.mrb[106].mxu0 }
 0xa42   :  { %v6612_v8 = vadd.f32 %v8301_v17, %v6580_v21  ;;  %v6161_v48 = vpop.f32.mrb[107].mxu0  ;;  %v6651_v21 = vld [vmem:[%s12796_s0 + $0x50] sm:$0xff] }
 0xa43   :  { %v6611_v19 = vadd.f32 %v6579_v50, %v6161_v48  ;;  %v6596_v48 = vld [vmem:[#allocation7 + $0x98] sm:$0xff] }
 0xa44   :  { %v6676_v63 = vadd.f32 %v6644_v46, %v6612_v8 }
 0xa45   :  { %v6675_v16 = vadd.f32 %v6643_v5, %v6611_v19  ;;  %v6595_v19 = vld [vmem:[#allocation7 + $0x90] sm:$0xff] }
 0xa46   :  { %v6708_v31 = vmax.f32 %v6676_v63, 0.0 }
 0xa47   :  { %v6707_v54 = vmax.f32 %v6675_v16, 0.0 }
 0xa48   :  { %6740 = vst [vmem:[#allocation7 + $0x18] sm:$0xff] %v6708_v31  ;;  %v6660_v31 = vld [vmem:[%s12796_s0 + $0x98] sm:$0xff] }
 0xa49   :  { %6739 = vst [vmem:[#allocation7 + $0x10] sm:$0xff] %v6707_v54  ;;  %v8304_v55 = vpop.f32.mrb[108].mxu0 }
 0xa4a   :  { %v6614_v39 = vadd.f32 %v8304_v55, %v6582_v27  ;;  %v6171_v26 = vpop.f32.mrb[109].mxu0  ;;  %v6659_v55 = vld [vmem:[%s12796_s0 + $0x90] sm:$0xff] }
 0xa4b   :  { %v6613_v25 = vadd.f32 %v6581_v51, %v6171_v26  ;;  %v6589_v26 = vld [vmem:[#allocation7 + $0x60] sm:$0xff] }
 0xa4c   :  { %v6678_v3 = vadd.f32 %v6646_v61, %v6614_v39  ;;  %v6590_v61 = vld [vmem:[#allocation7 + $0x68] sm:$0xff] }
 0xa4d   :  { %v6677_v22 = vadd.f32 %v6645_v9, %v6613_v25 }
 0xa4e   :  { %v6710_v1 = vmax.f32 %v6678_v3, 0.0  ;;  %v6654_v3 = vld [vmem:[%s12796_s0 + $0x68] sm:$0xff] }
 0xa4f   :  { %v6709_v42 = vmax.f32 %v6677_v22, 0.0 }
 0xa50   :  { %6742 = vst [vmem:[#allocation7 + $0x28] sm:$0xff] %v6710_v1 }
 0xa51   :  { %6741 = vst [vmem:[#allocation7 + $0x20] sm:$0xff] %v6709_v42  ;;  %v8307_v34 = vpop.f32.mrb[110].mxu0 }
 0xa52   :  { %v6616_v13 = vadd.f32 %v8307_v34, %v6584_v45  ;;  %v6181_v38 = vpop.f32.mrb[111].mxu0  ;;  %v6653_v45 = vld [vmem:[%s12796_s0 + $0x60] sm:$0xff] }
 0xa53   :  { %v6615_v60 = vadd.f32 %v6583_v4, %v6181_v38  ;;  %v6598_v38 = vld [vmem:[#allocation7 + $0xa8] sm:$0xff] }
 0xa54   :  { %v6680_v20 = vadd.f32 %v6648_v28, %v6616_v13 }
 0xa55   :  { %v6679_v62 = vadd.f32 %v6647_v12, %v6615_v60  ;;  %v6597_v60 = vld [vmem:[#allocation7 + $0xa0] sm:$0xff] }
 0xa56   :  { %v6712_v35 = vmax.f32 %v6680_v20, 0.0 }
 0xa57   :  { %v6711_v2 = vmax.f32 %v6679_v62, 0.0 }
 0xa58   :  { %6744 = vst [vmem:[#allocation7 + $0x38] sm:$0xff] %v6712_v35  ;;  %v6662_v35 = vld [vmem:[%s12796_s0 + $0xa8] sm:$0xff] }
 0xa59   :  { %6743 = vst [vmem:[#allocation7 + $0x30] sm:$0xff] %v6711_v2  ;;  %v8326_v37 = vpop.f32.mrb[88].mxu1 }
 0xa5a   :  { %v6618_v56 = vadd.f32 %v8326_v37, %v6586_v14  ;;  %v6280_v15 = vpop.f32.mrb[89].mxu1  ;;  %v6661_v37 = vld [vmem:[%s12796_s0 + $0xa0] sm:$0xff] }
 0xa5b   :  { %v6617_v30 = vadd.f32 %v6585_v0, %v6280_v15  ;;  %v6591_v15 = vld [vmem:[#allocation7 + $0x70] sm:$0xff] }
 0xa5c   :  { %v6682_v53 = vadd.f32 %v6650_v7, %v6618_v56  ;;  %v6592_v7 = vld [vmem:[#allocation7 + $0x78] sm:$0xff] }
 0xa5d   :  { %v6681_v32 = vadd.f32 %v6649_v59, %v6617_v30 }
 0xa5e   :  { %v6714_v52 = vmax.f32 %v6682_v53, 0.0  ;;  %v8354_v29 = vpop.f32.mrb[112].mxu0  ;;  %v6656_v53 = vld [vmem:[%s12796_s0 + $0x78] sm:$0xff] }
 0xa5f   :  { %v6713_v41 = vmax.f32 %v6681_v32, 0.0  ;;  %v6626_v44 = vadd.f32 %v8354_v29, %v6594_v24  ;;  %v6409_v47 = vpop.f32.mrb[113].mxu0 }
 0xa60   :  { %6746 = vst [vmem:[#allocation7 + $0x48] sm:$0xff] %v6714_v52  ;;  %v6625_v10 = vadd.f32 %v6593_v33, %v6409_v47  ;;  %v6655_v52 = vld [vmem:[%s12796_s0 + $0x70] sm:$0xff] }
 0xa61   :  { %6745 = vst [vmem:[#allocation7 + $0x40] sm:$0xff] %v6713_v41  ;;  %v6690_v23 = vadd.f32 %v6658_v49, %v6626_v44  ;;  %v8329_v18 = vpop.f32.mrb[90].mxu1  ;;  %v6600_v41 = vld [vmem:[#allocation7 + $0xb8] sm:$0xff] }
 0xa62   :  { %v6689_v57 = vadd.f32 %v6657_v36, %v6625_v10  ;;  %v6620_v58 = vadd.f32 %v8329_v18, %v6588_v11  ;;  %v6290_v40 = vpop.f32.mrb[91].mxu1  ;;  %v6599_v36 = vld [vmem:[#allocation7 + $0xb0] sm:$0xff] }
 0xa63   :  { %v6722_v50 = vmax.f32 %v6690_v23, 0.0  ;;  %v6619_v17 = vadd.f32 %v6587_v43, %v6290_v40  ;;  %v6664_v43 = vld [vmem:[%s12796_s0 + $0xb8] sm:$0xff] }
 0xa64   :  { %v6721_v46 = vmax.f32 %v6689_v57, 0.0  ;;  %v6684_v8 = vadd.f32 %v6652_v6, %v6620_v58  ;;  %v6663_v57 = vld [vmem:[%s12796_s0 + $0xb0] sm:$0xff] }
 0xa65   :  { %6754 = vst [vmem:[#allocation7 + $0x88] sm:$0xff] %v6722_v50  ;;  %v6683_v5 = vadd.f32 %v6651_v21, %v6619_v17  ;;  %v6602_v21 = vld [vmem:[#allocation7 + $0xc8] sm:$0xff]  ;;  %v6601_v17 = vld [vmem:[#allocation7 + $0xc0] sm:$0xff] }
 0xa66   :  { %6753 = vst [vmem:[#allocation7 + $0x80] sm:$0xff] %v6721_v46  ;;  %v6716_v63 = vmax.f32 %v6684_v8, 0.0  ;;  %v8357_v16 = vpop.f32.mrb[114].mxu0 }
 0xa67   :  { %v6715_v54 = vmax.f32 %v6683_v5, 0.0  ;;  %v6628_v27 = vadd.f32 %v8357_v16, %v6596_v48  ;;  %v6419_v51 = vpop.f32.mrb[115].mxu0  ;;  %v6666_v48 = vld [vmem:[%s12796_s0 + $0xc8] sm:$0xff]  ;;  %v6665_v16 = vld [vmem:[%s12796_s0 + $0xc0] sm:$0xff] }
 0xa68   :  { %6748 = vst [vmem:[#allocation7 + $0x58] sm:$0xff] %v6716_v63  ;;  %v6627_v39 = vadd.f32 %v6595_v19, %v6419_v51 }
 0xa69   :  { %6747 = vst [vmem:[#allocation7 + $0x50] sm:$0xff] %v6715_v54  ;;  %v6692_v9 = vadd.f32 %v6660_v31, %v6628_v27  ;;  %v8332_v25 = vpop.f32.mrb[92].mxu1 }
 0xa6a   :  { %v6691_v22 = vadd.f32 %v6659_v55, %v6627_v39  ;;  %v6622_v1 = vadd.f32 %v8332_v25, %v6590_v61  ;;  %v6300_v42 = vpop.f32.mrb[93].mxu1  ;;  %v6604_v39 = vld [vmem:[#allocation7 + $0xd8] sm:$0xff] }
 0xa6b   :  { %v6724_v4 = vmax.f32 %v6692_v9, 0.0  ;;  %v6621_v34 = vadd.f32 %v6589_v26, %v6300_v42  ;;  %v6603_v26 = vld [vmem:[#allocation7 + $0xd0] sm:$0xff]  ;;  %v6668_v25 = vld [vmem:[%s12796_s0 + $0xd8] sm:$0xff] }
 0xa6c   :  { %v6723_v28 = vmax.f32 %v6691_v22, 0.0  ;;  %v6686_v13 = vadd.f32 %v6654_v3, %v6622_v1  ;;  %v6667_v1 = vld [vmem:[%s12796_s0 + $0xd0] sm:$0xff] }
 0xa6d   :  { %6756 = vst [vmem:[#allocation7 + $0x98] sm:$0xff] %v6724_v4  ;;  %v6685_v12 = vadd.f32 %v6653_v45, %v6621_v34 }
 0xa6e   :  { %6755 = vst [vmem:[#allocation7 + $0x90] sm:$0xff] %v6723_v28  ;;  %v6718_v20 = vmax.f32 %v6686_v13, 0.0  ;;  %v8360_v62 = vpop.f32.mrb[116].mxu0  ;;  %v6606_v13 = vld [vmem:[#allocation7 + $0xe8] sm:$0xff] }
 0xa6f   :  { %v6717_v2 = vmax.f32 %v6685_v12, 0.0  ;;  %v6630_v14 = vadd.f32 %v8360_v62, %v6598_v38  ;;  %v6429_v0 = vpop.f32.mrb[117].mxu0  ;;  %v6605_v38 = vld [vmem:[#allocation7 + $0xe0] sm:$0xff] }
 0xa70   :  { %6750 = vst [vmem:[#allocation7 + $0x68] sm:$0xff] %v6718_v20  ;;  %v6629_v56 = vadd.f32 %v6597_v60, %v6429_v0  ;;  %v6670_v60 = vld [vmem:[%s12796_s0 + $0xe8] sm:$0xff] }
 0xa71   :  { %6749 = vst [vmem:[#allocation7 + $0x60] sm:$0xff] %v6717_v2  ;;  %v6694_v59 = vadd.f32 %v6662_v35, %v6630_v14  ;;  %v8335_v30 = vpop.f32.mrb[94].mxu1  ;;  %v6669_v35 = vld [vmem:[%s12796_s0 + $0xe0] sm:$0xff] }
 0xa72   :  { %v6693_v24 = vadd.f32 %v6661_v37, %v6629_v56  ;;  %v6624_v32 = vadd.f32 %v8335_v30, %v6592_v7  ;;  %v6310_v33 = vpop.f32.mrb[95].mxu1  ;;  %v6608_v7 = vld [vmem:[#allocation7 + $0xf8] sm:$0xff] }
 0xa73   :  { %v6726_v29 = vmax.f32 %v6694_v59, 0.0  ;;  %v6623_v49 = vadd.f32 %v6591_v15, %v6310_v33  ;;  %v6607_v15 = vld [vmem:[#allocation7 + $0xf0] sm:$0xff]  ;;  %v6672_v30 = vld [vmem:[%s12796_s0 + $0xf8] sm:$0xff] }
 0xa74   :  { %v6725_v44 = vmax.f32 %v6693_v24, 0.0  ;;  %v6688_v47 = vadd.f32 %v6656_v53, %v6624_v32  ;;  %v6671_v32 = vld [vmem:[%s12796_s0 + $0xf0] sm:$0xff] }
 0xa75   :  { %6758 = vst [vmem:[#allocation7 + $0xa8] sm:$0xff] %v6726_v29  ;;  %v6687_v11 = vadd.f32 %v6655_v52, %v6623_v49  ;;  %v8363_v10 = vpop.f32.mrb[118].mxu0 }
 0xa76   :  { %6757 = vst [vmem:[#allocation7 + $0xa0] sm:$0xff] %v6725_v44  ;;  %v6720_v23 = vmax.f32 %v6688_v47, 0.0  ;;  %v6632_v18 = vadd.f32 %v8363_v10, %v6600_v41  ;;  %v6439_v6 = vpop.f32.mrb[119].mxu0 }
 0xa77   :  { %v6719_v58 = vmax.f32 %v6687_v11, 0.0  ;;  %v6631_v40 = vadd.f32 %v6599_v36, %v6439_v6 }
 0xa78   :  { %6752 = vst [vmem:[#allocation7 + $0x78] sm:$0xff] %v6720_v23  ;;  %v6696_v50 = vadd.f32 %v6664_v43, %v6632_v18 }
 0xa79   :  { %6751 = vst [vmem:[#allocation7 + $0x70] sm:$0xff] %v6719_v58  ;;  %v6695_v46 = vadd.f32 %v6663_v57, %v6631_v40  ;;  %v8382_v8 = vpop.f32.mrb[96].mxu1 }
 0xa7a   :  { %v6728_v5 = vmax.f32 %v6696_v50, 0.0  ;;  %v6634_v19 = vadd.f32 %v8382_v8, %v6602_v21  ;;  %v6538_v63 = vpop.f32.mrb[97].mxu1 }
 0xa7b   :  { %v6727_v31 = vmax.f32 %v6695_v46, 0.0  ;;  %v6633_v54 = vadd.f32 %v6601_v17, %v6538_v63 }
 0xa7c   :  { %6760 = vst [vmem:[#allocation7 + $0xb8] sm:$0xff] %v6728_v5  ;;  %v6698_v27 = vadd.f32 %v6666_v48, %v6634_v19 }
 0xa7d   :  { %6759 = vst [vmem:[#allocation7 + $0xb0] sm:$0xff] %v6727_v31  ;;  %v6697_v51 = vadd.f32 %v6665_v16, %v6633_v54 }
 0xa7e   :  { %v6730_v55 = vmax.f32 %v6698_v27, 0.0 }
 0xa7f   :  { %v6729_v61 = vmax.f32 %v6697_v51, 0.0 }
 0xa80   :  { %6762 = vst [vmem:[#allocation7 + $0xc8] sm:$0xff] %v6730_v55 }
 0xa81   :  { %6761 = vst [vmem:[#allocation7 + $0xc0] sm:$0xff] %v6729_v61  ;;  %v8385_v9 = vpop.f32.mrb[98].mxu1 }
 0xa82   :  { %v6636_v3 = vadd.f32 %v8385_v9, %v6604_v39  ;;  %v6548_v22 = vpop.f32.mrb[99].mxu1 }
 0xa83   :  { %v6635_v42 = vadd.f32 %v6603_v26, %v6548_v22 }
 0xa84   :  { %v6700_v45 = vadd.f32 %v6668_v25, %v6636_v3 }
 0xa85   :  { %v6699_v4 = vadd.f32 %v6667_v1, %v6635_v42 }
 0xa86   :  { %v6732_v34 = vmax.f32 %v6700_v45, 0.0 }
 0xa87   :  { %v6731_v28 = vmax.f32 %v6699_v4, 0.0 }
 0xa88   :  { %6764 = vst [vmem:[#allocation7 + $0xd8] sm:$0xff] %v6732_v34 }
 0xa89   :  { %6763 = vst [vmem:[#allocation7 + $0xd0] sm:$0xff] %v6731_v28  ;;  %v8388_v12 = vpop.f32.mrb[100].mxu1 }
 0xa8a   :  { %v6638_v20 = vadd.f32 %v8388_v12, %v6606_v13  ;;  %v6558_v62 = vpop.f32.mrb[101].mxu1 }
 0xa8b   :  { %v6637_v2 = vadd.f32 %v6605_v38, %v6558_v62 }
 0xa8c   :  { %v6702_v14 = vadd.f32 %v6670_v60, %v6638_v20 }
 0xa8d   :  { %v6701_v0 = vadd.f32 %v6669_v35, %v6637_v2 }
 0xa8e   :  { %v6734_v37 = vmax.f32 %v6702_v14, 0.0 }
 0xa8f   :  { %v6733_v56 = vmax.f32 %v6701_v0, 0.0 }
 0xa90   :  { %6766 = vst [vmem:[#allocation7 + $0xe8] sm:$0xff] %v6734_v37  ;;  %v8391_v59 = vpop.f32.mrb[102].mxu1 }
 0xa91   :  { %6765 = vst [vmem:[#allocation7 + $0xe0] sm:$0xff] %v6733_v56  ;;  %v6640_v53 = vadd.f32 %v8391_v59, %v6608_v7  ;;  %v6568_v24 = vpop.f32.mrb[103].mxu1 }
 0xa92   :  { %v6639_v33 = vadd.f32 %v6607_v15, %v6568_v24 }
 0xa93   :  { %v6704_v52 = vadd.f32 %v6672_v30, %v6640_v53 }
 0xa94   :  { %v6703_v29 = vadd.f32 %v6671_v32, %v6639_v33 }
 0xa95   :  { %v6736_v49 = vmax.f32 %v6704_v52, 0.0 }
 0xa96   :  { %v6735_v41 = vmax.f32 %v6703_v29, 0.0 }
 0xa97   :  { %6768 = vst [vmem:[#allocation7 + $0xf8] sm:$0xff] %v6736_v49 }
 0xa98   :  { %6767 = vst [vmem:[#allocation7 + $0xf0] sm:$0xff] %v6735_v41 }
 0xa99   :  { %8758 = shalt.err (!%p8755_p4)
}
 0xa9a   :  { %s8759_s0 = scalar_lea.hbm %s12805_s9, 4096 }
 0xa9b   :  { %p8760_p5 = scmp.ne.s32.totalorder %s12805_s9, %s8759_s0  ;;  %p8763_p6 = scmp.lt.u32.totalorder %s8759_s0, %s12805_s9 }
 0xa9d   :  { %p8765_p7 = pnand %p8763_p6, %p8760_p5 }
 0xa9f   :  { %8768 = shalt.err (!%p8765_p7)
}
 0xaa0   :  { %s8778_s18 = smov 128   ;;  %s8779_s19 = smov 8  }
 0xaa1   :  { %6780 = dma.vmem_to_hbm [thread:$0]  %s6775_s11, 4096, %s12805_s9, [#allocation8], %s8778_s18, %s8778_s18, %s8779_s19  }
 0xaa2   :  { %8773 = dma.done.wait [#allocation8], 4096  }
 0xaa3   :  { %8774 = vsyncadd [#allocation8], 4294963200 }
 0xaa4   :  { %6784 = vsyncpa [#allocation8], 1 }
 0xaa5   :  { %6785 = vsyncmov [#allocation6] }
 0xaa8   :  { %s6786_s1 = vpop.sfrf %6785 }
 0xaa9   :  { %p6926_p8 = scmp.ne.s32.totalorder %s6786_s1, 0 }
 0xaab   :  { %6790 = shalt.err (%p6926_p8)  }
 0xaac   :  { %6792 = vsyncmov [#allocation6 + $0x1] }
 0xaaf   :  { %s6793_s22 = vpop.sfrf %6792 }
 0xab0   :  { %p6927_p9 = scmp.ne.s32.totalorder %s6793_s22, 0 }
 0xab2   :  { %6797 = shalt.err (%p6927_p9)  }

</bundles_post_ra>
